<compile_context>
chip_gen: v5e
topology: v5e:2x2
jax: 0.10.0
libtpu: 0.0.40
codegen_flags: <defaults>
</compile_context>

<pallas_src>
import jax
import jax.numpy as jnp
from jax.experimental import pallas as pl
from jax.experimental.pallas import tpu as pltpu

D_IN, H1, H2, D_OUT = 48000, 200, 100, 27


def _net_kernel(x_ref, w1_ref, w2_ref, w3_ref, b1_ref, b2_ref, b3_ref,
                o_ref, h_acc_ref):
    """Fused 3-layer MLP.

    Grid axis 0 iterates over K tiles of layer 1; the f32 hidden accumulator
    (B, 200) lives in VMEM scratch.  On the last K step we apply bias + ReLU
    and run the (tiny, VMEM-resident) layers 2 and 3, writing the final
    (B, 27) output.
    """
    k = pl.program_id(0)

    @pl.when(k == 0)
    def _():
        h_acc_ref[...] = jnp.zeros_like(h_acc_ref)

    h_acc_ref[...] += jnp.dot(
        x_ref[...], w1_ref[...], preferred_element_type=jnp.float32
    )

    @pl.when(k == pl.num_programs(0) - 1)
    def _():
        h1 = jnp.maximum(h_acc_ref[...] + b1_ref[...], 0.0)
        h2 = jnp.maximum(
            jnp.dot(h1, w2_ref[...], preferred_element_type=jnp.float32)
            + b2_ref[...],
            0.0,
        )
        y = (
            jnp.dot(h2, w3_ref[...], preferred_element_type=jnp.float32)
            + b3_ref[...]
        )
        o_ref[...] = y.astype(o_ref.dtype)


def net_forward_pallas(x, params, *, tk=9600):
    """y = layer3(relu(layer2(relu(layer1(x))))) as ONE fused pallas_call."""
    (w1, b1), (w2, b2), (w3, b3) = params
    B, K = x.shape
    assert w1.shape == (D_IN, H1) and K == D_IN
    assert K % tk == 0, "K must be divisible by the K-tile size"
    assert tk % 128 == 0, "K tile must be a multiple of 128 (lane width)"

    b1_2d = b1.reshape(1, H1)
    b2_2d = b2.reshape(1, H2)
    b3_2d = b3.reshape(1, D_OUT)

    return pl.pallas_call(
        _net_kernel,
        out_shape=jax.ShapeDtypeStruct((B, D_OUT), x.dtype),
        grid_spec=pltpu.PrefetchScalarGridSpec(
            num_scalar_prefetch=0,
            grid=(K // tk,),
            in_specs=[
                pl.BlockSpec((B, tk), lambda k: (0, k)),      # x K-tile
                pl.BlockSpec((tk, H1), lambda k: (k, 0)),     # W1 K-tile
                pl.BlockSpec((H1, H2), lambda k: (0, 0)),     # W2 (resident)
                pl.BlockSpec((H2, D_OUT), lambda k: (0, 0)),  # W3 (resident)
                pl.BlockSpec((1, H1), lambda k: (0, 0)),      # b1 (resident)
                pl.BlockSpec((1, H2), lambda k: (0, 0)),      # b2 (resident)
                pl.BlockSpec((1, D_OUT), lambda k: (0, 0)),   # b3 (resident)
            ],
            out_specs=pl.BlockSpec((B, D_OUT), lambda k: (0, 0)),
            scratch_shapes=[pltpu.VMEM((B, H1), jnp.float32)],
        ),
        compiler_params=pltpu.CompilerParams(
            dimension_semantics=("arbitrary",),  # K is a reduction axis
        ),
    )(x, w1, w2, w3, b1_2d, b2_2d, b3_2d)


def init_params(key):
    """Deterministic parameter init mirroring the PyTorch module's shapes."""
    dims = [(D_IN, H1), (H1, H2), (H2, D_OUT)]
    params = []
    for i, (k_in, n_out) in enumerate(dims):
        kw, kb = jax.random.split(jax.random.fold_in(key, i))
        bound = 1.0 / jnp.sqrt(k_in)
        # Stored as (K, N): transpose of PyTorch's (out, in) weight.
        w = jax.random.uniform(kw, (k_in, n_out), jnp.float32, -bound, bound)
        b = jax.random.uniform(kb, (n_out,), jnp.float32, -bound, bound)
        params.append((w, b))
    return params


@jax.jit
def net_forward(x, params):
    return net_forward_pallas(x, params)


def reference_forward(x, params):
    (w1, b1), (w2, b2), (w3, b3) = params
    h = jnp.maximum(x @ w1 + b1, 0.0)
    h = jnp.maximum(h @ w2 + b2, 0.0)
    return h @ w3 + b3


if __name__ == "__main__":
    key = jax.random.PRNGKey(0)
    kx, kp = jax.random.split(key)

    batch = 2
    x = jax.random.normal(kx, (batch, D_IN), jnp.float32)
    params = init_params(kp)

    y = net_forward(x, params)
    jax.block_until_ready(y)

    y_ref = reference_forward(x, params)
    assert y.shape == (batch, D_OUT), y.shape
    assert jnp.allclose(y, y_ref, atol=1e-3, rtol=1e-3), "mismatch vs reference"

    print("KERNEL_OK")
</pallas_src>

<mosaic_0001>
module attributes {stable_mosaic.version = 11 : i64} {
  func.func @_net_kernel(%arg0: i32, %arg1: memref<2x9600xf32, #tpu.memory_space<vmem>>, %arg2: memref<9600x200xf32, #tpu.memory_space<vmem>>, %arg3: memref<200x100xf32, #tpu.memory_space<vmem>>, %arg4: memref<100x27xf32, #tpu.memory_space<vmem>>, %arg5: memref<1x200xf32, #tpu.memory_space<vmem>>, %arg6: memref<1x100xf32, #tpu.memory_space<vmem>>, %arg7: memref<1x27xf32, #tpu.memory_space<vmem>>, %arg8: memref<2x27xf32, #tpu.memory_space<vmem>>, %arg9: memref<2x200xf32, #tpu.memory_space<vmem>>) attributes {dimension_semantics = [#tpu.dimension_semantics<arbitrary>], iteration_bounds = array<i64: 5>, scalar_prefetch = 0 : i64, scratch_operands = 1 : i64, tpu.core_type = #tpu.core_type<tc>, window_params = [{transform_indices = @transform_0, window_bounds = array<i64: 2, 9600>}, {transform_indices = @transform_1, window_bounds = array<i64: 9600, 200>}, {pipeline_mode = #tpu.pipeline_mode<synchronous>, transform_indices = @transform_2, window_bounds = array<i64: 200, 100>}, {pipeline_mode = #tpu.pipeline_mode<synchronous>, transform_indices = @transform_3, window_bounds = array<i64: 100, 27>}, {pipeline_mode = #tpu.pipeline_mode<synchronous>, transform_indices = @transform_4, window_bounds = array<i64: 1, 200>}, {pipeline_mode = #tpu.pipeline_mode<synchronous>, transform_indices = @transform_5, window_bounds = array<i64: 1, 100>}, {pipeline_mode = #tpu.pipeline_mode<synchronous>, transform_indices = @transform_6, window_bounds = array<i64: 1, 27>}, {pipeline_mode = #tpu.pipeline_mode<synchronous>, transform_indices = @transform_7, window_bounds = array<i64: 2, 27>}]} {
    %c0_i32 = arith.constant 0 : i32
    %0 = arith.cmpi eq, %arg0, %c0_i32 : i32
    %1 = arith.extui %0 : i1 to i32
    %c0_i32_0 = arith.constant 0 : i32
    %2 = arith.cmpi ne, %1, %c0_i32_0 : i32
    scf.if %2 {
      %cst_9 = arith.constant 0.000000e+00 : f32
      %12 = vector.broadcast %cst_9 : f32 to vector<2x200xf32>
      %c0_10 = arith.constant 0 : index
      %c0_11 = arith.constant 0 : index
      %13 = vector.load %arg9[%c0_10, %c0_11] : memref<2x200xf32, #tpu.memory_space<vmem>>, vector<2x200xf32>
      tpu.vector_store %arg9[%c0_10, %c0_11], %12 {strides = array<i32>} : memref<2x200xf32, #tpu.memory_space<vmem>>, vector<2x200xf32>,
    } else {
    }
    %c0 = arith.constant 0 : index
    %c0_1 = arith.constant 0 : index
    %3 = vector.load %arg9[%c0, %c0_1] : memref<2x200xf32, #tpu.memory_space<vmem>>, vector<2x200xf32>
    %c0_2 = arith.constant 0 : index
    %c0_3 = arith.constant 0 : index
    %4 = vector.load %arg1[%c0_2, %c0_3] : memref<2x9600xf32, #tpu.memory_space<vmem>>, vector<2x9600xf32>
    %c0_4 = arith.constant 0 : index
    %c0_5 = arith.constant 0 : index
    %5 = vector.load %arg2[%c0_4, %c0_5] : memref<9600x200xf32, #tpu.memory_space<vmem>>, vector<9600x200xf32>
    %cst = arith.constant dense<0.000000e+00> : vector<2x200xf32>
    %6 = tpu.matmul %4, %5, %cst {dimension_numbers = #tpu.dot_dimension_numbers<[1], [0], [0], [1], [0, 0, 1, 1], [], []>} : vector<2x9600xf32>, vector<9600x200xf32>, vector<2x200xf32> -> vector<2x200xf32>
    %7 = arith.addf %3, %6 : vector<2x200xf32>
    %c0_6 = arith.constant 0 : index
    %c0_7 = arith.constant 0 : index
    %8 = vector.load %arg9[%c0_6, %c0_7] : memref<2x200xf32, #tpu.memory_space<vmem>>, vector<2x200xf32>
    tpu.vector_store %arg9[%c0_6, %c0_7], %7 {strides = array<i32>} : memref<2x200xf32, #tpu.memory_space<vmem>>, vector<2x200xf32>,
    %c4_i32 = arith.constant 4 : i32
    %9 = arith.cmpi eq, %arg0, %c4_i32 : i32
    %10 = arith.extui %9 : i1 to i32
    %c0_i32_8 = arith.constant 0 : i32
    %11 = arith.cmpi ne, %10, %c0_i32_8 : i32
    scf.if %11 {
      %c0_9 = arith.constant 0 : index
      %c0_10 = arith.constant 0 : index
      %12 = vector.load %arg9[%c0_9, %c0_10] : memref<2x200xf32, #tpu.memory_space<vmem>>, vector<2x200xf32>
      %c0_11 = arith.constant 0 : index
      %c0_12 = arith.constant 0 : index
      %13 = vector.load %arg5[%c0_11, %c0_12] : memref<1x200xf32, #tpu.memory_space<vmem>>, vector<1x200xf32>
      %14 = vector.broadcast %13 : vector<1x200xf32> to vector<2x200xf32>
      %15 = arith.addf %12, %14 : vector<2x200xf32>
      %cst_13 = arith.constant 0.000000e+00 : f32
      %16 = vector.broadcast %cst_13 : f32 to vector<2x200xf32>
      %17 = arith.maximumf %15, %16 : vector<2x200xf32>
      %c0_14 = arith.constant 0 : index
      %c0_15 = arith.constant 0 : index
      %18 = vector.load %arg3[%c0_14, %c0_15] : memref<200x100xf32, #tpu.memory_space<vmem>>, vector<200x100xf32>
      %cst_16 = arith.constant dense<0.000000e+00> : vector<2x100xf32>
      %19 = tpu.matmul %17, %18, %cst_16 {dimension_numbers = #tpu.dot_dimension_numbers<[1], [0], [0], [1], [0, 0, 1, 1], [], []>} : vector<2x200xf32>, vector<200x100xf32>, vector<2x100xf32> -> vector<2x100xf32>
      %c0_17 = arith.constant 0 : index
      %c0_18 = arith.constant 0 : index
      %20 = vector.load %arg6[%c0_17, %c0_18] : memref<1x100xf32, #tpu.memory_space<vmem>>, vector<1x100xf32>
      %21 = vector.broadcast %20 : vector<1x100xf32> to vector<2x100xf32>
      %22 = arith.addf %19, %21 : vector<2x100xf32>
      %cst_19 = arith.constant 0.000000e+00 : f32
      %23 = vector.broadcast %cst_19 : f32 to vector<2x100xf32>
      %24 = arith.maximumf %22, %23 : vector<2x100xf32>
      %c0_20 = arith.constant 0 : index
      %c0_21 = arith.constant 0 : index
      %25 = vector.load %arg4[%c0_20, %c0_21] : memref<100x27xf32, #tpu.memory_space<vmem>>, vector<100x27xf32>
      %cst_22 = arith.constant dense<0.000000e+00> : vector<2x27xf32>
      %26 = tpu.matmul %24, %25, %cst_22 {dimension_numbers = #tpu.dot_dimension_numbers<[1], [0], [0], [1], [0, 0, 1, 1], [], []>} : vector<2x100xf32>, vector<100x27xf32>, vector<2x27xf32> -> vector<2x27xf32>
      %c0_23 = arith.constant 0 : index
      %c0_24 = arith.constant 0 : index
      %27 = vector.load %arg7[%c0_23, %c0_24] : memref<1x27xf32, #tpu.memory_space<vmem>>, vector<1x27xf32>
      %28 = vector.broadcast %27 : vector<1x27xf32> to vector<2x27xf32>
      %29 = arith.addf %26, %28 : vector<2x27xf32>
      %c0_25 = arith.constant 0 : index
      %c0_26 = arith.constant 0 : index
      %30 = vector.load %arg8[%c0_25, %c0_26] : memref<2x27xf32, #tpu.memory_space<vmem>>, vector<2x27xf32>
      tpu.vector_store %arg8[%c0_25, %c0_26], %29 {strides = array<i32>} : memref<2x27xf32, #tpu.memory_space<vmem>>, vector<2x27xf32>,
    } else {
    }
    return
  }
  func.func @transform_0(%arg0: i32) -> (i32, i32) {
    %c0_i32 = arith.constant 0 : i32
    %c0_i32_0 = arith.constant 0 : i32
    return %c0_i32, %arg0 : i32, i32
  }
  func.func @transform_1(%arg0: i32) -> (i32, i32) {
    %c0_i32 = arith.constant 0 : i32
    %c0_i32_0 = arith.constant 0 : i32
    return %arg0, %c0_i32 : i32, i32
  }
  func.func @transform_2(%arg0: i32) -> (i32, i32) {
    %c0_i32 = arith.constant 0 : i32
    %c0_i32_0 = arith.constant 0 : i32
    %c0_i32_1 = arith.constant 0 : i32
    return %c0_i32, %c0_i32_0 : i32, i32
  }
  func.func @transform_3(%arg0: i32) -> (i32, i32) {
    %c0_i32 = arith.constant 0 : i32
    %c0_i32_0 = arith.constant 0 : i32
    %c0_i32_1 = arith.constant 0 : i32
    return %c0_i32, %c0_i32_0 : i32, i32
  }
  func.func @transform_4(%arg0: i32) -> (i32, i32) {
    %c0_i32 = arith.constant 0 : i32
    %c0_i32_0 = arith.constant 0 : i32
    %c0_i32_1 = arith.constant 0 : i32
    return %c0_i32, %c0_i32_0 : i32, i32
  }
  func.func @transform_5(%arg0: i32) -> (i32, i32) {
    %c0_i32 = arith.constant 0 : i32
    %c0_i32_0 = arith.constant 0 : i32
    %c0_i32_1 = arith.constant 0 : i32
    return %c0_i32, %c0_i32_0 : i32, i32
  }
  func.func @transform_6(%arg0: i32) -> (i32, i32) {
    %c0_i32 = arith.constant 0 : i32
    %c0_i32_0 = arith.constant 0 : i32
    %c0_i32_1 = arith.constant 0 : i32
    return %c0_i32, %c0_i32_0 : i32, i32
  }
  func.func @transform_7(%arg0: i32) -> (i32, i32) {
    %c0_i32 = arith.constant 0 : i32
    %c0_i32_0 = arith.constant 0 : i32
    %c0_i32_1 = arith.constant 0 : i32
    return %c0_i32, %c0_i32_0 : i32, i32
  }
}

</mosaic_0001>

<bundles_post_ra>
// kernel: net_forward.1
= control target key start
LH: loop header
LB: loop body
LE: loop exit
PB: predicated region body
PF: predicated region fallthrough
CT: control target
= control target key end

     0   :  { %12 = vsyncpa [#allocation4], 0  ;;  %s6242_s24 = smov 0   ;;  %s9108_s0 = inlined_call_operand.vmem [shape: f32[2,48000], index: 0, kind: input, shape index: {}]   ;;  %s9109_s1 = inlined_call_operand.vmem [shape: f32[48000,200], index: 1, kind: input, shape index: {}]   ;;  %s9110_s2 = inlined_call_operand.vmem [shape: f32[200,100], index: 2, kind: input, shape index: {}]   ;;  %s9111_s3 = inlined_call_operand.vmem [shape: f32[100,27], index: 3, kind: input, shape index: {}]   ;;  %s9112_s4 = inlined_call_operand.vmem [shape: f32[1,200], index: 4, kind: input, shape index: {}]   ;;  %s9113_s5 = inlined_call_operand.vmem [shape: f32[1,100], index: 5, kind: input, shape index: {}]   ;;  %s9114_s6 = inlined_call_operand.vmem [shape: f32[1,27], index: 6, kind: input, shape index: {}]   ;;  %s9115_s7 = inlined_call_operand.hbm [shape: f32[2,27], index: 7, kind: output, shape index: {}]  }
   0x1 LB: > { %s6248_s25 = sadd.s32 4294967295, %s6198_s24   ;;  %p6121_p0 = scmp.ge.s32.totalorder %s6198_s24, 1  ;;  %s6198_s24 = sphi %s6242_s24, %s18_s24  }
   0x2   : > { %p246_p1 = scmp.lt.s32.totalorder %s6198_s24, 6 }
   0x4   : > { %p247_p2 = pnand %p6121_p0, %p246_p1 }
   0x6   : > { %250 = sbr.rel (%p247_p2) target bundleno = 1753 (0x6d9), region = 48 }
   0xb   : > { %s279_s26 = smul.u32 75, %s6248_s25  ;;  %p6125_p5 = scmp.ne.s32.totalorder %s6248_s25, 0 }
   0xc   : > { %s285_s27 = smul.u32 1200, %s6248_s25 }
   0xd   : > { %p280_p3 = scmp.lt.s32.totalorder %s279_s26, 374 }
   0xe   : > { %p286_p4 = scmp.lt.s32.totalorder %s285_s27, 5999  ;;  %295 = sbr.rel (%p6125_p5) target bundleno = 22 (0x16), region = 52 }
   0xf   : > { %s9183_s26 = smov (!%p280_p3, %s279_s26), 374 }
  0x10   : > { %s9185_s27 = smov (!%p286_p4, %s285_s27), 5999  ;;  %s6122_s28 = sshll.u32 %s9183_s26, 1 }
  0x11   : > { %s6257_s8 = scalar_lea.vmem %s9108_s0, %s6122_s28  ;;  %s6134_s9 = sshll.u32 %s9185_s27, 4 }
  0x12   : > { %s6262_s12 = scalar_lea.vmem %s9109_s1, %s6134_s9 }
  0x13   : > { %vm296_vm0 = vcmask 1041408   ;;  %vm297_vm1 = vcmask 584706   ;;  %v6200_v0 = vmov 0.0  }
  0x14   : > { %vm298_vm2 = vmor %vm297_vm1, %vm296_vm0 }
  0x15   : > { %299 = vst.msk [vmem:[#allocation2] sm:$0xf] %vm298_vm2, %v6200_v0 }
  0x16 PF: > { %v350_v1 = vld [vmem:[%s6262_s12 + $0xf0] sm:$0xff]  ;;  %v348_v3 = vld [vmem:[%s6262_s12 + $0xe0] sm:$0xff]  ;;  %vm5912_vm3 = vcmask 1041408   ;;  %vm5916_vm4 = vcmask 584706   ;;  %p6126_p6 = scmp.ne.s32.totalorder %s6248_s25, 4 }
  0x17   : > { %v414_v2 = vld [vmem:[%s6262_s12 + $0x2f0] sm:$0xff]  ;;  %2909 = vmatpush.msra.mxu0 %v350_v1  ;;  %v412_v5 = vld [vmem:[%s6262_s12 + $0x2e0] sm:$0xff]  ;;  %vm5917_vm5 = vmor %vm5916_vm4, %vm5912_vm3 }
  0x18   : > { %2949 = vmatpush.msra.mxu2 %v414_v2  ;;  %v382_v4 = vld [vmem:[%s6262_s12 + $0x1f0] sm:$0xff]  ;;  %v380_v8 = vld [vmem:[%s6262_s12 + $0x1e0] sm:$0xff] }
  0x19   : > { %v446_v6 = vld [vmem:[%s6262_s12 + $0x3f0] sm:$0xff]  ;;  %2929 = vmatpush.msra.mxu1 %v382_v4  ;;  %2910 = vmatpush.msra.mxu0 %v348_v3  ;;  %v444_v10 = vld [vmem:[%s6262_s12 + $0x3e0] sm:$0xff] }
  0x1a   : > { %2969 = vmatpush.msra.mxu3 %v446_v6  ;;  %v346_v7 = vld [vmem:[%s6262_s12 + $0xd0] sm:$0xff]  ;;  %2950 = vmatpush.msra.mxu2 %v412_v5  ;;  %v344_v12 = vld [vmem:[%s6262_s12 + $0xc0] sm:$0xff] }
  0x1b   : > { %v410_v9 = vld [vmem:[%s6262_s12 + $0x2d0] sm:$0xff]  ;;  %2930 = vmatpush.msra.mxu1 %v380_v8  ;;  %v408_v13 = vld [vmem:[%s6262_s12 + $0x2c0] sm:$0xff]  ;;  %2911 = vmatpush.msra.mxu0 %v346_v7 }
  0x1c   : > { %v378_v11 = vld [vmem:[%s6262_s12 + $0x1d0] sm:$0xff]  ;;  %2970 = vmatpush.msra.mxu3 %v444_v10  ;;  %2951 = vmatpush.msra.mxu2 %v410_v9  ;;  %v376_v15 = vld [vmem:[%s6262_s12 + $0x1c0] sm:$0xff] }
  0x1d   : > { %v442_v14 = vld [vmem:[%s6262_s12 + $0x3d0] sm:$0xff]  ;;  %v440_v16 = vld [vmem:[%s6262_s12 + $0x3c0] sm:$0xff]  ;;  %2931 = vmatpush.msra.mxu1 %v378_v11  ;;  %2912 = vmatpush.msra.mxu0 %v344_v12 }
  0x1e   : > { %2971 = vmatpush.msra.mxu3 %v442_v14  ;;  %v342_v17 = vld [vmem:[%s6262_s12 + $0xb0] sm:$0xff]  ;;  %2952 = vmatpush.msra.mxu2 %v408_v13  ;;  %v340_v21 = vld [vmem:[%s6262_s12 + $0xa0] sm:$0xff] }
  0x1f   : > { %v406_v18 = vld [vmem:[%s6262_s12 + $0x2b0] sm:$0xff]  ;;  %2932 = vmatpush.msra.mxu1 %v376_v15  ;;  %v404_v22 = vld [vmem:[%s6262_s12 + $0x2a0] sm:$0xff]  ;;  %2913 = vmatpush.msra.mxu0 %v342_v17 }
  0x20   : > { %v374_v19 = vld [vmem:[%s6262_s12 + $0x1b0] sm:$0xff]  ;;  %2972 = vmatpush.msra.mxu3 %v440_v16  ;;  %2953 = vmatpush.msra.mxu2 %v406_v18  ;;  %v372_v23 = vld [vmem:[%s6262_s12 + $0x1a0] sm:$0xff] }
  0x21   : > { %v438_v20 = vld [vmem:[%s6262_s12 + $0x3b0] sm:$0xff]  ;;  %v436_v24 = vld [vmem:[%s6262_s12 + $0x3a0] sm:$0xff]  ;;  %2933 = vmatpush.msra.mxu1 %v374_v19  ;;  %2914 = vmatpush.msra.mxu0 %v340_v21 }
  0x22   : > { %2973 = vmatpush.msra.mxu3 %v438_v20  ;;  %v338_v25 = vld [vmem:[%s6262_s12 + $0x90] sm:$0xff]  ;;  %2954 = vmatpush.msra.mxu2 %v404_v22  ;;  %v336_v29 = vld [vmem:[%s6262_s12 + $0x80] sm:$0xff] }
  0x23   : > { %v402_v26 = vld [vmem:[%s6262_s12 + $0x290] sm:$0xff]  ;;  %2934 = vmatpush.msra.mxu1 %v372_v23  ;;  %v400_v30 = vld [vmem:[%s6262_s12 + $0x280] sm:$0xff]  ;;  %2915 = vmatpush.msra.mxu0 %v338_v25 }
  0x24   : > { %v370_v27 = vld [vmem:[%s6262_s12 + $0x190] sm:$0xff]  ;;  %2974 = vmatpush.msra.mxu3 %v436_v24  ;;  %2955 = vmatpush.msra.mxu2 %v402_v26  ;;  %v368_v31 = vld [vmem:[%s6262_s12 + $0x180] sm:$0xff] }
  0x25   : > { %v434_v28 = vld [vmem:[%s6262_s12 + $0x390] sm:$0xff]  ;;  %v432_v32 = vld [vmem:[%s6262_s12 + $0x380] sm:$0xff]  ;;  %2935 = vmatpush.msra.mxu1 %v370_v27  ;;  %2916 = vmatpush.msra.mxu0 %v336_v29 }
  0x26   : > { %2975 = vmatpush.msra.mxu3 %v434_v28  ;;  %v334_v33 = vld [vmem:[%s6262_s12 + $0x70] sm:$0xff]  ;;  %2956 = vmatpush.msra.mxu2 %v400_v30  ;;  %v332_v37 = vld [vmem:[%s6262_s12 + $0x60] sm:$0xff] }
  0x27   : > { %v398_v34 = vld [vmem:[%s6262_s12 + $0x270] sm:$0xff]  ;;  %2936 = vmatpush.msra.mxu1 %v368_v31  ;;  %v396_v38 = vld [vmem:[%s6262_s12 + $0x260] sm:$0xff]  ;;  %2917 = vmatpush.msra.mxu0 %v334_v33 }
  0x28   : > { %v366_v35 = vld [vmem:[%s6262_s12 + $0x170] sm:$0xff]  ;;  %2976 = vmatpush.msra.mxu3 %v432_v32  ;;  %2957 = vmatpush.msra.mxu2 %v398_v34  ;;  %v364_v39 = vld [vmem:[%s6262_s12 + $0x160] sm:$0xff]  ;;  %v302_v34 = vld [vmem:[%s6257_s8 + $0x8] sm:$0xff] }
  0x29   : > { %v430_v36 = vld [vmem:[%s6262_s12 + $0x370] sm:$0xff]  ;;  %v428_v40 = vld [vmem:[%s6262_s12 + $0x360] sm:$0xff]  ;;  %2937 = vmatpush.msra.mxu1 %v366_v35  ;;  %2918 = vmatpush.msra.mxu0 %v332_v37  ;;  %2741 = vst [vmem:[#allocation1 + $0x20] ss:$4 sm:$0xff] %v302_v34 }
  0x2a   : > { %2977 = vmatpush.msra.mxu3 %v430_v36  ;;  %v330_v41 = vld [vmem:[%s6262_s12 + $0x50] sm:$0xff]  ;;  %2958 = vmatpush.msra.mxu2 %v396_v38  ;;  %v328_v45 = vld [vmem:[%s6262_s12 + $0x40] sm:$0xff] }
  0x2b   : > { %v394_v42 = vld [vmem:[%s6262_s12 + $0x250] sm:$0xff]  ;;  %2938 = vmatpush.msra.mxu1 %v364_v39  ;;  %v392_v46 = vld [vmem:[%s6262_s12 + $0x240] sm:$0xff]  ;;  %2919 = vmatpush.msra.mxu0 %v330_v41 }
  0x2c   : > { %v362_v43 = vld [vmem:[%s6262_s12 + $0x150] sm:$0xff]  ;;  %2978 = vmatpush.msra.mxu3 %v428_v40  ;;  %2959 = vmatpush.msra.mxu2 %v394_v42  ;;  %v360_v47 = vld [vmem:[%s6262_s12 + $0x140] sm:$0xff] }
  0x2d   : > { %v426_v44 = vld [vmem:[%s6262_s12 + $0x350] sm:$0xff]  ;;  %v424_v48 = vld [vmem:[%s6262_s12 + $0x340] sm:$0xff]  ;;  %2939 = vmatpush.msra.mxu1 %v362_v43  ;;  %2920 = vmatpush.msra.mxu0 %v328_v45 }
  0x2e   : > { %2979 = vmatpush.msra.mxu3 %v426_v44  ;;  %v326_v49 = vld [vmem:[%s6262_s12 + $0x30] sm:$0xff]  ;;  %2960 = vmatpush.msra.mxu2 %v392_v46  ;;  %v324_v53 = vld [vmem:[%s6262_s12 + $0x20] sm:$0xff] }
  0x2f   : > { %v390_v50 = vld [vmem:[%s6262_s12 + $0x230] sm:$0xff]  ;;  %2940 = vmatpush.msra.mxu1 %v360_v47  ;;  %v388_v54 = vld [vmem:[%s6262_s12 + $0x220] sm:$0xff]  ;;  %2921 = vmatpush.msra.mxu0 %v326_v49 }
  0x30   : > { %v358_v51 = vld [vmem:[%s6262_s12 + $0x130] sm:$0xff]  ;;  %2980 = vmatpush.msra.mxu3 %v424_v48  ;;  %2961 = vmatpush.msra.mxu2 %v390_v50  ;;  %v356_v55 = vld [vmem:[%s6262_s12 + $0x120] sm:$0xff] }
  0x31   : > { %v422_v52 = vld [vmem:[%s6262_s12 + $0x330] sm:$0xff]  ;;  %v420_v56 = vld [vmem:[%s6262_s12 + $0x320] sm:$0xff]  ;;  %2941 = vmatpush.msra.mxu1 %v358_v51  ;;  %2922 = vmatpush.msra.mxu0 %v324_v53  ;;  %v304_v53 = vld [vmem:[%s6257_s8 + $0x18] sm:$0xff] }
  0x32   : > { %2981 = vmatpush.msra.mxu3 %v422_v52  ;;  %v322_v57 = vld [vmem:[%s6262_s12 + $0x10] sm:$0xff]  ;;  %2962 = vmatpush.msra.mxu2 %v388_v54  ;;  %v320_v61 = vld [vmem:[%s6262_s12] sm:$0xff] }
  0x33   : > { %v386_v58 = vld [vmem:[%s6262_s12 + $0x210] sm:$0xff]  ;;  %2942 = vmatpush.msra.mxu1 %v356_v55  ;;  %v384_v62 = vld [vmem:[%s6262_s12 + $0x200] sm:$0xff]  ;;  %2923 = vmatpush.msra.mxu0 %v322_v57  ;;  %v6388_v57 = vld.sshfl [vmem:[#allocation1 + $0x28] sm:$0xff pattern:$0x73625140] }
  0x34   : > { %v354_v59 = vld [vmem:[%s6262_s12 + $0x110] sm:$0xff]  ;;  %2982 = vmatpush.msra.mxu3 %v420_v56  ;;  %2963 = vmatpush.msra.mxu2 %v386_v58  ;;  %v352_v1 = vld [vmem:[%s6262_s12 + $0x100] sm:$0xff]  ;;  %v6386_v56 = vld.sshfl [vmem:[#allocation1 + $0x38] sm:$0xff pattern:$0x73625140] }
  0x35   : > { %v418_v60 = vld [vmem:[%s6262_s12 + $0x310] sm:$0xff]  ;;  %2943 = vmatpush.msra.mxu1 %v354_v59  ;;  %v416_v2 = vld [vmem:[%s6262_s12 + $0x300] sm:$0xff]  ;;  %2924 = vmatpush.msra.mxu0 %v320_v61 }
  0x36   : > { %v478_v63 = vld [vmem:[%s6262_s12 + $0x4f0] sm:$0xff]  ;;  %2983 = vmatpush.msra.mxu3 %v418_v60  ;;  %2964 = vmatpush.msra.mxu2 %v384_v62  ;;  %v476_v3 = vld [vmem:[%s6262_s12 + $0x4e0] sm:$0xff] }
  0x37   : > { %v542_v0 = vld [vmem:[%s6262_s12 + $0x6f0] sm:$0xff]  ;;  %2989 = vmatpush.msrb.mxu0 %v478_v63  ;;  %v540_v5 = vld [vmem:[%s6262_s12 + $0x6e0] sm:$0xff]  ;;  %2944 = vmatpush.msra.mxu1 %v352_v1 }
  0x38   : > { %v510_v4 = vld [vmem:[%s6262_s12 + $0x5f0] sm:$0xff]  ;;  %3029 = vmatpush.msrb.mxu2 %v542_v0  ;;  %2984 = vmatpush.msra.mxu3 %v416_v2  ;;  %v508_v8 = vld [vmem:[%s6262_s12 + $0x5e0] sm:$0xff] }
  0x39   : > { %v574_v6 = vld [vmem:[%s6262_s12 + $0x7f0] sm:$0xff]  ;;  %2990 = vmatpush.msrb.mxu0 %v476_v3  ;;  %3009 = vmatpush.msrb.mxu1 %v510_v4  ;;  %v572_v10 = vld [vmem:[%s6262_s12 + $0x7e0] sm:$0xff] }
  0x3a   : > { %v474_v7 = vld [vmem:[%s6262_s12 + $0x4d0] sm:$0xff]  ;;  %3030 = vmatpush.msrb.mxu2 %v540_v5  ;;  %3049 = vmatpush.msrb.mxu3 %v574_v6  ;;  %v472_v11 = vld [vmem:[%s6262_s12 + $0x4c0] sm:$0xff] }
  0x3b   : > { %v538_v9 = vld [vmem:[%s6262_s12 + $0x6d0] sm:$0xff]  ;;  %2991 = vmatpush.msrb.mxu0 %v474_v7  ;;  %3010 = vmatpush.msrb.mxu1 %v508_v8  ;;  %v536_v13 = vld [vmem:[%s6262_s12 + $0x6c0] sm:$0xff] }
  0x3c   : > { %v506_v12 = vld [vmem:[%s6262_s12 + $0x5d0] sm:$0xff]  ;;  %3031 = vmatpush.msrb.mxu2 %v538_v9  ;;  %3050 = vmatpush.msrb.mxu3 %v572_v10  ;;  %v504_v16 = vld [vmem:[%s6262_s12 + $0x5c0] sm:$0xff] }
  0x3d   : > { %v570_v14 = vld [vmem:[%s6262_s12 + $0x7d0] sm:$0xff]  ;;  %2992 = vmatpush.msrb.mxu0 %v472_v11  ;;  %3011 = vmatpush.msrb.mxu1 %v506_v12  ;;  %v568_v18 = vld [vmem:[%s6262_s12 + $0x7c0] sm:$0xff] }
  0x3e   : > { %v470_v15 = vld [vmem:[%s6262_s12 + $0x4b0] sm:$0xff]  ;;  %3032 = vmatpush.msrb.mxu2 %v536_v13  ;;  %3051 = vmatpush.msrb.mxu3 %v570_v14  ;;  %v468_v19 = vld [vmem:[%s6262_s12 + $0x4a0] sm:$0xff] }
  0x3f   : > { %v534_v17 = vld [vmem:[%s6262_s12 + $0x6b0] sm:$0xff]  ;;  %v301_v21 = vld [vmem:[%s6257_s8] sm:$0xff]  ;;  %2993 = vmatpush.msrb.mxu0 %v470_v15  ;;  %3012 = vmatpush.msrb.mxu1 %v504_v16 }
  0x40   : > { %v502_v20 = vld [vmem:[%s6262_s12 + $0x5b0] sm:$0xff]  ;;  %v532_v22 = vld [vmem:[%s6262_s12 + $0x6a0] sm:$0xff]  ;;  %2739 = vst [vmem:[#allocation1] ss:$4 sm:$0xff] %v301_v21  ;;  %3033 = vmatpush.msrb.mxu2 %v534_v17  ;;  %3052 = vmatpush.msrb.mxu3 %v568_v18 }
  0x41   : > { %v566_v23 = vld [vmem:[%s6262_s12 + $0x7b0] sm:$0xff]  ;;  %v500_v25 = vld [vmem:[%s6262_s12 + $0x5a0] sm:$0xff]  ;;  %2994 = vmatpush.msrb.mxu0 %v468_v19  ;;  %3013 = vmatpush.msrb.mxu1 %v502_v20 }
  0x42   : > { %v466_v24 = vld [vmem:[%s6262_s12 + $0x490] sm:$0xff]  ;;  %v564_v27 = vld [vmem:[%s6262_s12 + $0x7a0] sm:$0xff]  ;;  %3034 = vmatpush.msrb.mxu2 %v532_v22  ;;  %3053 = vmatpush.msrb.mxu3 %v566_v23 }
  0x43   : > { %v530_v26 = vld [vmem:[%s6262_s12 + $0x690] sm:$0xff]  ;;  %v464_v28 = vld [vmem:[%s6262_s12 + $0x480] sm:$0xff]  ;;  %2995 = vmatpush.msrb.mxu0 %v466_v24  ;;  %3014 = vmatpush.msrb.mxu1 %v500_v25 }
  0x44   : > { %v498_v29 = vld [vmem:[%s6262_s12 + $0x590] sm:$0xff]  ;;  %v528_v30 = vld [vmem:[%s6262_s12 + $0x680] sm:$0xff]  ;;  %3035 = vmatpush.msrb.mxu2 %v530_v26  ;;  %3054 = vmatpush.msrb.mxu3 %v564_v27 }
  0x45   : > { %v562_v31 = vld [vmem:[%s6262_s12 + $0x790] sm:$0xff]  ;;  %v496_v33 = vld [vmem:[%s6262_s12 + $0x580] sm:$0xff]  ;;  %2996 = vmatpush.msrb.mxu0 %v464_v28  ;;  %3015 = vmatpush.msrb.mxu1 %v498_v29 }
  0x46   : > { %v462_v32 = vld [vmem:[%s6262_s12 + $0x470] sm:$0xff]  ;;  %v560_v36 = vld [vmem:[%s6262_s12 + $0x780] sm:$0xff]  ;;  %3036 = vmatpush.msrb.mxu2 %v528_v30  ;;  %3055 = vmatpush.msrb.mxu3 %v562_v31 }
  0x47   : > { %v526_v35 = vld [vmem:[%s6262_s12 + $0x670] sm:$0xff]  ;;  %v460_v37 = vld [vmem:[%s6262_s12 + $0x460] sm:$0xff]  ;;  %2997 = vmatpush.msrb.mxu0 %v462_v32  ;;  %3016 = vmatpush.msrb.mxu1 %v496_v33  ;;  %v6403_v4 = vld.sshfl [vmem:[#allocation1 + $0x18] sm:$0xff pattern:$0x73625140] }
  0x48   : > { %v494_v38 = vld [vmem:[%s6262_s12 + $0x570] sm:$0xff]  ;;  %v524_v39 = vld [vmem:[%s6262_s12 + $0x660] sm:$0xff]  ;;  %3037 = vmatpush.msrb.mxu2 %v526_v35  ;;  %3056 = vmatpush.msrb.mxu3 %v560_v36  ;;  %v6410_v9 = vld.sshfl [vmem:[#allocation1 + $0x8] sm:$0xff pattern:$0x73625140] }
  0x49   : > { %v558_v40 = vld [vmem:[%s6262_s12 + $0x770] sm:$0xff]  ;;  %v492_v42 = vld [vmem:[%s6262_s12 + $0x560] sm:$0xff]  ;;  %2998 = vmatpush.msrb.mxu0 %v460_v37  ;;  %3017 = vmatpush.msrb.mxu1 %v494_v38 }
  0x4a   : > { %v458_v41 = vld [vmem:[%s6262_s12 + $0x450] sm:$0xff]  ;;  %v556_v44 = vld [vmem:[%s6262_s12 + $0x760] sm:$0xff]  ;;  %3038 = vmatpush.msrb.mxu2 %v524_v39  ;;  %3057 = vmatpush.msrb.mxu3 %v558_v40 }
  0x4b   : > { %v522_v43 = vld [vmem:[%s6262_s12 + $0x650] sm:$0xff]  ;;  %v456_v45 = vld [vmem:[%s6262_s12 + $0x440] sm:$0xff]  ;;  %2999 = vmatpush.msrb.mxu0 %v458_v41  ;;  %3018 = vmatpush.msrb.mxu1 %v492_v42 }
  0x4c   : > { %v490_v46 = vld [vmem:[%s6262_s12 + $0x550] sm:$0xff]  ;;  %v520_v47 = vld [vmem:[%s6262_s12 + $0x640] sm:$0xff]  ;;  %3039 = vmatpush.msrb.mxu2 %v522_v43  ;;  %3058 = vmatpush.msrb.mxu3 %v556_v44 }
  0x4d   : > { %v554_v48 = vld [vmem:[%s6262_s12 + $0x750] sm:$0xff]  ;;  %v488_v50 = vld [vmem:[%s6262_s12 + $0x540] sm:$0xff]  ;;  %3000 = vmatpush.msrb.mxu0 %v456_v45  ;;  %3019 = vmatpush.msrb.mxu1 %v490_v46 }
  0x4e   : > { %v454_v49 = vld [vmem:[%s6262_s12 + $0x430] sm:$0xff]  ;;  %v552_v52 = vld [vmem:[%s6262_s12 + $0x740] sm:$0xff]  ;;  %3040 = vmatpush.msrb.mxu2 %v520_v47  ;;  %3059 = vmatpush.msrb.mxu3 %v554_v48 }
  0x4f   : > { %v518_v51 = vld [vmem:[%s6262_s12 + $0x630] sm:$0xff]  ;;  %v6384_v55 = vld.sshfl [vmem:[#allocation1 + $0x20] sm:$0xff pattern:$0x73625140]  ;;  %3001 = vmatpush.msrb.mxu0 %v454_v49  ;;  %3020 = vmatpush.msrb.mxu1 %v488_v50 }
  0x50   : > { %v6382_v54 = vld.sshfl [vmem:[#allocation1 + $0x30] sm:$0xff pattern:$0x73625140]  ;;  %v452_v58 = vld [vmem:[%s6262_s12 + $0x420] sm:$0xff]  ;;  %3041 = vmatpush.msrb.mxu2 %v518_v51  ;;  %3060 = vmatpush.msrb.mxu3 %v552_v52 }
  0x51   : > { %v486_v59 = vld [vmem:[%s6262_s12 + $0x530] sm:$0xff]  ;;  %2751 = vst [vmem:[#allocation1 + $0x20] ss:$4 sm:$0xff] %v304_v53  ;;  %v516_v60 = vld [vmem:[%s6262_s12 + $0x620] sm:$0xff]  ;;  %3002 = vmatpush.msrb.mxu0 %v452_v58  ;;  %2985 = vmatmul.f32.vlgmr.msra.gmra.mxu3 %v6403_v4 }
  0x52   : > { %v550_v61 = vld [vmem:[%s6262_s12 + $0x730] sm:$0xff]  ;;  %3021 = vmatpush.msrb.mxu1 %v486_v59  ;;  %v484_v0 = vld [vmem:[%s6262_s12 + $0x520] sm:$0xff]  ;;  %3042 = vmatpush.msrb.mxu2 %v516_v60 }
  0x53   : > { %v6394_v62 = vld.sshfl [vmem:[#allocation1 + $0x10] sm:$0xff pattern:$0x73625140]  ;;  %3061 = vmatpush.msrb.mxu3 %v550_v61  ;;  %v548_v2 = vld [vmem:[%s6262_s12 + $0x720] sm:$0xff]  ;;  %2945 = vmatmul.f32.vlgmr.msra.gmra.mxu1 %v6410_v9 }
  0x54   : > { %v450_v63 = vld [vmem:[%s6262_s12 + $0x410] sm:$0xff]  ;;  %v6400_v3 = vld.sshfl [vmem:[#allocation1] sm:$0xff pattern:$0x73625140]  ;;  %2965 = vmatmul.f32.vlgmr.msra.gmra.mxu2 %v6394_v62  ;;  %3022 = vmatpush.msrb.mxu1 %v484_v0 }
  0x55   : > { %v514_v1 = vld [vmem:[%s6262_s12 + $0x610] sm:$0xff]  ;;  %3003 = vmatpush.msrb.mxu0 %v450_v63  ;;  %v448_v5 = vld [vmem:[%s6262_s12 + $0x400] sm:$0xff]  ;;  %3062 = vmatpush.msrb.mxu3 %v548_v2 }
  0x56   : > { %3043 = vmatpush.msrb.mxu2 %v514_v1  ;;  %v482_v6 = vld [vmem:[%s6262_s12 + $0x510] sm:$0xff]  ;;  %v512_v7 = vld [vmem:[%s6262_s12 + $0x600] sm:$0xff]  ;;  %2925 = vmatmul.f32.vlgmr.msra.gmra.mxu0 %v6400_v3 }
  0x57   : > { %v546_v8 = vld [vmem:[%s6262_s12 + $0x710] sm:$0xff]  ;;  %3004 = vmatpush.msrb.mxu0 %v448_v5  ;;  %3023 = vmatpush.msrb.mxu1 %v482_v6  ;;  %v480_v12 = vld [vmem:[%s6262_s12 + $0x500] sm:$0xff] }
  0x58   : > { %v606_v10 = vld [vmem:[%s6262_s12 + $0x8f0] sm:$0xff]  ;;  %3044 = vmatpush.msrb.mxu2 %v512_v7  ;;  %v544_v13 = vld [vmem:[%s6262_s12 + $0x700] sm:$0xff]  ;;  %3063 = vmatpush.msrb.mxu3 %v546_v8 }
  0x59   : > { %v670_v11 = vld [vmem:[%s6262_s12 + $0xaf0] sm:$0xff]  ;;  %v604_v14 = vld [vmem:[%s6262_s12 + $0x8e0] sm:$0xff]  ;;  %3069 = vmatpush.msra.mxu0 %v606_v10  ;;  %3024 = vmatpush.msrb.mxu1 %v480_v12 }
  0x5a   : > { %v638_v15 = vld [vmem:[%s6262_s12 + $0x9f0] sm:$0xff]  ;;  %3109 = vmatpush.msra.mxu2 %v670_v11  ;;  %v668_v16 = vld [vmem:[%s6262_s12 + $0xae0] sm:$0xff]  ;;  %3064 = vmatpush.msrb.mxu3 %v544_v13 }
  0x5b   : > { %v702_v17 = vld [vmem:[%s6262_s12 + $0xbf0] sm:$0xff]  ;;  %3070 = vmatpush.msra.mxu0 %v604_v14  ;;  %3089 = vmatpush.msra.mxu1 %v638_v15  ;;  %v636_v19 = vld [vmem:[%s6262_s12 + $0x9e0] sm:$0xff] }
  0x5c   : > { %v602_v18 = vld [vmem:[%s6262_s12 + $0x8d0] sm:$0xff]  ;;  %3110 = vmatpush.msra.mxu2 %v668_v16  ;;  %3129 = vmatpush.msra.mxu3 %v702_v17  ;;  %v700_v22 = vld [vmem:[%s6262_s12 + $0xbe0] sm:$0xff] }
  0x5d   : > { %v666_v20 = vld [vmem:[%s6262_s12 + $0xad0] sm:$0xff]  ;;  %3045 = vmatmul.f32.vlgmr.msrb.gmra.mxu2 %v6382_v54  ;;  %3071 = vmatpush.msra.mxu0 %v602_v18  ;;  %v600_v23 = vld [vmem:[%s6262_s12 + $0x8c0] sm:$0xff] }
  0x5e   : > { %v303_v21 = vld [vmem:[%s6257_s8 + $0x10] sm:$0xff]  ;;  %3090 = vmatpush.msra.mxu1 %v636_v19  ;;  %3111 = vmatpush.msra.mxu2 %v666_v20  ;;  %v664_v25 = vld [vmem:[%s6262_s12 + $0xac0] sm:$0xff] }
  0x5f   : > { %2750 = vst [vmem:[#allocation1] ss:$4 sm:$0xff] %v303_v21  ;;  %v634_v24 = vld [vmem:[%s6262_s12 + $0x9d0] sm:$0xff]  ;;  %3130 = vmatpush.msra.mxu3 %v700_v22  ;;  %3005 = vmatmul.f32.vlgmr.msrb.gmra.mxu0 %v6384_v55  ;;  %v632_v28 = vld [vmem:[%s6262_s12 + $0x9c0] sm:$0xff] }
  0x60   : > { %v698_v26 = vld [vmem:[%s6262_s12 + $0xbd0] sm:$0xff]  ;;  %3065 = vmatmul.f32.vlgmr.msrb.gmra.mxu3 %v6386_v56  ;;  %3072 = vmatpush.msra.mxu0 %v600_v23  ;;  %v696_v30 = vld [vmem:[%s6262_s12 + $0xbc0] sm:$0xff] }
  0x61   : > { %v598_v27 = vld [vmem:[%s6262_s12 + $0x8b0] sm:$0xff]  ;;  %v596_v31 = vld [vmem:[%s6262_s12 + $0x8a0] sm:$0xff]  ;;  %3091 = vmatpush.msra.mxu1 %v634_v24  ;;  %3112 = vmatpush.msra.mxu2 %v664_v25 }
  0x62   : > { %v662_v29 = vld [vmem:[%s6262_s12 + $0xab0] sm:$0xff]  ;;  %v660_v33 = vld [vmem:[%s6262_s12 + $0xaa0] sm:$0xff]  ;;  %3131 = vmatpush.msra.mxu3 %v698_v26  ;;  %3025 = vmatmul.f32.vlgmr.msrb.gmra.mxu1 %v6388_v57 }
  0x63   : > { %v630_v32 = vld [vmem:[%s6262_s12 + $0x9b0] sm:$0xff]  ;;  %v628_v36 = vld [vmem:[%s6262_s12 + $0x9a0] sm:$0xff]  ;;  %3073 = vmatpush.msra.mxu0 %v598_v27  ;;  %3092 = vmatpush.msra.mxu1 %v632_v28 }
  0x64   : > { %v694_v34 = vld [vmem:[%s6262_s12 + $0xbb0] sm:$0xff]  ;;  %v305_v37 = vld [vmem:[%s6257_s8 + $0x20] sm:$0xff]  ;;  %3113 = vmatpush.msra.mxu2 %v662_v29  ;;  %3132 = vmatpush.msra.mxu3 %v696_v30 }
  0x65   : > { %v594_v35 = vld [vmem:[%s6262_s12 + $0x890] sm:$0xff]  ;;  %3074 = vmatpush.msra.mxu0 %v596_v31  ;;  %3093 = vmatpush.msra.mxu1 %v630_v32  ;;  %v692_v43 = vld [vmem:[%s6262_s12 + $0xba0] sm:$0xff] }
  0x66   : > { %v6446_v38 = vld.sshfl [vmem:[#allocation1] sm:$0xff pattern:$0x73625140]  ;;  %v6448_v39 = vld.sshfl [vmem:[#allocation1 + $0x10] sm:$0xff pattern:$0x73625140]  ;;  %3114 = vmatpush.msra.mxu2 %v660_v33  ;;  %3133 = vmatpush.msra.mxu3 %v694_v34 }
  0x67   : > { %v6450_v40 = vld.sshfl [vmem:[#allocation1 + $0x8] sm:$0xff pattern:$0x73625140]  ;;  %v6452_v41 = vld.sshfl [vmem:[#allocation1 + $0x18] sm:$0xff pattern:$0x73625140]  ;;  %3075 = vmatpush.msra.mxu0 %v594_v35  ;;  %3094 = vmatpush.msra.mxu1 %v628_v36 }
  0x68   : > { %v658_v42 = vld [vmem:[%s6262_s12 + $0xa90] sm:$0xff]  ;;  %2760 = vst [vmem:[#allocation1] ss:$4 sm:$0xff] %v305_v37  ;;  %v592_v44 = vld [vmem:[%s6262_s12 + $0x880] sm:$0xff]  ;;  %3134 = vmatpush.msra.mxu3 %v692_v43 }
  0x69   : > { %v626_v45 = vld [vmem:[%s6262_s12 + $0x990] sm:$0xff]  ;;  %v656_v46 = vld [vmem:[%s6262_s12 + $0xa80] sm:$0xff]  ;;  %3115 = vmatpush.msra.mxu2 %v658_v42  ;;  %3076 = vmatpush.msra.mxu0 %v592_v44  ;;  %v6513_v43 = vld.sshfl [vmem:[#allocation1 + $0x28] sm:$0xff pattern:$0x73625140] }
  0x6a   : > { %v690_v47 = vld [vmem:[%s6262_s12 + $0xb90] sm:$0xff]  ;;  %v624_v49 = vld [vmem:[%s6262_s12 + $0x980] sm:$0xff]  ;;  %3095 = vmatpush.msra.mxu1 %v626_v45  ;;  %v306_v45 = vld [vmem:[%s6257_s8 + $0x28] sm:$0xff] }
  0x6b   : > { %v590_v48 = vld [vmem:[%s6262_s12 + $0x870] sm:$0xff]  ;;  %v688_v51 = vld [vmem:[%s6262_s12 + $0xb80] sm:$0xff]  ;;  %3116 = vmatpush.msra.mxu2 %v656_v46  ;;  %3135 = vmatpush.msra.mxu3 %v690_v47  ;;  %v6517_v46 = vld.sshfl [vmem:[#allocation1 + $0x38] sm:$0xff pattern:$0x73625140] }
  0x6c   : > { %v654_v50 = vld [vmem:[%s6262_s12 + $0xa70] sm:$0xff]  ;;  %v588_v52 = vld [vmem:[%s6262_s12 + $0x860] sm:$0xff]  ;;  %3077 = vmatpush.msra.mxu0 %v590_v48  ;;  %3096 = vmatpush.msra.mxu1 %v624_v49 }
  0x6d   : > { %v622_v53 = vld [vmem:[%s6262_s12 + $0x970] sm:$0xff]  ;;  %v652_v58 = vld [vmem:[%s6262_s12 + $0xa60] sm:$0xff]  ;;  %3117 = vmatpush.msra.mxu2 %v654_v50  ;;  %3136 = vmatpush.msra.mxu3 %v688_v51 }
  0x6e   : > { %v686_v59 = vld [vmem:[%s6262_s12 + $0xb70] sm:$0xff]  ;;  %v620_v61 = vld [vmem:[%s6262_s12 + $0x960] sm:$0xff]  ;;  %3078 = vmatpush.msra.mxu0 %v588_v52  ;;  %3097 = vmatpush.msra.mxu1 %v622_v53 }
  0x6f   : > { %v586_v60 = vld [vmem:[%s6262_s12 + $0x850] sm:$0xff]  ;;  %v684_v0 = vld [vmem:[%s6262_s12 + $0xb60] sm:$0xff]  ;;  %3118 = vmatpush.msra.mxu2 %v652_v58  ;;  %3137 = vmatpush.msra.mxu3 %v686_v59 }
  0x70   : > { %v650_v63 = vld [vmem:[%s6262_s12 + $0xa50] sm:$0xff]  ;;  %v584_v1 = vld [vmem:[%s6262_s12 + $0x840] sm:$0xff]  ;;  %3079 = vmatpush.msra.mxu0 %v586_v60  ;;  %3098 = vmatpush.msra.mxu1 %v620_v61 }
  0x71   : > { %v618_v2 = vld [vmem:[%s6262_s12 + $0x950] sm:$0xff]  ;;  %v648_v5 = vld [vmem:[%s6262_s12 + $0xa40] sm:$0xff]  ;;  %3119 = vmatpush.msra.mxu2 %v650_v63  ;;  %3138 = vmatpush.msra.mxu3 %v684_v0 }
  0x72   : > { %v682_v6 = vld [vmem:[%s6262_s12 + $0xb50] sm:$0xff]  ;;  %v616_v8 = vld [vmem:[%s6262_s12 + $0x940] sm:$0xff]  ;;  %3080 = vmatpush.msra.mxu0 %v584_v1  ;;  %3099 = vmatpush.msra.mxu1 %v618_v2 }
  0x73   : > { %v582_v7 = vld [vmem:[%s6262_s12 + $0x830] sm:$0xff]  ;;  %v680_v11 = vld [vmem:[%s6262_s12 + $0xb40] sm:$0xff]  ;;  %3120 = vmatpush.msra.mxu2 %v648_v5  ;;  %3139 = vmatpush.msra.mxu3 %v682_v6 }
  0x74   : > { %v646_v10 = vld [vmem:[%s6262_s12 + $0xa30] sm:$0xff]  ;;  %v580_v12 = vld [vmem:[%s6262_s12 + $0x820] sm:$0xff]  ;;  %3081 = vmatpush.msra.mxu0 %v582_v7  ;;  %3100 = vmatpush.msra.mxu1 %v616_v8 }
  0x75   : > { %v614_v13 = vld [vmem:[%s6262_s12 + $0x930] sm:$0xff]  ;;  %v644_v14 = vld [vmem:[%s6262_s12 + $0xa20] sm:$0xff]  ;;  %3121 = vmatpush.msra.mxu2 %v646_v10  ;;  %3140 = vmatpush.msra.mxu3 %v680_v11 }
  0x76   : > { %v678_v15 = vld [vmem:[%s6262_s12 + $0xb30] sm:$0xff]  ;;  %v612_v17 = vld [vmem:[%s6262_s12 + $0x920] sm:$0xff]  ;;  %3082 = vmatpush.msra.mxu0 %v580_v12  ;;  %3101 = vmatpush.msra.mxu1 %v614_v13 }
  0x77   : > { %v578_v16 = vld [vmem:[%s6262_s12 + $0x810] sm:$0xff]  ;;  %v676_v19 = vld [vmem:[%s6262_s12 + $0xb20] sm:$0xff]  ;;  %3122 = vmatpush.msra.mxu2 %v644_v14  ;;  %3141 = vmatpush.msra.mxu3 %v678_v15 }
  0x78   : > { %v642_v18 = vld [vmem:[%s6262_s12 + $0xa10] sm:$0xff]  ;;  %v576_v20 = vld [vmem:[%s6262_s12 + $0x800] sm:$0xff]  ;;  %3083 = vmatpush.msra.mxu0 %v578_v16  ;;  %3102 = vmatpush.msra.mxu1 %v612_v17 }
  0x79   : > { %v610_v21 = vld [vmem:[%s6262_s12 + $0x910] sm:$0xff]  ;;  %v640_v22 = vld [vmem:[%s6262_s12 + $0xa00] sm:$0xff]  ;;  %3123 = vmatpush.msra.mxu2 %v642_v18  ;;  %3142 = vmatpush.msra.mxu3 %v676_v19 }
  0x7a   : > { %v674_v23 = vld [vmem:[%s6262_s12 + $0xb10] sm:$0xff]  ;;  %3084 = vmatpush.msra.mxu0 %v576_v20  ;;  %3103 = vmatpush.msra.mxu1 %v610_v21  ;;  %v608_v26 = vld [vmem:[%s6262_s12 + $0x900] sm:$0xff] }
  0x7b   : > { %v734_v24 = vld [vmem:[%s6262_s12 + $0xcf0] sm:$0xff]  ;;  %3124 = vmatpush.msra.mxu2 %v640_v22  ;;  %3143 = vmatpush.msra.mxu3 %v674_v23  ;;  %v672_v27 = vld [vmem:[%s6262_s12 + $0xb00] sm:$0xff] }
  0x7c   : > { %v798_v25 = vld [vmem:[%s6262_s12 + $0xef0] sm:$0xff]  ;;  %3085 = vmatmul.f32.vlgmr.msra.gmra.mxu0 %v6446_v38  ;;  %3125 = vmatmul.f32.vlgmr.msra.gmra.mxu2 %v6448_v39  ;;  %v732_v28 = vld [vmem:[%s6262_s12 + $0xce0] sm:$0xff] }
  0x7d   : > { %3149 = vmatpush.msrb.mxu0 %v734_v24  ;;  %3189 = vmatpush.msrb.mxu2 %v798_v25  ;;  %v766_v29 = vld [vmem:[%s6262_s12 + $0xdf0] sm:$0xff]  ;;  %v796_v30 = vld [vmem:[%s6262_s12 + $0xee0] sm:$0xff] }
  0x7e   : > { %v830_v31 = vld [vmem:[%s6262_s12 + $0xff0] sm:$0xff]  ;;  %3104 = vmatpush.msra.mxu1 %v608_v26  ;;  %3144 = vmatpush.msra.mxu3 %v672_v27  ;;  %v764_v33 = vld [vmem:[%s6262_s12 + $0xde0] sm:$0xff] }
  0x7f   : > { %v730_v32 = vld [vmem:[%s6262_s12 + $0xcd0] sm:$0xff]  ;;  %3105 = vmatmul.f32.vlgmr.msra.gmra.mxu1 %v6450_v40  ;;  %3145 = vmatmul.f32.vlgmr.msra.gmra.mxu3 %v6452_v41  ;;  %v828_v35 = vld [vmem:[%s6262_s12 + $0xfe0] sm:$0xff] }
  0x80   : > { %v794_v34 = vld [vmem:[%s6262_s12 + $0xed0] sm:$0xff]  ;;  %v728_v36 = vld [vmem:[%s6262_s12 + $0xcc0] sm:$0xff]  ;;  %3150 = vmatpush.msrb.mxu0 %v732_v28  ;;  %3169 = vmatpush.msrb.mxu1 %v766_v29 }
  0x81   : > { %v6509_v37 = vld.sshfl [vmem:[#allocation1 + $0x20] sm:$0xff pattern:$0x73625140]  ;;  %v6511_v42 = vld.sshfl [vmem:[#allocation1 + $0x30] sm:$0xff pattern:$0x73625140]  ;;  %3190 = vmatpush.msrb.mxu2 %v796_v30  ;;  %3209 = vmatpush.msrb.mxu3 %v830_v31 }
  0x82   : > { %v762_v44 = vld [vmem:[%s6262_s12 + $0xdd0] sm:$0xff]  ;;  %3151 = vmatpush.msrb.mxu0 %v730_v32  ;;  %3170 = vmatpush.msrb.mxu1 %v764_v33  ;;  %v792_v47 = vld [vmem:[%s6262_s12 + $0xec0] sm:$0xff]  ;;  %2761 = vst [vmem:[#allocation1 + $0x20] ss:$4 sm:$0xff] %v306_v45 }
  0x83   : > { %v826_v48 = vld [vmem:[%s6262_s12 + $0xfd0] sm:$0xff]  ;;  %3191 = vmatpush.msrb.mxu2 %v794_v34  ;;  %3210 = vmatpush.msrb.mxu3 %v828_v35  ;;  %v760_v50 = vld [vmem:[%s6262_s12 + $0xdc0] sm:$0xff] }
  0x84   : > { %v726_v49 = vld [vmem:[%s6262_s12 + $0xcb0] sm:$0xff]  ;;  %3152 = vmatpush.msrb.mxu0 %v728_v36  ;;  %3171 = vmatpush.msrb.mxu1 %v762_v44  ;;  %v824_v52 = vld [vmem:[%s6262_s12 + $0xfc0] sm:$0xff] }
  0x85   : > { %v790_v51 = vld [vmem:[%s6262_s12 + $0xeb0] sm:$0xff]  ;;  %3192 = vmatpush.msrb.mxu2 %v792_v47  ;;  %3211 = vmatpush.msrb.mxu3 %v826_v48  ;;  %v724_v53 = vld [vmem:[%s6262_s12 + $0xca0] sm:$0xff] }
  0x86   : > { %v758_v58 = vld [vmem:[%s6262_s12 + $0xdb0] sm:$0xff]  ;;  %3153 = vmatpush.msrb.mxu0 %v726_v49  ;;  %3172 = vmatpush.msrb.mxu1 %v760_v50  ;;  %v788_v59 = vld [vmem:[%s6262_s12 + $0xea0] sm:$0xff] }
  0x87   : > { %v822_v60 = vld [vmem:[%s6262_s12 + $0xfb0] sm:$0xff]  ;;  %3193 = vmatpush.msrb.mxu2 %v790_v51  ;;  %3212 = vmatpush.msrb.mxu3 %v824_v52  ;;  %v756_v63 = vld [vmem:[%s6262_s12 + $0xda0] sm:$0xff] }
  0x88   : > { %v722_v61 = vld [vmem:[%s6262_s12 + $0xc90] sm:$0xff]  ;;  %3154 = vmatpush.msrb.mxu0 %v724_v53  ;;  %3173 = vmatpush.msrb.mxu1 %v758_v58  ;;  %v820_v1 = vld [vmem:[%s6262_s12 + $0xfa0] sm:$0xff] }
  0x89   : > { %v786_v0 = vld [vmem:[%s6262_s12 + $0xe90] sm:$0xff]  ;;  %3194 = vmatpush.msrb.mxu2 %v788_v59  ;;  %3213 = vmatpush.msrb.mxu3 %v822_v60  ;;  %v720_v2 = vld [vmem:[%s6262_s12 + $0xc80] sm:$0xff] }
  0x8a   : > { %v754_v5 = vld [vmem:[%s6262_s12 + $0xd90] sm:$0xff]  ;;  %3155 = vmatpush.msrb.mxu0 %v722_v61  ;;  %3174 = vmatpush.msrb.mxu1 %v756_v63  ;;  %v784_v6 = vld [vmem:[%s6262_s12 + $0xe80] sm:$0xff] }
  0x8b   : > { %v818_v7 = vld [vmem:[%s6262_s12 + $0xf90] sm:$0xff]  ;;  %3195 = vmatpush.msrb.mxu2 %v786_v0  ;;  %3214 = vmatpush.msrb.mxu3 %v820_v1  ;;  %v752_v10 = vld [vmem:[%s6262_s12 + $0xd80] sm:$0xff] }
  0x8c   : > { %v718_v8 = vld [vmem:[%s6262_s12 + $0xc70] sm:$0xff]  ;;  %3156 = vmatpush.msrb.mxu0 %v720_v2  ;;  %3175 = vmatpush.msrb.mxu1 %v754_v5  ;;  %v816_v12 = vld [vmem:[%s6262_s12 + $0xf80] sm:$0xff] }
  0x8d   : > { %v782_v11 = vld [vmem:[%s6262_s12 + $0xe70] sm:$0xff]  ;;  %3196 = vmatpush.msrb.mxu2 %v784_v6  ;;  %3215 = vmatpush.msrb.mxu3 %v818_v7  ;;  %v716_v13 = vld [vmem:[%s6262_s12 + $0xc60] sm:$0xff] }
  0x8e   : > { %v750_v14 = vld [vmem:[%s6262_s12 + $0xd70] sm:$0xff]  ;;  %3157 = vmatpush.msrb.mxu0 %v718_v8  ;;  %3176 = vmatpush.msrb.mxu1 %v752_v10  ;;  %v780_v15 = vld [vmem:[%s6262_s12 + $0xe60] sm:$0xff] }
  0x8f   : > { %v814_v16 = vld [vmem:[%s6262_s12 + $0xf70] sm:$0xff]  ;;  %3197 = vmatpush.msrb.mxu2 %v782_v11  ;;  %3216 = vmatpush.msrb.mxu3 %v816_v12  ;;  %v748_v18 = vld [vmem:[%s6262_s12 + $0xd60] sm:$0xff] }
  0x90   : > { %v714_v17 = vld [vmem:[%s6262_s12 + $0xc50] sm:$0xff]  ;;  %3158 = vmatpush.msrb.mxu0 %v716_v13  ;;  %3177 = vmatpush.msrb.mxu1 %v750_v14  ;;  %v812_v20 = vld [vmem:[%s6262_s12 + $0xf60] sm:$0xff] }
  0x91   : > { %v778_v19 = vld [vmem:[%s6262_s12 + $0xe50] sm:$0xff]  ;;  %3198 = vmatpush.msrb.mxu2 %v780_v15  ;;  %3217 = vmatpush.msrb.mxu3 %v814_v16  ;;  %v712_v21 = vld [vmem:[%s6262_s12 + $0xc40] sm:$0xff] }
  0x92   : > { %v746_v22 = vld [vmem:[%s6262_s12 + $0xd50] sm:$0xff]  ;;  %3159 = vmatpush.msrb.mxu0 %v714_v17  ;;  %3178 = vmatpush.msrb.mxu1 %v748_v18  ;;  %v776_v23 = vld [vmem:[%s6262_s12 + $0xe40] sm:$0xff] }
  0x93   : > { %v810_v24 = vld [vmem:[%s6262_s12 + $0xf50] sm:$0xff]  ;;  %3199 = vmatpush.msrb.mxu2 %v778_v19  ;;  %3218 = vmatpush.msrb.mxu3 %v812_v20  ;;  %v744_v26 = vld [vmem:[%s6262_s12 + $0xd40] sm:$0xff] }
  0x94   : > { %v710_v25 = vld [vmem:[%s6262_s12 + $0xc30] sm:$0xff]  ;;  %3160 = vmatpush.msrb.mxu0 %v712_v21  ;;  %3179 = vmatpush.msrb.mxu1 %v746_v22  ;;  %v808_v28 = vld [vmem:[%s6262_s12 + $0xf40] sm:$0xff] }
  0x95   : > { %v774_v27 = vld [vmem:[%s6262_s12 + $0xe30] sm:$0xff]  ;;  %3200 = vmatpush.msrb.mxu2 %v776_v23  ;;  %3219 = vmatpush.msrb.mxu3 %v810_v24  ;;  %v708_v29 = vld [vmem:[%s6262_s12 + $0xc20] sm:$0xff] }
  0x96   : > { %v742_v30 = vld [vmem:[%s6262_s12 + $0xd30] sm:$0xff]  ;;  %3161 = vmatpush.msrb.mxu0 %v710_v25  ;;  %3180 = vmatpush.msrb.mxu1 %v744_v26  ;;  %v772_v31 = vld [vmem:[%s6262_s12 + $0xe20] sm:$0xff] }
  0x97   : > { %v806_v32 = vld [vmem:[%s6262_s12 + $0xf30] sm:$0xff]  ;;  %3201 = vmatpush.msrb.mxu2 %v774_v27  ;;  %3220 = vmatpush.msrb.mxu3 %v808_v28  ;;  %v740_v34 = vld [vmem:[%s6262_s12 + $0xd20] sm:$0xff] }
  0x98   : > { %v706_v33 = vld [vmem:[%s6262_s12 + $0xc10] sm:$0xff]  ;;  %3162 = vmatpush.msrb.mxu0 %v708_v29  ;;  %3181 = vmatpush.msrb.mxu1 %v742_v30  ;;  %v804_v36 = vld [vmem:[%s6262_s12 + $0xf20] sm:$0xff] }
  0x99   : > { %v770_v35 = vld [vmem:[%s6262_s12 + $0xe10] sm:$0xff]  ;;  %3202 = vmatpush.msrb.mxu2 %v772_v31  ;;  %3221 = vmatpush.msrb.mxu3 %v806_v32  ;;  %v704_v44 = vld [vmem:[%s6262_s12 + $0xc00] sm:$0xff] }
  0x9a   : > { %v738_v45 = vld [vmem:[%s6262_s12 + $0xd10] sm:$0xff]  ;;  %3163 = vmatpush.msrb.mxu0 %v706_v33  ;;  %3182 = vmatpush.msrb.mxu1 %v740_v34  ;;  %v768_v47 = vld [vmem:[%s6262_s12 + $0xe00] sm:$0xff] }
  0x9b   : > { %v802_v48 = vld [vmem:[%s6262_s12 + $0xf10] sm:$0xff]  ;;  %3203 = vmatpush.msrb.mxu2 %v770_v35  ;;  %3222 = vmatpush.msrb.mxu3 %v804_v36  ;;  %v736_v51 = vld [vmem:[%s6262_s12 + $0xd00] sm:$0xff] }
  0x9c   : > { %3164 = vmatpush.msrb.mxu0 %v704_v44  ;;  %3183 = vmatpush.msrb.mxu1 %v738_v45  ;;  %v862_v49 = vld [vmem:[%s6262_s12 + $0x10f0] sm:$0xff]  ;;  %v800_v52 = vld [vmem:[%s6262_s12 + $0xf00] sm:$0xff] }
  0x9d   : > { %v926_v50 = vld [vmem:[%s6262_s12 + $0x12f0] sm:$0xff]  ;;  %3204 = vmatpush.msrb.mxu2 %v768_v47  ;;  %3223 = vmatpush.msrb.mxu3 %v802_v48  ;;  %v860_v53 = vld [vmem:[%s6262_s12 + $0x10e0] sm:$0xff] }
  0x9e   : > { %3165 = vmatmul.f32.vlgmr.msrb.gmra.mxu0 %v6509_v37  ;;  %3205 = vmatmul.f32.vlgmr.msrb.gmra.mxu2 %v6511_v42  ;;  %v894_v58 = vld [vmem:[%s6262_s12 + $0x11f0] sm:$0xff]  ;;  %v924_v59 = vld [vmem:[%s6262_s12 + $0x12e0] sm:$0xff] }
  0x9f   : > { %3229 = vmatpush.msra.mxu0 %v862_v49  ;;  %3269 = vmatpush.msra.mxu2 %v926_v50  ;;  %v958_v60 = vld [vmem:[%s6262_s12 + $0x13f0] sm:$0xff]  ;;  %v892_v63 = vld [vmem:[%s6262_s12 + $0x11e0] sm:$0xff] }
  0xa0   : > { %3184 = vmatpush.msrb.mxu1 %v736_v51  ;;  %3224 = vmatpush.msrb.mxu3 %v800_v52  ;;  %v858_v61 = vld [vmem:[%s6262_s12 + $0x10d0] sm:$0xff]  ;;  %v956_v1 = vld [vmem:[%s6262_s12 + $0x13e0] sm:$0xff] }
  0xa1   : > { %3185 = vmatmul.f32.vlgmr.msrb.gmra.mxu1 %v6513_v43  ;;  %3225 = vmatmul.f32.vlgmr.msrb.gmra.mxu3 %v6517_v46  ;;  %v922_v0 = vld [vmem:[%s6262_s12 + $0x12d0] sm:$0xff]  ;;  %v856_v2 = vld [vmem:[%s6262_s12 + $0x10c0] sm:$0xff] }
  0xa2   : > { %3230 = vmatpush.msra.mxu0 %v860_v53  ;;  %3249 = vmatpush.msra.mxu1 %v894_v58  ;;  %v890_v5 = vld [vmem:[%s6262_s12 + $0x11d0] sm:$0xff]  ;;  %v920_v6 = vld [vmem:[%s6262_s12 + $0x12c0] sm:$0xff] }
  0xa3   : > { %3270 = vmatpush.msra.mxu2 %v924_v59  ;;  %3289 = vmatpush.msra.mxu3 %v958_v60  ;;  %v954_v7 = vld [vmem:[%s6262_s12 + $0x13d0] sm:$0xff]  ;;  %v888_v10 = vld [vmem:[%s6262_s12 + $0x11c0] sm:$0xff] }
  0xa4   : > { %3231 = vmatpush.msra.mxu0 %v858_v61  ;;  %3250 = vmatpush.msra.mxu1 %v892_v63  ;;  %v854_v8 = vld [vmem:[%s6262_s12 + $0x10b0] sm:$0xff]  ;;  %v952_v12 = vld [vmem:[%s6262_s12 + $0x13c0] sm:$0xff] }
  0xa5   : > { %3271 = vmatpush.msra.mxu2 %v922_v0  ;;  %3290 = vmatpush.msra.mxu3 %v956_v1  ;;  %v918_v11 = vld [vmem:[%s6262_s12 + $0x12b0] sm:$0xff]  ;;  %v852_v13 = vld [vmem:[%s6262_s12 + $0x10a0] sm:$0xff] }
  0xa6   : > { %3232 = vmatpush.msra.mxu0 %v856_v2  ;;  %3251 = vmatpush.msra.mxu1 %v890_v5  ;;  %v886_v14 = vld [vmem:[%s6262_s12 + $0x11b0] sm:$0xff]  ;;  %v916_v15 = vld [vmem:[%s6262_s12 + $0x12a0] sm:$0xff] }
  0xa7   : > { %3272 = vmatpush.msra.mxu2 %v920_v6  ;;  %3291 = vmatpush.msra.mxu3 %v954_v7  ;;  %v950_v16 = vld [vmem:[%s6262_s12 + $0x13b0] sm:$0xff]  ;;  %v884_v18 = vld [vmem:[%s6262_s12 + $0x11a0] sm:$0xff] }
  0xa8   : > { %3233 = vmatpush.msra.mxu0 %v854_v8  ;;  %3252 = vmatpush.msra.mxu1 %v888_v10  ;;  %v850_v17 = vld [vmem:[%s6262_s12 + $0x1090] sm:$0xff]  ;;  %v948_v20 = vld [vmem:[%s6262_s12 + $0x13a0] sm:$0xff] }
  0xa9   : > { %3273 = vmatpush.msra.mxu2 %v918_v11  ;;  %3292 = vmatpush.msra.mxu3 %v952_v12  ;;  %v914_v19 = vld [vmem:[%s6262_s12 + $0x1290] sm:$0xff]  ;;  %v848_v21 = vld [vmem:[%s6262_s12 + $0x1080] sm:$0xff] }
  0xaa   : > { %3234 = vmatpush.msra.mxu0 %v852_v13  ;;  %3253 = vmatpush.msra.mxu1 %v886_v14  ;;  %v882_v22 = vld [vmem:[%s6262_s12 + $0x1190] sm:$0xff]  ;;  %v912_v23 = vld [vmem:[%s6262_s12 + $0x1280] sm:$0xff] }
  0xab   : > { %3274 = vmatpush.msra.mxu2 %v916_v15  ;;  %3293 = vmatpush.msra.mxu3 %v950_v16  ;;  %v946_v24 = vld [vmem:[%s6262_s12 + $0x1390] sm:$0xff]  ;;  %v880_v26 = vld [vmem:[%s6262_s12 + $0x1180] sm:$0xff]  ;;  %v6647_v15 = vld.sshfl [vmem:[#allocation1 + $0x8] sm:$0xff pattern:$0x73625140] }
  0xac   : > { %3235 = vmatpush.msra.mxu0 %v850_v17  ;;  %3254 = vmatpush.msra.mxu1 %v884_v18  ;;  %v846_v25 = vld [vmem:[%s6262_s12 + $0x1070] sm:$0xff]  ;;  %v944_v28 = vld [vmem:[%s6262_s12 + $0x1380] sm:$0xff]  ;;  %v6649_v16 = vld.sshfl [vmem:[#allocation1 + $0x18] sm:$0xff pattern:$0x73625140] }
  0xad   : > { %3275 = vmatpush.msra.mxu2 %v914_v19  ;;  %3294 = vmatpush.msra.mxu3 %v948_v20  ;;  %v910_v27 = vld [vmem:[%s6262_s12 + $0x1270] sm:$0xff]  ;;  %v844_v29 = vld [vmem:[%s6262_s12 + $0x1060] sm:$0xff] }
  0xae   : > { %3236 = vmatpush.msra.mxu0 %v848_v21  ;;  %3255 = vmatpush.msra.mxu1 %v882_v22  ;;  %v878_v30 = vld [vmem:[%s6262_s12 + $0x1170] sm:$0xff]  ;;  %v908_v31 = vld [vmem:[%s6262_s12 + $0x1260] sm:$0xff] }
  0xaf   : > { %3276 = vmatpush.msra.mxu2 %v912_v23  ;;  %3295 = vmatpush.msra.mxu3 %v946_v24  ;;  %v942_v32 = vld [vmem:[%s6262_s12 + $0x1370] sm:$0xff]  ;;  %v876_v34 = vld [vmem:[%s6262_s12 + $0x1160] sm:$0xff] }
  0xb0   : > { %3237 = vmatpush.msra.mxu0 %v846_v25  ;;  %3256 = vmatpush.msra.mxu1 %v880_v26  ;;  %v842_v33 = vld [vmem:[%s6262_s12 + $0x1050] sm:$0xff]  ;;  %v940_v36 = vld [vmem:[%s6262_s12 + $0x1360] sm:$0xff] }
  0xb1   : > { %3277 = vmatpush.msra.mxu2 %v910_v27  ;;  %3296 = vmatpush.msra.mxu3 %v944_v28  ;;  %v906_v35 = vld [vmem:[%s6262_s12 + $0x1250] sm:$0xff]  ;;  %v840_v44 = vld [vmem:[%s6262_s12 + $0x1040] sm:$0xff] }
  0xb2   : > { %3238 = vmatpush.msra.mxu0 %v844_v29  ;;  %3257 = vmatpush.msra.mxu1 %v878_v30  ;;  %v874_v45 = vld [vmem:[%s6262_s12 + $0x1150] sm:$0xff]  ;;  %v904_v47 = vld [vmem:[%s6262_s12 + $0x1240] sm:$0xff] }
  0xb3   : > { %3278 = vmatpush.msra.mxu2 %v908_v31  ;;  %3297 = vmatpush.msra.mxu3 %v942_v32  ;;  %v938_v48 = vld [vmem:[%s6262_s12 + $0x1350] sm:$0xff]  ;;  %v872_v50 = vld [vmem:[%s6262_s12 + $0x1140] sm:$0xff] }
  0xb4   : > { %3239 = vmatpush.msra.mxu0 %v842_v33  ;;  %3258 = vmatpush.msra.mxu1 %v876_v34  ;;  %v838_v49 = vld [vmem:[%s6262_s12 + $0x1030] sm:$0xff]  ;;  %v936_v52 = vld [vmem:[%s6262_s12 + $0x1340] sm:$0xff] }
  0xb5   : > { %3279 = vmatpush.msra.mxu2 %v906_v35  ;;  %3298 = vmatpush.msra.mxu3 %v940_v36  ;;  %v902_v51 = vld [vmem:[%s6262_s12 + $0x1230] sm:$0xff]  ;;  %v836_v53 = vld [vmem:[%s6262_s12 + $0x1020] sm:$0xff] }
  0xb6   : > { %3240 = vmatpush.msra.mxu0 %v840_v44  ;;  %3259 = vmatpush.msra.mxu1 %v874_v45  ;;  %v870_v58 = vld [vmem:[%s6262_s12 + $0x1130] sm:$0xff]  ;;  %v900_v59 = vld [vmem:[%s6262_s12 + $0x1220] sm:$0xff] }
  0xb7   : > { %3280 = vmatpush.msra.mxu2 %v904_v47  ;;  %3299 = vmatpush.msra.mxu3 %v938_v48  ;;  %v934_v60 = vld [vmem:[%s6262_s12 + $0x1330] sm:$0xff]  ;;  %v868_v63 = vld [vmem:[%s6262_s12 + $0x1120] sm:$0xff] }
  0xb8   : > { %3241 = vmatpush.msra.mxu0 %v838_v49  ;;  %3260 = vmatpush.msra.mxu1 %v872_v50  ;;  %v834_v61 = vld [vmem:[%s6262_s12 + $0x1010] sm:$0xff]  ;;  %v932_v1 = vld [vmem:[%s6262_s12 + $0x1320] sm:$0xff] }
  0xb9   : > { %3281 = vmatpush.msra.mxu2 %v902_v51  ;;  %3300 = vmatpush.msra.mxu3 %v936_v52  ;;  %v898_v0 = vld [vmem:[%s6262_s12 + $0x1210] sm:$0xff]  ;;  %v832_v2 = vld [vmem:[%s6262_s12 + $0x1000] sm:$0xff] }
  0xba   : > { %3242 = vmatpush.msra.mxu0 %v836_v53  ;;  %3261 = vmatpush.msra.mxu1 %v870_v58  ;;  %v866_v5 = vld [vmem:[%s6262_s12 + $0x1110] sm:$0xff]  ;;  %v896_v6 = vld [vmem:[%s6262_s12 + $0x1200] sm:$0xff] }
  0xbb   : > { %3282 = vmatpush.msra.mxu2 %v900_v59  ;;  %3301 = vmatpush.msra.mxu3 %v934_v60  ;;  %v930_v7 = vld [vmem:[%s6262_s12 + $0x1310] sm:$0xff]  ;;  %v6637_v8 = vld.sshfl [vmem:[#allocation1] sm:$0xff pattern:$0x73625140] }
  0xbc   : > { %3243 = vmatpush.msra.mxu0 %v834_v61  ;;  %3262 = vmatpush.msra.mxu1 %v868_v63  ;;  %v6639_v10 = vld.sshfl [vmem:[#allocation1 + $0x10] sm:$0xff pattern:$0x73625140]  ;;  %v864_v13 = vld [vmem:[%s6262_s12 + $0x1100] sm:$0xff] }
  0xbd   : > { %3283 = vmatpush.msra.mxu2 %v898_v0  ;;  %3302 = vmatpush.msra.mxu3 %v932_v1  ;;  %v990_v11 = vld [vmem:[%s6262_s12 + $0x14f0] sm:$0xff]  ;;  %v928_v14 = vld [vmem:[%s6262_s12 + $0x1300] sm:$0xff] }
  0xbe   : > { %3244 = vmatpush.msra.mxu0 %v832_v2  ;;  %3263 = vmatpush.msra.mxu1 %v866_v5  ;;  %v1054_v12 = vld [vmem:[%s6262_s12 + $0x16f0] sm:$0xff]  ;;  %v988_v17 = vld [vmem:[%s6262_s12 + $0x14e0] sm:$0xff] }
  0xbf   : > { %3284 = vmatpush.msra.mxu2 %v896_v6  ;;  %3303 = vmatpush.msra.mxu3 %v930_v7  ;;  %v1022_v18 = vld [vmem:[%s6262_s12 + $0x15f0] sm:$0xff]  ;;  %v1052_v19 = vld [vmem:[%s6262_s12 + $0x16e0] sm:$0xff] }
  0xc0   : > { %3245 = vmatmul.f32.vlgmr.msra.gmra.mxu0 %v6637_v8  ;;  %3285 = vmatmul.f32.vlgmr.msra.gmra.mxu2 %v6639_v10  ;;  %v1086_v20 = vld [vmem:[%s6262_s12 + $0x17f0] sm:$0xff]  ;;  %v1020_v22 = vld [vmem:[%s6262_s12 + $0x15e0] sm:$0xff] }
  0xc1   : > { %3309 = vmatpush.msrb.mxu0 %v990_v11  ;;  %3349 = vmatpush.msrb.mxu2 %v1054_v12  ;;  %v986_v21 = vld [vmem:[%s6262_s12 + $0x14d0] sm:$0xff]  ;;  %v1084_v24 = vld [vmem:[%s6262_s12 + $0x17e0] sm:$0xff] }
  0xc2   : > { %3264 = vmatpush.msra.mxu1 %v864_v13  ;;  %3304 = vmatpush.msra.mxu3 %v928_v14  ;;  %v1050_v23 = vld [vmem:[%s6262_s12 + $0x16d0] sm:$0xff]  ;;  %v984_v25 = vld [vmem:[%s6262_s12 + $0x14c0] sm:$0xff] }
  0xc3   : > { %3265 = vmatmul.f32.vlgmr.msra.gmra.mxu1 %v6647_v15  ;;  %3305 = vmatmul.f32.vlgmr.msra.gmra.mxu3 %v6649_v16  ;;  %v1018_v26 = vld [vmem:[%s6262_s12 + $0x15d0] sm:$0xff]  ;;  %v1048_v27 = vld [vmem:[%s6262_s12 + $0x16c0] sm:$0xff] }
  0xc4   : > { %3310 = vmatpush.msrb.mxu0 %v988_v17  ;;  %3329 = vmatpush.msrb.mxu1 %v1022_v18  ;;  %v1082_v28 = vld [vmem:[%s6262_s12 + $0x17d0] sm:$0xff]  ;;  %v1016_v30 = vld [vmem:[%s6262_s12 + $0x15c0] sm:$0xff] }
  0xc5   : > { %3350 = vmatpush.msrb.mxu2 %v1052_v19  ;;  %3369 = vmatpush.msrb.mxu3 %v1086_v20  ;;  %v982_v29 = vld [vmem:[%s6262_s12 + $0x14b0] sm:$0xff]  ;;  %v1080_v32 = vld [vmem:[%s6262_s12 + $0x17c0] sm:$0xff] }
  0xc6   : > { %3311 = vmatpush.msrb.mxu0 %v986_v21  ;;  %3330 = vmatpush.msrb.mxu1 %v1020_v22  ;;  %v1046_v31 = vld [vmem:[%s6262_s12 + $0x16b0] sm:$0xff]  ;;  %v980_v33 = vld [vmem:[%s6262_s12 + $0x14a0] sm:$0xff] }
  0xc7   : > { %3351 = vmatpush.msrb.mxu2 %v1050_v23  ;;  %3370 = vmatpush.msrb.mxu3 %v1084_v24  ;;  %v1014_v34 = vld [vmem:[%s6262_s12 + $0x15b0] sm:$0xff]  ;;  %v1044_v35 = vld [vmem:[%s6262_s12 + $0x16a0] sm:$0xff] }
  0xc8   : > { %3312 = vmatpush.msrb.mxu0 %v984_v25  ;;  %3331 = vmatpush.msrb.mxu1 %v1018_v26  ;;  %v1078_v36 = vld [vmem:[%s6262_s12 + $0x17b0] sm:$0xff]  ;;  %v1012_v45 = vld [vmem:[%s6262_s12 + $0x15a0] sm:$0xff] }
  0xc9   : > { %3352 = vmatpush.msrb.mxu2 %v1048_v27  ;;  %3371 = vmatpush.msrb.mxu3 %v1082_v28  ;;  %v978_v44 = vld [vmem:[%s6262_s12 + $0x1490] sm:$0xff]  ;;  %v1076_v48 = vld [vmem:[%s6262_s12 + $0x17a0] sm:$0xff] }
  0xca   : > { %3313 = vmatpush.msrb.mxu0 %v982_v29  ;;  %3332 = vmatpush.msrb.mxu1 %v1016_v30  ;;  %v1042_v47 = vld [vmem:[%s6262_s12 + $0x1690] sm:$0xff]  ;;  %v976_v49 = vld [vmem:[%s6262_s12 + $0x1480] sm:$0xff] }
  0xcb   : > { %3353 = vmatpush.msrb.mxu2 %v1046_v31  ;;  %3372 = vmatpush.msrb.mxu3 %v1080_v32  ;;  %v1010_v50 = vld [vmem:[%s6262_s12 + $0x1590] sm:$0xff]  ;;  %v1040_v51 = vld [vmem:[%s6262_s12 + $0x1680] sm:$0xff] }
  0xcc   : > { %3314 = vmatpush.msrb.mxu0 %v980_v33  ;;  %3333 = vmatpush.msrb.mxu1 %v1014_v34  ;;  %v1074_v52 = vld [vmem:[%s6262_s12 + $0x1790] sm:$0xff]  ;;  %v1008_v58 = vld [vmem:[%s6262_s12 + $0x1580] sm:$0xff] }
  0xcd   : > { %3354 = vmatpush.msrb.mxu2 %v1044_v35  ;;  %3373 = vmatpush.msrb.mxu3 %v1078_v36  ;;  %v974_v53 = vld [vmem:[%s6262_s12 + $0x1470] sm:$0xff]  ;;  %v1072_v60 = vld [vmem:[%s6262_s12 + $0x1780] sm:$0xff] }
  0xce   : > { %3315 = vmatpush.msrb.mxu0 %v978_v44  ;;  %3334 = vmatpush.msrb.mxu1 %v1012_v45  ;;  %v1038_v59 = vld [vmem:[%s6262_s12 + $0x1670] sm:$0xff]  ;;  %v972_v61 = vld [vmem:[%s6262_s12 + $0x1460] sm:$0xff] }
  0xcf   : > { %3355 = vmatpush.msrb.mxu2 %v1042_v47  ;;  %3374 = vmatpush.msrb.mxu3 %v1076_v48  ;;  %v1006_v63 = vld [vmem:[%s6262_s12 + $0x1570] sm:$0xff]  ;;  %v1036_v0 = vld [vmem:[%s6262_s12 + $0x1660] sm:$0xff]  ;;  %v6724_v48 = vld.sshfl [vmem:[#allocation1 + $0x28] sm:$0xff pattern:$0x73625140] }
  0xd0   : > { %3316 = vmatpush.msrb.mxu0 %v976_v49  ;;  %3335 = vmatpush.msrb.mxu1 %v1010_v50  ;;  %v1070_v1 = vld [vmem:[%s6262_s12 + $0x1770] sm:$0xff]  ;;  %v1004_v5 = vld [vmem:[%s6262_s12 + $0x1560] sm:$0xff]  ;;  %v6726_v49 = vld.sshfl [vmem:[#allocation1 + $0x38] sm:$0xff pattern:$0x73625140] }
  0xd1   : > { %3356 = vmatpush.msrb.mxu2 %v1040_v51  ;;  %3375 = vmatpush.msrb.mxu3 %v1074_v52  ;;  %v970_v2 = vld [vmem:[%s6262_s12 + $0x1450] sm:$0xff]  ;;  %v1068_v7 = vld [vmem:[%s6262_s12 + $0x1760] sm:$0xff] }
  0xd2   : > { %3317 = vmatpush.msrb.mxu0 %v974_v53  ;;  %3336 = vmatpush.msrb.mxu1 %v1008_v58  ;;  %v1034_v6 = vld [vmem:[%s6262_s12 + $0x1650] sm:$0xff]  ;;  %v968_v11 = vld [vmem:[%s6262_s12 + $0x1440] sm:$0xff] }
  0xd3   : > { %3357 = vmatpush.msrb.mxu2 %v1038_v59  ;;  %3376 = vmatpush.msrb.mxu3 %v1072_v60  ;;  %v1002_v12 = vld [vmem:[%s6262_s12 + $0x1550] sm:$0xff]  ;;  %v1032_v13 = vld [vmem:[%s6262_s12 + $0x1640] sm:$0xff] }
  0xd4   : > { %3318 = vmatpush.msrb.mxu0 %v972_v61  ;;  %3337 = vmatpush.msrb.mxu1 %v1006_v63  ;;  %v1066_v14 = vld [vmem:[%s6262_s12 + $0x1750] sm:$0xff]  ;;  %v1000_v18 = vld [vmem:[%s6262_s12 + $0x1540] sm:$0xff] }
  0xd5   : > { %3358 = vmatpush.msrb.mxu2 %v1036_v0  ;;  %3377 = vmatpush.msrb.mxu3 %v1070_v1  ;;  %v966_v17 = vld [vmem:[%s6262_s12 + $0x1430] sm:$0xff]  ;;  %v1064_v20 = vld [vmem:[%s6262_s12 + $0x1740] sm:$0xff] }
  0xd6   : > { %3319 = vmatpush.msrb.mxu0 %v970_v2  ;;  %3338 = vmatpush.msrb.mxu1 %v1004_v5  ;;  %v1030_v19 = vld [vmem:[%s6262_s12 + $0x1630] sm:$0xff]  ;;  %v964_v21 = vld [vmem:[%s6262_s12 + $0x1420] sm:$0xff] }
  0xd7   : > { %3359 = vmatpush.msrb.mxu2 %v1034_v6  ;;  %3378 = vmatpush.msrb.mxu3 %v1068_v7  ;;  %v998_v22 = vld [vmem:[%s6262_s12 + $0x1530] sm:$0xff]  ;;  %v1028_v23 = vld [vmem:[%s6262_s12 + $0x1620] sm:$0xff] }
  0xd8   : > { %3320 = vmatpush.msrb.mxu0 %v968_v11  ;;  %3339 = vmatpush.msrb.mxu1 %v1002_v12  ;;  %v1062_v24 = vld [vmem:[%s6262_s12 + $0x1730] sm:$0xff]  ;;  %v996_v26 = vld [vmem:[%s6262_s12 + $0x1520] sm:$0xff] }
  0xd9   : > { %3360 = vmatpush.msrb.mxu2 %v1032_v13  ;;  %3379 = vmatpush.msrb.mxu3 %v1066_v14  ;;  %v962_v25 = vld [vmem:[%s6262_s12 + $0x1410] sm:$0xff]  ;;  %v1060_v29 = vld [vmem:[%s6262_s12 + $0x1720] sm:$0xff] }
  0xda   : > { %3321 = vmatpush.msrb.mxu0 %v966_v17  ;;  %3340 = vmatpush.msrb.mxu1 %v1000_v18  ;;  %v307_v27 = vld [vmem:[%s6257_s8 + $0x30] sm:$0xff]  ;;  %v960_v30 = vld [vmem:[%s6262_s12 + $0x1400] sm:$0xff] }
  0xdb   : > { %3361 = vmatpush.msrb.mxu2 %v1030_v19  ;;  %3380 = vmatpush.msrb.mxu3 %v1064_v20  ;;  %v1026_v28 = vld [vmem:[%s6262_s12 + $0x1610] sm:$0xff]  ;;  %2770 = vst [vmem:[#allocation1] ss:$4 sm:$0xff] %v307_v27  ;;  %v1024_v32 = vld [vmem:[%s6262_s12 + $0x1600] sm:$0xff] }
  0xdc   : > { %3322 = vmatpush.msrb.mxu0 %v964_v21  ;;  %3341 = vmatpush.msrb.mxu1 %v998_v22  ;;  %v994_v31 = vld [vmem:[%s6262_s12 + $0x1510] sm:$0xff]  ;;  %v6714_v34 = vld.sshfl [vmem:[#allocation1 + $0x20] sm:$0xff pattern:$0x73625140] }
  0xdd   : > { %3362 = vmatpush.msrb.mxu2 %v1028_v23  ;;  %3381 = vmatpush.msrb.mxu3 %v1062_v24  ;;  %v1058_v33 = vld [vmem:[%s6262_s12 + $0x1710] sm:$0xff]  ;;  %v992_v45 = vld [vmem:[%s6262_s12 + $0x1500] sm:$0xff] }
  0xde   : > { %3323 = vmatpush.msrb.mxu0 %v962_v25  ;;  %3342 = vmatpush.msrb.mxu1 %v996_v26  ;;  %v6716_v35 = vld.sshfl [vmem:[#allocation1 + $0x30] sm:$0xff pattern:$0x73625140]  ;;  %v1056_v47 = vld [vmem:[%s6262_s12 + $0x1700] sm:$0xff] }
  0xdf   : > { %3363 = vmatpush.msrb.mxu2 %v1026_v28  ;;  %3382 = vmatpush.msrb.mxu3 %v1060_v29  ;;  %v1118_v36 = vld [vmem:[%s6262_s12 + $0x18f0] sm:$0xff]  ;;  %v1116_v50 = vld [vmem:[%s6262_s12 + $0x18e0] sm:$0xff] }
  0xe0   : > { %3324 = vmatpush.msrb.mxu0 %v960_v30  ;;  %3343 = vmatpush.msrb.mxu1 %v994_v31  ;;  %v1182_v44 = vld [vmem:[%s6262_s12 + $0x1af0] sm:$0xff]  ;;  %v1180_v52 = vld [vmem:[%s6262_s12 + $0x1ae0] sm:$0xff] }
  0xe1   : > { %3364 = vmatpush.msrb.mxu2 %v1024_v32  ;;  %3383 = vmatpush.msrb.mxu3 %v1058_v33  ;;  %v1150_v51 = vld [vmem:[%s6262_s12 + $0x19f0] sm:$0xff]  ;;  %v1148_v59 = vld [vmem:[%s6262_s12 + $0x19e0] sm:$0xff] }
  0xe2   : > { %3325 = vmatmul.f32.vlgmr.msrb.gmra.mxu0 %v6714_v34  ;;  %3365 = vmatmul.f32.vlgmr.msrb.gmra.mxu2 %v6716_v35  ;;  %v1214_v53 = vld [vmem:[%s6262_s12 + $0x1bf0] sm:$0xff]  ;;  %v1212_v61 = vld [vmem:[%s6262_s12 + $0x1be0] sm:$0xff] }
  0xe3   : > { %3389 = vmatpush.msra.mxu0 %v1118_v36  ;;  %3429 = vmatpush.msra.mxu2 %v1182_v44  ;;  %v1114_v58 = vld [vmem:[%s6262_s12 + $0x18d0] sm:$0xff]  ;;  %v1112_v63 = vld [vmem:[%s6262_s12 + $0x18c0] sm:$0xff] }
  0xe4   : > { %3344 = vmatpush.msrb.mxu1 %v992_v45  ;;  %3384 = vmatpush.msrb.mxu3 %v1056_v47  ;;  %v1178_v60 = vld [vmem:[%s6262_s12 + $0x1ad0] sm:$0xff]  ;;  %v1176_v1 = vld [vmem:[%s6262_s12 + $0x1ac0] sm:$0xff] }
  0xe5   : > { %3345 = vmatmul.f32.vlgmr.msrb.gmra.mxu1 %v6724_v48  ;;  %3385 = vmatmul.f32.vlgmr.msrb.gmra.mxu3 %v6726_v49  ;;  %v1146_v0 = vld [vmem:[%s6262_s12 + $0x19d0] sm:$0xff]  ;;  %v1144_v6 = vld [vmem:[%s6262_s12 + $0x19c0] sm:$0xff] }
  0xe6   : > { %3390 = vmatpush.msra.mxu0 %v1116_v50  ;;  %3409 = vmatpush.msra.mxu1 %v1150_v51  ;;  %v1210_v2 = vld [vmem:[%s6262_s12 + $0x1bd0] sm:$0xff]  ;;  %v1208_v11 = vld [vmem:[%s6262_s12 + $0x1bc0] sm:$0xff] }
  0xe7   : > { %3430 = vmatpush.msra.mxu2 %v1180_v52  ;;  %3449 = vmatpush.msra.mxu3 %v1214_v53  ;;  %v1110_v5 = vld [vmem:[%s6262_s12 + $0x18b0] sm:$0xff]  ;;  %v1108_v12 = vld [vmem:[%s6262_s12 + $0x18a0] sm:$0xff] }
  0xe8   : > { %3391 = vmatpush.msra.mxu0 %v1114_v58  ;;  %3410 = vmatpush.msra.mxu1 %v1148_v59  ;;  %v1174_v7 = vld [vmem:[%s6262_s12 + $0x1ab0] sm:$0xff]  ;;  %v1172_v14 = vld [vmem:[%s6262_s12 + $0x1aa0] sm:$0xff] }
  0xe9   : > { %3431 = vmatpush.msra.mxu2 %v1178_v60  ;;  %3450 = vmatpush.msra.mxu3 %v1212_v61  ;;  %v1142_v13 = vld [vmem:[%s6262_s12 + $0x19b0] sm:$0xff]  ;;  %v1140_v19 = vld [vmem:[%s6262_s12 + $0x19a0] sm:$0xff] }
  0xea   : > { %3392 = vmatpush.msra.mxu0 %v1112_v63  ;;  %3411 = vmatpush.msra.mxu1 %v1146_v0  ;;  %v1206_v17 = vld [vmem:[%s6262_s12 + $0x1bb0] sm:$0xff]  ;;  %v1204_v21 = vld [vmem:[%s6262_s12 + $0x1ba0] sm:$0xff] }
  0xeb   : > { %3432 = vmatpush.msra.mxu2 %v1176_v1  ;;  %3451 = vmatpush.msra.mxu3 %v1210_v2  ;;  %v1106_v18 = vld [vmem:[%s6262_s12 + $0x1890] sm:$0xff]  ;;  %v1104_v22 = vld [vmem:[%s6262_s12 + $0x1880] sm:$0xff] }
  0xec   : > { %3393 = vmatpush.msra.mxu0 %v1110_v5  ;;  %3412 = vmatpush.msra.mxu1 %v1144_v6  ;;  %v1170_v20 = vld [vmem:[%s6262_s12 + $0x1a90] sm:$0xff]  ;;  %v1168_v24 = vld [vmem:[%s6262_s12 + $0x1a80] sm:$0xff] }
  0xed   : > { %3433 = vmatpush.msra.mxu2 %v1174_v7  ;;  %3452 = vmatpush.msra.mxu3 %v1208_v11  ;;  %v1138_v23 = vld [vmem:[%s6262_s12 + $0x1990] sm:$0xff]  ;;  %v1136_v27 = vld [vmem:[%s6262_s12 + $0x1980] sm:$0xff]  ;;  %v308_v7 = vld [vmem:[%s6257_s8 + $0x38] sm:$0xff] }
  0xee   : > { %3394 = vmatpush.msra.mxu0 %v1108_v12  ;;  %3413 = vmatpush.msra.mxu1 %v1142_v13  ;;  %v1202_v25 = vld [vmem:[%s6262_s12 + $0x1b90] sm:$0xff]  ;;  %v1200_v29 = vld [vmem:[%s6262_s12 + $0x1b80] sm:$0xff]  ;;  %2771 = vst [vmem:[#allocation1 + $0x20] ss:$4 sm:$0xff] %v308_v7 }
  0xef   : > { %3434 = vmatpush.msra.mxu2 %v1172_v14  ;;  %3453 = vmatpush.msra.mxu3 %v1206_v17  ;;  %v1102_v26 = vld [vmem:[%s6262_s12 + $0x1870] sm:$0xff]  ;;  %v1100_v30 = vld [vmem:[%s6262_s12 + $0x1860] sm:$0xff] }
  0xf0   : > { %3395 = vmatpush.msra.mxu0 %v1106_v18  ;;  %3414 = vmatpush.msra.mxu1 %v1140_v19  ;;  %v1166_v28 = vld [vmem:[%s6262_s12 + $0x1a70] sm:$0xff]  ;;  %v1164_v32 = vld [vmem:[%s6262_s12 + $0x1a60] sm:$0xff] }
  0xf1   : > { %3435 = vmatpush.msra.mxu2 %v1170_v20  ;;  %3454 = vmatpush.msra.mxu3 %v1204_v21  ;;  %v1134_v31 = vld [vmem:[%s6262_s12 + $0x1970] sm:$0xff]  ;;  %v1132_v44 = vld [vmem:[%s6262_s12 + $0x1960] sm:$0xff] }
  0xf2   : > { %3396 = vmatpush.msra.mxu0 %v1104_v22  ;;  %3415 = vmatpush.msra.mxu1 %v1138_v23  ;;  %v1198_v33 = vld [vmem:[%s6262_s12 + $0x1b70] sm:$0xff]  ;;  %v1196_v47 = vld [vmem:[%s6262_s12 + $0x1b60] sm:$0xff] }
  0xf3   : > { %3436 = vmatpush.msra.mxu2 %v1168_v24  ;;  %3455 = vmatpush.msra.mxu3 %v1202_v25  ;;  %v1098_v36 = vld [vmem:[%s6262_s12 + $0x1850] sm:$0xff]  ;;  %v1096_v50 = vld [vmem:[%s6262_s12 + $0x1840] sm:$0xff]  ;;  %v6801_v25 = vld.sshfl [vmem:[#allocation1 + $0x8] sm:$0xff pattern:$0x73625140] }
  0xf4   : > { %3397 = vmatpush.msra.mxu0 %v1102_v26  ;;  %3416 = vmatpush.msra.mxu1 %v1136_v27  ;;  %v1162_v45 = vld [vmem:[%s6262_s12 + $0x1a50] sm:$0xff]  ;;  %v1160_v52 = vld [vmem:[%s6262_s12 + $0x1a40] sm:$0xff]  ;;  %v6803_v26 = vld.sshfl [vmem:[#allocation1 + $0x18] sm:$0xff pattern:$0x73625140] }
  0xf5   : > { %3437 = vmatpush.msra.mxu2 %v1166_v28  ;;  %3456 = vmatpush.msra.mxu3 %v1200_v29  ;;  %v1130_v51 = vld [vmem:[%s6262_s12 + $0x1950] sm:$0xff]  ;;  %v1128_v59 = vld [vmem:[%s6262_s12 + $0x1940] sm:$0xff] }
  0xf6   : > { %3398 = vmatpush.msra.mxu0 %v1100_v30  ;;  %3417 = vmatpush.msra.mxu1 %v1134_v31  ;;  %v1194_v53 = vld [vmem:[%s6262_s12 + $0x1b50] sm:$0xff]  ;;  %v1192_v61 = vld [vmem:[%s6262_s12 + $0x1b40] sm:$0xff] }
  0xf7   : > { %3438 = vmatpush.msra.mxu2 %v1164_v32  ;;  %3457 = vmatpush.msra.mxu3 %v1198_v33  ;;  %v1094_v58 = vld [vmem:[%s6262_s12 + $0x1830] sm:$0xff]  ;;  %v1092_v63 = vld [vmem:[%s6262_s12 + $0x1820] sm:$0xff] }
  0xf8   : > { %3399 = vmatpush.msra.mxu0 %v1098_v36  ;;  %3418 = vmatpush.msra.mxu1 %v1132_v44  ;;  %v1158_v60 = vld [vmem:[%s6262_s12 + $0x1a30] sm:$0xff]  ;;  %v1156_v1 = vld [vmem:[%s6262_s12 + $0x1a20] sm:$0xff] }
  0xf9   : > { %3439 = vmatpush.msra.mxu2 %v1162_v45  ;;  %3458 = vmatpush.msra.mxu3 %v1196_v47  ;;  %v1126_v0 = vld [vmem:[%s6262_s12 + $0x1930] sm:$0xff]  ;;  %v1124_v6 = vld [vmem:[%s6262_s12 + $0x1920] sm:$0xff] }
  0xfa   : > { %3400 = vmatpush.msra.mxu0 %v1096_v50  ;;  %3419 = vmatpush.msra.mxu1 %v1130_v51  ;;  %v1190_v2 = vld [vmem:[%s6262_s12 + $0x1b30] sm:$0xff]  ;;  %v1188_v12 = vld [vmem:[%s6262_s12 + $0x1b20] sm:$0xff] }
  0xfb   : > { %3440 = vmatpush.msra.mxu2 %v1160_v52  ;;  %3459 = vmatpush.msra.mxu3 %v1194_v53  ;;  %v1090_v5 = vld [vmem:[%s6262_s12 + $0x1810] sm:$0xff]  ;;  %v1088_v13 = vld [vmem:[%s6262_s12 + $0x1800] sm:$0xff] }
  0xfc   : > { %3401 = vmatpush.msra.mxu0 %v1094_v58  ;;  %3420 = vmatpush.msra.mxu1 %v1128_v59  ;;  %v1154_v11 = vld [vmem:[%s6262_s12 + $0x1a10] sm:$0xff]  ;;  %v1152_v17 = vld [vmem:[%s6262_s12 + $0x1a00] sm:$0xff] }
  0xfd   : > { %3441 = vmatpush.msra.mxu2 %v1158_v60  ;;  %3460 = vmatpush.msra.mxu3 %v1192_v61  ;;  %v1122_v14 = vld [vmem:[%s6262_s12 + $0x1910] sm:$0xff]  ;;  %v6791_v19 = vld.sshfl [vmem:[#allocation1] sm:$0xff pattern:$0x73625140] }
  0xfe   : > { %3402 = vmatpush.msra.mxu0 %v1092_v63  ;;  %3421 = vmatpush.msra.mxu1 %v1126_v0  ;;  %v1186_v18 = vld [vmem:[%s6262_s12 + $0x1b10] sm:$0xff]  ;;  %v1120_v23 = vld [vmem:[%s6262_s12 + $0x1900] sm:$0xff] }
  0xff   : > { %3442 = vmatpush.msra.mxu2 %v1156_v1  ;;  %3461 = vmatpush.msra.mxu3 %v1190_v2  ;;  %v6793_v20 = vld.sshfl [vmem:[#allocation1 + $0x10] sm:$0xff pattern:$0x73625140]  ;;  %v1184_v24 = vld [vmem:[%s6262_s12 + $0x1b00] sm:$0xff] }
 0x100   : > { %3403 = vmatpush.msra.mxu0 %v1090_v5  ;;  %3422 = vmatpush.msra.mxu1 %v1124_v6  ;;  %v1246_v21 = vld [vmem:[%s6262_s12 + $0x1cf0] sm:$0xff]  ;;  %v1244_v27 = vld [vmem:[%s6262_s12 + $0x1ce0] sm:$0xff] }
 0x101   : > { %3443 = vmatpush.msra.mxu2 %v1154_v11  ;;  %3462 = vmatpush.msra.mxu3 %v1188_v12  ;;  %v1310_v22 = vld [vmem:[%s6262_s12 + $0x1ef0] sm:$0xff]  ;;  %v1308_v29 = vld [vmem:[%s6262_s12 + $0x1ee0] sm:$0xff] }
 0x102   : > { %3404 = vmatpush.msra.mxu0 %v1088_v13  ;;  %3423 = vmatpush.msra.mxu1 %v1122_v14  ;;  %v1278_v28 = vld [vmem:[%s6262_s12 + $0x1df0] sm:$0xff]  ;;  %v1276_v32 = vld [vmem:[%s6262_s12 + $0x1de0] sm:$0xff] }
 0x103   : > { %3444 = vmatpush.msra.mxu2 %v1152_v17  ;;  %3463 = vmatpush.msra.mxu3 %v1186_v18  ;;  %v1342_v30 = vld [vmem:[%s6262_s12 + $0x1ff0] sm:$0xff]  ;;  %v1340_v36 = vld [vmem:[%s6262_s12 + $0x1fe0] sm:$0xff] }
 0x104   : > { %3405 = vmatmul.f32.vlgmr.msra.gmra.mxu0 %v6791_v19  ;;  %3445 = vmatmul.f32.vlgmr.msra.gmra.mxu2 %v6793_v20  ;;  %v1242_v31 = vld [vmem:[%s6262_s12 + $0x1cd0] sm:$0xff]  ;;  %v1240_v44 = vld [vmem:[%s6262_s12 + $0x1cc0] sm:$0xff] }
 0x105   : > { %3469 = vmatpush.msrb.mxu0 %v1246_v21  ;;  %3509 = vmatpush.msrb.mxu2 %v1310_v22  ;;  %v1306_v33 = vld [vmem:[%s6262_s12 + $0x1ed0] sm:$0xff]  ;;  %v1304_v47 = vld [vmem:[%s6262_s12 + $0x1ec0] sm:$0xff] }
 0x106   : > { %3424 = vmatpush.msra.mxu1 %v1120_v23  ;;  %3464 = vmatpush.msra.mxu3 %v1184_v24  ;;  %v1274_v45 = vld [vmem:[%s6262_s12 + $0x1dd0] sm:$0xff]  ;;  %v1272_v52 = vld [vmem:[%s6262_s12 + $0x1dc0] sm:$0xff] }
 0x107   : > { %3425 = vmatmul.f32.vlgmr.msra.gmra.mxu1 %v6801_v25  ;;  %3465 = vmatmul.f32.vlgmr.msra.gmra.mxu3 %v6803_v26  ;;  %v1338_v50 = vld [vmem:[%s6262_s12 + $0x1fd0] sm:$0xff]  ;;  %v1336_v58 = vld [vmem:[%s6262_s12 + $0x1fc0] sm:$0xff] }
 0x108   : > { %3470 = vmatpush.msrb.mxu0 %v1244_v27  ;;  %3489 = vmatpush.msrb.mxu1 %v1278_v28  ;;  %v1238_v51 = vld [vmem:[%s6262_s12 + $0x1cb0] sm:$0xff]  ;;  %v1236_v59 = vld [vmem:[%s6262_s12 + $0x1ca0] sm:$0xff] }
 0x109   : > { %3510 = vmatpush.msrb.mxu2 %v1308_v29  ;;  %3529 = vmatpush.msrb.mxu3 %v1342_v30  ;;  %v1302_v53 = vld [vmem:[%s6262_s12 + $0x1eb0] sm:$0xff]  ;;  %v1300_v61 = vld [vmem:[%s6262_s12 + $0x1ea0] sm:$0xff] }
 0x10a   : > { %3471 = vmatpush.msrb.mxu0 %v1242_v31  ;;  %3490 = vmatpush.msrb.mxu1 %v1276_v32  ;;  %v1270_v60 = vld [vmem:[%s6262_s12 + $0x1db0] sm:$0xff]  ;;  %v1268_v1 = vld [vmem:[%s6262_s12 + $0x1da0] sm:$0xff] }
 0x10b   : > { %3511 = vmatpush.msrb.mxu2 %v1306_v33  ;;  %3530 = vmatpush.msrb.mxu3 %v1340_v36  ;;  %v1334_v63 = vld [vmem:[%s6262_s12 + $0x1fb0] sm:$0xff]  ;;  %v1332_v5 = vld [vmem:[%s6262_s12 + $0x1fa0] sm:$0xff] }
 0x10c   : > { %3472 = vmatpush.msrb.mxu0 %v1240_v44  ;;  %3491 = vmatpush.msrb.mxu1 %v1274_v45  ;;  %v1234_v0 = vld [vmem:[%s6262_s12 + $0x1c90] sm:$0xff]  ;;  %v1232_v6 = vld [vmem:[%s6262_s12 + $0x1c80] sm:$0xff] }
 0x10d   : > { %3512 = vmatpush.msrb.mxu2 %v1304_v47  ;;  %3531 = vmatpush.msrb.mxu3 %v1338_v50  ;;  %v1298_v2 = vld [vmem:[%s6262_s12 + $0x1e90] sm:$0xff]  ;;  %v1296_v11 = vld [vmem:[%s6262_s12 + $0x1e80] sm:$0xff] }
 0x10e   : > { %3473 = vmatpush.msrb.mxu0 %v1238_v51  ;;  %3492 = vmatpush.msrb.mxu1 %v1272_v52  ;;  %v1266_v7 = vld [vmem:[%s6262_s12 + $0x1d90] sm:$0xff]  ;;  %v1264_v14 = vld [vmem:[%s6262_s12 + $0x1d80] sm:$0xff] }
 0x10f   : > { %3513 = vmatpush.msrb.mxu2 %v1302_v53  ;;  %3532 = vmatpush.msrb.mxu3 %v1336_v58  ;;  %v1330_v12 = vld [vmem:[%s6262_s12 + $0x1f90] sm:$0xff]  ;;  %v1328_v18 = vld [vmem:[%s6262_s12 + $0x1f80] sm:$0xff] }
 0x110   : > { %3474 = vmatpush.msrb.mxu0 %v1236_v59  ;;  %3493 = vmatpush.msrb.mxu1 %v1270_v60  ;;  %v1230_v13 = vld [vmem:[%s6262_s12 + $0x1c70] sm:$0xff]  ;;  %v1228_v21 = vld [vmem:[%s6262_s12 + $0x1c60] sm:$0xff] }
 0x111   : > { %3514 = vmatpush.msrb.mxu2 %v1300_v61  ;;  %3533 = vmatpush.msrb.mxu3 %v1334_v63  ;;  %v1294_v17 = vld [vmem:[%s6262_s12 + $0x1e70] sm:$0xff]  ;;  %v1292_v23 = vld [vmem:[%s6262_s12 + $0x1e60] sm:$0xff] }
 0x112   : > { %3475 = vmatpush.msrb.mxu0 %v1234_v0  ;;  %3494 = vmatpush.msrb.mxu1 %v1268_v1  ;;  %v1262_v22 = vld [vmem:[%s6262_s12 + $0x1d70] sm:$0xff]  ;;  %v1260_v28 = vld [vmem:[%s6262_s12 + $0x1d60] sm:$0xff] }
 0x113   : > { %3515 = vmatpush.msrb.mxu2 %v1298_v2  ;;  %3534 = vmatpush.msrb.mxu3 %v1332_v5  ;;  %v1326_v24 = vld [vmem:[%s6262_s12 + $0x1f70] sm:$0xff]  ;;  %v1324_v30 = vld [vmem:[%s6262_s12 + $0x1f60] sm:$0xff] }
 0x114   : > { %3476 = vmatpush.msrb.mxu0 %v1232_v6  ;;  %3495 = vmatpush.msrb.mxu1 %v1266_v7  ;;  %v1226_v27 = vld [vmem:[%s6262_s12 + $0x1c50] sm:$0xff]  ;;  %v1224_v31 = vld [vmem:[%s6262_s12 + $0x1c40] sm:$0xff] }
 0x115   : > { %3516 = vmatpush.msrb.mxu2 %v1296_v11  ;;  %3535 = vmatpush.msrb.mxu3 %v1330_v12  ;;  %v1290_v29 = vld [vmem:[%s6262_s12 + $0x1e50] sm:$0xff]  ;;  %v1288_v33 = vld [vmem:[%s6262_s12 + $0x1e40] sm:$0xff] }
 0x116   : > { %3477 = vmatpush.msrb.mxu0 %v1230_v13  ;;  %3496 = vmatpush.msrb.mxu1 %v1264_v14  ;;  %v1258_v32 = vld [vmem:[%s6262_s12 + $0x1d50] sm:$0xff]  ;;  %v1256_v45 = vld [vmem:[%s6262_s12 + $0x1d40] sm:$0xff] }
 0x117   : > { %3517 = vmatpush.msrb.mxu2 %v1294_v17  ;;  %3536 = vmatpush.msrb.mxu3 %v1328_v18  ;;  %v1322_v36 = vld [vmem:[%s6262_s12 + $0x1f50] sm:$0xff]  ;;  %v1320_v50 = vld [vmem:[%s6262_s12 + $0x1f40] sm:$0xff]  ;;  %v6878_v18 = vld.sshfl [vmem:[#allocation1 + $0x28] sm:$0xff pattern:$0x73625140] }
 0x118   : > { %3478 = vmatpush.msrb.mxu0 %v1228_v21  ;;  %3497 = vmatpush.msrb.mxu1 %v1262_v22  ;;  %v1222_v44 = vld [vmem:[%s6262_s12 + $0x1c30] sm:$0xff]  ;;  %v1220_v51 = vld [vmem:[%s6262_s12 + $0x1c20] sm:$0xff]  ;;  %v6880_v21 = vld.sshfl [vmem:[#allocation1 + $0x38] sm:$0xff pattern:$0x73625140] }
 0x119   : > { %3518 = vmatpush.msrb.mxu2 %v1292_v23  ;;  %3537 = vmatpush.msrb.mxu3 %v1326_v24  ;;  %v1286_v47 = vld [vmem:[%s6262_s12 + $0x1e30] sm:$0xff]  ;;  %v1284_v53 = vld [vmem:[%s6262_s12 + $0x1e20] sm:$0xff] }
 0x11a   : > { %3479 = vmatpush.msrb.mxu0 %v1226_v27  ;;  %3498 = vmatpush.msrb.mxu1 %v1260_v28  ;;  %v1254_v52 = vld [vmem:[%s6262_s12 + $0x1d30] sm:$0xff]  ;;  %v1252_v60 = vld [vmem:[%s6262_s12 + $0x1d20] sm:$0xff] }
 0x11b   : > { %3519 = vmatpush.msrb.mxu2 %v1290_v29  ;;  %3538 = vmatpush.msrb.mxu3 %v1324_v30  ;;  %v1318_v58 = vld [vmem:[%s6262_s12 + $0x1f30] sm:$0xff]  ;;  %v309_v61 = vld [vmem:[%s6257_s8 + $0x40] sm:$0xff] }
 0x11c   : > { %3480 = vmatpush.msrb.mxu0 %v1224_v31  ;;  %3499 = vmatpush.msrb.mxu1 %v1258_v32  ;;  %v1218_v59 = vld [vmem:[%s6262_s12 + $0x1c10] sm:$0xff]  ;;  %v1316_v0 = vld [vmem:[%s6262_s12 + $0x1f20] sm:$0xff]  ;;  %2780 = vst [vmem:[#allocation1] ss:$4 sm:$0xff] %v309_v61 }
 0x11d   : > { %3520 = vmatpush.msrb.mxu2 %v1288_v33  ;;  %3539 = vmatpush.msrb.mxu3 %v1322_v36  ;;  %v1282_v63 = vld [vmem:[%s6262_s12 + $0x1e10] sm:$0xff]  ;;  %v1216_v1 = vld [vmem:[%s6262_s12 + $0x1c00] sm:$0xff] }
 0x11e   : > { %3481 = vmatpush.msrb.mxu0 %v1222_v44  ;;  %3500 = vmatpush.msrb.mxu1 %v1256_v45  ;;  %v1250_v2 = vld [vmem:[%s6262_s12 + $0x1d10] sm:$0xff]  ;;  %v1280_v5 = vld [vmem:[%s6262_s12 + $0x1e00] sm:$0xff] }
 0x11f   : > { %3521 = vmatpush.msrb.mxu2 %v1286_v47  ;;  %3540 = vmatpush.msrb.mxu3 %v1320_v50  ;;  %v1314_v6 = vld [vmem:[%s6262_s12 + $0x1f10] sm:$0xff]  ;;  %v6868_v7 = vld.sshfl [vmem:[#allocation1 + $0x20] sm:$0xff pattern:$0x73625140] }
 0x120   : > { %3482 = vmatpush.msrb.mxu0 %v1220_v51  ;;  %3501 = vmatpush.msrb.mxu1 %v1254_v52  ;;  %v6870_v11 = vld.sshfl [vmem:[#allocation1 + $0x30] sm:$0xff pattern:$0x73625140]  ;;  %v1248_v14 = vld [vmem:[%s6262_s12 + $0x1d00] sm:$0xff] }
 0x121   : > { %3522 = vmatpush.msrb.mxu2 %v1284_v53  ;;  %3541 = vmatpush.msrb.mxu3 %v1318_v58  ;;  %v1374_v12 = vld [vmem:[%s6262_s12 + $0x20f0] sm:$0xff]  ;;  %v1312_v17 = vld [vmem:[%s6262_s12 + $0x1f00] sm:$0xff] }
 0x122   : > { %3483 = vmatpush.msrb.mxu0 %v1218_v59  ;;  %3502 = vmatpush.msrb.mxu1 %v1252_v60  ;;  %v1438_v13 = vld [vmem:[%s6262_s12 + $0x22f0] sm:$0xff]  ;;  %v1372_v22 = vld [vmem:[%s6262_s12 + $0x20e0] sm:$0xff] }
 0x123   : > { %3523 = vmatpush.msrb.mxu2 %v1282_v63  ;;  %3542 = vmatpush.msrb.mxu3 %v1316_v0  ;;  %v1406_v23 = vld [vmem:[%s6262_s12 + $0x21f0] sm:$0xff]  ;;  %v1436_v24 = vld [vmem:[%s6262_s12 + $0x22e0] sm:$0xff] }
 0x124   : > { %3484 = vmatpush.msrb.mxu0 %v1216_v1  ;;  %3503 = vmatpush.msrb.mxu1 %v1250_v2  ;;  %v1470_v27 = vld [vmem:[%s6262_s12 + $0x23f0] sm:$0xff]  ;;  %v1404_v29 = vld [vmem:[%s6262_s12 + $0x21e0] sm:$0xff] }
 0x125   : > { %3524 = vmatpush.msrb.mxu2 %v1280_v5  ;;  %3543 = vmatpush.msrb.mxu3 %v1314_v6  ;;  %v1370_v28 = vld [vmem:[%s6262_s12 + $0x20d0] sm:$0xff]  ;;  %v1468_v31 = vld [vmem:[%s6262_s12 + $0x23e0] sm:$0xff] }
 0x126   : > { %3485 = vmatmul.f32.vlgmr.msrb.gmra.mxu0 %v6868_v7  ;;  %3525 = vmatmul.f32.vlgmr.msrb.gmra.mxu2 %v6870_v11  ;;  %v1434_v30 = vld [vmem:[%s6262_s12 + $0x22d0] sm:$0xff]  ;;  %v1368_v32 = vld [vmem:[%s6262_s12 + $0x20c0] sm:$0xff] }
 0x127   : > { %3549 = vmatpush.msra.mxu0 %v1374_v12  ;;  %3589 = vmatpush.msra.mxu2 %v1438_v13  ;;  %v1402_v33 = vld [vmem:[%s6262_s12 + $0x21d0] sm:$0xff]  ;;  %v1432_v36 = vld [vmem:[%s6262_s12 + $0x22c0] sm:$0xff] }
 0x128   : > { %3504 = vmatpush.msrb.mxu1 %v1248_v14  ;;  %3544 = vmatpush.msrb.mxu3 %v1312_v17  ;;  %v1466_v44 = vld [vmem:[%s6262_s12 + $0x23d0] sm:$0xff]  ;;  %v1400_v47 = vld [vmem:[%s6262_s12 + $0x21c0] sm:$0xff] }
 0x129   : > { %3505 = vmatmul.f32.vlgmr.msrb.gmra.mxu1 %v6878_v18  ;;  %3545 = vmatmul.f32.vlgmr.msrb.gmra.mxu3 %v6880_v21  ;;  %v1366_v45 = vld [vmem:[%s6262_s12 + $0x20b0] sm:$0xff]  ;;  %v1464_v51 = vld [vmem:[%s6262_s12 + $0x23c0] sm:$0xff] }
 0x12a   : > { %3550 = vmatpush.msra.mxu0 %v1372_v22  ;;  %3569 = vmatpush.msra.mxu1 %v1406_v23  ;;  %v1430_v50 = vld [vmem:[%s6262_s12 + $0x22b0] sm:$0xff]  ;;  %v1364_v52 = vld [vmem:[%s6262_s12 + $0x20a0] sm:$0xff] }
 0x12b   : > { %3590 = vmatpush.msra.mxu2 %v1436_v24  ;;  %3609 = vmatpush.msra.mxu3 %v1470_v27  ;;  %v1398_v53 = vld [vmem:[%s6262_s12 + $0x21b0] sm:$0xff]  ;;  %v1428_v58 = vld [vmem:[%s6262_s12 + $0x22a0] sm:$0xff] }
 0x12c   : > { %3551 = vmatpush.msra.mxu0 %v1370_v28  ;;  %3570 = vmatpush.msra.mxu1 %v1404_v29  ;;  %v1462_v59 = vld [vmem:[%s6262_s12 + $0x23b0] sm:$0xff]  ;;  %v1396_v61 = vld [vmem:[%s6262_s12 + $0x21a0] sm:$0xff] }
 0x12d   : > { %3591 = vmatpush.msra.mxu2 %v1434_v30  ;;  %3610 = vmatpush.msra.mxu3 %v1468_v31  ;;  %v1362_v60 = vld [vmem:[%s6262_s12 + $0x2090] sm:$0xff]  ;;  %v1460_v0 = vld [vmem:[%s6262_s12 + $0x23a0] sm:$0xff] }
 0x12e   : > { %3552 = vmatpush.msra.mxu0 %v1368_v32  ;;  %3571 = vmatpush.msra.mxu1 %v1402_v33  ;;  %v1426_v63 = vld [vmem:[%s6262_s12 + $0x2290] sm:$0xff]  ;;  %v1360_v1 = vld [vmem:[%s6262_s12 + $0x2080] sm:$0xff] }
 0x12f   : > { %3592 = vmatpush.msra.mxu2 %v1432_v36  ;;  %3611 = vmatpush.msra.mxu3 %v1466_v44  ;;  %v1394_v2 = vld [vmem:[%s6262_s12 + $0x2190] sm:$0xff]  ;;  %v1424_v5 = vld [vmem:[%s6262_s12 + $0x2280] sm:$0xff] }
 0x130   : > { %3553 = vmatpush.msra.mxu0 %v1366_v45  ;;  %3572 = vmatpush.msra.mxu1 %v1400_v47  ;;  %v1458_v6 = vld [vmem:[%s6262_s12 + $0x2390] sm:$0xff]  ;;  %v1392_v13 = vld [vmem:[%s6262_s12 + $0x2180] sm:$0xff] }
 0x131   : > { %3593 = vmatpush.msra.mxu2 %v1430_v50  ;;  %3612 = vmatpush.msra.mxu3 %v1464_v51  ;;  %v1358_v12 = vld [vmem:[%s6262_s12 + $0x2070] sm:$0xff]  ;;  %v1456_v17 = vld [vmem:[%s6262_s12 + $0x2380] sm:$0xff] }
 0x132   : > { %3554 = vmatpush.msra.mxu0 %v1364_v52  ;;  %3573 = vmatpush.msra.mxu1 %v1398_v53  ;;  %v1422_v14 = vld [vmem:[%s6262_s12 + $0x2270] sm:$0xff]  ;;  %v1356_v22 = vld [vmem:[%s6262_s12 + $0x2060] sm:$0xff] }
 0x133   : > { %3594 = vmatpush.msra.mxu2 %v1428_v58  ;;  %3613 = vmatpush.msra.mxu3 %v1462_v59  ;;  %v1390_v23 = vld [vmem:[%s6262_s12 + $0x2170] sm:$0xff]  ;;  %v1420_v24 = vld [vmem:[%s6262_s12 + $0x2260] sm:$0xff] }
 0x134   : > { %3555 = vmatpush.msra.mxu0 %v1362_v60  ;;  %3574 = vmatpush.msra.mxu1 %v1396_v61  ;;  %v1454_v27 = vld [vmem:[%s6262_s12 + $0x2370] sm:$0xff]  ;;  %v1388_v29 = vld [vmem:[%s6262_s12 + $0x2160] sm:$0xff] }
 0x135   : > { %3595 = vmatpush.msra.mxu2 %v1426_v63  ;;  %3614 = vmatpush.msra.mxu3 %v1460_v0  ;;  %v1354_v28 = vld [vmem:[%s6262_s12 + $0x2050] sm:$0xff]  ;;  %v1452_v31 = vld [vmem:[%s6262_s12 + $0x2360] sm:$0xff]  ;;  %v310_v63 = vld [vmem:[%s6257_s8 + $0x48] sm:$0xff] }
 0x136   : > { %3556 = vmatpush.msra.mxu0 %v1360_v1  ;;  %3575 = vmatpush.msra.mxu1 %v1394_v2  ;;  %v1418_v30 = vld [vmem:[%s6262_s12 + $0x2250] sm:$0xff]  ;;  %v1352_v32 = vld [vmem:[%s6262_s12 + $0x2040] sm:$0xff]  ;;  %2781 = vst [vmem:[#allocation1 + $0x20] ss:$4 sm:$0xff] %v310_v63 }
 0x137   : > { %3596 = vmatpush.msra.mxu2 %v1424_v5  ;;  %3615 = vmatpush.msra.mxu3 %v1458_v6  ;;  %v1386_v33 = vld [vmem:[%s6262_s12 + $0x2150] sm:$0xff]  ;;  %v1416_v36 = vld [vmem:[%s6262_s12 + $0x2240] sm:$0xff] }
 0x138   : > { %3557 = vmatpush.msra.mxu0 %v1358_v12  ;;  %3576 = vmatpush.msra.mxu1 %v1392_v13  ;;  %v1450_v44 = vld [vmem:[%s6262_s12 + $0x2350] sm:$0xff]  ;;  %v1384_v47 = vld [vmem:[%s6262_s12 + $0x2140] sm:$0xff] }
 0x139   : > { %3597 = vmatpush.msra.mxu2 %v1422_v14  ;;  %3616 = vmatpush.msra.mxu3 %v1456_v17  ;;  %v1350_v45 = vld [vmem:[%s6262_s12 + $0x2030] sm:$0xff]  ;;  %v1448_v51 = vld [vmem:[%s6262_s12 + $0x2340] sm:$0xff] }
 0x13a   : > { %3558 = vmatpush.msra.mxu0 %v1356_v22  ;;  %3577 = vmatpush.msra.mxu1 %v1390_v23  ;;  %v1414_v50 = vld [vmem:[%s6262_s12 + $0x2230] sm:$0xff]  ;;  %v1348_v52 = vld [vmem:[%s6262_s12 + $0x2020] sm:$0xff] }
 0x13b   : > { %3598 = vmatpush.msra.mxu2 %v1420_v24  ;;  %3617 = vmatpush.msra.mxu3 %v1454_v27  ;;  %v1382_v53 = vld [vmem:[%s6262_s12 + $0x2130] sm:$0xff]  ;;  %v1412_v58 = vld [vmem:[%s6262_s12 + $0x2220] sm:$0xff]  ;;  %v6955_v27 = vld.sshfl [vmem:[#allocation1 + $0x8] sm:$0xff pattern:$0x73625140] }
 0x13c   : > { %3559 = vmatpush.msra.mxu0 %v1354_v28  ;;  %3578 = vmatpush.msra.mxu1 %v1388_v29  ;;  %v1446_v59 = vld [vmem:[%s6262_s12 + $0x2330] sm:$0xff]  ;;  %v1380_v61 = vld [vmem:[%s6262_s12 + $0x2120] sm:$0xff]  ;;  %v6957_v28 = vld.sshfl [vmem:[#allocation1 + $0x18] sm:$0xff pattern:$0x73625140] }
 0x13d   : > { %3599 = vmatpush.msra.mxu2 %v1418_v30  ;;  %3618 = vmatpush.msra.mxu3 %v1452_v31  ;;  %v1346_v60 = vld [vmem:[%s6262_s12 + $0x2010] sm:$0xff]  ;;  %v1444_v1 = vld [vmem:[%s6262_s12 + $0x2320] sm:$0xff] }
 0x13e   : > { %3560 = vmatpush.msra.mxu0 %v1352_v32  ;;  %3579 = vmatpush.msra.mxu1 %v1386_v33  ;;  %v1410_v0 = vld [vmem:[%s6262_s12 + $0x2210] sm:$0xff]  ;;  %v1344_v2 = vld [vmem:[%s6262_s12 + $0x2000] sm:$0xff] }
 0x13f   : > { %3600 = vmatpush.msra.mxu2 %v1416_v36  ;;  %3619 = vmatpush.msra.mxu3 %v1450_v44  ;;  %v1378_v5 = vld [vmem:[%s6262_s12 + $0x2110] sm:$0xff]  ;;  %v1408_v6 = vld [vmem:[%s6262_s12 + $0x2200] sm:$0xff] }
 0x140   : > { %3561 = vmatpush.msra.mxu0 %v1350_v45  ;;  %3580 = vmatpush.msra.mxu1 %v1384_v47  ;;  %v1442_v12 = vld [vmem:[%s6262_s12 + $0x2310] sm:$0xff]  ;;  %v6945_v13 = vld.sshfl [vmem:[#allocation1] sm:$0xff pattern:$0x73625140] }
 0x141   : > { %3601 = vmatpush.msra.mxu2 %v1414_v50  ;;  %3620 = vmatpush.msra.mxu3 %v1448_v51  ;;  %v6947_v14 = vld.sshfl [vmem:[#allocation1 + $0x10] sm:$0xff pattern:$0x73625140]  ;;  %v1376_v23 = vld [vmem:[%s6262_s12 + $0x2100] sm:$0xff] }
 0x142   : > { %3562 = vmatpush.msra.mxu0 %v1348_v52  ;;  %3581 = vmatpush.msra.mxu1 %v1382_v53  ;;  %v1502_v17 = vld [vmem:[%s6262_s12 + $0x24f0] sm:$0xff]  ;;  %v1440_v24 = vld [vmem:[%s6262_s12 + $0x2300] sm:$0xff] }
 0x143   : > { %3602 = vmatpush.msra.mxu2 %v1412_v58  ;;  %3621 = vmatpush.msra.mxu3 %v1446_v59  ;;  %v1566_v22 = vld [vmem:[%s6262_s12 + $0x26f0] sm:$0xff]  ;;  %v1500_v29 = vld [vmem:[%s6262_s12 + $0x24e0] sm:$0xff] }
 0x144   : > { %3563 = vmatpush.msra.mxu0 %v1346_v60  ;;  %3582 = vmatpush.msra.mxu1 %v1380_v61  ;;  %v1534_v30 = vld [vmem:[%s6262_s12 + $0x25f0] sm:$0xff]  ;;  %v1564_v31 = vld [vmem:[%s6262_s12 + $0x26e0] sm:$0xff] }
 0x145   : > { %3603 = vmatpush.msra.mxu2 %v1410_v0  ;;  %3622 = vmatpush.msra.mxu3 %v1444_v1  ;;  %v1598_v32 = vld [vmem:[%s6262_s12 + $0x27f0] sm:$0xff]  ;;  %v1532_v36 = vld [vmem:[%s6262_s12 + $0x25e0] sm:$0xff] }
 0x146   : > { %3564 = vmatpush.msra.mxu0 %v1344_v2  ;;  %3583 = vmatpush.msra.mxu1 %v1378_v5  ;;  %v1498_v33 = vld [vmem:[%s6262_s12 + $0x24d0] sm:$0xff]  ;;  %v1596_v45 = vld [vmem:[%s6262_s12 + $0x27e0] sm:$0xff] }
 0x147   : > { %3604 = vmatpush.msra.mxu2 %v1408_v6  ;;  %3623 = vmatpush.msra.mxu3 %v1442_v12  ;;  %v1562_v44 = vld [vmem:[%s6262_s12 + $0x26d0] sm:$0xff]  ;;  %v1496_v47 = vld [vmem:[%s6262_s12 + $0x24c0] sm:$0xff] }
 0x148   : > { %3565 = vmatmul.f32.vlgmr.msra.gmra.mxu0 %v6945_v13  ;;  %3605 = vmatmul.f32.vlgmr.msra.gmra.mxu2 %v6947_v14  ;;  %v1530_v50 = vld [vmem:[%s6262_s12 + $0x25d0] sm:$0xff]  ;;  %v1560_v51 = vld [vmem:[%s6262_s12 + $0x26c0] sm:$0xff] }
 0x149   : > { %3629 = vmatpush.msrb.mxu0 %v1502_v17  ;;  %3669 = vmatpush.msrb.mxu2 %v1566_v22  ;;  %v1594_v52 = vld [vmem:[%s6262_s12 + $0x27d0] sm:$0xff]  ;;  %v1528_v58 = vld [vmem:[%s6262_s12 + $0x25c0] sm:$0xff] }
 0x14a   : > { %3584 = vmatpush.msra.mxu1 %v1376_v23  ;;  %3624 = vmatpush.msra.mxu3 %v1440_v24  ;;  %v1494_v53 = vld [vmem:[%s6262_s12 + $0x24b0] sm:$0xff]  ;;  %v1592_v60 = vld [vmem:[%s6262_s12 + $0x27c0] sm:$0xff] }
 0x14b   : > { %3585 = vmatmul.f32.vlgmr.msra.gmra.mxu1 %v6955_v27  ;;  %3625 = vmatmul.f32.vlgmr.msra.gmra.mxu3 %v6957_v28  ;;  %v1558_v59 = vld [vmem:[%s6262_s12 + $0x26b0] sm:$0xff]  ;;  %v1492_v61 = vld [vmem:[%s6262_s12 + $0x24a0] sm:$0xff] }
 0x14c   : > { %3630 = vmatpush.msrb.mxu0 %v1500_v29  ;;  %3649 = vmatpush.msrb.mxu1 %v1534_v30  ;;  %v1526_v63 = vld [vmem:[%s6262_s12 + $0x25b0] sm:$0xff]  ;;  %v1556_v0 = vld [vmem:[%s6262_s12 + $0x26a0] sm:$0xff] }
 0x14d   : > { %3670 = vmatpush.msrb.mxu2 %v1564_v31  ;;  %3689 = vmatpush.msrb.mxu3 %v1598_v32  ;;  %v1590_v1 = vld [vmem:[%s6262_s12 + $0x27b0] sm:$0xff]  ;;  %v1524_v5 = vld [vmem:[%s6262_s12 + $0x25a0] sm:$0xff] }
 0x14e   : > { %3631 = vmatpush.msrb.mxu0 %v1498_v33  ;;  %3650 = vmatpush.msrb.mxu1 %v1532_v36  ;;  %v1490_v2 = vld [vmem:[%s6262_s12 + $0x2490] sm:$0xff]  ;;  %v1588_v12 = vld [vmem:[%s6262_s12 + $0x27a0] sm:$0xff] }
 0x14f   : > { %3671 = vmatpush.msrb.mxu2 %v1562_v44  ;;  %3690 = vmatpush.msrb.mxu3 %v1596_v45  ;;  %v1554_v6 = vld [vmem:[%s6262_s12 + $0x2690] sm:$0xff]  ;;  %v1488_v17 = vld [vmem:[%s6262_s12 + $0x2480] sm:$0xff] }
 0x150   : > { %3632 = vmatpush.msrb.mxu0 %v1496_v47  ;;  %3651 = vmatpush.msrb.mxu1 %v1530_v50  ;;  %v1522_v22 = vld [vmem:[%s6262_s12 + $0x2590] sm:$0xff]  ;;  %v1552_v23 = vld [vmem:[%s6262_s12 + $0x2680] sm:$0xff] }
 0x151   : > { %3672 = vmatpush.msrb.mxu2 %v1560_v51  ;;  %3691 = vmatpush.msrb.mxu3 %v1594_v52  ;;  %v1586_v24 = vld [vmem:[%s6262_s12 + $0x2790] sm:$0xff]  ;;  %v1520_v30 = vld [vmem:[%s6262_s12 + $0x2580] sm:$0xff] }
 0x152   : > { %3633 = vmatpush.msrb.mxu0 %v1494_v53  ;;  %3652 = vmatpush.msrb.mxu1 %v1528_v58  ;;  %v1486_v29 = vld [vmem:[%s6262_s12 + $0x2470] sm:$0xff]  ;;  %v1584_v32 = vld [vmem:[%s6262_s12 + $0x2780] sm:$0xff] }
 0x153   : > { %3673 = vmatpush.msrb.mxu2 %v1558_v59  ;;  %3692 = vmatpush.msrb.mxu3 %v1592_v60  ;;  %v1550_v31 = vld [vmem:[%s6262_s12 + $0x2670] sm:$0xff]  ;;  %v1484_v33 = vld [vmem:[%s6262_s12 + $0x2460] sm:$0xff] }
 0x154   : > { %3634 = vmatpush.msrb.mxu0 %v1492_v61  ;;  %3653 = vmatpush.msrb.mxu1 %v1526_v63  ;;  %v1518_v36 = vld [vmem:[%s6262_s12 + $0x2570] sm:$0xff]  ;;  %v1548_v44 = vld [vmem:[%s6262_s12 + $0x2660] sm:$0xff] }
 0x155   : > { %3674 = vmatpush.msrb.mxu2 %v1556_v0  ;;  %3693 = vmatpush.msrb.mxu3 %v1590_v1  ;;  %v1582_v45 = vld [vmem:[%s6262_s12 + $0x2770] sm:$0xff]  ;;  %v1516_v50 = vld [vmem:[%s6262_s12 + $0x2560] sm:$0xff] }
 0x156   : > { %3635 = vmatpush.msrb.mxu0 %v1490_v2  ;;  %3654 = vmatpush.msrb.mxu1 %v1524_v5  ;;  %v1482_v47 = vld [vmem:[%s6262_s12 + $0x2450] sm:$0xff]  ;;  %v1580_v52 = vld [vmem:[%s6262_s12 + $0x2760] sm:$0xff] }
 0x157   : > { %3675 = vmatpush.msrb.mxu2 %v1554_v6  ;;  %3694 = vmatpush.msrb.mxu3 %v1588_v12  ;;  %v1546_v51 = vld [vmem:[%s6262_s12 + $0x2650] sm:$0xff]  ;;  %v1480_v53 = vld [vmem:[%s6262_s12 + $0x2440] sm:$0xff] }
 0x158   : > { %3636 = vmatpush.msrb.mxu0 %v1488_v17  ;;  %3655 = vmatpush.msrb.mxu1 %v1522_v22  ;;  %v1514_v58 = vld [vmem:[%s6262_s12 + $0x2550] sm:$0xff]  ;;  %v1544_v59 = vld [vmem:[%s6262_s12 + $0x2640] sm:$0xff] }
 0x159   : > { %3676 = vmatpush.msrb.mxu2 %v1552_v23  ;;  %3695 = vmatpush.msrb.mxu3 %v1586_v24  ;;  %v1578_v60 = vld [vmem:[%s6262_s12 + $0x2750] sm:$0xff]  ;;  %v1512_v63 = vld [vmem:[%s6262_s12 + $0x2540] sm:$0xff] }
 0x15a   : > { %3637 = vmatpush.msrb.mxu0 %v1486_v29  ;;  %3656 = vmatpush.msrb.mxu1 %v1520_v30  ;;  %v1478_v61 = vld [vmem:[%s6262_s12 + $0x2430] sm:$0xff]  ;;  %v1576_v1 = vld [vmem:[%s6262_s12 + $0x2740] sm:$0xff] }
 0x15b   : > { %3677 = vmatpush.msrb.mxu2 %v1550_v31  ;;  %3696 = vmatpush.msrb.mxu3 %v1584_v32  ;;  %v1542_v0 = vld [vmem:[%s6262_s12 + $0x2630] sm:$0xff]  ;;  %v1476_v2 = vld [vmem:[%s6262_s12 + $0x2420] sm:$0xff] }
 0x15c   : > { %3638 = vmatpush.msrb.mxu0 %v1484_v33  ;;  %3657 = vmatpush.msrb.mxu1 %v1518_v36  ;;  %v1510_v5 = vld [vmem:[%s6262_s12 + $0x2530] sm:$0xff]  ;;  %v1540_v6 = vld [vmem:[%s6262_s12 + $0x2620] sm:$0xff] }
 0x15d   : > { %3678 = vmatpush.msrb.mxu2 %v1548_v44  ;;  %3697 = vmatpush.msrb.mxu3 %v1582_v45  ;;  %v1574_v12 = vld [vmem:[%s6262_s12 + $0x2730] sm:$0xff]  ;;  %v1508_v22 = vld [vmem:[%s6262_s12 + $0x2520] sm:$0xff] }
 0x15e   : > { %3639 = vmatpush.msrb.mxu0 %v1482_v47  ;;  %3658 = vmatpush.msrb.mxu1 %v1516_v50  ;;  %v1474_v17 = vld [vmem:[%s6262_s12 + $0x2410] sm:$0xff]  ;;  %v1572_v29 = vld [vmem:[%s6262_s12 + $0x2720] sm:$0xff] }
 0x15f   : > { %3679 = vmatpush.msrb.mxu2 %v1546_v51  ;;  %3698 = vmatpush.msrb.mxu3 %v1580_v52  ;;  %v311_v23 = vld [vmem:[%s6257_s8 + $0x50] sm:$0xff]  ;;  %v1472_v30 = vld [vmem:[%s6262_s12 + $0x2400] sm:$0xff]  ;;  %v7032_v52 = vld.sshfl [vmem:[#allocation1 + $0x28] sm:$0xff pattern:$0x73625140] }
 0x160   : > { %3640 = vmatpush.msrb.mxu0 %v1480_v53  ;;  %3659 = vmatpush.msrb.mxu1 %v1514_v58  ;;  %v1538_v24 = vld [vmem:[%s6262_s12 + $0x2610] sm:$0xff]  ;;  %2790 = vst [vmem:[#allocation1] ss:$4 sm:$0xff] %v311_v23  ;;  %v1536_v32 = vld [vmem:[%s6262_s12 + $0x2600] sm:$0xff] }
 0x161   : > { %3680 = vmatpush.msrb.mxu2 %v1544_v59  ;;  %3699 = vmatpush.msrb.mxu3 %v1578_v60  ;;  %v1506_v31 = vld [vmem:[%s6262_s12 + $0x2510] sm:$0xff]  ;;  %v7022_v36 = vld.sshfl [vmem:[#allocation1 + $0x20] sm:$0xff pattern:$0x73625140] }
 0x162   : > { %3641 = vmatpush.msrb.mxu0 %v1478_v61  ;;  %3660 = vmatpush.msrb.mxu1 %v1512_v63  ;;  %v1570_v33 = vld [vmem:[%s6262_s12 + $0x2710] sm:$0xff]  ;;  %v1504_v50 = vld [vmem:[%s6262_s12 + $0x2500] sm:$0xff]  ;;  %v7034_v53 = vld.sshfl [vmem:[#allocation1 + $0x38] sm:$0xff pattern:$0x73625140] }
 0x163   : > { %3681 = vmatpush.msrb.mxu2 %v1542_v0  ;;  %3700 = vmatpush.msrb.mxu3 %v1576_v1  ;;  %v7024_v44 = vld.sshfl [vmem:[#allocation1 + $0x30] sm:$0xff pattern:$0x73625140]  ;;  %v1568_v51 = vld [vmem:[%s6262_s12 + $0x2700] sm:$0xff] }
 0x164   : > { %3642 = vmatpush.msrb.mxu0 %v1476_v2  ;;  %3661 = vmatpush.msrb.mxu1 %v1510_v5  ;;  %v1630_v45 = vld [vmem:[%s6262_s12 + $0x28f0] sm:$0xff]  ;;  %v1628_v58 = vld [vmem:[%s6262_s12 + $0x28e0] sm:$0xff] }
 0x165   : > { %3682 = vmatpush.msrb.mxu2 %v1540_v6  ;;  %3701 = vmatpush.msrb.mxu3 %v1574_v12  ;;  %v1694_v47 = vld [vmem:[%s6262_s12 + $0x2af0] sm:$0xff]  ;;  %v1692_v60 = vld [vmem:[%s6262_s12 + $0x2ae0] sm:$0xff] }
 0x166   : > { %3643 = vmatpush.msrb.mxu0 %v1474_v17  ;;  %3662 = vmatpush.msrb.mxu1 %v1508_v22  ;;  %v1662_v59 = vld [vmem:[%s6262_s12 + $0x29f0] sm:$0xff]  ;;  %v1660_v0 = vld [vmem:[%s6262_s12 + $0x29e0] sm:$0xff] }
 0x167   : > { %3683 = vmatpush.msrb.mxu2 %v1538_v24  ;;  %3702 = vmatpush.msrb.mxu3 %v1572_v29  ;;  %v1726_v61 = vld [vmem:[%s6262_s12 + $0x2bf0] sm:$0xff]  ;;  %v1724_v2 = vld [vmem:[%s6262_s12 + $0x2be0] sm:$0xff] }
 0x168   : > { %3644 = vmatpush.msrb.mxu0 %v1472_v30  ;;  %3663 = vmatpush.msrb.mxu1 %v1506_v31  ;;  %v1626_v63 = vld [vmem:[%s6262_s12 + $0x28d0] sm:$0xff]  ;;  %v1624_v5 = vld [vmem:[%s6262_s12 + $0x28c0] sm:$0xff] }
 0x169   : > { %3684 = vmatpush.msrb.mxu2 %v1536_v32  ;;  %3703 = vmatpush.msrb.mxu3 %v1570_v33  ;;  %v1690_v1 = vld [vmem:[%s6262_s12 + $0x2ad0] sm:$0xff]  ;;  %v1688_v12 = vld [vmem:[%s6262_s12 + $0x2ac0] sm:$0xff] }
 0x16a   : > { %3645 = vmatmul.f32.vlgmr.msrb.gmra.mxu0 %v7022_v36  ;;  %3685 = vmatmul.f32.vlgmr.msrb.gmra.mxu2 %v7024_v44  ;;  %v1658_v6 = vld [vmem:[%s6262_s12 + $0x29d0] sm:$0xff]  ;;  %v1656_v23 = vld [vmem:[%s6262_s12 + $0x29c0] sm:$0xff] }
 0x16b   : > { %3709 = vmatpush.msra.mxu0 %v1630_v45  ;;  %3749 = vmatpush.msra.mxu2 %v1694_v47  ;;  %v1722_v17 = vld [vmem:[%s6262_s12 + $0x2bd0] sm:$0xff]  ;;  %v1720_v29 = vld [vmem:[%s6262_s12 + $0x2bc0] sm:$0xff] }
 0x16c   : > { %3664 = vmatpush.msrb.mxu1 %v1504_v50  ;;  %3704 = vmatpush.msrb.mxu3 %v1568_v51  ;;  %v1622_v22 = vld [vmem:[%s6262_s12 + $0x28b0] sm:$0xff]  ;;  %v1620_v30 = vld [vmem:[%s6262_s12 + $0x28a0] sm:$0xff] }
 0x16d   : > { %3665 = vmatmul.f32.vlgmr.msrb.gmra.mxu1 %v7032_v52  ;;  %3705 = vmatmul.f32.vlgmr.msrb.gmra.mxu3 %v7034_v53  ;;  %v1686_v24 = vld [vmem:[%s6262_s12 + $0x2ab0] sm:$0xff]  ;;  %v1684_v32 = vld [vmem:[%s6262_s12 + $0x2aa0] sm:$0xff] }
 0x16e   : > { %3710 = vmatpush.msra.mxu0 %v1628_v58  ;;  %3729 = vmatpush.msra.mxu1 %v1662_v59  ;;  %v1654_v31 = vld [vmem:[%s6262_s12 + $0x29b0] sm:$0xff]  ;;  %v1652_v47 = vld [vmem:[%s6262_s12 + $0x29a0] sm:$0xff] }
 0x16f   : > { %3750 = vmatpush.msra.mxu2 %v1692_v60  ;;  %3769 = vmatpush.msra.mxu3 %v1726_v61  ;;  %v1718_v33 = vld [vmem:[%s6262_s12 + $0x2bb0] sm:$0xff]  ;;  %v1716_v51 = vld [vmem:[%s6262_s12 + $0x2ba0] sm:$0xff] }
 0x170   : > { %3711 = vmatpush.msra.mxu0 %v1626_v63  ;;  %3730 = vmatpush.msra.mxu1 %v1660_v0  ;;  %v1618_v45 = vld [vmem:[%s6262_s12 + $0x2890] sm:$0xff]  ;;  %v1616_v58 = vld [vmem:[%s6262_s12 + $0x2880] sm:$0xff] }
 0x171   : > { %3751 = vmatpush.msra.mxu2 %v1690_v1  ;;  %3770 = vmatpush.msra.mxu3 %v1724_v2  ;;  %v1682_v50 = vld [vmem:[%s6262_s12 + $0x2a90] sm:$0xff]  ;;  %v1680_v60 = vld [vmem:[%s6262_s12 + $0x2a80] sm:$0xff] }
 0x172   : > { %3712 = vmatpush.msra.mxu0 %v1624_v5  ;;  %3731 = vmatpush.msra.mxu1 %v1658_v6  ;;  %v1650_v59 = vld [vmem:[%s6262_s12 + $0x2990] sm:$0xff]  ;;  %v1648_v0 = vld [vmem:[%s6262_s12 + $0x2980] sm:$0xff] }
 0x173   : > { %3752 = vmatpush.msra.mxu2 %v1688_v12  ;;  %3771 = vmatpush.msra.mxu3 %v1722_v17  ;;  %v1714_v61 = vld [vmem:[%s6262_s12 + $0x2b90] sm:$0xff]  ;;  %v1712_v2 = vld [vmem:[%s6262_s12 + $0x2b80] sm:$0xff] }
 0x174   : > { %3713 = vmatpush.msra.mxu0 %v1622_v22  ;;  %3732 = vmatpush.msra.mxu1 %v1656_v23  ;;  %v1614_v63 = vld [vmem:[%s6262_s12 + $0x2870] sm:$0xff]  ;;  %v1612_v5 = vld [vmem:[%s6262_s12 + $0x2860] sm:$0xff] }
 0x175   : > { %3753 = vmatpush.msra.mxu2 %v1686_v24  ;;  %3772 = vmatpush.msra.mxu3 %v1720_v29  ;;  %v1678_v1 = vld [vmem:[%s6262_s12 + $0x2a70] sm:$0xff]  ;;  %v1676_v12 = vld [vmem:[%s6262_s12 + $0x2a60] sm:$0xff] }
 0x176   : > { %3714 = vmatpush.msra.mxu0 %v1620_v30  ;;  %3733 = vmatpush.msra.mxu1 %v1654_v31  ;;  %v1646_v6 = vld [vmem:[%s6262_s12 + $0x2970] sm:$0xff]  ;;  %v1644_v23 = vld [vmem:[%s6262_s12 + $0x2960] sm:$0xff] }
 0x177   : > { %3754 = vmatpush.msra.mxu2 %v1684_v32  ;;  %3773 = vmatpush.msra.mxu3 %v1718_v33  ;;  %v1710_v17 = vld [vmem:[%s6262_s12 + $0x2b70] sm:$0xff]  ;;  %v1708_v29 = vld [vmem:[%s6262_s12 + $0x2b60] sm:$0xff] }
 0x178   : > { %3715 = vmatpush.msra.mxu0 %v1618_v45  ;;  %3734 = vmatpush.msra.mxu1 %v1652_v47  ;;  %v1610_v22 = vld [vmem:[%s6262_s12 + $0x2850] sm:$0xff]  ;;  %v1608_v30 = vld [vmem:[%s6262_s12 + $0x2840] sm:$0xff] }
 0x179   : > { %3755 = vmatpush.msra.mxu2 %v1682_v50  ;;  %3774 = vmatpush.msra.mxu3 %v1716_v51  ;;  %v1674_v24 = vld [vmem:[%s6262_s12 + $0x2a50] sm:$0xff]  ;;  %v1672_v32 = vld [vmem:[%s6262_s12 + $0x2a40] sm:$0xff] }
 0x17a   : > { %3716 = vmatpush.msra.mxu0 %v1616_v58  ;;  %3735 = vmatpush.msra.mxu1 %v1650_v59  ;;  %v1642_v31 = vld [vmem:[%s6262_s12 + $0x2950] sm:$0xff]  ;;  %v1640_v47 = vld [vmem:[%s6262_s12 + $0x2940] sm:$0xff] }
 0x17b   : > { %3756 = vmatpush.msra.mxu2 %v1680_v60  ;;  %3775 = vmatpush.msra.mxu3 %v1714_v61  ;;  %v1706_v33 = vld [vmem:[%s6262_s12 + $0x2b50] sm:$0xff]  ;;  %v1704_v51 = vld [vmem:[%s6262_s12 + $0x2b40] sm:$0xff] }
 0x17c   : > { %3717 = vmatpush.msra.mxu0 %v1614_v63  ;;  %3736 = vmatpush.msra.mxu1 %v1648_v0  ;;  %v1606_v45 = vld [vmem:[%s6262_s12 + $0x2830] sm:$0xff]  ;;  %v1604_v58 = vld [vmem:[%s6262_s12 + $0x2820] sm:$0xff] }
 0x17d   : > { %3757 = vmatpush.msra.mxu2 %v1678_v1  ;;  %3776 = vmatpush.msra.mxu3 %v1712_v2  ;;  %v1670_v50 = vld [vmem:[%s6262_s12 + $0x2a30] sm:$0xff]  ;;  %v1668_v60 = vld [vmem:[%s6262_s12 + $0x2a20] sm:$0xff]  ;;  %v312_v1 = vld [vmem:[%s6257_s8 + $0x58] sm:$0xff] }
 0x17e   : > { %3718 = vmatpush.msra.mxu0 %v1612_v5  ;;  %3737 = vmatpush.msra.mxu1 %v1646_v6  ;;  %v1638_v59 = vld [vmem:[%s6262_s12 + $0x2930] sm:$0xff]  ;;  %v1636_v0 = vld [vmem:[%s6262_s12 + $0x2920] sm:$0xff]  ;;  %2791 = vst [vmem:[#allocation1 + $0x20] ss:$4 sm:$0xff] %v312_v1 }
 0x17f   : > { %3758 = vmatpush.msra.mxu2 %v1676_v12  ;;  %3777 = vmatpush.msra.mxu3 %v1710_v17  ;;  %v1702_v61 = vld [vmem:[%s6262_s12 + $0x2b30] sm:$0xff]  ;;  %v1700_v5 = vld [vmem:[%s6262_s12 + $0x2b20] sm:$0xff] }
 0x180   : > { %3719 = vmatpush.msra.mxu0 %v1610_v22  ;;  %3738 = vmatpush.msra.mxu1 %v1644_v23  ;;  %v1602_v63 = vld [vmem:[%s6262_s12 + $0x2810] sm:$0xff]  ;;  %v1600_v6 = vld [vmem:[%s6262_s12 + $0x2800] sm:$0xff] }
 0x181   : > { %3759 = vmatpush.msra.mxu2 %v1674_v24  ;;  %3778 = vmatpush.msra.mxu3 %v1708_v29  ;;  %v1666_v2 = vld [vmem:[%s6262_s12 + $0x2a10] sm:$0xff]  ;;  %v1664_v17 = vld [vmem:[%s6262_s12 + $0x2a00] sm:$0xff] }
 0x182   : > { %3720 = vmatpush.msra.mxu0 %v1608_v30  ;;  %3739 = vmatpush.msra.mxu1 %v1642_v31  ;;  %v1634_v12 = vld [vmem:[%s6262_s12 + $0x2910] sm:$0xff]  ;;  %v7099_v23 = vld.sshfl [vmem:[#allocation1] sm:$0xff pattern:$0x73625140] }
 0x183   : > { %3760 = vmatpush.msra.mxu2 %v1672_v32  ;;  %3779 = vmatpush.msra.mxu3 %v1706_v33  ;;  %v1698_v22 = vld [vmem:[%s6262_s12 + $0x2b10] sm:$0xff]  ;;  %v1632_v31 = vld [vmem:[%s6262_s12 + $0x2900] sm:$0xff]  ;;  %v7109_v33 = vld.sshfl [vmem:[#allocation1 + $0x8] sm:$0xff pattern:$0x73625140] }
 0x184   : > { %3721 = vmatpush.msra.mxu0 %v1606_v45  ;;  %3740 = vmatpush.msra.mxu1 %v1640_v47  ;;  %v7101_v24 = vld.sshfl [vmem:[#allocation1 + $0x10] sm:$0xff pattern:$0x73625140]  ;;  %v1696_v32 = vld [vmem:[%s6262_s12 + $0x2b00] sm:$0xff] }
 0x185   : > { %3761 = vmatpush.msra.mxu2 %v1670_v50  ;;  %3780 = vmatpush.msra.mxu3 %v1704_v51  ;;  %v1758_v29 = vld [vmem:[%s6262_s12 + $0x2cf0] sm:$0xff]  ;;  %v7111_v45 = vld.sshfl [vmem:[#allocation1 + $0x18] sm:$0xff pattern:$0x73625140]  ;;  %v1756_v47 = vld [vmem:[%s6262_s12 + $0x2ce0] sm:$0xff] }
 0x186   : > { %3722 = vmatpush.msra.mxu0 %v1604_v58  ;;  %3741 = vmatpush.msra.mxu1 %v1638_v59  ;;  %v1822_v30 = vld [vmem:[%s6262_s12 + $0x2ef0] sm:$0xff]  ;;  %v1820_v51 = vld [vmem:[%s6262_s12 + $0x2ee0] sm:$0xff] }
 0x187   : > { %3762 = vmatpush.msra.mxu2 %v1668_v60  ;;  %3781 = vmatpush.msra.mxu3 %v1702_v61  ;;  %v1790_v50 = vld [vmem:[%s6262_s12 + $0x2df0] sm:$0xff]  ;;  %v1788_v60 = vld [vmem:[%s6262_s12 + $0x2de0] sm:$0xff] }
 0x188   : > { %3723 = vmatpush.msra.mxu0 %v1602_v63  ;;  %3742 = vmatpush.msra.mxu1 %v1636_v0  ;;  %v1854_v58 = vld [vmem:[%s6262_s12 + $0x2ff0] sm:$0xff]  ;;  %v1852_v63 = vld [vmem:[%s6262_s12 + $0x2fe0] sm:$0xff] }
 0x189   : > { %3763 = vmatpush.msra.mxu2 %v1666_v2  ;;  %3782 = vmatpush.msra.mxu3 %v1700_v5  ;;  %v1754_v59 = vld [vmem:[%s6262_s12 + $0x2cd0] sm:$0xff]  ;;  %v1752_v0 = vld [vmem:[%s6262_s12 + $0x2cc0] sm:$0xff] }
 0x18a   : > { %3724 = vmatpush.msra.mxu0 %v1600_v6  ;;  %3743 = vmatpush.msra.mxu1 %v1634_v12  ;;  %v1818_v61 = vld [vmem:[%s6262_s12 + $0x2ed0] sm:$0xff]  ;;  %v1816_v2 = vld [vmem:[%s6262_s12 + $0x2ec0] sm:$0xff] }
 0x18b   : > { %3764 = vmatpush.msra.mxu2 %v1664_v17  ;;  %3783 = vmatpush.msra.mxu3 %v1698_v22  ;;  %v1786_v1 = vld [vmem:[%s6262_s12 + $0x2dd0] sm:$0xff]  ;;  %v1784_v12 = vld [vmem:[%s6262_s12 + $0x2dc0] sm:$0xff] }
 0x18c   : > { %3725 = vmatmul.f32.vlgmr.msra.gmra.mxu0 %v7099_v23  ;;  %3765 = vmatmul.f32.vlgmr.msra.gmra.mxu2 %v7101_v24  ;;  %v1850_v5 = vld [vmem:[%s6262_s12 + $0x2fd0] sm:$0xff]  ;;  %v1848_v22 = vld [vmem:[%s6262_s12 + $0x2fc0] sm:$0xff] }
 0x18d   : > { %3789 = vmatpush.msrb.mxu0 %v1758_v29  ;;  %3829 = vmatpush.msrb.mxu2 %v1822_v30  ;;  %v1750_v6 = vld [vmem:[%s6262_s12 + $0x2cb0] sm:$0xff]  ;;  %v1748_v29 = vld [vmem:[%s6262_s12 + $0x2ca0] sm:$0xff] }
 0x18e   : > { %3744 = vmatpush.msra.mxu1 %v1632_v31  ;;  %3784 = vmatpush.msra.mxu3 %v1696_v32  ;;  %v1814_v17 = vld [vmem:[%s6262_s12 + $0x2eb0] sm:$0xff]  ;;  %v1812_v31 = vld [vmem:[%s6262_s12 + $0x2ea0] sm:$0xff] }
 0x18f   : > { %3745 = vmatmul.f32.vlgmr.msra.gmra.mxu1 %v7109_v33  ;;  %3785 = vmatmul.f32.vlgmr.msra.gmra.mxu3 %v7111_v45  ;;  %v1782_v30 = vld [vmem:[%s6262_s12 + $0x2db0] sm:$0xff] }
 0x190   : > { %3790 = vmatpush.msrb.mxu0 %v1756_v47  ;;  %3809 = vmatpush.msrb.mxu1 %v1790_v50  ;;  %v1846_v32 = vld [vmem:[%s6262_s12 + $0x2fb0] sm:$0xff]  ;;  %v1780_v50 = vld [vmem:[%s6262_s12 + $0x2da0] sm:$0xff] }
 0x191   : > { %3830 = vmatpush.msrb.mxu2 %v1820_v51  ;;  %3849 = vmatpush.msrb.mxu3 %v1854_v58  ;;  %v1746_v47 = vld [vmem:[%s6262_s12 + $0x2c90] sm:$0xff]  ;;  %v1844_v58 = vld [vmem:[%s6262_s12 + $0x2fa0] sm:$0xff] }
 0x192   : > { %3791 = vmatpush.msrb.mxu0 %v1754_v59  ;;  %3810 = vmatpush.msrb.mxu1 %v1788_v60  ;;  %v1810_v51 = vld [vmem:[%s6262_s12 + $0x2e90] sm:$0xff]  ;;  %v1744_v59 = vld [vmem:[%s6262_s12 + $0x2c80] sm:$0xff] }
 0x193   : > { %3831 = vmatpush.msrb.mxu2 %v1818_v61  ;;  %3850 = vmatpush.msrb.mxu3 %v1852_v63  ;;  %v1778_v60 = vld [vmem:[%s6262_s12 + $0x2d90] sm:$0xff]  ;;  %v1808_v61 = vld [vmem:[%s6262_s12 + $0x2e80] sm:$0xff] }
 0x194   : > { %3792 = vmatpush.msrb.mxu0 %v1752_v0  ;;  %3811 = vmatpush.msrb.mxu1 %v1786_v1  ;;  %v1842_v63 = vld [vmem:[%s6262_s12 + $0x2f90] sm:$0xff]  ;;  %v1776_v1 = vld [vmem:[%s6262_s12 + $0x2d80] sm:$0xff] }
 0x195   : > { %3832 = vmatpush.msrb.mxu2 %v1816_v2  ;;  %3851 = vmatpush.msrb.mxu3 %v1850_v5  ;;  %v1742_v0 = vld [vmem:[%s6262_s12 + $0x2c70] sm:$0xff]  ;;  %v1840_v5 = vld [vmem:[%s6262_s12 + $0x2f80] sm:$0xff] }
 0x196   : > { %3793 = vmatpush.msrb.mxu0 %v1750_v6  ;;  %3812 = vmatpush.msrb.mxu1 %v1784_v12  ;;  %v1806_v2 = vld [vmem:[%s6262_s12 + $0x2e70] sm:$0xff]  ;;  %v1740_v6 = vld [vmem:[%s6262_s12 + $0x2c60] sm:$0xff] }
 0x197   : > { %3833 = vmatpush.msrb.mxu2 %v1814_v17  ;;  %3852 = vmatpush.msrb.mxu3 %v1848_v22  ;;  %v1774_v12 = vld [vmem:[%s6262_s12 + $0x2d70] sm:$0xff]  ;;  %v1804_v17 = vld [vmem:[%s6262_s12 + $0x2e60] sm:$0xff] }
 0x198   : > { %3794 = vmatpush.msrb.mxu0 %v1748_v29  ;;  %3813 = vmatpush.msrb.mxu1 %v1782_v30  ;;  %v1838_v22 = vld [vmem:[%s6262_s12 + $0x2f70] sm:$0xff]  ;;  %v1772_v30 = vld [vmem:[%s6262_s12 + $0x2d60] sm:$0xff] }
 0x199   : > { %3834 = vmatpush.msrb.mxu2 %v1812_v31  ;;  %3853 = vmatpush.msrb.mxu3 %v1846_v32  ;;  %v1738_v29 = vld [vmem:[%s6262_s12 + $0x2c50] sm:$0xff]  ;;  %v1836_v32 = vld [vmem:[%s6262_s12 + $0x2f60] sm:$0xff] }
 0x19a   : > { %3795 = vmatpush.msrb.mxu0 %v1746_v47  ;;  %3814 = vmatpush.msrb.mxu1 %v1780_v50  ;;  %v1802_v31 = vld [vmem:[%s6262_s12 + $0x2e50] sm:$0xff]  ;;  %v1736_v47 = vld [vmem:[%s6262_s12 + $0x2c40] sm:$0xff] }
 0x19b   : > { %3835 = vmatpush.msrb.mxu2 %v1810_v51  ;;  %3854 = vmatpush.msrb.mxu3 %v1844_v58  ;;  %v1770_v50 = vld [vmem:[%s6262_s12 + $0x2d50] sm:$0xff]  ;;  %v1800_v51 = vld [vmem:[%s6262_s12 + $0x2e40] sm:$0xff] }
 0x19c   : > { %3796 = vmatpush.msrb.mxu0 %v1744_v59  ;;  %3815 = vmatpush.msrb.mxu1 %v1778_v60  ;;  %v1834_v58 = vld [vmem:[%s6262_s12 + $0x2f50] sm:$0xff]  ;;  %v1768_v60 = vld [vmem:[%s6262_s12 + $0x2d40] sm:$0xff] }
 0x19d   : > { %3836 = vmatpush.msrb.mxu2 %v1808_v61  ;;  %3855 = vmatpush.msrb.mxu3 %v1842_v63  ;;  %v1734_v59 = vld [vmem:[%s6262_s12 + $0x2c30] sm:$0xff]  ;;  %v1832_v63 = vld [vmem:[%s6262_s12 + $0x2f40] sm:$0xff] }
 0x19e   : > { %3797 = vmatpush.msrb.mxu0 %v1742_v0  ;;  %3816 = vmatpush.msrb.mxu1 %v1776_v1  ;;  %v1798_v61 = vld [vmem:[%s6262_s12 + $0x2e30] sm:$0xff]  ;;  %v1732_v0 = vld [vmem:[%s6262_s12 + $0x2c20] sm:$0xff] }
 0x19f   : > { %3837 = vmatpush.msrb.mxu2 %v1806_v2  ;;  %3856 = vmatpush.msrb.mxu3 %v1840_v5  ;;  %v1766_v1 = vld [vmem:[%s6262_s12 + $0x2d30] sm:$0xff]  ;;  %v1796_v2 = vld [vmem:[%s6262_s12 + $0x2e20] sm:$0xff] }
 0x1a0   : > { %3798 = vmatpush.msrb.mxu0 %v1740_v6  ;;  %3817 = vmatpush.msrb.mxu1 %v1774_v12  ;;  %v1830_v5 = vld [vmem:[%s6262_s12 + $0x2f30] sm:$0xff]  ;;  %v1764_v12 = vld [vmem:[%s6262_s12 + $0x2d20] sm:$0xff] }
 0x1a1   : > { %3838 = vmatpush.msrb.mxu2 %v1804_v17  ;;  %3857 = vmatpush.msrb.mxu3 %v1838_v22  ;;  %v1730_v6 = vld [vmem:[%s6262_s12 + $0x2c10] sm:$0xff]  ;;  %v313_v17 = vld [vmem:[%s6257_s8 + $0x60] sm:$0xff] }
 0x1a2   : > { %3799 = vmatpush.msrb.mxu0 %v1738_v29  ;;  %3818 = vmatpush.msrb.mxu1 %v1772_v30  ;;  %v1794_v22 = vld [vmem:[%s6262_s12 + $0x2e10] sm:$0xff]  ;;  %v1828_v29 = vld [vmem:[%s6262_s12 + $0x2f20] sm:$0xff]  ;;  %2800 = vst [vmem:[#allocation1] ss:$4 sm:$0xff] %v313_v17 }
 0x1a3   : > { %3839 = vmatpush.msrb.mxu2 %v1802_v31  ;;  %3858 = vmatpush.msrb.mxu3 %v1836_v32  ;;  %v1728_v30 = vld [vmem:[%s6262_s12 + $0x2c00] sm:$0xff]  ;;  %v1762_v31 = vld [vmem:[%s6262_s12 + $0x2d10] sm:$0xff] }
 0x1a4   : > { %3800 = vmatpush.msrb.mxu0 %v1736_v47  ;;  %3819 = vmatpush.msrb.mxu1 %v1770_v50  ;;  %v1792_v32 = vld [vmem:[%s6262_s12 + $0x2e00] sm:$0xff]  ;;  %v1826_v47 = vld [vmem:[%s6262_s12 + $0x2f10] sm:$0xff] }
 0x1a5   : > { %3840 = vmatpush.msrb.mxu2 %v1800_v51  ;;  %3859 = vmatpush.msrb.mxu3 %v1834_v58  ;;  %v7176_v50 = vld.sshfl [vmem:[#allocation1 + $0x20] sm:$0xff pattern:$0x73625140]  ;;  %v7178_v51 = vld.sshfl [vmem:[#allocation1 + $0x30] sm:$0xff pattern:$0x73625140] }
 0x1a6   : > { %3801 = vmatpush.msrb.mxu0 %v1734_v59  ;;  %3820 = vmatpush.msrb.mxu1 %v1768_v60  ;;  %9138 = vst [vmem:[#allocation6_spill] sm:$0xff] %v7178_v51  ;;  %v1886_v58 = vld [vmem:[%s6262_s12 + $0x30f0] sm:$0xff]  ;;  %v1760_v60 = vld [vmem:[%s6262_s12 + $0x2d00] sm:$0xff] }
 0x1a7   : > { %3841 = vmatpush.msrb.mxu2 %v1798_v61  ;;  %3860 = vmatpush.msrb.mxu3 %v1832_v63  ;;  %v1950_v59 = vld [vmem:[%s6262_s12 + $0x32f0] sm:$0xff]  ;;  %v1824_v61 = vld [vmem:[%s6262_s12 + $0x2f00] sm:$0xff]  ;;  %v7186_v63 = vld.sshfl [vmem:[#allocation1 + $0x28] sm:$0xff pattern:$0x73625140] }
 0x1a8   : > { %3802 = vmatpush.msrb.mxu0 %v1732_v0  ;;  %3821 = vmatpush.msrb.mxu1 %v1766_v1  ;;  %9139 = vst [vmem:[#allocation7_spill] sm:$0xff] %v7186_v63  ;;  %v7188_v0 = vld.sshfl [vmem:[#allocation1 + $0x38] sm:$0xff pattern:$0x73625140]  ;;  %v1884_v1 = vld [vmem:[%s6262_s12 + $0x30e0] sm:$0xff] }
 0x1a9   : > { %3842 = vmatpush.msrb.mxu2 %v1796_v2  ;;  %3861 = vmatpush.msrb.mxu3 %v1830_v5  ;;  %9140 = vst [vmem:[#allocation8_spill] sm:$0xff] %v7188_v0  ;;  %v1918_v2 = vld [vmem:[%s6262_s12 + $0x31f0] sm:$0xff]  ;;  %v1948_v5 = vld [vmem:[%s6262_s12 + $0x32e0] sm:$0xff] }
 0x1aa   : > { %3803 = vmatpush.msrb.mxu0 %v1730_v6  ;;  %3822 = vmatpush.msrb.mxu1 %v1764_v12  ;;  %v1982_v6 = vld [vmem:[%s6262_s12 + $0x33f0] sm:$0xff]  ;;  %v1916_v17 = vld [vmem:[%s6262_s12 + $0x31e0] sm:$0xff] }
 0x1ab   : > { %3843 = vmatpush.msrb.mxu2 %v1794_v22  ;;  %3862 = vmatpush.msrb.mxu3 %v1828_v29  ;;  %v1882_v12 = vld [vmem:[%s6262_s12 + $0x30d0] sm:$0xff]  ;;  %v1980_v29 = vld [vmem:[%s6262_s12 + $0x33e0] sm:$0xff] }
 0x1ac   : > { %3804 = vmatpush.msrb.mxu0 %v1728_v30  ;;  %3823 = vmatpush.msrb.mxu1 %v1762_v31  ;;  %v1946_v22 = vld [vmem:[%s6262_s12 + $0x32d0] sm:$0xff]  ;;  %v1880_v30 = vld [vmem:[%s6262_s12 + $0x30c0] sm:$0xff] }
 0x1ad   : > { %3844 = vmatpush.msrb.mxu2 %v1792_v32  ;;  %3863 = vmatpush.msrb.mxu3 %v1826_v47  ;;  %v1914_v31 = vld [vmem:[%s6262_s12 + $0x31d0] sm:$0xff]  ;;  %v1944_v32 = vld [vmem:[%s6262_s12 + $0x32c0] sm:$0xff] }
 0x1ae   : > { %3805 = vmatmul.f32.vlgmr.msrb.gmra.mxu0 %v7176_v50  ;;  %3845 = vmatmul.f32.vlgmr.msrb.gmra.mxu2 %v7178_v51  ;;  %v1978_v47 = vld [vmem:[%s6262_s12 + $0x33d0] sm:$0xff] }
 0x1af   : > { %3869 = vmatpush.msra.mxu0 %v1886_v58  ;;  %3909 = vmatpush.msra.mxu2 %v1950_v59  ;;  %v1878_v58 = vld [vmem:[%s6262_s12 + $0x30b0] sm:$0xff]  ;;  %v1912_v59 = vld [vmem:[%s6262_s12 + $0x31c0] sm:$0xff] }
 0x1b0   : > { %3824 = vmatpush.msrb.mxu1 %v1760_v60  ;;  %3864 = vmatpush.msrb.mxu3 %v1824_v61  ;;  %v1942_v60 = vld [vmem:[%s6262_s12 + $0x32b0] sm:$0xff]  ;;  %v1976_v61 = vld [vmem:[%s6262_s12 + $0x33c0] sm:$0xff] }
 0x1b1   : > { %3825 = vmatmul.f32.vlgmr.msrb.gmra.mxu1 %v7186_v63  ;;  %3865 = vmatmul.f32.vlgmr.msrb.gmra.mxu3 %v7188_v0  ;;  %v315_v51 = vld [vmem:[%s6257_s8 + $0x70] sm:$0xff]  ;;  %v2084_v0 = vld [vmem:[%s6262_s12 + $0x3720] sm:$0xff] }
 0x1b2   : > { %3870 = vmatpush.msra.mxu0 %v1884_v1  ;;  %3889 = vmatpush.msra.mxu1 %v1918_v2  ;;  %v1876_v1 = vld [vmem:[%s6262_s12 + $0x30a0] sm:$0xff]  ;;  %v1910_v2 = vld [vmem:[%s6262_s12 + $0x31b0] sm:$0xff] }
 0x1b3   : > { %3910 = vmatpush.msra.mxu2 %v1948_v5  ;;  %3929 = vmatpush.msra.mxu3 %v1982_v6  ;;  %v1940_v5 = vld [vmem:[%s6262_s12 + $0x32a0] sm:$0xff]  ;;  %v1974_v6 = vld [vmem:[%s6262_s12 + $0x33b0] sm:$0xff] }
 0x1b4   : > { %3871 = vmatpush.msra.mxu0 %v1882_v12  ;;  %3890 = vmatpush.msra.mxu1 %v1916_v17  ;;  %v1874_v12 = vld [vmem:[%s6262_s12 + $0x3090] sm:$0xff]  ;;  %v1908_v17 = vld [vmem:[%s6262_s12 + $0x31a0] sm:$0xff] }
 0x1b5   : > { %3911 = vmatpush.msra.mxu2 %v1946_v22  ;;  %3930 = vmatpush.msra.mxu3 %v1980_v29  ;;  %v1938_v22 = vld [vmem:[%s6262_s12 + $0x3290] sm:$0xff]  ;;  %v1972_v29 = vld [vmem:[%s6262_s12 + $0x33a0] sm:$0xff] }
 0x1b6   : > { %3872 = vmatpush.msra.mxu0 %v1880_v30  ;;  %3891 = vmatpush.msra.mxu1 %v1914_v31  ;;  %v1872_v30 = vld [vmem:[%s6262_s12 + $0x3080] sm:$0xff]  ;;  %v1906_v31 = vld [vmem:[%s6262_s12 + $0x3190] sm:$0xff] }
 0x1b7   : > { %3912 = vmatpush.msra.mxu2 %v1944_v32  ;;  %3931 = vmatpush.msra.mxu3 %v1978_v47  ;;  %v1936_v32 = vld [vmem:[%s6262_s12 + $0x3280] sm:$0xff]  ;;  %v1970_v47 = vld [vmem:[%s6262_s12 + $0x3390] sm:$0xff] }
 0x1b8   : > { %3873 = vmatpush.msra.mxu0 %v1878_v58  ;;  %3892 = vmatpush.msra.mxu1 %v1912_v59  ;;  %v1870_v58 = vld [vmem:[%s6262_s12 + $0x3070] sm:$0xff]  ;;  %v1904_v59 = vld [vmem:[%s6262_s12 + $0x3180] sm:$0xff] }
 0x1b9   : > { %3913 = vmatpush.msra.mxu2 %v1942_v60  ;;  %3932 = vmatpush.msra.mxu3 %v1976_v61  ;;  %v1934_v60 = vld [vmem:[%s6262_s12 + $0x3270] sm:$0xff]  ;;  %v1968_v61 = vld [vmem:[%s6262_s12 + $0x3380] sm:$0xff] }
 0x1ba   : > { %3874 = vmatpush.msra.mxu0 %v1876_v1  ;;  %3893 = vmatpush.msra.mxu1 %v1910_v2  ;;  %v1868_v1 = vld [vmem:[%s6262_s12 + $0x3060] sm:$0xff]  ;;  %v1902_v2 = vld [vmem:[%s6262_s12 + $0x3170] sm:$0xff] }
 0x1bb   : > { %3914 = vmatpush.msra.mxu2 %v1940_v5  ;;  %3933 = vmatpush.msra.mxu3 %v1974_v6  ;;  %v1932_v5 = vld [vmem:[%s6262_s12 + $0x3260] sm:$0xff]  ;;  %v1966_v6 = vld [vmem:[%s6262_s12 + $0x3370] sm:$0xff] }
 0x1bc   : > { %3875 = vmatpush.msra.mxu0 %v1874_v12  ;;  %3894 = vmatpush.msra.mxu1 %v1908_v17  ;;  %v1866_v12 = vld [vmem:[%s6262_s12 + $0x3050] sm:$0xff]  ;;  %v1900_v17 = vld [vmem:[%s6262_s12 + $0x3160] sm:$0xff] }
 0x1bd   : > { %3915 = vmatpush.msra.mxu2 %v1938_v22  ;;  %3934 = vmatpush.msra.mxu3 %v1972_v29  ;;  %v1930_v22 = vld [vmem:[%s6262_s12 + $0x3250] sm:$0xff]  ;;  %v1964_v29 = vld [vmem:[%s6262_s12 + $0x3360] sm:$0xff] }
 0x1be   : > { %3876 = vmatpush.msra.mxu0 %v1872_v30  ;;  %3895 = vmatpush.msra.mxu1 %v1906_v31  ;;  %v1864_v30 = vld [vmem:[%s6262_s12 + $0x3040] sm:$0xff]  ;;  %v1898_v31 = vld [vmem:[%s6262_s12 + $0x3150] sm:$0xff] }
 0x1bf   : > { %3916 = vmatpush.msra.mxu2 %v1936_v32  ;;  %3935 = vmatpush.msra.mxu3 %v1970_v47  ;;  %v1928_v32 = vld [vmem:[%s6262_s12 + $0x3240] sm:$0xff]  ;;  %v1962_v47 = vld [vmem:[%s6262_s12 + $0x3350] sm:$0xff] }
 0x1c0   : > { %3877 = vmatpush.msra.mxu0 %v1870_v58  ;;  %3896 = vmatpush.msra.mxu1 %v1904_v59  ;;  %v1862_v58 = vld [vmem:[%s6262_s12 + $0x3030] sm:$0xff]  ;;  %v1896_v59 = vld [vmem:[%s6262_s12 + $0x3140] sm:$0xff] }
 0x1c1   : > { %3917 = vmatpush.msra.mxu2 %v1934_v60  ;;  %3936 = vmatpush.msra.mxu3 %v1968_v61  ;;  %v1926_v60 = vld [vmem:[%s6262_s12 + $0x3230] sm:$0xff]  ;;  %v1960_v61 = vld [vmem:[%s6262_s12 + $0x3340] sm:$0xff] }
 0x1c2   : > { %3878 = vmatpush.msra.mxu0 %v1868_v1  ;;  %3897 = vmatpush.msra.mxu1 %v1902_v2  ;;  %v1860_v1 = vld [vmem:[%s6262_s12 + $0x3020] sm:$0xff]  ;;  %v1894_v2 = vld [vmem:[%s6262_s12 + $0x3130] sm:$0xff] }
 0x1c3   : > { %3918 = vmatpush.msra.mxu2 %v1932_v5  ;;  %3937 = vmatpush.msra.mxu3 %v1966_v6  ;;  %v1924_v5 = vld [vmem:[%s6262_s12 + $0x3220] sm:$0xff]  ;;  %v1958_v6 = vld [vmem:[%s6262_s12 + $0x3330] sm:$0xff] }
 0x1c4   : > { %3879 = vmatpush.msra.mxu0 %v1866_v12  ;;  %3898 = vmatpush.msra.mxu1 %v1900_v17  ;;  %v1858_v12 = vld [vmem:[%s6262_s12 + $0x3010] sm:$0xff]  ;;  %v1892_v17 = vld [vmem:[%s6262_s12 + $0x3120] sm:$0xff] }
 0x1c5   : > { %3919 = vmatpush.msra.mxu2 %v1930_v22  ;;  %3938 = vmatpush.msra.mxu3 %v1964_v29  ;;  %v314_v22 = vld [vmem:[%s6257_s8 + $0x68] sm:$0xff]  ;;  %v1922_v29 = vld [vmem:[%s6262_s12 + $0x3210] sm:$0xff] }
 0x1c6   : > { %3880 = vmatpush.msra.mxu0 %v1864_v30  ;;  %3899 = vmatpush.msra.mxu1 %v1898_v31  ;;  %v1956_v30 = vld [vmem:[%s6262_s12 + $0x3320] sm:$0xff]  ;;  %2801 = vst [vmem:[#allocation1 + $0x20] ss:$4 sm:$0xff] %v314_v22  ;;  %v2926_v22 = vpop.f32.mrf.mxu0 }
 0x1c7   : > { %3920 = vmatpush.msra.mxu2 %v1928_v32  ;;  %3939 = vmatpush.msra.mxu3 %v1962_v47  ;;  %v1856_v31 = vld [vmem:[%s6262_s12 + $0x3000] sm:$0xff]  ;;  %v1890_v32 = vld [vmem:[%s6262_s12 + $0x3110] sm:$0xff] }
 0x1c8   : > { %3881 = vmatpush.msra.mxu0 %v1862_v58  ;;  %3900 = vmatpush.msra.mxu1 %v1896_v59  ;;  %v1920_v47 = vld [vmem:[%s6262_s12 + $0x3200] sm:$0xff]  ;;  %v1954_v58 = vld [vmem:[%s6262_s12 + $0x3310] sm:$0xff] }
 0x1c9   : > { %3921 = vmatpush.msra.mxu2 %v1926_v60  ;;  %3940 = vmatpush.msra.mxu3 %v1960_v61  ;;  %v7253_v59 = vld.sshfl [vmem:[#allocation1] sm:$0xff pattern:$0x73625140]  ;;  %v7255_v60 = vld.sshfl [vmem:[#allocation1 + $0x10] sm:$0xff pattern:$0x73625140] }
 0x1ca   : > { %3882 = vmatpush.msra.mxu0 %v1860_v1  ;;  %3901 = vmatpush.msra.mxu1 %v1894_v2  ;;  %9141 = vst [vmem:[#allocation9_spill] sm:$0xff] %v7253_v59  ;;  %v2014_v61 = vld [vmem:[%s6262_s12 + $0x34f0] sm:$0xff]  ;;  %v2946_v2 = vpop.f32.mrf.mxu1 }
 0x1cb   : > { %3922 = vmatpush.msra.mxu2 %v1924_v5  ;;  %3941 = vmatpush.msra.mxu3 %v1958_v6  ;;  %9142 = vst [vmem:[#allocation10_spill] sm:$0xff] %v7255_v60  ;;  %v2078_v1 = vld [vmem:[%s6262_s12 + $0x36f0] sm:$0xff]  ;;  %v1888_v5 = vld [vmem:[%s6262_s12 + $0x3100] sm:$0xff] }
 0x1cc   : > { %3883 = vmatpush.msra.mxu0 %v1858_v12  ;;  %3902 = vmatpush.msra.mxu1 %v1892_v17  ;;  %v1952_v6 = vld [vmem:[%s6262_s12 + $0x3300] sm:$0xff]  ;;  %v7263_v12 = vld.sshfl [vmem:[#allocation1 + $0x8] sm:$0xff pattern:$0x73625140] }
 0x1cd   : > { %3923 = vmatpush.msra.mxu2 %v1922_v29  ;;  %3942 = vmatpush.msra.mxu3 %v1956_v30  ;;  %9143 = vst [vmem:[#allocation11_spill] sm:$0xff] %v7263_v12  ;;  %v7265_v17 = vld.sshfl [vmem:[#allocation1 + $0x18] sm:$0xff pattern:$0x73625140]  ;;  %v2012_v29 = vld [vmem:[%s6262_s12 + $0x34e0] sm:$0xff]  ;;  %v2046_v30 = vld [vmem:[%s6262_s12 + $0x35f0] sm:$0xff] }
 0x1ce   : > { %3884 = vmatpush.msra.mxu0 %v1856_v31  ;;  %3903 = vmatpush.msra.mxu1 %v1890_v32  ;;  %9144 = vst [vmem:[#allocation12_spill] sm:$0xff] %v7265_v17  ;;  %v2947_v31 = vadd.f32 %v2946_v2, %v2926_v22  ;;  %v2076_v32 = vld [vmem:[%s6262_s12 + $0x36e0] sm:$0xff] }
 0x1cf   : > { %3924 = vmatpush.msra.mxu2 %v1920_v47  ;;  %3943 = vmatpush.msra.mxu3 %v1954_v58  ;;  %v2110_v47 = vld [vmem:[%s6262_s12 + $0x37f0] sm:$0xff]  ;;  %v2966_v58 = vpop.f32.mrf.mxu2  ;;  %v2108_v2 = vld [vmem:[%s6262_s12 + $0x37e0] sm:$0xff]  ;;  %2810 = vst [vmem:[#allocation1] ss:$4 sm:$0xff] %v315_v51 }
 0x1d0   : > { %3885 = vmatmul.f32.vlgmr.msra.gmra.mxu0 %v7253_v59  ;;  %3925 = vmatmul.f32.vlgmr.msra.gmra.mxu2 %v7255_v60  ;;  %v2044_v60 = vld [vmem:[%s6262_s12 + $0x35e0] sm:$0xff]  ;;  %v2967_v22 = vadd.f32 %v2966_v58, %v2947_v31  ;;  %v2986_v59 = vpop.f32.mrf.mxu3  ;;  %v2038_v31 = vld [vmem:[%s6262_s12 + $0x35b0] sm:$0xff] }
 0x1d1   : > { %3949 = vmatpush.msrb.mxu0 %v2014_v61  ;;  %3989 = vmatpush.msrb.mxu2 %v2078_v1  ;;  %v2010_v61 = vld [vmem:[%s6262_s12 + $0x34d0] sm:$0xff] }
 0x1d2   : > { %3904 = vmatpush.msra.mxu1 %v1888_v5  ;;  %3944 = vmatpush.msra.mxu3 %v1952_v6  ;;  %v2074_v1 = vld [vmem:[%s6262_s12 + $0x36d0] sm:$0xff]  ;;  %v2008_v5 = vld [vmem:[%s6262_s12 + $0x34c0] sm:$0xff]  ;;  %v2987_v58 = vadd.f32 %v2986_v59, %v2967_v22 }
 0x1d3   : > { %3905 = vmatmul.f32.vlgmr.msra.gmra.mxu1 %v7263_v12  ;;  %3945 = vmatmul.f32.vlgmr.msra.gmra.mxu3 %v7265_v17  ;;  %v2042_v6 = vld [vmem:[%s6262_s12 + $0x35d0] sm:$0xff]  ;;  %v2072_v17 = vld [vmem:[%s6262_s12 + $0x36c0] sm:$0xff] }
 0x1d4   : > { %3950 = vmatpush.msrb.mxu0 %v2012_v29  ;;  %3969 = vmatpush.msrb.mxu1 %v2046_v30  ;;  %v2106_v12 = vld [vmem:[%s6262_s12 + $0x37d0] sm:$0xff]  ;;  %v2040_v30 = vld [vmem:[%s6262_s12 + $0x35c0] sm:$0xff] }
 0x1d5   : > { %3990 = vmatpush.msrb.mxu2 %v2076_v32  ;;  %4009 = vmatpush.msrb.mxu3 %v2110_v47  ;;  %v2006_v29 = vld [vmem:[%s6262_s12 + $0x34b0] sm:$0xff]  ;;  %v2104_v47 = vld [vmem:[%s6262_s12 + $0x37c0] sm:$0xff] }
 0x1d6   : > { %3951 = vmatpush.msrb.mxu0 %v2010_v61  ;;  %3970 = vmatpush.msrb.mxu1 %v2044_v60  ;;  %v2070_v32 = vld [vmem:[%s6262_s12 + $0x36b0] sm:$0xff]  ;;  %v2004_v60 = vld [vmem:[%s6262_s12 + $0x34a0] sm:$0xff] }
 0x1d7   : > { %3991 = vmatpush.msrb.mxu2 %v2074_v1  ;;  %4010 = vmatpush.msrb.mxu3 %v2108_v2  ;;  %v2068_v61 = vld [vmem:[%s6262_s12 + $0x36a0] sm:$0xff]  ;;  %v2102_v1 = vld [vmem:[%s6262_s12 + $0x37b0] sm:$0xff]  ;;  %v3006_v2 = vpop.f32.mrf.mxu0 }
 0x1d8   : > { %3952 = vmatpush.msrb.mxu0 %v2008_v5  ;;  %3971 = vmatpush.msrb.mxu1 %v2042_v6  ;;  %v2002_v5 = vld [vmem:[%s6262_s12 + $0x3490] sm:$0xff]  ;;  %v2036_v6 = vld [vmem:[%s6262_s12 + $0x35a0] sm:$0xff] }
 0x1d9   : > { %3992 = vmatpush.msrb.mxu2 %v2072_v17  ;;  %4011 = vmatpush.msrb.mxu3 %v2106_v12  ;;  %v2066_v12 = vld [vmem:[%s6262_s12 + $0x3690] sm:$0xff]  ;;  %v2100_v17 = vld [vmem:[%s6262_s12 + $0x37a0] sm:$0xff] }
 0x1da   : > { %3953 = vmatpush.msrb.mxu0 %v2006_v29  ;;  %3972 = vmatpush.msrb.mxu1 %v2040_v30  ;;  %v2000_v59 = vld [vmem:[%s6262_s12 + $0x3480] sm:$0xff]  ;;  %v2034_v22 = vld [vmem:[%s6262_s12 + $0x3590] sm:$0xff]  ;;  %v3007_v29 = vadd.f32 %v3006_v2, %v2987_v58 }
 0x1db   : > { %3993 = vmatpush.msrb.mxu2 %v2070_v32  ;;  %4012 = vmatpush.msrb.mxu3 %v2104_v47  ;;  %v2064_v30 = vld [vmem:[%s6262_s12 + $0x3680] sm:$0xff]  ;;  %v2098_v32 = vld [vmem:[%s6262_s12 + $0x3790] sm:$0xff]  ;;  %v3026_v47 = vpop.f32.mrf.mxu1 }
 0x1dc   : > { %3954 = vmatpush.msrb.mxu0 %v2004_v60  ;;  %3973 = vmatpush.msrb.mxu1 %v2038_v31  ;;  %v1998_v60 = vld [vmem:[%s6262_s12 + $0x3470] sm:$0xff]  ;;  %v2032_v31 = vld [vmem:[%s6262_s12 + $0x3580] sm:$0xff] }
 0x1dd   : > { %3994 = vmatpush.msrb.mxu2 %v2068_v61  ;;  %4013 = vmatpush.msrb.mxu3 %v2102_v1  ;;  %v2062_v61 = vld [vmem:[%s6262_s12 + $0x3670] sm:$0xff]  ;;  %v2096_v1 = vld [vmem:[%s6262_s12 + $0x3780] sm:$0xff] }
 0x1de   : > { %3955 = vmatpush.msrb.mxu0 %v2002_v5  ;;  %3974 = vmatpush.msrb.mxu1 %v2036_v6  ;;  %v1996_v58 = vld [vmem:[%s6262_s12 + $0x3460] sm:$0xff]  ;;  %v2030_v2 = vld [vmem:[%s6262_s12 + $0x3570] sm:$0xff]  ;;  %v3027_v5 = vadd.f32 %v3026_v47, %v3007_v29 }
 0x1df   : > { %3995 = vmatpush.msrb.mxu2 %v2066_v12  ;;  %4014 = vmatpush.msrb.mxu3 %v2100_v17  ;;  %v2060_v6 = vld [vmem:[%s6262_s12 + $0x3660] sm:$0xff]  ;;  %v2094_v12 = vld [vmem:[%s6262_s12 + $0x3770] sm:$0xff]  ;;  %v3046_v17 = vpop.f32.mrf.mxu2 }
 0x1e0   : > { %3956 = vmatpush.msrb.mxu0 %v2000_v59  ;;  %3975 = vmatpush.msrb.mxu1 %v2034_v22  ;;  %v1994_v59 = vld [vmem:[%s6262_s12 + $0x3450] sm:$0xff]  ;;  %v2028_v22 = vld [vmem:[%s6262_s12 + $0x3560] sm:$0xff] }
 0x1e1   : > { %3996 = vmatpush.msrb.mxu2 %v2064_v30  ;;  %4015 = vmatpush.msrb.mxu3 %v2098_v32  ;;  %v2058_v30 = vld [vmem:[%s6262_s12 + $0x3650] sm:$0xff]  ;;  %v2092_v32 = vld [vmem:[%s6262_s12 + $0x3760] sm:$0xff] }
 0x1e2   : > { %3957 = vmatpush.msrb.mxu0 %v1998_v60  ;;  %3976 = vmatpush.msrb.mxu1 %v2032_v31  ;;  %v1992_v29 = vld [vmem:[%s6262_s12 + $0x3440] sm:$0xff]  ;;  %v2026_v47 = vld [vmem:[%s6262_s12 + $0x3550] sm:$0xff]  ;;  %v3047_v60 = vadd.f32 %v3046_v17, %v3027_v5 }
 0x1e3   : > { %3997 = vmatpush.msrb.mxu2 %v2062_v61  ;;  %4016 = vmatpush.msrb.mxu3 %v2096_v1  ;;  %v2056_v31 = vld [vmem:[%s6262_s12 + $0x3640] sm:$0xff]  ;;  %v2090_v61 = vld [vmem:[%s6262_s12 + $0x3750] sm:$0xff]  ;;  %v3066_v1 = vpop.f32.mrf.mxu3 }
 0x1e4   : > { %3958 = vmatpush.msrb.mxu0 %v1996_v58  ;;  %3977 = vmatpush.msrb.mxu1 %v2030_v2  ;;  %v1990_v58 = vld [vmem:[%s6262_s12 + $0x3430] sm:$0xff]  ;;  %v2024_v2 = vld [vmem:[%s6262_s12 + $0x3540] sm:$0xff] }
 0x1e5   : > { %3998 = vmatpush.msrb.mxu2 %v2060_v6  ;;  %4017 = vmatpush.msrb.mxu3 %v2094_v12  ;;  %v2054_v6 = vld [vmem:[%s6262_s12 + $0x3630] sm:$0xff]  ;;  %v2088_v5 = vld [vmem:[%s6262_s12 + $0x3740] sm:$0xff]  ;;  %v3086_v12 = vpop.f32.mrf.mxu0 }
 0x1e6   : > { %3959 = vmatpush.msrb.mxu0 %v1994_v59  ;;  %3978 = vmatpush.msrb.mxu1 %v2028_v22  ;;  %v1988_v17 = vld [vmem:[%s6262_s12 + $0x3420] sm:$0xff]  ;;  %v2022_v59 = vld [vmem:[%s6262_s12 + $0x3530] sm:$0xff]  ;;  %v3067_v22 = vadd.f32 %v3066_v1, %v3047_v60  ;;  %v3106_v60 = vpop.f32.mrf.mxu1 }
 0x1e7   : > { %3999 = vmatpush.msrb.mxu2 %v2058_v30  ;;  %4018 = vmatpush.msrb.mxu3 %v2092_v32  ;;  %v2052_v30 = vld [vmem:[%s6262_s12 + $0x3620] sm:$0xff]  ;;  %v2086_v32 = vld [vmem:[%s6262_s12 + $0x3730] sm:$0xff] }
 0x1e8   : > { %3960 = vmatpush.msrb.mxu0 %v1992_v29  ;;  %3979 = vmatpush.msrb.mxu1 %v2026_v47  ;;  %v1986_v29 = vld [vmem:[%s6262_s12 + $0x3410] sm:$0xff]  ;;  %v2020_v47 = vld [vmem:[%s6262_s12 + $0x3520] sm:$0xff] }
 0x1e9   : > { %4000 = vmatpush.msrb.mxu2 %v2056_v31  ;;  %4019 = vmatpush.msrb.mxu3 %v2090_v61  ;;  %v3087_v31 = vadd.f32 %v3086_v12, %v3067_v22  ;;  %v2050_v61 = vld [vmem:[%s6262_s12 + $0x3610] sm:$0xff]  ;;  %v1984_v1 = vld [vmem:[%s6262_s12 + $0x3400] sm:$0xff] }
 0x1ea   : > { %3961 = vmatpush.msrb.mxu0 %v1990_v58  ;;  %3980 = vmatpush.msrb.mxu1 %v2024_v2  ;;  %v2018_v58 = vld [vmem:[%s6262_s12 + $0x3510] sm:$0xff]  ;;  %v2048_v2 = vld [vmem:[%s6262_s12 + $0x3600] sm:$0xff] }
 0x1eb   : > { %4001 = vmatpush.msrb.mxu2 %v2054_v6  ;;  %4020 = vmatpush.msrb.mxu3 %v2088_v5  ;;  %v2082_v6 = vld [vmem:[%s6262_s12 + $0x3710] sm:$0xff]  ;;  %v3126_v5 = vpop.f32.mrf.mxu2  ;;  %v7330_v12 = vld.sshfl [vmem:[#allocation1 + $0x20] sm:$0xff pattern:$0x73625140]  ;;  %v3107_v51 = vadd.f32 %v3106_v60, %v3087_v31  ;;  %v3146_v31 = vpop.f32.mrf.mxu3 }
 0x1ec   : > { %3962 = vmatpush.msrb.mxu0 %v1988_v17  ;;  %3981 = vmatpush.msrb.mxu1 %v2022_v59  ;;  %9145 = vst [vmem:[#allocation13_spill] sm:$0xff] %v7330_v12  ;;  %v7332_v17 = vld.sshfl [vmem:[#allocation1 + $0x30] sm:$0xff pattern:$0x73625140] }
 0x1ed   : > { %4002 = vmatpush.msrb.mxu2 %v2052_v30  ;;  %4021 = vmatpush.msrb.mxu3 %v2086_v32  ;;  %9146 = vst [vmem:[#allocation14_spill] sm:$0xff] %v7332_v17  ;;  %v2142_v59 = vld [vmem:[%s6262_s12 + $0x38f0] sm:$0xff]  ;;  %v2016_v30 = vld [vmem:[%s6262_s12 + $0x3500] sm:$0xff] }
 0x1ee   : > { %3963 = vmatpush.msrb.mxu0 %v1986_v29  ;;  %3982 = vmatpush.msrb.mxu1 %v2020_v47  ;;  %v2206_v22 = vld [vmem:[%s6262_s12 + $0x3af0] sm:$0xff]  ;;  %v2080_v32 = vld [vmem:[%s6262_s12 + $0x3700] sm:$0xff]  ;;  %v3127_v29 = vadd.f32 %v3126_v5, %v3107_v51  ;;  %v7342_v47 = vld.sshfl [vmem:[#allocation1 + $0x38] sm:$0xff pattern:$0x73625140] }
 0x1ef   : > { %4003 = vmatpush.msrb.mxu2 %v2050_v61  ;;  %4022 = vmatpush.msrb.mxu3 %v2084_v0  ;;  %v7340_v0 = vld.sshfl [vmem:[#allocation1 + $0x28] sm:$0xff pattern:$0x73625140]  ;;  %9148 = vst [vmem:[#allocation16_spill] sm:$0xff] %v7342_v47  ;;  %v2140_v61 = vld [vmem:[%s6262_s12 + $0x38e0] sm:$0xff]  ;;  %v2174_v60 = vld [vmem:[%s6262_s12 + $0x39f0] sm:$0xff] }
 0x1f0   : > { %3964 = vmatpush.msrb.mxu0 %v1984_v1  ;;  %3983 = vmatpush.msrb.mxu1 %v2018_v58  ;;  %9147 = vst [vmem:[#allocation15_spill] sm:$0xff] %v7340_v0  ;;  %v2204_v1 = vld [vmem:[%s6262_s12 + $0x3ae0] sm:$0xff]  ;;  %v2238_v58 = vld [vmem:[%s6262_s12 + $0x3bf0] sm:$0xff]  ;;  %v3147_v51 = vadd.f32 %v3146_v31, %v3127_v29  ;;  %v3186_v29 = vpop.f32.mrf.mxu1 }
 0x1f1   : > { %4004 = vmatpush.msrb.mxu2 %v2048_v2  ;;  %4023 = vmatpush.msrb.mxu3 %v2082_v6  ;;  %v3166_v2 = vpop.f32.mrf.mxu0  ;;  %v2138_v6 = vld [vmem:[%s6262_s12 + $0x38d0] sm:$0xff]  ;;  %v2172_v5 = vld [vmem:[%s6262_s12 + $0x39e0] sm:$0xff] }
 0x1f2   : > { %3965 = vmatmul.f32.vlgmr.msrb.gmra.mxu0 %v7330_v12  ;;  %4005 = vmatmul.f32.vlgmr.msrb.gmra.mxu2 %v7332_v17  ;;  %v3167_v17 = vadd.f32 %v3166_v2, %v3147_v51  ;;  %v2134_v31 = vld [vmem:[%s6262_s12 + $0x38b0] sm:$0xff]  ;;  %v2132_v2 = vld [vmem:[%s6262_s12 + $0x38a0] sm:$0xff] }
 0x1f3   : > { %4029 = vmatpush.msra.mxu0 %v2142_v59  ;;  %4069 = vmatpush.msra.mxu2 %v2206_v22  ;;  %v2202_v59 = vld [vmem:[%s6262_s12 + $0x3ad0] sm:$0xff]  ;;  %v2236_v22 = vld [vmem:[%s6262_s12 + $0x3be0] sm:$0xff] }
 0x1f4   : > { %3984 = vmatpush.msrb.mxu1 %v2016_v30  ;;  %4024 = vmatpush.msrb.mxu3 %v2080_v32  ;;  %v2136_v30 = vld [vmem:[%s6262_s12 + $0x38c0] sm:$0xff]  ;;  %v2170_v32 = vld [vmem:[%s6262_s12 + $0x39d0] sm:$0xff] }
 0x1f5   : > { %3985 = vmatmul.f32.vlgmr.msrb.gmra.mxu1 %v7340_v0  ;;  %4025 = vmatmul.f32.vlgmr.msrb.gmra.mxu3 %v7342_v47  ;;  %v2200_v47 = vld [vmem:[%s6262_s12 + $0x3ac0] sm:$0xff]  ;;  %v2234_v0 = vld [vmem:[%s6262_s12 + $0x3bd0] sm:$0xff] }
 0x1f6   : > { %4030 = vmatpush.msra.mxu0 %v2140_v61  ;;  %4049 = vmatpush.msra.mxu1 %v2174_v60  ;;  %v2168_v61 = vld [vmem:[%s6262_s12 + $0x39c0] sm:$0xff]  ;;  %v2198_v60 = vld [vmem:[%s6262_s12 + $0x3ab0] sm:$0xff] }
 0x1f7   : > { %4070 = vmatpush.msra.mxu2 %v2204_v1  ;;  %4089 = vmatpush.msra.mxu3 %v2238_v58  ;;  %v2232_v1 = vld [vmem:[%s6262_s12 + $0x3bc0] sm:$0xff]  ;;  %v3206_v58 = vpop.f32.mrf.mxu2 }
 0x1f8   : > { %4031 = vmatpush.msra.mxu0 %v2138_v6  ;;  %4050 = vmatpush.msra.mxu1 %v2172_v5  ;;  %v2166_v6 = vld [vmem:[%s6262_s12 + $0x39b0] sm:$0xff]  ;;  %v3187_v5 = vadd.f32 %v3186_v29, %v3167_v17  ;;  %v2196_v51 = vld [vmem:[%s6262_s12 + $0x3aa0] sm:$0xff]  ;;  %v3226_v17 = vpop.f32.mrf.mxu3 }
 0x1f9   : > { %4071 = vmatpush.msra.mxu2 %v2202_v59  ;;  %4090 = vmatpush.msra.mxu3 %v2236_v22  ;;  %v2230_v59 = vld [vmem:[%s6262_s12 + $0x3bb0] sm:$0xff]  ;;  %v2128_v29 = vld [vmem:[%s6262_s12 + $0x3880] sm:$0xff] }
 0x1fa   : > { %4032 = vmatpush.msra.mxu0 %v2136_v30  ;;  %4051 = vmatpush.msra.mxu1 %v2170_v32  ;;  %v2130_v22 = vld [vmem:[%s6262_s12 + $0x3890] sm:$0xff]  ;;  %v2164_v30 = vld [vmem:[%s6262_s12 + $0x39a0] sm:$0xff]  ;;  %v3207_v32 = vadd.f32 %v3206_v58, %v3187_v5 }
 0x1fb   : > { %4072 = vmatpush.msra.mxu2 %v2200_v47  ;;  %4091 = vmatpush.msra.mxu3 %v2234_v0  ;;  %v2194_v0 = vld [vmem:[%s6262_s12 + $0x3a90] sm:$0xff]  ;;  %v2228_v47 = vld [vmem:[%s6262_s12 + $0x3ba0] sm:$0xff] }
 0x1fc   : > { %4033 = vmatpush.msra.mxu0 %v2134_v31  ;;  %4052 = vmatpush.msra.mxu1 %v2168_v61  ;;  %v2162_v31 = vld [vmem:[%s6262_s12 + $0x3990] sm:$0xff]  ;;  %v2192_v61 = vld [vmem:[%s6262_s12 + $0x3a80] sm:$0xff] }
 0x1fd   : > { %4073 = vmatpush.msra.mxu2 %v2198_v60  ;;  %4092 = vmatpush.msra.mxu3 %v2232_v1  ;;  %v2226_v60 = vld [vmem:[%s6262_s12 + $0x3b90] sm:$0xff]  ;;  %v3246_v1 = vpop.f32.mrf.mxu0 }
 0x1fe   : > { %4034 = vmatpush.msra.mxu0 %v2132_v2  ;;  %4053 = vmatpush.msra.mxu1 %v2166_v6  ;;  %v2126_v58 = vld [vmem:[%s6262_s12 + $0x3870] sm:$0xff]  ;;  %v2160_v2 = vld [vmem:[%s6262_s12 + $0x3980] sm:$0xff]  ;;  %v3227_v6 = vadd.f32 %v3226_v17, %v3207_v32  ;;  %v3266_v32 = vpop.f32.mrf.mxu1 }
 0x1ff   : > { %4074 = vmatpush.msra.mxu2 %v2196_v51  ;;  %4093 = vmatpush.msra.mxu3 %v2230_v59  ;;  %v2190_v5 = vld [vmem:[%s6262_s12 + $0x3a70] sm:$0xff]  ;;  %v2224_v51 = vld [vmem:[%s6262_s12 + $0x3b80] sm:$0xff] }
 0x200   : > { %4035 = vmatpush.msra.mxu0 %v2130_v22  ;;  %4054 = vmatpush.msra.mxu1 %v2164_v30  ;;  %v2124_v59 = vld [vmem:[%s6262_s12 + $0x3860] sm:$0xff]  ;;  %v2158_v22 = vld [vmem:[%s6262_s12 + $0x3970] sm:$0xff]  ;;  %v3247_v30 = vadd.f32 %v3246_v1, %v3227_v6 }
 0x201   : > { %4075 = vmatpush.msra.mxu2 %v2194_v0  ;;  %4094 = vmatpush.msra.mxu3 %v2228_v47  ;;  %v2188_v0 = vld [vmem:[%s6262_s12 + $0x3a60] sm:$0xff]  ;;  %v2222_v47 = vld [vmem:[%s6262_s12 + $0x3b70] sm:$0xff] }
 0x202   : > { %4036 = vmatpush.msra.mxu0 %v2128_v29  ;;  %4055 = vmatpush.msra.mxu1 %v2162_v31  ;;  %v2122_v17 = vld [vmem:[%s6262_s12 + $0x3850] sm:$0xff]  ;;  %v2156_v29 = vld [vmem:[%s6262_s12 + $0x3960] sm:$0xff] }
 0x203   : > { %4076 = vmatpush.msra.mxu2 %v2192_v61  ;;  %4095 = vmatpush.msra.mxu3 %v2226_v60  ;;  %v2186_v31 = vld [vmem:[%s6262_s12 + $0x3a50] sm:$0xff]  ;;  %v2220_v61 = vld [vmem:[%s6262_s12 + $0x3b60] sm:$0xff]  ;;  %v3286_v60 = vpop.f32.mrf.mxu2 }
 0x204   : > { %4037 = vmatpush.msra.mxu0 %v2126_v58  ;;  %4056 = vmatpush.msra.mxu1 %v2160_v2  ;;  %v2120_v1 = vld [vmem:[%s6262_s12 + $0x3840] sm:$0xff]  ;;  %v2154_v58 = vld [vmem:[%s6262_s12 + $0x3950] sm:$0xff]  ;;  %v3267_v2 = vadd.f32 %v3266_v32, %v3247_v30 }
 0x205   : > { %4077 = vmatpush.msra.mxu2 %v2190_v5  ;;  %4096 = vmatpush.msra.mxu3 %v2224_v51  ;;  %v2184_v6 = vld [vmem:[%s6262_s12 + $0x3a40] sm:$0xff]  ;;  %v2218_v5 = vld [vmem:[%s6262_s12 + $0x3b50] sm:$0xff] }
 0x206   : > { %4038 = vmatpush.msra.mxu0 %v2124_v59  ;;  %4057 = vmatpush.msra.mxu1 %v2158_v22  ;;  %v2118_v51 = vld [vmem:[%s6262_s12 + $0x3830] sm:$0xff]  ;;  %v2152_v59 = vld [vmem:[%s6262_s12 + $0x3940] sm:$0xff]  ;;  %v3287_v22 = vadd.f32 %v3286_v60, %v3267_v2  ;;  %v3346_v63 = vpop.f32.mrf.mxu1 }
 0x207   : > { %4078 = vmatpush.msra.mxu2 %v2188_v0  ;;  %4097 = vmatpush.msra.mxu3 %v2222_v47  ;;  %v2182_v0 = vld [vmem:[%s6262_s12 + $0x3a30] sm:$0xff]  ;;  %v2216_v30 = vld [vmem:[%s6262_s12 + $0x3b40] sm:$0xff]  ;;  %v3306_v47 = vpop.f32.mrf.mxu3 }
 0x208   : > { %4039 = vmatpush.msra.mxu0 %v2122_v17  ;;  %4058 = vmatpush.msra.mxu1 %v2156_v29  ;;  %v2116_v32 = vld [vmem:[%s6262_s12 + $0x3820] sm:$0xff]  ;;  %v2150_v17 = vld [vmem:[%s6262_s12 + $0x3930] sm:$0xff]  ;;  %v3307_v2 = vadd.f32 %v3306_v47, %v3287_v22 }
 0x209   : > { %4079 = vmatpush.msra.mxu2 %v2186_v31  ;;  %4098 = vmatpush.msra.mxu3 %v2220_v61  ;;  %v2180_v29 = vld [vmem:[%s6262_s12 + $0x3a20] sm:$0xff]  ;;  %v2214_v31 = vld [vmem:[%s6262_s12 + $0x3b30] sm:$0xff]  ;;  %v3326_v61 = vpop.f32.mrf.mxu0 }
 0x20a   : > { %4040 = vmatpush.msra.mxu0 %v2120_v1  ;;  %4059 = vmatpush.msra.mxu1 %v2154_v58  ;;  %v2114_v60 = vld [vmem:[%s6262_s12 + $0x3810] sm:$0xff]  ;;  %v2148_v1 = vld [vmem:[%s6262_s12 + $0x3920] sm:$0xff]  ;;  %v316_v58 = vld [vmem:[%s6257_s8 + $0x78] sm:$0xff]  ;;  %v3327_v12 = vadd.f32 %v3326_v61, %v3307_v2 }
 0x20b   : > { %4080 = vmatpush.msra.mxu2 %v2184_v6  ;;  %4099 = vmatpush.msra.mxu3 %v2218_v5  ;;  %v2178_v6 = vld [vmem:[%s6262_s12 + $0x3a10] sm:$0xff]  ;;  %v2212_v5 = vld [vmem:[%s6262_s12 + $0x3b20] sm:$0xff]  ;;  %2811 = vst [vmem:[#allocation1 + $0x20] ss:$4 sm:$0xff] %v316_v58 }
 0x20c   : > { %4041 = vmatpush.msra.mxu0 %v2118_v51  ;;  %4060 = vmatpush.msra.mxu1 %v2152_v59  ;;  %v2112_v51 = vld [vmem:[%s6262_s12 + $0x3800] sm:$0xff]  ;;  %v2146_v59 = vld [vmem:[%s6262_s12 + $0x3910] sm:$0xff]  ;;  %v7419_v58 = vld.sshfl [vmem:[#allocation1 + $0x18] sm:$0xff pattern:$0x73625140] }
 0x20d   : > { %4081 = vmatpush.msra.mxu2 %v2182_v0  ;;  %4100 = vmatpush.msra.mxu3 %v2216_v30  ;;  %v2176_v0 = vld [vmem:[%s6262_s12 + $0x3a00] sm:$0xff]  ;;  %v2210_v30 = vld [vmem:[%s6262_s12 + $0x3b10] sm:$0xff]  ;;  %9151 = vst [vmem:[#allocation19_spill] sm:$0xff] %v7419_v58 }
 0x20e   : > { %4042 = vmatpush.msra.mxu0 %v2116_v32  ;;  %4061 = vmatpush.msra.mxu1 %v2150_v17  ;;  %v7407_v22 = vld.sshfl [vmem:[#allocation1] sm:$0xff pattern:$0x73625140]  ;;  %v7409_v47 = vld.sshfl [vmem:[#allocation1 + $0x10] sm:$0xff pattern:$0x73625140] }
 0x20f   : > { %4082 = vmatpush.msra.mxu2 %v2180_v29  ;;  %4101 = vmatpush.msra.mxu3 %v2214_v31  ;;  %9149 = vst [vmem:[#allocation17_spill] sm:$0xff] %v7409_v47  ;;  %v2270_v32 = vld [vmem:[%s6262_s12 + $0x3cf0] sm:$0xff]  ;;  %v3366_v29 = vpop.f32.mrf.mxu2  ;;  %v2144_v31 = vld [vmem:[%s6262_s12 + $0x3900] sm:$0xff] }
 0x210   : > { %4043 = vmatpush.msra.mxu0 %v2114_v60  ;;  %4062 = vmatpush.msra.mxu1 %v2148_v1  ;;  %v2334_v17 = vld [vmem:[%s6262_s12 + $0x3ef0] sm:$0xff]  ;;  %v2208_v61 = vld [vmem:[%s6262_s12 + $0x3b00] sm:$0xff]  ;;  %v3347_v60 = vadd.f32 %v3346_v63, %v3327_v12  ;;  %v7417_v1 = vld.sshfl [vmem:[#allocation1 + $0x8] sm:$0xff pattern:$0x73625140] }
 0x211   : > { %4083 = vmatpush.msra.mxu2 %v2178_v6  ;;  %4102 = vmatpush.msra.mxu3 %v2212_v5  ;;  %9150 = vst [vmem:[#allocation18_spill] sm:$0xff] %v7417_v1  ;;  %v2268_v2 = vld [vmem:[%s6262_s12 + $0x3ce0] sm:$0xff]  ;;  %v2302_v6 = vld [vmem:[%s6262_s12 + $0x3df0] sm:$0xff] }
 0x212   : > { %4044 = vmatpush.msra.mxu0 %v2112_v51  ;;  %4063 = vmatpush.msra.mxu1 %v2146_v59  ;;  %v3367_v5 = vadd.f32 %v3366_v29, %v3347_v60  ;;  %v2332_v63 = vld [vmem:[%s6262_s12 + $0x3ee0] sm:$0xff]  ;;  %v2366_v12 = vld [vmem:[%s6262_s12 + $0x3ff0] sm:$0xff]  ;;  %v3386_v51 = vpop.f32.mrf.mxu3 }
 0x213   : > { %4084 = vmatpush.msra.mxu2 %v2176_v0  ;;  %4103 = vmatpush.msra.mxu3 %v2210_v30  ;;  %v2266_v59 = vld [vmem:[%s6262_s12 + $0x3cd0] sm:$0xff]  ;;  %v2300_v0 = vld [vmem:[%s6262_s12 + $0x3de0] sm:$0xff] }
 0x214   : > { %4045 = vmatmul.f32.vlgmr.msra.gmra.mxu0 %v7407_v22  ;;  %4085 = vmatmul.f32.vlgmr.msra.gmra.mxu2 %v7409_v47  ;;  %v2330_v30 = vld [vmem:[%s6262_s12 + $0x3ed0] sm:$0xff]  ;;  %v2264_v29 = vld [vmem:[%s6262_s12 + $0x3cc0] sm:$0xff] }
 0x215   : > { %4109 = vmatpush.msrb.mxu0 %v2270_v32  ;;  %4149 = vmatpush.msrb.mxu2 %v2334_v17  ;;  %v2364_v32 = vld [vmem:[%s6262_s12 + $0x3fe0] sm:$0xff]  ;;  %v3406_v17 = vpop.f32.mrf.mxu0  ;;  %v2362_v47 = vld [vmem:[%s6262_s12 + $0x3fd0] sm:$0xff] }
 0x216   : > { %4064 = vmatpush.msra.mxu1 %v2144_v31  ;;  %4104 = vmatpush.msra.mxu3 %v2208_v61  ;;  %v2298_v31 = vld [vmem:[%s6262_s12 + $0x3dd0] sm:$0xff]  ;;  %v3387_v61 = vadd.f32 %v3386_v51, %v3367_v5  ;;  %v2328_v60 = vld [vmem:[%s6262_s12 + $0x3ec0] sm:$0xff]  ;;  %v3426_v5 = vpop.f32.mrf.mxu1 }
 0x217   : > { %4065 = vmatmul.f32.vlgmr.msra.gmra.mxu1 %v7417_v1  ;;  %4105 = vmatmul.f32.vlgmr.msra.gmra.mxu3 %v7419_v58  ;;  %v2260_v51 = vld [vmem:[%s6262_s12 + $0x3ca0] sm:$0xff] }
 0x218   : > { %4110 = vmatpush.msrb.mxu0 %v2268_v2  ;;  %4129 = vmatpush.msrb.mxu1 %v2302_v6  ;;  %v2262_v2 = vld [vmem:[%s6262_s12 + $0x3cb0] sm:$0xff]  ;;  %v2296_v6 = vld [vmem:[%s6262_s12 + $0x3dc0] sm:$0xff]  ;;  %v3407_v58 = vadd.f32 %v3406_v17, %v3387_v61 }
 0x219   : > { %4150 = vmatpush.msrb.mxu2 %v2332_v63  ;;  %4169 = vmatpush.msrb.mxu3 %v2366_v12  ;;  %v2326_v63 = vld [vmem:[%s6262_s12 + $0x3eb0] sm:$0xff]  ;;  %v2360_v12 = vld [vmem:[%s6262_s12 + $0x3fc0] sm:$0xff] }
 0x21a   : > { %4111 = vmatpush.msrb.mxu0 %v2266_v59  ;;  %4130 = vmatpush.msrb.mxu1 %v2300_v0  ;;  %v2294_v59 = vld [vmem:[%s6262_s12 + $0x3db0] sm:$0xff]  ;;  %v2324_v0 = vld [vmem:[%s6262_s12 + $0x3ea0] sm:$0xff] }
 0x21b   : > { %4151 = vmatpush.msrb.mxu2 %v2330_v30  ;;  %4170 = vmatpush.msrb.mxu3 %v2364_v32  ;;  %v2358_v30 = vld [vmem:[%s6262_s12 + $0x3fb0] sm:$0xff]  ;;  %v3446_v32 = vpop.f32.mrf.mxu2  ;;  %v2356_v61 = vld [vmem:[%s6262_s12 + $0x3fa0] sm:$0xff] }
 0x21c   : > { %4112 = vmatpush.msrb.mxu0 %v2264_v29  ;;  %4131 = vmatpush.msrb.mxu1 %v2298_v31  ;;  %v2258_v17 = vld [vmem:[%s6262_s12 + $0x3c90] sm:$0xff]  ;;  %v2292_v29 = vld [vmem:[%s6262_s12 + $0x3da0] sm:$0xff]  ;;  %v3427_v31 = vadd.f32 %v3426_v5, %v3407_v58  ;;  %v3466_v58 = vpop.f32.mrf.mxu3 }
 0x21d   : > { %4152 = vmatpush.msrb.mxu2 %v2328_v60  ;;  %4171 = vmatpush.msrb.mxu3 %v2362_v47  ;;  %v2322_v47 = vld [vmem:[%s6262_s12 + $0x3e90] sm:$0xff]  ;;  %v2256_v60 = vld [vmem:[%s6262_s12 + $0x3c80] sm:$0xff] }
 0x21e   : > { %4113 = vmatpush.msrb.mxu0 %v2262_v2  ;;  %4132 = vmatpush.msrb.mxu1 %v2296_v6  ;;  %v2290_v2 = vld [vmem:[%s6262_s12 + $0x3d90] sm:$0xff]  ;;  %v3447_v6 = vadd.f32 %v3446_v32, %v3427_v31  ;;  %v2252_v32 = vld [vmem:[%s6262_s12 + $0x3c60] sm:$0xff] }
 0x21f   : > { %4153 = vmatpush.msrb.mxu2 %v2326_v63  ;;  %4172 = vmatpush.msrb.mxu3 %v2360_v12  ;;  %v2320_v63 = vld [vmem:[%s6262_s12 + $0x3e80] sm:$0xff]  ;;  %v2354_v12 = vld [vmem:[%s6262_s12 + $0x3f90] sm:$0xff] }
 0x220   : > { %4114 = vmatpush.msrb.mxu0 %v2260_v51  ;;  %4133 = vmatpush.msrb.mxu1 %v2294_v59  ;;  %v2254_v5 = vld [vmem:[%s6262_s12 + $0x3c70] sm:$0xff]  ;;  %v2288_v51 = vld [vmem:[%s6262_s12 + $0x3d80] sm:$0xff] }
 0x221   : > { %4154 = vmatpush.msrb.mxu2 %v2324_v0  ;;  %4173 = vmatpush.msrb.mxu3 %v2358_v30  ;;  %v2318_v59 = vld [vmem:[%s6262_s12 + $0x3e70] sm:$0xff]  ;;  %v2352_v0 = vld [vmem:[%s6262_s12 + $0x3f80] sm:$0xff]  ;;  %v3486_v30 = vpop.f32.mrf.mxu0 }
 0x222   : > { %4115 = vmatpush.msrb.mxu0 %v2258_v17  ;;  %4134 = vmatpush.msrb.mxu1 %v2292_v29  ;;  %v2286_v17 = vld [vmem:[%s6262_s12 + $0x3d70] sm:$0xff]  ;;  %v3467_v29 = vadd.f32 %v3466_v58, %v3447_v6  ;;  %v2316_v31 = vld [vmem:[%s6262_s12 + $0x3e60] sm:$0xff]  ;;  %v3506_v6 = vpop.f32.mrf.mxu1 }
 0x223   : > { %4155 = vmatpush.msrb.mxu2 %v2322_v47  ;;  %4174 = vmatpush.msrb.mxu3 %v2356_v61  ;;  %v2350_v47 = vld [vmem:[%s6262_s12 + $0x3f70] sm:$0xff]  ;;  %v2248_v58 = vld [vmem:[%s6262_s12 + $0x3c40] sm:$0xff] }
 0x224   : > { %4116 = vmatpush.msrb.mxu0 %v2256_v60  ;;  %4135 = vmatpush.msrb.mxu1 %v2290_v2  ;;  %v2250_v61 = vld [vmem:[%s6262_s12 + $0x3c50] sm:$0xff]  ;;  %v2284_v60 = vld [vmem:[%s6262_s12 + $0x3d60] sm:$0xff]  ;;  %v3487_v2 = vadd.f32 %v3486_v30, %v3467_v29 }
 0x225   : > { %4156 = vmatpush.msrb.mxu2 %v2320_v63  ;;  %4175 = vmatpush.msrb.mxu3 %v2354_v12  ;;  %v2314_v63 = vld [vmem:[%s6262_s12 + $0x3e50] sm:$0xff]  ;;  %v2348_v12 = vld [vmem:[%s6262_s12 + $0x3f60] sm:$0xff] }
 0x226   : > { %4117 = vmatpush.msrb.mxu0 %v2254_v5  ;;  %4136 = vmatpush.msrb.mxu1 %v2288_v51  ;;  %v2282_v5 = vld [vmem:[%s6262_s12 + $0x3d50] sm:$0xff]  ;;  %v2312_v51 = vld [vmem:[%s6262_s12 + $0x3e40] sm:$0xff] }
 0x227   : > { %4157 = vmatpush.msrb.mxu2 %v2318_v59  ;;  %4176 = vmatpush.msrb.mxu3 %v2352_v0  ;;  %v2346_v59 = vld [vmem:[%s6262_s12 + $0x3f50] sm:$0xff]  ;;  %v3526_v0 = vpop.f32.mrf.mxu2  ;;  %v2468_v1 = vld [vmem:[%s6262_s12 + $0x4320] sm:$0xff] }
 0x228   : > { %4118 = vmatpush.msrb.mxu0 %v2252_v32  ;;  %4137 = vmatpush.msrb.mxu1 %v2286_v17  ;;  %v2246_v30 = vld [vmem:[%s6262_s12 + $0x3c30] sm:$0xff]  ;;  %v2280_v32 = vld [vmem:[%s6262_s12 + $0x3d40] sm:$0xff]  ;;  %v3507_v17 = vadd.f32 %v3506_v6, %v3487_v2  ;;  %v3546_v2 = vpop.f32.mrf.mxu3 }
 0x229   : > { %4158 = vmatpush.msrb.mxu2 %v2316_v31  ;;  %4177 = vmatpush.msrb.mxu3 %v2350_v47  ;;  %v2310_v29 = vld [vmem:[%s6262_s12 + $0x3e30] sm:$0xff]  ;;  %v2344_v31 = vld [vmem:[%s6262_s12 + $0x3f40] sm:$0xff] }
 0x22a   : > { %4119 = vmatpush.msrb.mxu0 %v2250_v61  ;;  %4138 = vmatpush.msrb.mxu1 %v2284_v60  ;;  %v2244_v47 = vld [vmem:[%s6262_s12 + $0x3c20] sm:$0xff]  ;;  %v2278_v61 = vld [vmem:[%s6262_s12 + $0x3d30] sm:$0xff]  ;;  %v3527_v60 = vadd.f32 %v3526_v0, %v3507_v17  ;;  %v3566_v0 = vpop.f32.mrf.mxu0 }
 0x22b   : > { %4159 = vmatpush.msrb.mxu2 %v2314_v63  ;;  %4178 = vmatpush.msrb.mxu3 %v2348_v12  ;;  %v2308_v63 = vld [vmem:[%s6262_s12 + $0x3e20] sm:$0xff]  ;;  %v2342_v12 = vld [vmem:[%s6262_s12 + $0x3f30] sm:$0xff] }
 0x22c   : > { %4120 = vmatpush.msrb.mxu0 %v2248_v58  ;;  %4139 = vmatpush.msrb.mxu1 %v2282_v5  ;;  %v2242_v6 = vld [vmem:[%s6262_s12 + $0x3c10] sm:$0xff]  ;;  %v2276_v58 = vld [vmem:[%s6262_s12 + $0x3d20] sm:$0xff]  ;;  %v3547_v17 = vadd.f32 %v3546_v2, %v3527_v60  ;;  %v3586_v60 = vpop.f32.mrf.mxu1 }
 0x22d   : > { %4160 = vmatpush.msrb.mxu2 %v2312_v51  ;;  %4179 = vmatpush.msrb.mxu3 %v2346_v59  ;;  %v317_v5 = vld [vmem:[%s6257_s8 + $0x80] sm:$0xff]  ;;  %v2306_v51 = vld [vmem:[%s6262_s12 + $0x3e10] sm:$0xff] }
 0x22e   : > { %4121 = vmatpush.msrb.mxu0 %v2246_v30  ;;  %4140 = vmatpush.msrb.mxu1 %v2280_v32  ;;  %v2340_v59 = vld [vmem:[%s6262_s12 + $0x3f20] sm:$0xff]  ;;  %2820 = vst [vmem:[#allocation1] ss:$4 sm:$0xff] %v317_v5  ;;  %v2274_v32 = vld [vmem:[%s6262_s12 + $0x3d10] sm:$0xff]  ;;  %v3567_v5 = vadd.f32 %v3566_v0, %v3547_v17 }
 0x22f   : > { %4161 = vmatpush.msrb.mxu2 %v2310_v29  ;;  %4180 = vmatpush.msrb.mxu3 %v2344_v31  ;;  %v2240_v30 = vld [vmem:[%s6262_s12 + $0x3c00] sm:$0xff]  ;;  %v2338_v31 = vld [vmem:[%s6262_s12 + $0x3f10] sm:$0xff] }
 0x230   : > { %4122 = vmatpush.msrb.mxu0 %v2244_v47  ;;  %4141 = vmatpush.msrb.mxu1 %v2278_v61  ;;  %v2304_v29 = vld [vmem:[%s6262_s12 + $0x3e00] sm:$0xff]  ;;  %v7486_v61 = vld.sshfl [vmem:[#allocation1 + $0x30] sm:$0xff pattern:$0x73625140] }
 0x231   : > { %4162 = vmatpush.msrb.mxu2 %v2308_v63  ;;  %4181 = vmatpush.msrb.mxu3 %v2342_v12  ;;  %v7484_v47 = vld.sshfl [vmem:[#allocation1 + $0x20] sm:$0xff pattern:$0x73625140]  ;;  %9153 = vst [vmem:[#allocation21_spill] sm:$0xff] %v7486_v61  ;;  %v2398_v63 = vld [vmem:[%s6262_s12 + $0x40f0] sm:$0xff] }
 0x232   : > { %4123 = vmatpush.msrb.mxu0 %v2242_v6  ;;  %4142 = vmatpush.msrb.mxu1 %v2276_v58  ;;  %9152 = vst [vmem:[#allocation20_spill] sm:$0xff] %v7484_v47  ;;  %v2462_v12 = vld [vmem:[%s6262_s12 + $0x42f0] sm:$0xff]  ;;  %v2272_v2 = vld [vmem:[%s6262_s12 + $0x3d00] sm:$0xff]  ;;  %v7494_v58 = vld.sshfl [vmem:[#allocation1 + $0x28] sm:$0xff pattern:$0x73625140] }
 0x233   : > { %4163 = vmatpush.msrb.mxu2 %v2306_v51  ;;  %4182 = vmatpush.msrb.mxu3 %v2340_v59  ;;  %v2336_v6 = vld [vmem:[%s6262_s12 + $0x3f00] sm:$0xff]  ;;  %9154 = vst [vmem:[#allocation22_spill] sm:$0xff] %v7494_v58  ;;  %v7496_v51 = vld.sshfl [vmem:[#allocation1 + $0x38] sm:$0xff pattern:$0x73625140]  ;;  %v3606_v59 = vpop.f32.mrf.mxu2 }
 0x234   : > { %4124 = vmatpush.msrb.mxu0 %v2240_v30  ;;  %4143 = vmatpush.msrb.mxu1 %v2274_v32  ;;  %9155 = vst [vmem:[#allocation23_spill] sm:$0xff] %v7496_v51  ;;  %v2396_v0 = vld [vmem:[%s6262_s12 + $0x40e0] sm:$0xff]  ;;  %v2430_v30 = vld [vmem:[%s6262_s12 + $0x41f0] sm:$0xff]  ;;  %v3587_v32 = vadd.f32 %v3586_v60, %v3567_v5  ;;  %v3626_v60 = vpop.f32.mrf.mxu3 }
 0x235   : > { %4164 = vmatpush.msrb.mxu2 %v2304_v29  ;;  %4183 = vmatpush.msrb.mxu3 %v2338_v31  ;;  %v2460_v17 = vld [vmem:[%s6262_s12 + $0x42e0] sm:$0xff]  ;;  %v2494_v29 = vld [vmem:[%s6262_s12 + $0x43f0] sm:$0xff] }
 0x236   : > { %4125 = vmatmul.f32.vlgmr.msrb.gmra.mxu0 %v7484_v47  ;;  %4165 = vmatmul.f32.vlgmr.msrb.gmra.mxu2 %v7486_v61  ;;  %v2394_v31 = vld [vmem:[%s6262_s12 + $0x40d0] sm:$0xff]  ;;  %v3607_v61 = vadd.f32 %v3606_v59, %v3587_v32  ;;  %v3646_v59 = vpop.f32.mrf.mxu0 }
 0x237   : > { %4189 = vmatpush.msra.mxu0 %v2398_v63  ;;  %4229 = vmatpush.msra.mxu2 %v2462_v12  ;;  %v2428_v63 = vld [vmem:[%s6262_s12 + $0x41e0] sm:$0xff]  ;;  %v2458_v5 = vld [vmem:[%s6262_s12 + $0x42d0] sm:$0xff] }
 0x238   : > { %4144 = vmatpush.msrb.mxu1 %v2272_v2  ;;  %4184 = vmatpush.msrb.mxu3 %v2336_v6  ;;  %v2492_v12 = vld [vmem:[%s6262_s12 + $0x43e0] sm:$0xff]  ;;  %v2426_v6 = vld [vmem:[%s6262_s12 + $0x41d0] sm:$0xff]  ;;  %v3627_v32 = vadd.f32 %v3626_v60, %v3607_v61  ;;  %v3666_v61 = vpop.f32.mrf.mxu1 }
 0x239   : > { %4145 = vmatmul.f32.vlgmr.msrb.gmra.mxu1 %v7494_v58  ;;  %4185 = vmatmul.f32.vlgmr.msrb.gmra.mxu3 %v7496_v51  ;;  %v2392_v2 = vld [vmem:[%s6262_s12 + $0x40c0] sm:$0xff]  ;;  %v2490_v58 = vld [vmem:[%s6262_s12 + $0x43d0] sm:$0xff] }
 0x23a   : > { %4190 = vmatpush.msra.mxu0 %v2396_v0  ;;  %4209 = vmatpush.msra.mxu1 %v2430_v30  ;;  %v2456_v51 = vld [vmem:[%s6262_s12 + $0x42c0] sm:$0xff]  ;;  %v2390_v0 = vld [vmem:[%s6262_s12 + $0x40b0] sm:$0xff]  ;;  %v3647_v47 = vadd.f32 %v3646_v59, %v3627_v32 }
 0x23b   : > { %4230 = vmatpush.msra.mxu2 %v2460_v17  ;;  %4249 = vmatpush.msra.mxu3 %v2494_v29  ;;  %v2424_v30 = vld [vmem:[%s6262_s12 + $0x41c0] sm:$0xff]  ;;  %v2454_v17 = vld [vmem:[%s6262_s12 + $0x42b0] sm:$0xff] }
 0x23c   : > { %4191 = vmatpush.msra.mxu0 %v2394_v31  ;;  %4210 = vmatpush.msra.mxu1 %v2428_v63  ;;  %v2488_v29 = vld [vmem:[%s6262_s12 + $0x43c0] sm:$0xff]  ;;  %v2422_v63 = vld [vmem:[%s6262_s12 + $0x41b0] sm:$0xff] }
 0x23d   : > { %4231 = vmatpush.msra.mxu2 %v2458_v5  ;;  %4250 = vmatpush.msra.mxu3 %v2492_v12  ;;  %v2388_v31 = vld [vmem:[%s6262_s12 + $0x40a0] sm:$0xff]  ;;  %v2486_v12 = vld [vmem:[%s6262_s12 + $0x43b0] sm:$0xff] }
 0x23e   : > { %4192 = vmatpush.msra.mxu0 %v2392_v2  ;;  %4211 = vmatpush.msra.mxu1 %v2426_v6  ;;  %v2452_v5 = vld [vmem:[%s6262_s12 + $0x42a0] sm:$0xff]  ;;  %v2386_v60 = vld [vmem:[%s6262_s12 + $0x4090] sm:$0xff]  ;;  %v3686_v6 = vpop.f32.mrf.mxu2 }
 0x23f   : > { %4232 = vmatpush.msra.mxu2 %v2456_v51  ;;  %4251 = vmatpush.msra.mxu3 %v2490_v58  ;;  %v2420_v2 = vld [vmem:[%s6262_s12 + $0x41a0] sm:$0xff]  ;;  %v2450_v58 = vld [vmem:[%s6262_s12 + $0x4290] sm:$0xff] }
 0x240   : > { %4193 = vmatpush.msra.mxu0 %v2390_v0  ;;  %4212 = vmatpush.msra.mxu1 %v2424_v30  ;;  %v2484_v51 = vld [vmem:[%s6262_s12 + $0x43a0] sm:$0xff]  ;;  %v2418_v0 = vld [vmem:[%s6262_s12 + $0x4190] sm:$0xff]  ;;  %v3667_v30 = vadd.f32 %v3666_v61, %v3647_v47  ;;  %v3706_v47 = vpop.f32.mrf.mxu3 }
 0x241   : > { %4233 = vmatpush.msra.mxu2 %v2454_v17  ;;  %4252 = vmatpush.msra.mxu3 %v2488_v29  ;;  %v2384_v59 = vld [vmem:[%s6262_s12 + $0x4080] sm:$0xff]  ;;  %v2482_v17 = vld [vmem:[%s6262_s12 + $0x4390] sm:$0xff] }
 0x242   : > { %4194 = vmatpush.msra.mxu0 %v2388_v31  ;;  %4213 = vmatpush.msra.mxu1 %v2422_v63  ;;  %v2448_v32 = vld [vmem:[%s6262_s12 + $0x4280] sm:$0xff]  ;;  %v2382_v29 = vld [vmem:[%s6262_s12 + $0x4070] sm:$0xff]  ;;  %v3687_v63 = vadd.f32 %v3686_v6, %v3667_v30 }
 0x243   : > { %4234 = vmatpush.msra.mxu2 %v2452_v5  ;;  %4253 = vmatpush.msra.mxu3 %v2486_v12  ;;  %v2416_v31 = vld [vmem:[%s6262_s12 + $0x4180] sm:$0xff]  ;;  %v2446_v5 = vld [vmem:[%s6262_s12 + $0x4270] sm:$0xff] }
 0x244   : > { %4195 = vmatpush.msra.mxu0 %v2386_v60  ;;  %4214 = vmatpush.msra.mxu1 %v2420_v2  ;;  %v2480_v12 = vld [vmem:[%s6262_s12 + $0x4380] sm:$0xff]  ;;  %v2414_v60 = vld [vmem:[%s6262_s12 + $0x4170] sm:$0xff] }
 0x245   : > { %4235 = vmatpush.msra.mxu2 %v2450_v58  ;;  %4254 = vmatpush.msra.mxu3 %v2484_v51  ;;  %v2380_v61 = vld [vmem:[%s6262_s12 + $0x4060] sm:$0xff]  ;;  %v2478_v58 = vld [vmem:[%s6262_s12 + $0x4370] sm:$0xff]  ;;  %v3726_v51 = vpop.f32.mrf.mxu0 }
 0x246   : > { %4196 = vmatpush.msra.mxu0 %v2384_v59  ;;  %4215 = vmatpush.msra.mxu1 %v2418_v0  ;;  %v2444_v2 = vld [vmem:[%s6262_s12 + $0x4260] sm:$0xff]  ;;  %v2378_v6 = vld [vmem:[%s6262_s12 + $0x4050] sm:$0xff]  ;;  %v3707_v0 = vadd.f32 %v3706_v47, %v3687_v63  ;;  %v3746_v63 = vpop.f32.mrf.mxu1 }
 0x247   : > { %4236 = vmatpush.msra.mxu2 %v2448_v32  ;;  %4255 = vmatpush.msra.mxu3 %v2482_v17  ;;  %v2412_v59 = vld [vmem:[%s6262_s12 + $0x4160] sm:$0xff]  ;;  %v2442_v30 = vld [vmem:[%s6262_s12 + $0x4250] sm:$0xff] }
 0x248   : > { %4197 = vmatpush.msra.mxu0 %v2382_v29  ;;  %4216 = vmatpush.msra.mxu1 %v2416_v31  ;;  %v2476_v32 = vld [vmem:[%s6262_s12 + $0x4360] sm:$0xff]  ;;  %v2410_v29 = vld [vmem:[%s6262_s12 + $0x4150] sm:$0xff]  ;;  %v3727_v31 = vadd.f32 %v3726_v51, %v3707_v0 }
 0x249   : > { %4237 = vmatpush.msra.mxu2 %v2446_v5  ;;  %4256 = vmatpush.msra.mxu3 %v2480_v12  ;;  %v2376_v17 = vld [vmem:[%s6262_s12 + $0x4040] sm:$0xff]  ;;  %v2474_v12 = vld [vmem:[%s6262_s12 + $0x4350] sm:$0xff] }
 0x24a   : > { %4198 = vmatpush.msra.mxu0 %v2380_v61  ;;  %4217 = vmatpush.msra.mxu1 %v2414_v60  ;;  %v2440_v5 = vld [vmem:[%s6262_s12 + $0x4240] sm:$0xff]  ;;  %v2374_v47 = vld [vmem:[%s6262_s12 + $0x4030] sm:$0xff] }
 0x24b   : > { %4238 = vmatpush.msra.mxu2 %v2444_v2  ;;  %4257 = vmatpush.msra.mxu3 %v2478_v58  ;;  %v2408_v61 = vld [vmem:[%s6262_s12 + $0x4140] sm:$0xff]  ;;  %v2438_v60 = vld [vmem:[%s6262_s12 + $0x4230] sm:$0xff]  ;;  %v3766_v58 = vpop.f32.mrf.mxu2 }
 0x24c   : > { %4199 = vmatpush.msra.mxu0 %v2378_v6  ;;  %4218 = vmatpush.msra.mxu1 %v2412_v59  ;;  %v2472_v2 = vld [vmem:[%s6262_s12 + $0x4340] sm:$0xff]  ;;  %v2406_v6 = vld [vmem:[%s6262_s12 + $0x4130] sm:$0xff]  ;;  %v3747_v59 = vadd.f32 %v3746_v63, %v3727_v31  ;;  %v3786_v31 = vpop.f32.mrf.mxu3 }
 0x24d   : > { %4239 = vmatpush.msra.mxu2 %v2442_v30  ;;  %4258 = vmatpush.msra.mxu3 %v2476_v32  ;;  %v2372_v51 = vld [vmem:[%s6262_s12 + $0x4020] sm:$0xff]  ;;  %v2470_v30 = vld [vmem:[%s6262_s12 + $0x4330] sm:$0xff] }
 0x24e   : > { %4200 = vmatpush.msra.mxu0 %v2376_v17  ;;  %4219 = vmatpush.msra.mxu1 %v2410_v29  ;;  %v2436_v0 = vld [vmem:[%s6262_s12 + $0x4220] sm:$0xff]  ;;  %v2370_v32 = vld [vmem:[%s6262_s12 + $0x4010] sm:$0xff]  ;;  %v318_v29 = vld [vmem:[%s6257_s8 + $0x88] sm:$0xff] }
 0x24f   : > { %4240 = vmatpush.msra.mxu2 %v2440_v5  ;;  %4259 = vmatpush.msra.mxu3 %v2474_v12  ;;  %v2404_v17 = vld [vmem:[%s6262_s12 + $0x4120] sm:$0xff]  ;;  %v3767_v5 = vadd.f32 %v3766_v58, %v3747_v59  ;;  %v2434_v12 = vld [vmem:[%s6262_s12 + $0x4210] sm:$0xff]  ;;  %2821 = vst [vmem:[#allocation1 + $0x20] ss:$4 sm:$0xff] %v318_v29 }
 0x250   : > { %4201 = vmatpush.msra.mxu0 %v2374_v47  ;;  %4220 = vmatpush.msra.mxu1 %v2408_v61  ;;  %v2368_v63 = vld [vmem:[%s6262_s12 + $0x4000] sm:$0xff]  ;;  %v2402_v47 = vld [vmem:[%s6262_s12 + $0x4110] sm:$0xff]  ;;  %v7573_v29 = vld.sshfl [vmem:[#allocation1 + $0x18] sm:$0xff pattern:$0x73625140] }
 0x251   : > { %4241 = vmatpush.msra.mxu2 %v2438_v60  ;;  %4260 = vmatpush.msra.mxu3 %v2472_v2  ;;  %v2432_v61 = vld [vmem:[%s6262_s12 + $0x4200] sm:$0xff]  ;;  %v2466_v60 = vld [vmem:[%s6262_s12 + $0x4310] sm:$0xff]  ;;  %v3806_v2 = vpop.f32.mrf.mxu0  ;;  %9159 = vst [vmem:[#allocation27_spill] sm:$0xff] %v7573_v29 }
 0x252   : > { %4202 = vmatpush.msra.mxu0 %v2372_v51  ;;  %4221 = vmatpush.msra.mxu1 %v2406_v6  ;;  %v7561_v58 = vld.sshfl [vmem:[#allocation1] sm:$0xff pattern:$0x73625140]  ;;  %v7563_v51 = vld.sshfl [vmem:[#allocation1 + $0x10] sm:$0xff pattern:$0x73625140]  ;;  %v3787_v6 = vadd.f32 %v3786_v31, %v3767_v5  ;;  %v3826_v5 = vpop.f32.mrf.mxu1 }
 0x253   : > { %4242 = vmatpush.msra.mxu2 %v2436_v0  ;;  %4261 = vmatpush.msra.mxu3 %v2470_v30  ;;  %9156 = vst [vmem:[#allocation24_spill] sm:$0xff] %v7561_v58  ;;  %v2526_v59 = vld [vmem:[%s6262_s12 + $0x44f0] sm:$0xff]  ;;  %v2400_v30 = vld [vmem:[%s6262_s12 + $0x4100] sm:$0xff] }
 0x254   : > { %4203 = vmatpush.msra.mxu0 %v2370_v32  ;;  %4222 = vmatpush.msra.mxu1 %v2404_v17  ;;  %9157 = vst [vmem:[#allocation25_spill] sm:$0xff] %v7563_v51  ;;  %v2590_v0 = vld [vmem:[%s6262_s12 + $0x46f0] sm:$0xff]  ;;  %v2464_v32 = vld [vmem:[%s6262_s12 + $0x4300] sm:$0xff]  ;;  %v3807_v17 = vadd.f32 %v3806_v2, %v3787_v6 }
 0x255   : > { %4243 = vmatpush.msra.mxu2 %v2434_v12  ;;  %4262 = vmatpush.msra.mxu3 %v2468_v1  ;;  %v7571_v1 = vld.sshfl [vmem:[#allocation1 + $0x8] sm:$0xff pattern:$0x73625140]  ;;  %v2524_v12 = vld [vmem:[%s6262_s12 + $0x44e0] sm:$0xff]  ;;  %v2558_v31 = vld [vmem:[%s6262_s12 + $0x45f0] sm:$0xff] }
 0x256   : > { %4204 = vmatpush.msra.mxu0 %v2368_v63  ;;  %4223 = vmatpush.msra.mxu1 %v2402_v47  ;;  %9158 = vst [vmem:[#allocation26_spill] sm:$0xff] %v7571_v1  ;;  %v2588_v63 = vld [vmem:[%s6262_s12 + $0x46e0] sm:$0xff]  ;;  %v2622_v47 = vld [vmem:[%s6262_s12 + $0x47f0] sm:$0xff]  ;;  %v3827_v6 = vadd.f32 %v3826_v5, %v3807_v17  ;;  %v3866_v17 = vpop.f32.mrf.mxu3 }
 0x257   : > { %4244 = vmatpush.msra.mxu2 %v2432_v61  ;;  %4263 = vmatpush.msra.mxu3 %v2466_v60  ;;  %v3846_v61 = vpop.f32.mrf.mxu2  ;;  %v2522_v60 = vld [vmem:[%s6262_s12 + $0x44d0] sm:$0xff]  ;;  %v2556_v2 = vld [vmem:[%s6262_s12 + $0x45e0] sm:$0xff] }
 0x258   : > { %4205 = vmatmul.f32.vlgmr.msra.gmra.mxu0 %v7561_v58  ;;  %4245 = vmatmul.f32.vlgmr.msra.gmra.mxu2 %v7563_v51  ;;  %v3847_v51 = vadd.f32 %v3846_v61, %v3827_v6  ;;  %v2518_v5 = vld [vmem:[%s6262_s12 + $0x44b0] sm:$0xff]  ;;  %v2516_v61 = vld [vmem:[%s6262_s12 + $0x44a0] sm:$0xff] }
 0x259   : > { %4269 = vmatpush.msrb.mxu0 %v2526_v59  ;;  %4309 = vmatpush.msrb.mxu2 %v2590_v0  ;;  %v2586_v59 = vld [vmem:[%s6262_s12 + $0x46d0] sm:$0xff]  ;;  %v2620_v0 = vld [vmem:[%s6262_s12 + $0x47e0] sm:$0xff] }
 0x25a   : > { %4224 = vmatpush.msra.mxu1 %v2400_v30  ;;  %4264 = vmatpush.msra.mxu3 %v2464_v32  ;;  %v2520_v30 = vld [vmem:[%s6262_s12 + $0x44c0] sm:$0xff]  ;;  %v2554_v32 = vld [vmem:[%s6262_s12 + $0x45d0] sm:$0xff] }
 0x25b   : > { %4225 = vmatmul.f32.vlgmr.msra.gmra.mxu1 %v7571_v1  ;;  %4265 = vmatmul.f32.vlgmr.msra.gmra.mxu3 %v7573_v29  ;;  %v2584_v29 = vld [vmem:[%s6262_s12 + $0x46c0] sm:$0xff]  ;;  %v2618_v1 = vld [vmem:[%s6262_s12 + $0x47d0] sm:$0xff] }
 0x25c   : > { %4270 = vmatpush.msrb.mxu0 %v2524_v12  ;;  %4289 = vmatpush.msrb.mxu1 %v2558_v31  ;;  %v2552_v12 = vld [vmem:[%s6262_s12 + $0x45c0] sm:$0xff]  ;;  %v2582_v31 = vld [vmem:[%s6262_s12 + $0x46b0] sm:$0xff] }
 0x25d   : > { %4310 = vmatpush.msrb.mxu2 %v2588_v63  ;;  %4329 = vmatpush.msrb.mxu3 %v2622_v47  ;;  %v2616_v63 = vld [vmem:[%s6262_s12 + $0x47c0] sm:$0xff]  ;;  %v3886_v47 = vpop.f32.mrf.mxu0 }
 0x25e   : > { %4271 = vmatpush.msrb.mxu0 %v2522_v60  ;;  %4290 = vmatpush.msrb.mxu1 %v2556_v2  ;;  %v2550_v60 = vld [vmem:[%s6262_s12 + $0x45b0] sm:$0xff]  ;;  %v3867_v2 = vadd.f32 %v3866_v17, %v3847_v51  ;;  %v2580_v6 = vld [vmem:[%s6262_s12 + $0x46a0] sm:$0xff]  ;;  %v3906_v51 = vpop.f32.mrf.mxu1 }
 0x25f   : > { %4311 = vmatpush.msrb.mxu2 %v2586_v59  ;;  %4330 = vmatpush.msrb.mxu3 %v2620_v0  ;;  %v2614_v59 = vld [vmem:[%s6262_s12 + $0x47b0] sm:$0xff]  ;;  %v2512_v17 = vld [vmem:[%s6262_s12 + $0x4480] sm:$0xff] }
 0x260   : > { %4272 = vmatpush.msrb.mxu0 %v2520_v30  ;;  %4291 = vmatpush.msrb.mxu1 %v2554_v32  ;;  %v2514_v0 = vld [vmem:[%s6262_s12 + $0x4490] sm:$0xff]  ;;  %v2548_v30 = vld [vmem:[%s6262_s12 + $0x45a0] sm:$0xff]  ;;  %v3887_v32 = vadd.f32 %v3886_v47, %v3867_v2 }
 0x261   : > { %4312 = vmatpush.msrb.mxu2 %v2584_v29  ;;  %4331 = vmatpush.msrb.mxu3 %v2618_v1  ;;  %v2578_v1 = vld [vmem:[%s6262_s12 + $0x4690] sm:$0xff]  ;;  %v2612_v29 = vld [vmem:[%s6262_s12 + $0x47a0] sm:$0xff] }
 0x262   : > { %4273 = vmatpush.msrb.mxu0 %v2518_v5  ;;  %4292 = vmatpush.msrb.mxu1 %v2552_v12  ;;  %v2546_v5 = vld [vmem:[%s6262_s12 + $0x4590] sm:$0xff]  ;;  %v2576_v12 = vld [vmem:[%s6262_s12 + $0x4680] sm:$0xff] }
 0x263   : > { %4313 = vmatpush.msrb.mxu2 %v2582_v31  ;;  %4332 = vmatpush.msrb.mxu3 %v2616_v63  ;;  %v2610_v31 = vld [vmem:[%s6262_s12 + $0x4790] sm:$0xff]  ;;  %v3926_v63 = vpop.f32.mrf.mxu2 }
 0x264   : > { %4274 = vmatpush.msrb.mxu0 %v2516_v61  ;;  %4293 = vmatpush.msrb.mxu1 %v2550_v60  ;;  %v2510_v47 = vld [vmem:[%s6262_s12 + $0x4470] sm:$0xff]  ;;  %v2544_v61 = vld [vmem:[%s6262_s12 + $0x4580] sm:$0xff]  ;;  %v3907_v60 = vadd.f32 %v3906_v51, %v3887_v32  ;;  %v3946_v32 = vpop.f32.mrf.mxu3 }
 0x265   : > { %4314 = vmatpush.msrb.mxu2 %v2580_v6  ;;  %4333 = vmatpush.msrb.mxu3 %v2614_v59  ;;  %v2574_v2 = vld [vmem:[%s6262_s12 + $0x4670] sm:$0xff]  ;;  %v2608_v6 = vld [vmem:[%s6262_s12 + $0x4780] sm:$0xff] }
 0x266   : > { %4275 = vmatpush.msrb.mxu0 %v2514_v0  ;;  %4294 = vmatpush.msrb.mxu1 %v2548_v30  ;;  %v2508_v59 = vld [vmem:[%s6262_s12 + $0x4460] sm:$0xff]  ;;  %v2542_v0 = vld [vmem:[%s6262_s12 + $0x4570] sm:$0xff]  ;;  %v3927_v30 = vadd.f32 %v3926_v63, %v3907_v60 }
 0x267   : > { %4315 = vmatpush.msrb.mxu2 %v2578_v1  ;;  %4334 = vmatpush.msrb.mxu3 %v2612_v29  ;;  %v2572_v1 = vld [vmem:[%s6262_s12 + $0x4660] sm:$0xff]  ;;  %v2606_v29 = vld [vmem:[%s6262_s12 + $0x4770] sm:$0xff] }
 0x268   : > { %4276 = vmatpush.msrb.mxu0 %v2512_v17  ;;  %4295 = vmatpush.msrb.mxu1 %v2546_v5  ;;  %v2506_v51 = vld [vmem:[%s6262_s12 + $0x4450] sm:$0xff]  ;;  %v2540_v17 = vld [vmem:[%s6262_s12 + $0x4560] sm:$0xff] }
 0x269   : > { %4316 = vmatpush.msrb.mxu2 %v2576_v12  ;;  %4335 = vmatpush.msrb.mxu3 %v2610_v31  ;;  %v2570_v5 = vld [vmem:[%s6262_s12 + $0x4650] sm:$0xff]  ;;  %v2604_v12 = vld [vmem:[%s6262_s12 + $0x4760] sm:$0xff] }
 0x26a   : > { %4277 = vmatpush.msrb.mxu0 %v2510_v47  ;;  %4296 = vmatpush.msrb.mxu1 %v2544_v61  ;;  %v2504_v31 = vld [vmem:[%s6262_s12 + $0x4440] sm:$0xff]  ;;  %v2538_v63 = vld [vmem:[%s6262_s12 + $0x4550] sm:$0xff]  ;;  %v3947_v47 = vadd.f32 %v3946_v32, %v3927_v30 }
 0x26b   : > { %4317 = vmatpush.msrb.mxu2 %v2574_v2  ;;  %4336 = vmatpush.msrb.mxu3 %v2608_v6  ;;  %v2568_v61 = vld [vmem:[%s6262_s12 + $0x4640] sm:$0xff]  ;;  %v2602_v60 = vld [vmem:[%s6262_s12 + $0x4750] sm:$0xff] }
 0x26c   : > { %4278 = vmatpush.msrb.mxu0 %v2508_v59  ;;  %4297 = vmatpush.msrb.mxu1 %v2542_v0  ;;  %v2502_v2 = vld [vmem:[%s6262_s12 + $0x4430] sm:$0xff]  ;;  %v2536_v6 = vld [vmem:[%s6262_s12 + $0x4540] sm:$0xff] }
 0x26d   : > { %4318 = vmatpush.msrb.mxu2 %v2572_v1  ;;  %4337 = vmatpush.msrb.mxu3 %v2606_v29  ;;  %v2566_v0 = vld [vmem:[%s6262_s12 + $0x4630] sm:$0xff]  ;;  %v2600_v30 = vld [vmem:[%s6262_s12 + $0x4740] sm:$0xff] }
 0x26e   : > { %4279 = vmatpush.msrb.mxu0 %v2506_v51  ;;  %4298 = vmatpush.msrb.mxu1 %v2540_v17  ;;  %v2500_v29 = vld [vmem:[%s6262_s12 + $0x4420] sm:$0xff]  ;;  %v2534_v32 = vld [vmem:[%s6262_s12 + $0x4530] sm:$0xff] }
 0x26f   : > { %4319 = vmatpush.msrb.mxu2 %v2570_v5  ;;  %4338 = vmatpush.msrb.mxu3 %v2604_v12  ;;  %v3966_v59 = vpop.f32.mrf.mxu0  ;;  %v2564_v51 = vld [vmem:[%s6262_s12 + $0x4620] sm:$0xff]  ;;  %v2598_v17 = vld [vmem:[%s6262_s12 + $0x4730] sm:$0xff] }
 0x270   : > { %4280 = vmatpush.msrb.mxu0 %v2504_v31  ;;  %4299 = vmatpush.msrb.mxu1 %v2538_v63  ;;  %v3967_v1 = vadd.f32 %v3966_v59, %v3947_v47  ;;  %v2498_v12 = vld [vmem:[%s6262_s12 + $0x4410] sm:$0xff]  ;;  %v2532_v31 = vld [vmem:[%s6262_s12 + $0x4520] sm:$0xff] }
 0x271   : > { %4320 = vmatpush.msrb.mxu2 %v2568_v61  ;;  %4339 = vmatpush.msrb.mxu3 %v2602_v60  ;;  %v319_v63 = vld [vmem:[%s6257_s8 + $0x90] sm:$0x3f]  ;;  %v2596_v61 = vld [vmem:[%s6262_s12 + $0x4720] sm:$0xff] }
 0x272   : > { %4281 = vmatpush.msrb.mxu0 %v2502_v2  ;;  %4300 = vmatpush.msrb.mxu1 %v2536_v6  ;;  %v3986_v5 = vpop.f32.mrf.mxu1  ;;  %v2562_v47 = vld [vmem:[%s6262_s12 + $0x4610] sm:$0xff]  ;;  %2830 = vst [vmem:[#allocation1] ss:$4 sm:$0xff] %v319_v63  ;;  %v2496_v2 = vld [vmem:[%s6262_s12 + $0x4400] sm:$0xff] }
 0x273   : > { %4321 = vmatpush.msrb.mxu2 %v2566_v0  ;;  %4340 = vmatpush.msrb.mxu3 %v2600_v30  ;;  %v3987_v60 = vadd.f32 %v3986_v5, %v3967_v1  ;;  %v2530_v6 = vld [vmem:[%s6262_s12 + $0x4510] sm:$0xff]  ;;  %v2560_v0 = vld [vmem:[%s6262_s12 + $0x4600] sm:$0xff]  ;;  %v2827_v63 = vld.sshfl [vmem:[#allocation1 + $0x28] sm:$0xff pattern:$0x73625140] }
 0x274   : > { %4282 = vmatpush.msrb.mxu0 %v2500_v29  ;;  %4301 = vmatpush.msrb.mxu1 %v2534_v32  ;;  %v2594_v30 = vld [vmem:[%s6262_s12 + $0x4710] sm:$0xff]  ;;  %v2826_v29 = vld.sshfl [vmem:[#allocation1 + $0x20] sm:$0xff pattern:$0x73625140] }
 0x275   : > { %4322 = vmatpush.msrb.mxu2 %v2564_v51  ;;  %4341 = vmatpush.msrb.mxu3 %v2598_v17  ;;  %v4006_v59 = vpop.f32.mrf.mxu2  ;;  %v2828_v32 = vld.sshfl [vmem:[#allocation1 + $0x30] sm:$0xff pattern:$0x73625140]  ;;  %v2528_v5 = vld [vmem:[%s6262_s12 + $0x4500] sm:$0xff] }
 0x276   : > { %4283 = vmatpush.msrb.mxu0 %v2498_v12  ;;  %4302 = vmatpush.msrb.mxu1 %v2532_v31  ;;  %v4007_v58 = vadd.f32 %v4006_v59, %v3987_v60  ;;  %v2654_v1 = vld [vmem:[%s6262_s12 + $0x48f0] sm:$0xff]  ;;  %v2592_v12 = vld [vmem:[%s6262_s12 + $0x4700] sm:$0xff] }
 0x277   : > { %4323 = vmatpush.msrb.mxu2 %v2562_v47  ;;  %4342 = vmatpush.msrb.mxu3 %v2596_v61  ;;  %v2718_v51 = vld [vmem:[%s6262_s12 + $0x4af0] sm:$0xff]  ;;  %v2829_v47 = vld.sshfl [vmem:[#allocation1 + $0x38] sm:$0xff pattern:$0x73625140]  ;;  %v2652_v61 = vld [vmem:[%s6262_s12 + $0x48e0] sm:$0xff] }
 0x278   : > { %4284 = vmatpush.msrb.mxu0 %v2496_v2  ;;  %4303 = vmatpush.msrb.mxu1 %v2530_v6  ;;  %v4026_v17 = vpop.f32.mrf.mxu3  ;;  %v2686_v60 = vld [vmem:[%s6262_s12 + $0x49f0] sm:$0xff]  ;;  %v2716_v2 = vld [vmem:[%s6262_s12 + $0x4ae0] sm:$0xff]  ;;  %v351_v6 = vld [vmem:[%s6262_s12 + $0xf8] sm:$0xff] }
 0x279   : > { %4324 = vmatpush.msrb.mxu2 %v2560_v0  ;;  %4343 = vmatpush.msrb.mxu3 %v2594_v30  ;;  %v7642_v31 = vadd.f32 %v4026_v17, %v4007_v58  ;;  %v2650_v58 = vld [vmem:[%s6262_s12 + $0x48d0] sm:$0xff]  ;;  %v2684_v59 = vld [vmem:[%s6262_s12 + $0x49e0] sm:$0xff]  ;;  %v349_v30 = vld [vmem:[%s6262_s12 + $0xe8] sm:$0xff] }
 0x27a   : > { %4285 = vmatmul.f32.vlgmr.msrb.gmra.mxu0 %v2826_v29  ;;  %4325 = vmatmul.f32.vlgmr.msrb.gmra.mxu2 %v2828_v32  ;;  %v2714_v0 = vld [vmem:[%s6262_s12 + $0x4ad0] sm:$0xff]  ;;  %v2648_v29 = vld [vmem:[%s6262_s12 + $0x48c0] sm:$0xff] }
 0x27b   : > { %4349 = vmatpush.msra.mxu0 %v2654_v1  ;;  %4389 = vmatpush.msra.mxu2 %v2718_v51  ;;  %v2682_v32 = vld [vmem:[%s6262_s12 + $0x49d0] sm:$0xff]  ;;  %v2712_v1 = vld [vmem:[%s6262_s12 + $0x4ac0] sm:$0xff]  ;;  %v347_v51 = vld [vmem:[%s6262_s12 + $0xd8] sm:$0xff] }
 0x27c   : > { %4304 = vmatpush.msrb.mxu1 %v2528_v5  ;;  %4344 = vmatpush.msrb.mxu3 %v2592_v12  ;;  %v2646_v17 = vld [vmem:[%s6262_s12 + $0x48b0] sm:$0xff]  ;;  %v2680_v5 = vld [vmem:[%s6262_s12 + $0x49c0] sm:$0xff] }
 0x27d   : > { %4305 = vmatmul.f32.vlgmr.msrb.gmra.mxu1 %v2827_v63  ;;  %4345 = vmatmul.f32.vlgmr.msrb.gmra.mxu3 %v2829_v47  ;;  %v2710_v12 = vld [vmem:[%s6262_s12 + $0x4ab0] sm:$0xff]  ;;  %v345_v63 = vld [vmem:[%s6262_s12 + $0xc8] sm:$0xff]  ;;  %v2644_v47 = vld [vmem:[%s6262_s12 + $0x48a0] sm:$0xff] }
 0x27e   : > { %4350 = vmatpush.msra.mxu0 %v2652_v61  ;;  %4369 = vmatpush.msra.mxu1 %v2686_v60  ;;  %v2678_v61 = vld [vmem:[%s6262_s12 + $0x49b0] sm:$0xff]  ;;  %v2708_v60 = vld [vmem:[%s6262_s12 + $0x4aa0] sm:$0xff] }
 0x27f   : > { %4390 = vmatpush.msra.mxu2 %v2716_v2  ;;  %4409 = vmatpush.msra.mxu3 %v351_v6  ;;  %v343_v2 = vld [vmem:[%s6262_s12 + $0xb8] sm:$0xff]  ;;  %v2642_v6 = vld [vmem:[%s6262_s12 + $0x4890] sm:$0xff] }
 0x280   : > { %4351 = vmatpush.msra.mxu0 %v2650_v58  ;;  %4370 = vmatpush.msra.mxu1 %v2684_v59  ;;  %v2676_v58 = vld [vmem:[%s6262_s12 + $0x49a0] sm:$0xff]  ;;  %v2706_v59 = vld [vmem:[%s6262_s12 + $0x4a90] sm:$0xff] }
 0x281   : > { %4391 = vmatpush.msra.mxu2 %v2714_v0  ;;  %4410 = vmatpush.msra.mxu3 %v349_v30  ;;  %v341_v0 = vld [vmem:[%s6262_s12 + $0xa8] sm:$0xff]  ;;  %v2640_v30 = vld [vmem:[%s6262_s12 + $0x4880] sm:$0xff] }
 0x282   : > { %4352 = vmatpush.msra.mxu0 %v2648_v29  ;;  %4371 = vmatpush.msra.mxu1 %v2682_v32  ;;  %v2674_v29 = vld [vmem:[%s6262_s12 + $0x4990] sm:$0xff]  ;;  %v2704_v32 = vld [vmem:[%s6262_s12 + $0x4a80] sm:$0xff] }
 0x283   : > { %4392 = vmatpush.msra.mxu2 %v2712_v1  ;;  %4411 = vmatpush.msra.mxu3 %v347_v51  ;;  %v339_v1 = vld [vmem:[%s6262_s12 + $0x98] sm:$0xff]  ;;  %v2638_v51 = vld [vmem:[%s6262_s12 + $0x4870] sm:$0xff] }
 0x284   : > { %4353 = vmatpush.msra.mxu0 %v2646_v17  ;;  %4372 = vmatpush.msra.mxu1 %v2680_v5  ;;  %v2672_v17 = vld [vmem:[%s6262_s12 + $0x4980] sm:$0xff]  ;;  %v2702_v5 = vld [vmem:[%s6262_s12 + $0x4a70] sm:$0xff] }
 0x285   : > { %4393 = vmatpush.msra.mxu2 %v2710_v12  ;;  %4412 = vmatpush.msra.mxu3 %v345_v63  ;;  %v337_v12 = vld [vmem:[%s6262_s12 + $0x88] sm:$0xff]  ;;  %v2636_v63 = vld [vmem:[%s6262_s12 + $0x4860] sm:$0xff] }
 0x286   : > { %4354 = vmatpush.msra.mxu0 %v2644_v47  ;;  %4373 = vmatpush.msra.mxu1 %v2678_v61  ;;  %v2670_v47 = vld [vmem:[%s6262_s12 + $0x4970] sm:$0xff]  ;;  %v2700_v61 = vld [vmem:[%s6262_s12 + $0x4a60] sm:$0xff] }
 0x287   : > { %4394 = vmatpush.msra.mxu2 %v2708_v60  ;;  %4413 = vmatpush.msra.mxu3 %v343_v2  ;;  %v335_v60 = vld [vmem:[%s6262_s12 + $0x78] sm:$0xff]  ;;  %v2634_v2 = vld [vmem:[%s6262_s12 + $0x4850] sm:$0xff] }
 0x288   : > { %4355 = vmatpush.msra.mxu0 %v2642_v6  ;;  %4374 = vmatpush.msra.mxu1 %v2676_v58  ;;  %v2668_v6 = vld [vmem:[%s6262_s12 + $0x4960] sm:$0xff]  ;;  %v2698_v58 = vld [vmem:[%s6262_s12 + $0x4a50] sm:$0xff] }
 0x289   : > { %4395 = vmatpush.msra.mxu2 %v2706_v59  ;;  %4414 = vmatpush.msra.mxu3 %v341_v0  ;;  %v333_v59 = vld [vmem:[%s6262_s12 + $0x68] sm:$0xff]  ;;  %v2632_v0 = vld [vmem:[%s6262_s12 + $0x4840] sm:$0xff] }
 0x28a   : > { %4356 = vmatpush.msra.mxu0 %v2640_v30  ;;  %4375 = vmatpush.msra.mxu1 %v2674_v29  ;;  %v2666_v30 = vld [vmem:[%s6262_s12 + $0x4950] sm:$0xff]  ;;  %v2696_v29 = vld [vmem:[%s6262_s12 + $0x4a40] sm:$0xff] }
 0x28b   : > { %4396 = vmatpush.msra.mxu2 %v2704_v32  ;;  %4415 = vmatpush.msra.mxu3 %v339_v1  ;;  %v331_v32 = vld [vmem:[%s6262_s12 + $0x58] sm:$0xff]  ;;  %v2630_v1 = vld [vmem:[%s6262_s12 + $0x4830] sm:$0xff] }
 0x28c   : > { %4357 = vmatpush.msra.mxu0 %v2638_v51  ;;  %4376 = vmatpush.msra.mxu1 %v2672_v17  ;;  %v2664_v51 = vld [vmem:[%s6262_s12 + $0x4940] sm:$0xff] }
 0x28d   : > { %4397 = vmatpush.msra.mxu2 %v2702_v5  ;;  %4416 = vmatpush.msra.mxu3 %v337_v12  ;;  %v2694_v5 = vld [vmem:[%s6262_s12 + $0x4a30] sm:$0xff]  ;;  %v329_v12 = vld [vmem:[%s6262_s12 + $0x48] sm:$0xff] }
 0x28e   : > { %4358 = vmatpush.msra.mxu0 %v2636_v63  ;;  %4377 = vmatpush.msra.mxu1 %v2670_v47  ;;  %v2628_v47 = vld [vmem:[%s6262_s12 + $0x4820] sm:$0xff] }
 0x28f   : > { %4398 = vmatpush.msra.mxu2 %v2700_v61  ;;  %4417 = vmatpush.msra.mxu3 %v335_v60  ;;  %v2662_v61 = vld [vmem:[%s6262_s12 + $0x4930] sm:$0xff]  ;;  %v2692_v60 = vld [vmem:[%s6262_s12 + $0x4a20] sm:$0xff] }
 0x290   : > { %4359 = vmatpush.msra.mxu0 %v2634_v2  ;;  %4378 = vmatpush.msra.mxu1 %v2668_v6  ;;  %v327_v2 = vld [vmem:[%s6262_s12 + $0x38] sm:$0xff] }
 0x291   : > { %4399 = vmatpush.msra.mxu2 %v2698_v58  ;;  %4418 = vmatpush.msra.mxu3 %v333_v59  ;;  %v4046_v17 = vpop.f32.mrf.mxu0  ;;  %v2626_v58 = vld [vmem:[%s6262_s12 + $0x4810] sm:$0xff]  ;;  %v2660_v59 = vld [vmem:[%s6262_s12 + $0x4920] sm:$0xff] }
 0x292   : > { %4360 = vmatpush.msra.mxu0 %v2632_v0  ;;  %4379 = vmatpush.msra.mxu1 %v2666_v30  ;;  %v4047_v63 = vadd.f32 %v4046_v17, %v7642_v31  ;;  %v2690_v0 = vld [vmem:[%s6262_s12 + $0x4a10] sm:$0xff]  ;;  %v325_v30 = vld [vmem:[%s6262_s12 + $0x28] sm:$0xff]  ;;  %v323_v17 = vld [vmem:[%s6262_s12 + $0x18] sm:$0xff] }
 0x293   : > { %4400 = vmatpush.msra.mxu2 %v2696_v29  ;;  %4419 = vmatpush.msra.mxu3 %v331_v32  ;;  %v2624_v29 = vld [vmem:[%s6262_s12 + $0x4800] sm:$0xff]  ;;  %v2658_v32 = vld [vmem:[%s6262_s12 + $0x4910] sm:$0xff] }
 0x294   : > { %4361 = vmatpush.msra.mxu0 %v2630_v1  ;;  %4380 = vmatpush.msra.mxu1 %v2664_v51  ;;  %v4066_v6 = vpop.f32.mrf.mxu1  ;;  %v2688_v51 = vld [vmem:[%s6262_s12 + $0x4a00] sm:$0xff] }
 0x295   : > { %4401 = vmatpush.msra.mxu2 %v2694_v5  ;;  %4420 = vmatpush.msra.mxu3 %v329_v12  ;;  %v4067_v31 = vadd.f32 %v4066_v6, %v4047_v63  ;;  %v2831_v12 = vld.sshfl [vmem:[#allocation1] sm:$0xff pattern:$0x73625140]  ;;  %v2833_v63 = vld.sshfl [vmem:[#allocation1 + $0x10] sm:$0xff pattern:$0x73625140] }
 0x296   : > { %4362 = vmatpush.msra.mxu0 %v2628_v47  ;;  %4381 = vmatpush.msra.mxu1 %v2662_v61  ;;  %v383_v47 = vld [vmem:[%s6262_s12 + $0x1f8] sm:$0xff]  ;;  %v321_v6 = vld [vmem:[%s6262_s12 + $0x8] sm:$0xff] }
 0x297   : > { %4402 = vmatpush.msra.mxu2 %v2692_v60  ;;  %4421 = vmatpush.msra.mxu3 %v327_v2  ;;  %v4086_v1 = vpop.f32.mrf.mxu2  ;;  %v447_v61 = vld [vmem:[%s6262_s12 + $0x3f8] sm:$0xff]  ;;  %v2656_v2 = vld [vmem:[%s6262_s12 + $0x4900] sm:$0xff] }
 0x298   : > { %4363 = vmatpush.msra.mxu0 %v2626_v58  ;;  %4382 = vmatpush.msra.mxu1 %v2660_v59  ;;  %v4087_v5 = vadd.f32 %v4086_v1, %v4067_v31  ;;  %v2832_v59 = vld.sshfl [vmem:[#allocation1 + $0x8] sm:$0xff pattern:$0x73625140] }
 0x299   : > { %4403 = vmatpush.msra.mxu2 %v2690_v0  ;;  %4422 = vmatpush.msra.mxu3 %v325_v30  ;;  %v381_v31 = vld [vmem:[%s6262_s12 + $0x1e8] sm:$0xff]  ;;  %v415_v0 = vld [vmem:[%s6262_s12 + $0x2f8] sm:$0xff] }
 0x29a   : > { %4364 = vmatpush.msra.mxu0 %v2624_v29  ;;  %4383 = vmatpush.msra.mxu1 %v2658_v32  ;;  %v4106_v60 = vpop.f32.mrf.mxu3  ;;  %v445_v30 = vld [vmem:[%s6262_s12 + $0x3e8] sm:$0xff]  ;;  %v479_v29 = vld [vmem:[%s6262_s12 + $0x4f8] sm:$0xff] }
 0x29b   : > { %4404 = vmatpush.msra.mxu2 %v2688_v51  ;;  %4423 = vmatpush.msra.mxu3 %v323_v17  ;;  %v7709_v58 = vadd.f32 %v4106_v60, %v4087_v5  ;;  %v379_v32 = vld [vmem:[%s6262_s12 + $0x1d8] sm:$0xff]  ;;  %v413_v1 = vld [vmem:[%s6262_s12 + $0x2e8] sm:$0xff] }
 0x29c   : > { %4365 = vmatmul.f32.vlgmr.msra.gmra.mxu0 %v2831_v12  ;;  %4405 = vmatmul.f32.vlgmr.msra.gmra.mxu2 %v2833_v63  ;;  %v443_v51 = vld [vmem:[%s6262_s12 + $0x3d8] sm:$0xff]  ;;  %v477_v17 = vld [vmem:[%s6262_s12 + $0x4e8] sm:$0xff] }
 0x29d   : > { %4429 = vmatpush.msrb.mxu0 %v383_v47  ;;  %4469 = vmatpush.msrb.mxu2 %v447_v61  ;;  %v377_v5 = vld [vmem:[%s6262_s12 + $0x1c8] sm:$0xff]  ;;  %v411_v12 = vld [vmem:[%s6262_s12 + $0x2d8] sm:$0xff] }
 0x29e   : > { %4384 = vmatpush.msra.mxu1 %v2656_v2  ;;  %4424 = vmatpush.msra.mxu3 %v321_v6  ;;  %v441_v63 = vld [vmem:[%s6262_s12 + $0x3c8] sm:$0xff]  ;;  %v475_v47 = vld [vmem:[%s6262_s12 + $0x4d8] sm:$0xff] }
 0x29f   : > { %4385 = vmatmul.f32.vlgmr.msra.gmra.mxu1 %v2832_v59  ;;  %4430 = vmatpush.msrb.mxu0 %v381_v31  ;;  %v375_v61 = vld [vmem:[%s6262_s12 + $0x1b8] sm:$0xff]  ;;  %v409_v60 = vld [vmem:[%s6262_s12 + $0x2c8] sm:$0xff] }
 0x2a0   : > { %4449 = vmatpush.msrb.mxu1 %v415_v0  ;;  %4470 = vmatpush.msrb.mxu2 %v445_v30  ;;  %v439_v2 = vld [vmem:[%s6262_s12 + $0x3b8] sm:$0xff]  ;;  %v473_v6 = vld [vmem:[%s6262_s12 + $0x4c8] sm:$0xff] }
 0x2a1   : > { %4489 = vmatpush.msrb.mxu3 %v479_v29  ;;  %4431 = vmatpush.msrb.mxu0 %v379_v32  ;;  %v373_v59 = vld [vmem:[%s6262_s12 + $0x1a8] sm:$0xff]  ;;  %v407_v31 = vld [vmem:[%s6262_s12 + $0x2b8] sm:$0xff] }
 0x2a2   : > { %4450 = vmatpush.msrb.mxu1 %v413_v1  ;;  %4471 = vmatpush.msrb.mxu2 %v443_v51  ;;  %v437_v0 = vld [vmem:[%s6262_s12 + $0x3a8] sm:$0xff]  ;;  %v471_v30 = vld [vmem:[%s6262_s12 + $0x4b8] sm:$0xff] }
 0x2a3   : > { %4490 = vmatpush.msrb.mxu3 %v477_v17  ;;  %4432 = vmatpush.msrb.mxu0 %v377_v5  ;;  %v371_v29 = vld [vmem:[%s6262_s12 + $0x198] sm:$0xff]  ;;  %v405_v32 = vld [vmem:[%s6262_s12 + $0x2a8] sm:$0xff] }
 0x2a4   : > { %4451 = vmatpush.msrb.mxu1 %v411_v12  ;;  %4472 = vmatpush.msrb.mxu2 %v441_v63  ;;  %v435_v1 = vld [vmem:[%s6262_s12 + $0x398] sm:$0xff]  ;;  %v469_v51 = vld [vmem:[%s6262_s12 + $0x4a8] sm:$0xff] }
 0x2a5   : > { %4491 = vmatpush.msrb.mxu3 %v475_v47  ;;  %4433 = vmatpush.msrb.mxu0 %v375_v61  ;;  %v369_v17 = vld [vmem:[%s6262_s12 + $0x188] sm:$0xff]  ;;  %v403_v5 = vld [vmem:[%s6262_s12 + $0x298] sm:$0xff] }
 0x2a6   : > { %4452 = vmatpush.msrb.mxu1 %v409_v60  ;;  %4473 = vmatpush.msrb.mxu2 %v439_v2  ;;  %v433_v12 = vld [vmem:[%s6262_s12 + $0x388] sm:$0xff]  ;;  %v467_v63 = vld [vmem:[%s6262_s12 + $0x498] sm:$0xff] }
 0x2a7   : > { %4492 = vmatpush.msrb.mxu3 %v473_v6  ;;  %4434 = vmatpush.msrb.mxu0 %v373_v59  ;;  %v367_v47 = vld [vmem:[%s6262_s12 + $0x178] sm:$0xff]  ;;  %v401_v61 = vld [vmem:[%s6262_s12 + $0x288] sm:$0xff] }
 0x2a8   : > { %4453 = vmatpush.msrb.mxu1 %v407_v31  ;;  %4474 = vmatpush.msrb.mxu2 %v437_v0  ;;  %v431_v60 = vld [vmem:[%s6262_s12 + $0x378] sm:$0xff]  ;;  %v465_v2 = vld [vmem:[%s6262_s12 + $0x488] sm:$0xff] }
 0x2a9   : > { %4493 = vmatpush.msrb.mxu3 %v471_v30  ;;  %4435 = vmatpush.msrb.mxu0 %v371_v29  ;;  %v365_v6 = vld [vmem:[%s6262_s12 + $0x168] sm:$0xff]  ;;  %v399_v59 = vld [vmem:[%s6262_s12 + $0x278] sm:$0xff] }
 0x2aa   : > { %4454 = vmatpush.msrb.mxu1 %v405_v32  ;;  %4475 = vmatpush.msrb.mxu2 %v435_v1  ;;  %v429_v31 = vld [vmem:[%s6262_s12 + $0x368] sm:$0xff]  ;;  %v463_v0 = vld [vmem:[%s6262_s12 + $0x478] sm:$0xff] }
 0x2ab   : > { %4494 = vmatpush.msrb.mxu3 %v469_v51  ;;  %4436 = vmatpush.msrb.mxu0 %v369_v17  ;;  %v363_v30 = vld [vmem:[%s6262_s12 + $0x158] sm:$0xff]  ;;  %v397_v29 = vld [vmem:[%s6262_s12 + $0x268] sm:$0xff] }
 0x2ac   : > { %4455 = vmatpush.msrb.mxu1 %v403_v5  ;;  %4476 = vmatpush.msrb.mxu2 %v433_v12  ;;  %v427_v32 = vld [vmem:[%s6262_s12 + $0x358] sm:$0xff]  ;;  %v461_v1 = vld [vmem:[%s6262_s12 + $0x468] sm:$0xff] }
 0x2ad   : > { %4495 = vmatpush.msrb.mxu3 %v467_v63  ;;  %4437 = vmatpush.msrb.mxu0 %v367_v47  ;;  %v361_v51 = vld [vmem:[%s6262_s12 + $0x148] sm:$0xff]  ;;  %v395_v17 = vld [vmem:[%s6262_s12 + $0x258] sm:$0xff] }
 0x2ae   : > { %4456 = vmatpush.msrb.mxu1 %v401_v61  ;;  %4477 = vmatpush.msrb.mxu2 %v431_v60  ;;  %v425_v5 = vld [vmem:[%s6262_s12 + $0x348] sm:$0xff]  ;;  %v459_v12 = vld [vmem:[%s6262_s12 + $0x458] sm:$0xff] }
 0x2af   : > { %4496 = vmatpush.msrb.mxu3 %v465_v2  ;;  %4438 = vmatpush.msrb.mxu0 %v365_v6  ;;  %v359_v63 = vld [vmem:[%s6262_s12 + $0x138] sm:$0xff]  ;;  %v393_v47 = vld [vmem:[%s6262_s12 + $0x248] sm:$0xff] }
 0x2b0   : > { %4457 = vmatpush.msrb.mxu1 %v399_v59  ;;  %4478 = vmatpush.msrb.mxu2 %v429_v31  ;;  %v423_v61 = vld [vmem:[%s6262_s12 + $0x338] sm:$0xff]  ;;  %v457_v2 = vld [vmem:[%s6262_s12 + $0x448] sm:$0xff] }
 0x2b1   : > { %4497 = vmatpush.msrb.mxu3 %v463_v0  ;;  %4439 = vmatpush.msrb.mxu0 %v363_v30  ;;  %v357_v6 = vld [vmem:[%s6262_s12 + $0x128] sm:$0xff]  ;;  %v391_v31 = vld [vmem:[%s6262_s12 + $0x238] sm:$0xff] }
 0x2b2   : > { %4458 = vmatpush.msrb.mxu1 %v397_v29  ;;  %4479 = vmatpush.msrb.mxu2 %v427_v32  ;;  %v421_v0 = vld [vmem:[%s6262_s12 + $0x328] sm:$0xff]  ;;  %v455_v30 = vld [vmem:[%s6262_s12 + $0x438] sm:$0xff] }
 0x2b3   : > { %4498 = vmatpush.msrb.mxu3 %v461_v1  ;;  %4440 = vmatpush.msrb.mxu0 %v361_v51  ;;  %v4126_v60 = vpop.f32.mrf.mxu0  ;;  %v355_v29 = vld [vmem:[%s6262_s12 + $0x118] sm:$0xff]  ;;  %v389_v1 = vld [vmem:[%s6262_s12 + $0x228] sm:$0xff] }
 0x2b4   : > { %4459 = vmatpush.msrb.mxu1 %v395_v17  ;;  %4480 = vmatpush.msrb.mxu2 %v425_v5  ;;  %v4127_v59 = vadd.f32 %v4126_v60, %v7709_v58  ;;  %v419_v51 = vld [vmem:[%s6262_s12 + $0x318] sm:$0xff]  ;;  %v453_v17 = vld [vmem:[%s6262_s12 + $0x428] sm:$0xff] }
 0x2b5   : > { %4499 = vmatpush.msrb.mxu3 %v459_v12  ;;  %4441 = vmatpush.msrb.mxu0 %v359_v63  ;;  %v353_v5 = vld [vmem:[%s6262_s12 + $0x108] sm:$0xff]  ;;  %v387_v12 = vld [vmem:[%s6262_s12 + $0x218] sm:$0xff] }
 0x2b6   : > { %4460 = vmatpush.msrb.mxu1 %v393_v47  ;;  %4481 = vmatpush.msrb.mxu2 %v423_v61  ;;  %v4146_v32 = vpop.f32.mrf.mxu1  ;;  %v417_v63 = vld [vmem:[%s6262_s12 + $0x308] sm:$0xff]  ;;  %v451_v61 = vld [vmem:[%s6262_s12 + $0x418] sm:$0xff] }
 0x2b7   : > { %4500 = vmatpush.msrb.mxu3 %v457_v2  ;;  %4442 = vmatpush.msrb.mxu0 %v357_v6  ;;  %v4147_v58 = vadd.f32 %v4146_v32, %v4127_v59  ;;  %v511_v60 = vld [vmem:[%s6262_s12 + $0x5f8] sm:$0xff]  ;;  %v385_v59 = vld [vmem:[%s6262_s12 + $0x208] sm:$0xff] }
 0x2b8   : > { %4461 = vmatpush.msrb.mxu1 %v391_v31  ;;  %4482 = vmatpush.msrb.mxu2 %v421_v0  ;;  %v575_v6 = vld [vmem:[%s6262_s12 + $0x7f8] sm:$0xff]  ;;  %v449_v31 = vld [vmem:[%s6262_s12 + $0x408] sm:$0xff] }
 0x2b9   : > { %4501 = vmatpush.msrb.mxu3 %v455_v30  ;;  %4443 = vmatpush.msrb.mxu0 %v355_v29  ;;  %v4166_v47 = vpop.f32.mrf.mxu2  ;;  %v509_v0 = vld [vmem:[%s6262_s12 + $0x5e8] sm:$0xff]  ;;  %v543_v29 = vld [vmem:[%s6262_s12 + $0x6f8] sm:$0xff] }
 0x2ba   : > { %4462 = vmatpush.msrb.mxu1 %v389_v1  ;;  %4483 = vmatpush.msrb.mxu2 %v419_v51  ;;  %v4167_v2 = vadd.f32 %v4166_v47, %v4147_v58  ;;  %v573_v1 = vld [vmem:[%s6262_s12 + $0x7e8] sm:$0xff]  ;;  %v607_v51 = vld [vmem:[%s6262_s12 + $0x8f8] sm:$0xff] }
 0x2bb   : > { %4502 = vmatpush.msrb.mxu3 %v453_v17  ;;  %4444 = vmatpush.msrb.mxu0 %v353_v5  ;;  %v507_v58 = vld [vmem:[%s6262_s12 + $0x5d8] sm:$0xff]  ;;  %v541_v17 = vld [vmem:[%s6262_s12 + $0x6e8] sm:$0xff] }
 0x2bc   : > { %4463 = vmatpush.msrb.mxu1 %v387_v12  ;;  %4484 = vmatpush.msrb.mxu2 %v417_v63  ;;  %v4186_v30 = vpop.f32.mrf.mxu3  ;;  %v571_v5 = vld [vmem:[%s6262_s12 + $0x7d8] sm:$0xff]  ;;  %v605_v12 = vld [vmem:[%s6262_s12 + $0x8e8] sm:$0xff] }
 0x2bd   : > { %4503 = vmatpush.msrb.mxu3 %v451_v61  ;;  %4509 = vmatpush.msra.mxu0 %v511_v60  ;;  %v7778_v32 = vadd.f32 %v4186_v30, %v4167_v2  ;;  %v505_v63 = vld [vmem:[%s6262_s12 + $0x5c8] sm:$0xff]  ;;  %v539_v47 = vld [vmem:[%s6262_s12 + $0x6d8] sm:$0xff] }
 0x2be   : > { %4549 = vmatpush.msra.mxu2 %v575_v6  ;;  %4464 = vmatpush.msrb.mxu1 %v385_v59  ;;  %v569_v61 = vld [vmem:[%s6262_s12 + $0x7c8] sm:$0xff]  ;;  %v603_v60 = vld [vmem:[%s6262_s12 + $0x8d8] sm:$0xff] }
 0x2bf   : > { %4504 = vmatpush.msrb.mxu3 %v449_v31  ;;  %4510 = vmatpush.msra.mxu0 %v509_v0  ;;  %v537_v2 = vld [vmem:[%s6262_s12 + $0x6c8] sm:$0xff]  ;;  %v567_v6 = vld [vmem:[%s6262_s12 + $0x7b8] sm:$0xff] }
 0x2c0   : > { %4425 = vmatmul.f32.vlgmr.msra.gmra.mxu3 %v6400_v3  ;;  %4529 = vmatpush.msra.mxu1 %v543_v29  ;;  %v503_v3 = vld [vmem:[%s6262_s12 + $0x5b8] sm:$0xff]  ;;  %v601_v59 = vld [vmem:[%s6262_s12 + $0x8c8] sm:$0xff] }
 0x2c1   : > { %4550 = vmatpush.msra.mxu2 %v573_v1  ;;  %4569 = vmatpush.msra.mxu3 %v607_v51  ;;  %v501_v31 = vld [vmem:[%s6262_s12 + $0x5a8] sm:$0xff]  ;;  %v535_v0 = vld [vmem:[%s6262_s12 + $0x6b8] sm:$0xff] }
 0x2c2   : > { %4511 = vmatpush.msra.mxu0 %v507_v58  ;;  %4530 = vmatpush.msra.mxu1 %v541_v17  ;;  %v565_v30 = vld [vmem:[%s6262_s12 + $0x7a8] sm:$0xff]  ;;  %v599_v29 = vld [vmem:[%s6262_s12 + $0x8b8] sm:$0xff] }
 0x2c3   : > { %4551 = vmatpush.msra.mxu2 %v571_v5  ;;  %4570 = vmatpush.msra.mxu3 %v605_v12  ;;  %v499_v1 = vld [vmem:[%s6262_s12 + $0x598] sm:$0xff]  ;;  %v533_v51 = vld [vmem:[%s6262_s12 + $0x6a8] sm:$0xff] }
 0x2c4   : > { %4512 = vmatpush.msra.mxu0 %v505_v63  ;;  %4531 = vmatpush.msra.mxu1 %v539_v47  ;;  %v563_v58 = vld [vmem:[%s6262_s12 + $0x798] sm:$0xff]  ;;  %v597_v17 = vld [vmem:[%s6262_s12 + $0x8a8] sm:$0xff] }
 0x2c5   : > { %4552 = vmatpush.msra.mxu2 %v569_v61  ;;  %4571 = vmatpush.msra.mxu3 %v603_v60  ;;  %v497_v5 = vld [vmem:[%s6262_s12 + $0x588] sm:$0xff]  ;;  %v531_v12 = vld [vmem:[%s6262_s12 + $0x698] sm:$0xff] }
 0x2c6   : > { %4513 = vmatpush.msra.mxu0 %v503_v3  ;;  %4532 = vmatpush.msra.mxu1 %v537_v2  ;;  %v561_v63 = vld [vmem:[%s6262_s12 + $0x788] sm:$0xff]  ;;  %v595_v47 = vld [vmem:[%s6262_s12 + $0x898] sm:$0xff] }
 0x2c7   : > { %4553 = vmatpush.msra.mxu2 %v567_v6  ;;  %4572 = vmatpush.msra.mxu3 %v601_v59  ;;  %v495_v61 = vld [vmem:[%s6262_s12 + $0x578] sm:$0xff]  ;;  %v529_v60 = vld [vmem:[%s6262_s12 + $0x688] sm:$0xff] }
 0x2c8   : > { %4514 = vmatpush.msra.mxu0 %v501_v31  ;;  %4533 = vmatpush.msra.mxu1 %v535_v0  ;;  %v559_v3 = vld [vmem:[%s6262_s12 + $0x778] sm:$0xff]  ;;  %v593_v2 = vld [vmem:[%s6262_s12 + $0x888] sm:$0xff] }
 0x2c9   : > { %4554 = vmatpush.msra.mxu2 %v565_v30  ;;  %4573 = vmatpush.msra.mxu3 %v599_v29  ;;  %v493_v6 = vld [vmem:[%s6262_s12 + $0x568] sm:$0xff]  ;;  %v527_v59 = vld [vmem:[%s6262_s12 + $0x678] sm:$0xff] }
 0x2ca   : > { %4515 = vmatpush.msra.mxu0 %v499_v1  ;;  %4534 = vmatpush.msra.mxu1 %v533_v51  ;;  %v557_v31 = vld [vmem:[%s6262_s12 + $0x768] sm:$0xff]  ;;  %v591_v0 = vld [vmem:[%s6262_s12 + $0x878] sm:$0xff] }
 0x2cb   : > { %4555 = vmatpush.msra.mxu2 %v563_v58  ;;  %4574 = vmatpush.msra.mxu3 %v597_v17  ;;  %v491_v30 = vld [vmem:[%s6262_s12 + $0x558] sm:$0xff]  ;;  %v525_v29 = vld [vmem:[%s6262_s12 + $0x668] sm:$0xff] }
 0x2cc   : > { %4516 = vmatpush.msra.mxu0 %v497_v5  ;;  %4535 = vmatpush.msra.mxu1 %v531_v12  ;;  %v555_v1 = vld [vmem:[%s6262_s12 + $0x758] sm:$0xff]  ;;  %v589_v51 = vld [vmem:[%s6262_s12 + $0x868] sm:$0xff] }
 0x2cd   : > { %4556 = vmatpush.msra.mxu2 %v561_v63  ;;  %4575 = vmatpush.msra.mxu3 %v595_v47  ;;  %v489_v58 = vld [vmem:[%s6262_s12 + $0x548] sm:$0xff]  ;;  %v523_v17 = vld [vmem:[%s6262_s12 + $0x658] sm:$0xff] }
 0x2ce   : > { %4517 = vmatpush.msra.mxu0 %v495_v61  ;;  %4536 = vmatpush.msra.mxu1 %v529_v60  ;;  %v553_v5 = vld [vmem:[%s6262_s12 + $0x748] sm:$0xff]  ;;  %v587_v12 = vld [vmem:[%s6262_s12 + $0x858] sm:$0xff] }
 0x2cf   : > { %4557 = vmatpush.msra.mxu2 %v559_v3  ;;  %4576 = vmatpush.msra.mxu3 %v593_v2  ;;  %v487_v63 = vld [vmem:[%s6262_s12 + $0x538] sm:$0xff]  ;;  %v521_v47 = vld [vmem:[%s6262_s12 + $0x648] sm:$0xff] }
 0x2d0   : > { %4518 = vmatpush.msra.mxu0 %v493_v6  ;;  %4537 = vmatpush.msra.mxu1 %v527_v59  ;;  %v551_v61 = vld [vmem:[%s6262_s12 + $0x738] sm:$0xff]  ;;  %v585_v60 = vld [vmem:[%s6262_s12 + $0x848] sm:$0xff] }
 0x2d1   : > { %4558 = vmatpush.msra.mxu2 %v557_v31  ;;  %4577 = vmatpush.msra.mxu3 %v591_v0  ;;  %v485_v3 = vld [vmem:[%s6262_s12 + $0x528] sm:$0xff]  ;;  %v519_v2 = vld [vmem:[%s6262_s12 + $0x638] sm:$0xff] }
 0x2d2   : > { %4519 = vmatpush.msra.mxu0 %v491_v30  ;;  %4538 = vmatpush.msra.mxu1 %v525_v29  ;;  %v549_v59 = vld [vmem:[%s6262_s12 + $0x728] sm:$0xff]  ;;  %v583_v31 = vld [vmem:[%s6262_s12 + $0x838] sm:$0xff] }
 0x2d3   : > { %4559 = vmatpush.msra.mxu2 %v555_v1  ;;  %4578 = vmatpush.msra.mxu3 %v589_v51  ;;  %v483_v30 = vld [vmem:[%s6262_s12 + $0x518] sm:$0xff]  ;;  %v517_v29 = vld [vmem:[%s6262_s12 + $0x628] sm:$0xff] }
 0x2d4   : > { %4520 = vmatpush.msra.mxu0 %v489_v58  ;;  %4539 = vmatpush.msra.mxu1 %v523_v17  ;;  %v547_v1 = vld [vmem:[%s6262_s12 + $0x718] sm:$0xff]  ;;  %v581_v58 = vld [vmem:[%s6262_s12 + $0x828] sm:$0xff] }
 0x2d5   : > { %4560 = vmatpush.msra.mxu2 %v553_v5  ;;  %4579 = vmatpush.msra.mxu3 %v587_v12  ;;  %v4206_v6 = vpop.f32.mrf.mxu0  ;;  %v515_v5 = vld [vmem:[%s6262_s12 + $0x618] sm:$0xff]  ;;  %v545_v12 = vld [vmem:[%s6262_s12 + $0x708] sm:$0xff] }
 0x2d6   : > { %4521 = vmatpush.msra.mxu0 %v487_v63  ;;  %4540 = vmatpush.msra.mxu1 %v521_v47  ;;  %v4207_v0 = vadd.f32 %v4206_v6, %v7778_v32  ;;  %v481_v32 = vld [vmem:[%s6262_s12 + $0x508] sm:$0xff]  ;;  %v579_v47 = vld [vmem:[%s6262_s12 + $0x818] sm:$0xff] }
 0x2d7   : > { %4561 = vmatpush.msra.mxu2 %v551_v61  ;;  %4580 = vmatpush.msra.mxu3 %v585_v60  ;;  %v703_v60 = vld [vmem:[%s6262_s12 + $0xbf8] sm:$0xff] }
 0x2d8   : > { %4522 = vmatpush.msra.mxu0 %v485_v3  ;;  %4541 = vmatpush.msra.mxu1 %v519_v2  ;;  %v4226_v51 = vpop.f32.mrf.mxu1  ;;  %v513_v3 = vld [vmem:[%s6262_s12 + $0x608] sm:$0xff] }
 0x2d9   : > { %4562 = vmatpush.msra.mxu2 %v549_v59  ;;  %4581 = vmatpush.msra.mxu3 %v583_v31  ;;  %v4227_v17 = vadd.f32 %v4226_v51, %v4207_v0  ;;  %v577_v2 = vld [vmem:[%s6262_s12 + $0x808] sm:$0xff]  ;;  %v671_v59 = vld [vmem:[%s6262_s12 + $0xaf8] sm:$0xff] }
 0x2da   : > { %4485 = vmatmul.f32.vlgmr.msrb.gmra.mxu2 %v6403_v4  ;;  %4523 = vmatpush.msra.mxu0 %v483_v30  ;;  %v639_v4 = vld [vmem:[%s6262_s12 + $0x9f8] sm:$0xff]  ;;  %v701_v31 = vld [vmem:[%s6262_s12 + $0xbe8] sm:$0xff] }
 0x2db   : > { %4542 = vmatpush.msra.mxu1 %v517_v29  ;;  %4563 = vmatpush.msra.mxu2 %v547_v1  ;;  %v4246_v63 = vpop.f32.mrf.mxu2  ;;  %v735_v0 = vld [vmem:[%s6262_s12 + $0xcf8] sm:$0xff]  ;;  %v669_v29 = vld [vmem:[%s6262_s12 + $0xae8] sm:$0xff] }
 0x2dc   : > { %4582 = vmatpush.msra.mxu3 %v581_v58  ;;  %4445 = vmatmul.f32.vlgmr.msrb.gmra.mxu0 %v6410_v9  ;;  %v4247_v61 = vadd.f32 %v4246_v63, %v4227_v17  ;;  %v637_v9 = vld [vmem:[%s6262_s12 + $0x9e8] sm:$0xff]  ;;  %v635_v30 = vld [vmem:[%s6262_s12 + $0x9d8] sm:$0xff] }
 0x2dd   : > { %4505 = vmatmul.f32.vlgmr.msrb.gmra.mxu3 %v6384_v55  ;;  %4524 = vmatpush.msra.mxu0 %v481_v32  ;;  %v733_v1 = vld [vmem:[%s6262_s12 + $0xce8] sm:$0xff]  ;;  %v667_v58 = vld [vmem:[%s6262_s12 + $0xad8] sm:$0xff] }
 0x2de   : > { %4543 = vmatpush.msra.mxu1 %v515_v5  ;;  %4564 = vmatpush.msra.mxu2 %v545_v12  ;;  %v4266_v6 = vpop.f32.mrf.mxu3  ;;  %v633_v51 = vld [vmem:[%s6262_s12 + $0x9c8] sm:$0xff]  ;;  %v731_v32 = vld [vmem:[%s6262_s12 + $0xcd8] sm:$0xff] }
 0x2df   : > { %4583 = vmatpush.msra.mxu3 %v579_v47  ;;  %4465 = vmatmul.f32.vlgmr.msrb.gmra.mxu1 %v6394_v62  ;;  %v7850_v55 = vadd.f32 %v4266_v6, %v4247_v61  ;;  %v699_v62 = vld [vmem:[%s6262_s12 + $0xbd8] sm:$0xff]  ;;  %v697_v17 = vld [vmem:[%s6262_s12 + $0xbc8] sm:$0xff] }
 0x2e0   : > { %4589 = vmatpush.msrb.mxu0 %v639_v4  ;;  %4629 = vmatpush.msrb.mxu2 %v703_v60  ;;  %v665_v5 = vld [vmem:[%s6262_s12 + $0xac8] sm:$0xff]  ;;  %v695_v12 = vld [vmem:[%s6262_s12 + $0xbb8] sm:$0xff] }
 0x2e1   : > { %4544 = vmatpush.msra.mxu1 %v513_v3  ;;  %4584 = vmatpush.msra.mxu3 %v577_v2  ;;  %v729_v63 = vld [vmem:[%s6262_s12 + $0xcc8] sm:$0xff]  ;;  %v663_v47 = vld [vmem:[%s6262_s12 + $0xab8] sm:$0xff] }
 0x2e2   : > { %4590 = vmatpush.msrb.mxu0 %v637_v9  ;;  %4630 = vmatpush.msrb.mxu2 %v701_v31  ;;  %v727_v61 = vld [vmem:[%s6262_s12 + $0xcb8] sm:$0xff]  ;;  %v661_v60 = vld [vmem:[%s6262_s12 + $0xaa8] sm:$0xff] }
 0x2e3   : > { %4609 = vmatpush.msrb.mxu1 %v671_v59  ;;  %4649 = vmatpush.msrb.mxu3 %v735_v0  ;;  %v627_v4 = vld [vmem:[%s6262_s12 + $0x998] sm:$0xff]  ;;  %v625_v2 = vld [vmem:[%s6262_s12 + $0x988] sm:$0xff] }
 0x2e4   : > { %4565 = vmatmul.f32.vlgmr.msra.gmra.mxu2 %v6386_v56  ;;  %4591 = vmatpush.msrb.mxu0 %v635_v30  ;;  %v631_v56 = vld [vmem:[%s6262_s12 + $0x9b8] sm:$0xff]  ;;  %v689_v9 = vld [vmem:[%s6262_s12 + $0xb88] sm:$0xff] }
 0x2e5   : > { %4610 = vmatpush.msrb.mxu1 %v669_v29  ;;  %4631 = vmatpush.msrb.mxu2 %v699_v62  ;;  %v691_v3 = vld [vmem:[%s6262_s12 + $0xb98] sm:$0xff]  ;;  %v657_v0 = vld [vmem:[%s6262_s12 + $0xa88] sm:$0xff] }
 0x2e6   : > { %4650 = vmatpush.msrb.mxu3 %v733_v1  ;;  %4525 = vmatmul.f32.vlgmr.msra.gmra.mxu0 %v6388_v57  ;;  %v629_v57 = vld [vmem:[%s6262_s12 + $0x9a8] sm:$0xff]  ;;  %v659_v6 = vld [vmem:[%s6262_s12 + $0xa98] sm:$0xff] }
 0x2e7   : > { %4585 = vmatmul.f32.vlgmr.msra.gmra.mxu3 %v6446_v38  ;;  %4592 = vmatpush.msrb.mxu0 %v633_v51  ;;  %v693_v38 = vld [vmem:[%s6262_s12 + $0xba8] sm:$0xff]  ;;  %v723_v59 = vld [vmem:[%s6262_s12 + $0xc98] sm:$0xff] }
 0x2e8   : > { %4611 = vmatpush.msrb.mxu1 %v667_v58  ;;  %4632 = vmatpush.msrb.mxu2 %v697_v17  ;;  %v623_v31 = vld [vmem:[%s6262_s12 + $0x978] sm:$0xff]  ;;  %v721_v29 = vld [vmem:[%s6262_s12 + $0xc88] sm:$0xff] }
 0x2e9   : > { %4651 = vmatpush.msrb.mxu3 %v731_v32  ;;  %4545 = vmatmul.f32.vlgmr.msra.gmra.mxu1 %v6382_v54  ;;  %v725_v54 = vld [vmem:[%s6262_s12 + $0xca8] sm:$0xff]  ;;  %v687_v30 = vld [vmem:[%s6262_s12 + $0xb78] sm:$0xff] }
 0x2ea   : > { %4593 = vmatpush.msrb.mxu0 %v631_v56  ;;  %4612 = vmatpush.msrb.mxu1 %v665_v5  ;;  %v621_v62 = vld [vmem:[%s6262_s12 + $0x968] sm:$0xff]  ;;  %v655_v1 = vld [vmem:[%s6262_s12 + $0xa78] sm:$0xff] }
 0x2eb   : > { %4633 = vmatpush.msrb.mxu2 %v695_v12  ;;  %4652 = vmatpush.msrb.mxu3 %v729_v63  ;;  %v685_v51 = vld [vmem:[%s6262_s12 + $0xb68] sm:$0xff]  ;;  %v719_v58 = vld [vmem:[%s6262_s12 + $0xc78] sm:$0xff] }
 0x2ec   : > { %4594 = vmatpush.msrb.mxu0 %v629_v57  ;;  %4613 = vmatpush.msrb.mxu1 %v663_v47  ;;  %v619_v17 = vld [vmem:[%s6262_s12 + $0x958] sm:$0xff]  ;;  %v653_v32 = vld [vmem:[%s6262_s12 + $0xa68] sm:$0xff] }
 0x2ed   : > { %4634 = vmatpush.msrb.mxu2 %v693_v38  ;;  %4653 = vmatpush.msrb.mxu3 %v727_v61  ;;  %v683_v56 = vld [vmem:[%s6262_s12 + $0xb58] sm:$0xff]  ;;  %v717_v5 = vld [vmem:[%s6262_s12 + $0xc68] sm:$0xff] }
 0x2ee   : > { %4595 = vmatpush.msrb.mxu0 %v627_v4  ;;  %4614 = vmatpush.msrb.mxu1 %v661_v60  ;;  %v617_v12 = vld [vmem:[%s6262_s12 + $0x948] sm:$0xff]  ;;  %v651_v63 = vld [vmem:[%s6262_s12 + $0xa58] sm:$0xff] }
 0x2ef   : > { %4635 = vmatpush.msrb.mxu2 %v691_v3  ;;  %4654 = vmatpush.msrb.mxu3 %v725_v54  ;;  %v681_v57 = vld [vmem:[%s6262_s12 + $0xb48] sm:$0xff]  ;;  %v715_v47 = vld [vmem:[%s6262_s12 + $0xc58] sm:$0xff] }
 0x2f0   : > { %4596 = vmatpush.msrb.mxu0 %v625_v2  ;;  %4615 = vmatpush.msrb.mxu1 %v659_v6  ;;  %v615_v38 = vld [vmem:[%s6262_s12 + $0x938] sm:$0xff]  ;;  %v649_v61 = vld [vmem:[%s6262_s12 + $0xa48] sm:$0xff] }
 0x2f1   : > { %4636 = vmatpush.msrb.mxu2 %v689_v9  ;;  %4655 = vmatpush.msrb.mxu3 %v723_v59  ;;  %v679_v60 = vld [vmem:[%s6262_s12 + $0xb38] sm:$0xff]  ;;  %v713_v3 = vld [vmem:[%s6262_s12 + $0xc48] sm:$0xff] }
 0x2f2   : > { %4597 = vmatpush.msrb.mxu0 %v623_v31  ;;  %4616 = vmatpush.msrb.mxu1 %v657_v0  ;;  %v613_v2 = vld [vmem:[%s6262_s12 + $0x928] sm:$0xff]  ;;  %v647_v6 = vld [vmem:[%s6262_s12 + $0xa38] sm:$0xff] }
 0x2f3   : > { %4637 = vmatpush.msrb.mxu2 %v687_v30  ;;  %4656 = vmatpush.msrb.mxu3 %v721_v29  ;;  %v677_v9 = vld [vmem:[%s6262_s12 + $0xb28] sm:$0xff]  ;;  %v711_v59 = vld [vmem:[%s6262_s12 + $0xc38] sm:$0xff] }
 0x2f4   : > { %4598 = vmatpush.msrb.mxu0 %v621_v62  ;;  %4617 = vmatpush.msrb.mxu1 %v655_v1  ;;  %v611_v0 = vld [vmem:[%s6262_s12 + $0x918] sm:$0xff]  ;;  %v645_v30 = vld [vmem:[%s6262_s12 + $0xa28] sm:$0xff] }
 0x2f5   : > { %4638 = vmatpush.msrb.mxu2 %v685_v51  ;;  %4657 = vmatpush.msrb.mxu3 %v719_v58  ;;  %v675_v29 = vld [vmem:[%s6262_s12 + $0xb18] sm:$0xff]  ;;  %v709_v62 = vld [vmem:[%s6262_s12 + $0xc28] sm:$0xff] }
 0x2f6   : > { %4599 = vmatpush.msrb.mxu0 %v619_v17  ;;  %4618 = vmatpush.msrb.mxu1 %v653_v32  ;;  %v609_v1 = vld [vmem:[%s6262_s12 + $0x908] sm:$0xff]  ;;  %v643_v51 = vld [vmem:[%s6262_s12 + $0xa18] sm:$0xff] }
 0x2f7   : > { %4639 = vmatpush.msrb.mxu2 %v683_v56  ;;  %4658 = vmatpush.msrb.mxu3 %v717_v5  ;;  %v4286_v4 = vpop.f32.mrf.mxu0  ;;  %v673_v17 = vld [vmem:[%s6262_s12 + $0xb08] sm:$0xff]  ;;  %v707_v32 = vld [vmem:[%s6262_s12 + $0xc18] sm:$0xff] }
 0x2f8   : > { %4600 = vmatpush.msrb.mxu0 %v617_v12  ;;  %4619 = vmatpush.msrb.mxu1 %v651_v63  ;;  %v4287_v54 = vadd.f32 %v4286_v4, %v7850_v55  ;;  %v767_v5 = vld [vmem:[%s6262_s12 + $0xdf8] sm:$0xff]  ;;  %v641_v63 = vld [vmem:[%s6262_s12 + $0xa08] sm:$0xff] }
 0x2f9   : > { %4640 = vmatpush.msrb.mxu2 %v681_v57  ;;  %4659 = vmatpush.msrb.mxu3 %v715_v47  ;;  %v831_v12 = vld [vmem:[%s6262_s12 + $0xff8] sm:$0xff]  ;;  %v705_v57 = vld [vmem:[%s6262_s12 + $0xc08] sm:$0xff] }
 0x2fa   : > { %4601 = vmatpush.msrb.mxu0 %v615_v38  ;;  %4620 = vmatpush.msrb.mxu1 %v649_v61  ;;  %v4306_v31 = vpop.f32.mrf.mxu1  ;;  %v765_v47 = vld [vmem:[%s6262_s12 + $0xde8] sm:$0xff]  ;;  %v799_v38 = vld [vmem:[%s6262_s12 + $0xef8] sm:$0xff] }
 0x2fb   : > { %4641 = vmatpush.msrb.mxu2 %v679_v60  ;;  %4660 = vmatpush.msrb.mxu3 %v713_v3  ;;  %v4307_v55 = vadd.f32 %v4306_v31, %v4287_v54  ;;  %v829_v61 = vld [vmem:[%s6262_s12 + $0xfe8] sm:$0xff]  ;;  %v863_v4 = vld [vmem:[%s6262_s12 + $0x10f8] sm:$0xff] }
 0x2fc   : > { %4602 = vmatpush.msrb.mxu0 %v613_v2  ;;  %4621 = vmatpush.msrb.mxu1 %v647_v6  ;;  %v827_v60 = vld [vmem:[%s6262_s12 + $0xfd8] sm:$0xff]  ;;  %v861_v3 = vld [vmem:[%s6262_s12 + $0x10e8] sm:$0xff] }
 0x2fd   : > { %4642 = vmatpush.msrb.mxu2 %v677_v9  ;;  %4661 = vmatpush.msrb.mxu3 %v711_v59  ;;  %v4326_v58 = vpop.f32.mrf.mxu2  ;;  %v761_v54 = vld [vmem:[%s6262_s12 + $0xdc8] sm:$0xff]  ;;  %v795_v2 = vld [vmem:[%s6262_s12 + $0xed8] sm:$0xff] }
 0x2fe   : > { %4603 = vmatpush.msrb.mxu0 %v611_v0  ;;  %4622 = vmatpush.msrb.mxu1 %v645_v30  ;;  %v7915_v56 = vadd.f32 %v4326_v58, %v4307_v55  ;;  %v759_v6 = vld [vmem:[%s6262_s12 + $0xdb8] sm:$0xff]  ;;  %v793_v9 = vld [vmem:[%s6262_s12 + $0xec8] sm:$0xff] }
 0x2ff   : > { %4643 = vmatpush.msrb.mxu2 %v675_v29  ;;  %4662 = vmatpush.msrb.mxu3 %v709_v62  ;;  %v823_v59 = vld [vmem:[%s6262_s12 + $0xfb8] sm:$0xff]  ;;  %v857_v31 = vld [vmem:[%s6262_s12 + $0x10c8] sm:$0xff] }
 0x300   : > { %4604 = vmatpush.msrb.mxu0 %v609_v1  ;;  %4623 = vmatpush.msrb.mxu1 %v643_v51  ;;  %v757_v0 = vld [vmem:[%s6262_s12 + $0xda8] sm:$0xff]  ;;  %v791_v30 = vld [vmem:[%s6262_s12 + $0xeb8] sm:$0xff] }
 0x301   : > { %4644 = vmatpush.msrb.mxu2 %v673_v17  ;;  %4663 = vmatpush.msrb.mxu3 %v707_v32  ;;  %v821_v55 = vld [vmem:[%s6262_s12 + $0xfa8] sm:$0xff]  ;;  %v855_v29 = vld [vmem:[%s6262_s12 + $0x10b8] sm:$0xff] }
 0x302   : > { %4605 = vmatmul.f32.vlgmr.msrb.gmra.mxu0 %v6450_v40  ;;  %4645 = vmatmul.f32.vlgmr.msrb.gmra.mxu2 %v6452_v41  ;;  %v763_v40 = vld [vmem:[%s6262_s12 + $0xdd8] sm:$0xff]  ;;  %v797_v41 = vld [vmem:[%s6262_s12 + $0xee8] sm:$0xff] }
 0x303   : > { %4669 = vmatpush.msra.mxu0 %v767_v5  ;;  %4709 = vmatpush.msra.mxu2 %v831_v12  ;;  %v755_v62 = vld [vmem:[%s6262_s12 + $0xd98] sm:$0xff]  ;;  %v789_v1 = vld [vmem:[%s6262_s12 + $0xea8] sm:$0xff] }
 0x304   : > { %4624 = vmatpush.msrb.mxu1 %v641_v63  ;;  %4664 = vmatpush.msrb.mxu3 %v705_v57  ;;  %v819_v51 = vld [vmem:[%s6262_s12 + $0xf98] sm:$0xff]  ;;  %v853_v58 = vld [vmem:[%s6262_s12 + $0x10a8] sm:$0xff] }
 0x305   : > { %4625 = vmatmul.f32.vlgmr.msrb.gmra.mxu1 %v6448_v39  ;;  %4665 = vmatmul.f32.vlgmr.msrb.gmra.mxu3 %v6509_v37  ;;  %v825_v39 = vld [vmem:[%s6262_s12 + $0xfc8] sm:$0xff]  ;;  %v859_v37 = vld [vmem:[%s6262_s12 + $0x10d8] sm:$0xff] }
 0x306   : > { %4670 = vmatpush.msra.mxu0 %v765_v47  ;;  %4689 = vmatpush.msra.mxu1 %v799_v38  ;;  %v753_v17 = vld [vmem:[%s6262_s12 + $0xd88] sm:$0xff]  ;;  %v787_v32 = vld [vmem:[%s6262_s12 + $0xe98] sm:$0xff] }
 0x307   : > { %4710 = vmatpush.msra.mxu2 %v829_v61  ;;  %4729 = vmatpush.msra.mxu3 %v863_v4  ;;  %v817_v5 = vld [vmem:[%s6262_s12 + $0xf88] sm:$0xff]  ;;  %v851_v12 = vld [vmem:[%s6262_s12 + $0x1098] sm:$0xff] }
 0x308   : > { %4671 = vmatpush.msra.mxu0 %v763_v40  ;;  %4690 = vmatpush.msra.mxu1 %v797_v41  ;;  %v751_v63 = vld [vmem:[%s6262_s12 + $0xd78] sm:$0xff]  ;;  %v785_v57 = vld [vmem:[%s6262_s12 + $0xe88] sm:$0xff] }
 0x309   : > { %4711 = vmatpush.msra.mxu2 %v827_v60  ;;  %4730 = vmatpush.msra.mxu3 %v861_v3  ;;  %v815_v47 = vld [vmem:[%s6262_s12 + $0xf78] sm:$0xff]  ;;  %v849_v38 = vld [vmem:[%s6262_s12 + $0x1088] sm:$0xff]  ;;  %v4346_v60 = vpop.f32.mrf.mxu3 }
 0x30a   : > { %4672 = vmatpush.msra.mxu0 %v761_v54  ;;  %4691 = vmatpush.msra.mxu1 %v795_v2  ;;  %v749_v61 = vld [vmem:[%s6262_s12 + $0xd68] sm:$0xff]  ;;  %v783_v4 = vld [vmem:[%s6262_s12 + $0xe78] sm:$0xff] }
 0x30b   : > { %4712 = vmatpush.msra.mxu2 %v825_v39  ;;  %4731 = vmatpush.msra.mxu3 %v859_v37  ;;  %v813_v40 = vld [vmem:[%s6262_s12 + $0xf68] sm:$0xff]  ;;  %v847_v41 = vld [vmem:[%s6262_s12 + $0x1078] sm:$0xff] }
 0x30c   : > { %4673 = vmatpush.msra.mxu0 %v759_v6  ;;  %4692 = vmatpush.msra.mxu1 %v793_v9  ;;  %v747_v3 = vld [vmem:[%s6262_s12 + $0xd58] sm:$0xff]  ;;  %v781_v54 = vld [vmem:[%s6262_s12 + $0xe68] sm:$0xff]  ;;  %v4347_v9 = vadd.f32 %v4346_v60, %v7915_v56 }
 0x30d   : > { %4713 = vmatpush.msra.mxu2 %v823_v59  ;;  %4732 = vmatpush.msra.mxu3 %v857_v31  ;;  %v811_v2 = vld [vmem:[%s6262_s12 + $0xf58] sm:$0xff]  ;;  %v845_v39 = vld [vmem:[%s6262_s12 + $0x1068] sm:$0xff] }
 0x30e   : > { %4674 = vmatpush.msra.mxu0 %v757_v0  ;;  %4693 = vmatpush.msra.mxu1 %v791_v30  ;;  %v745_v37 = vld [vmem:[%s6262_s12 + $0xd48] sm:$0xff]  ;;  %v779_v6 = vld [vmem:[%s6262_s12 + $0xe58] sm:$0xff] }
 0x30f   : > { %4714 = vmatpush.msra.mxu2 %v821_v55  ;;  %4733 = vmatpush.msra.mxu3 %v855_v29  ;;  %v809_v59 = vld [vmem:[%s6262_s12 + $0xf48] sm:$0xff]  ;;  %v843_v31 = vld [vmem:[%s6262_s12 + $0x1058] sm:$0xff] }
 0x310   : > { %4675 = vmatpush.msra.mxu0 %v755_v62  ;;  %4694 = vmatpush.msra.mxu1 %v789_v1  ;;  %v743_v0 = vld [vmem:[%s6262_s12 + $0xd38] sm:$0xff]  ;;  %v777_v30 = vld [vmem:[%s6262_s12 + $0xe48] sm:$0xff] }
 0x311   : > { %4715 = vmatpush.msra.mxu2 %v819_v51  ;;  %4734 = vmatpush.msra.mxu3 %v853_v58  ;;  %v807_v29 = vld [vmem:[%s6262_s12 + $0xf38] sm:$0xff]  ;;  %v841_v62 = vld [vmem:[%s6262_s12 + $0x1048] sm:$0xff] }
 0x312   : > { %4676 = vmatpush.msra.mxu0 %v753_v17  ;;  %4695 = vmatpush.msra.mxu1 %v787_v32  ;;  %v741_v1 = vld [vmem:[%s6262_s12 + $0xd28] sm:$0xff]  ;;  %v775_v51 = vld [vmem:[%s6262_s12 + $0xe38] sm:$0xff] }
 0x313   : > { %4716 = vmatpush.msra.mxu2 %v817_v5  ;;  %4735 = vmatpush.msra.mxu3 %v851_v12  ;;  %v805_v58 = vld [vmem:[%s6262_s12 + $0xf28] sm:$0xff]  ;;  %v839_v17 = vld [vmem:[%s6262_s12 + $0x1038] sm:$0xff] }
 0x314   : > { %4677 = vmatpush.msra.mxu0 %v751_v63  ;;  %4696 = vmatpush.msra.mxu1 %v785_v57  ;;  %v739_v5 = vld [vmem:[%s6262_s12 + $0xd18] sm:$0xff]  ;;  %v773_v12 = vld [vmem:[%s6262_s12 + $0xe28] sm:$0xff] }
 0x315   : > { %4717 = vmatpush.msra.mxu2 %v815_v47  ;;  %4736 = vmatpush.msra.mxu3 %v849_v38  ;;  %v803_v57 = vld [vmem:[%s6262_s12 + $0xf18] sm:$0xff]  ;;  %v837_v47 = vld [vmem:[%s6262_s12 + $0x1028] sm:$0xff] }
 0x316   : > { %4678 = vmatpush.msra.mxu0 %v749_v61  ;;  %4697 = vmatpush.msra.mxu1 %v783_v4  ;;  %v737_v38 = vld [vmem:[%s6262_s12 + $0xd08] sm:$0xff]  ;;  %v771_v61 = vld [vmem:[%s6262_s12 + $0xe18] sm:$0xff] }
 0x317   : > { %4718 = vmatpush.msra.mxu2 %v813_v40  ;;  %4737 = vmatpush.msra.mxu3 %v847_v41  ;;  %v801_v40 = vld [vmem:[%s6262_s12 + $0xf08] sm:$0xff]  ;;  %v835_v41 = vld [vmem:[%s6262_s12 + $0x1018] sm:$0xff] }
 0x318   : > { %4679 = vmatpush.msra.mxu0 %v747_v3  ;;  %4698 = vmatpush.msra.mxu1 %v781_v54  ;;  %v895_v3 = vld [vmem:[%s6262_s12 + $0x11f8] sm:$0xff] }
 0x319   : > { %4719 = vmatpush.msra.mxu2 %v811_v2  ;;  %4738 = vmatpush.msra.mxu3 %v845_v39  ;;  %v4366_v55 = vpop.f32.mrf.mxu0  ;;  %v959_v54 = vld [vmem:[%s6262_s12 + $0x13f8] sm:$0xff]  ;;  %v769_v2 = vld [vmem:[%s6262_s12 + $0xe08] sm:$0xff] }
 0x31a   : > { %4680 = vmatpush.msra.mxu0 %v745_v37  ;;  %4699 = vmatpush.msra.mxu1 %v779_v6  ;;  %v4367_v56 = vadd.f32 %v4366_v55, %v4347_v9  ;;  %v833_v39 = vld [vmem:[%s6262_s12 + $0x1008] sm:$0xff]  ;;  %v927_v6 = vld [vmem:[%s6262_s12 + $0x12f8] sm:$0xff] }
 0x31b   : > { %4720 = vmatpush.msra.mxu2 %v809_v59  ;;  %4739 = vmatpush.msra.mxu3 %v843_v31  ;;  %v893_v37 = vld [vmem:[%s6262_s12 + $0x11e8] sm:$0xff]  ;;  %v991_v59 = vld [vmem:[%s6262_s12 + $0x14f8] sm:$0xff] }
 0x31c   : > { %4681 = vmatpush.msra.mxu0 %v743_v0  ;;  %4700 = vmatpush.msra.mxu1 %v777_v30  ;;  %v4386_v32 = vpop.f32.mrf.mxu1  ;;  %v957_v9 = vld [vmem:[%s6262_s12 + $0x13e8] sm:$0xff]  ;;  %v955_v31 = vld [vmem:[%s6262_s12 + $0x13d8] sm:$0xff] }
 0x31d   : > { %4721 = vmatpush.msra.mxu2 %v807_v29  ;;  %4740 = vmatpush.msra.mxu3 %v841_v62  ;;  %v4387_v63 = vadd.f32 %v4386_v32, %v4367_v56  ;;  %v989_v0 = vld [vmem:[%s6262_s12 + $0x14e8] sm:$0xff]  ;;  %v923_v55 = vld [vmem:[%s6262_s12 + $0x12d8] sm:$0xff] }
 0x31e   : > { %4682 = vmatpush.msra.mxu0 %v741_v1  ;;  %4701 = vmatpush.msra.mxu1 %v775_v51  ;;  %v889_v30 = vld [vmem:[%s6262_s12 + $0x11c8] sm:$0xff]  ;;  %v887_v29 = vld [vmem:[%s6262_s12 + $0x11b8] sm:$0xff] }
 0x31f   : > { %4722 = vmatpush.msra.mxu2 %v805_v58  ;;  %4741 = vmatpush.msra.mxu3 %v839_v17  ;;  %v4406_v4 = vpop.f32.mrf.mxu2  ;;  %v921_v62 = vld [vmem:[%s6262_s12 + $0x12c8] sm:$0xff]  ;;  %v951_v56 = vld [vmem:[%s6262_s12 + $0x13b8] sm:$0xff] }
 0x320   : > { %4683 = vmatpush.msra.mxu0 %v739_v5  ;;  %4702 = vmatpush.msra.mxu1 %v773_v12  ;;  %v7986_v60 = vadd.f32 %v4406_v4, %v4387_v63  ;;  %v985_v1 = vld [vmem:[%s6262_s12 + $0x14c8] sm:$0xff]  ;;  %v919_v58 = vld [vmem:[%s6262_s12 + $0x12b8] sm:$0xff] }
 0x321   : > { %4723 = vmatpush.msra.mxu2 %v803_v57  ;;  %4742 = vmatpush.msra.mxu3 %v837_v47  ;;  %v885_v51 = vld [vmem:[%s6262_s12 + $0x11a8] sm:$0xff]  ;;  %v983_v32 = vld [vmem:[%s6262_s12 + $0x14b8] sm:$0xff] }
 0x322   : > { %4684 = vmatpush.msra.mxu0 %v737_v38  ;;  %4703 = vmatpush.msra.mxu1 %v771_v61  ;;  %v949_v17 = vld [vmem:[%s6262_s12 + $0x13a8] sm:$0xff]  ;;  %v883_v5 = vld [vmem:[%s6262_s12 + $0x1198] sm:$0xff] }
 0x323   : > { %4724 = vmatpush.msra.mxu2 %v801_v40  ;;  %4743 = vmatpush.msra.mxu3 %v835_v41  ;;  %v917_v12 = vld [vmem:[%s6262_s12 + $0x12a8] sm:$0xff]  ;;  %v947_v63 = vld [vmem:[%s6262_s12 + $0x1398] sm:$0xff] }
 0x324   : > { %4685 = vmatmul.f32.vlgmr.msra.gmra.mxu0 %v6513_v43  ;;  %4725 = vmatmul.f32.vlgmr.msra.gmra.mxu2 %v6517_v46  ;;  %v891_v43 = vld [vmem:[%s6262_s12 + $0x11d8] sm:$0xff]  ;;  %v925_v46 = vld [vmem:[%s6262_s12 + $0x12e8] sm:$0xff] }
 0x325   : > { %4749 = vmatpush.msrb.mxu0 %v895_v3  ;;  %4789 = vmatpush.msrb.mxu2 %v959_v54  ;;  %v981_v57 = vld [vmem:[%s6262_s12 + $0x14a8] sm:$0xff]  ;;  %v915_v38 = vld [vmem:[%s6262_s12 + $0x1298] sm:$0xff] }
 0x326   : > { %4704 = vmatpush.msra.mxu1 %v769_v2  ;;  %4744 = vmatpush.msra.mxu3 %v833_v39  ;;  %v881_v47 = vld [vmem:[%s6262_s12 + $0x1188] sm:$0xff]  ;;  %v979_v4 = vld [vmem:[%s6262_s12 + $0x1498] sm:$0xff] }
 0x327   : > { %4705 = vmatmul.f32.vlgmr.msra.gmra.mxu1 %v6511_v42  ;;  %4745 = vmatmul.f32.vlgmr.msra.gmra.mxu3 %v6637_v8  ;;  %v953_v42 = vld [vmem:[%s6262_s12 + $0x13c8] sm:$0xff]  ;;  %v987_v8 = vld [vmem:[%s6262_s12 + $0x14d8] sm:$0xff] }
 0x328   : > { %4750 = vmatpush.msrb.mxu0 %v893_v37  ;;  %4769 = vmatpush.msrb.mxu1 %v927_v6  ;;  %v945_v61 = vld [vmem:[%s6262_s12 + $0x1388] sm:$0xff]  ;;  %v879_v40 = vld [vmem:[%s6262_s12 + $0x1178] sm:$0xff] }
 0x329   : > { %4790 = vmatpush.msrb.mxu2 %v957_v9  ;;  %4809 = vmatpush.msrb.mxu3 %v991_v59  ;;  %v913_v41 = vld [vmem:[%s6262_s12 + $0x1288] sm:$0xff]  ;;  %v943_v3 = vld [vmem:[%s6262_s12 + $0x1378] sm:$0xff] }
 0x32a   : > { %4751 = vmatpush.msrb.mxu0 %v891_v43  ;;  %4770 = vmatpush.msrb.mxu1 %v925_v46  ;;  %v977_v54 = vld [vmem:[%s6262_s12 + $0x1488] sm:$0xff]  ;;  %v911_v39 = vld [vmem:[%s6262_s12 + $0x1278] sm:$0xff] }
 0x32b   : > { %4791 = vmatpush.msrb.mxu2 %v955_v31  ;;  %4810 = vmatpush.msrb.mxu3 %v989_v0  ;;  %v877_v2 = vld [vmem:[%s6262_s12 + $0x1168] sm:$0xff]  ;;  %v975_v6 = vld [vmem:[%s6262_s12 + $0x1478] sm:$0xff] }
 0x32c   : > { %4752 = vmatpush.msrb.mxu0 %v889_v30  ;;  %4771 = vmatpush.msrb.mxu1 %v923_v55  ;;  %v941_v37 = vld [vmem:[%s6262_s12 + $0x1368] sm:$0xff]  ;;  %v875_v9 = vld [vmem:[%s6262_s12 + $0x1158] sm:$0xff] }
 0x32d   : > { %4792 = vmatpush.msrb.mxu2 %v953_v42  ;;  %4811 = vmatpush.msrb.mxu3 %v987_v8  ;;  %v909_v59 = vld [vmem:[%s6262_s12 + $0x1268] sm:$0xff]  ;;  %v939_v43 = vld [vmem:[%s6262_s12 + $0x1358] sm:$0xff] }
 0x32e   : > { %4753 = vmatpush.msrb.mxu0 %v887_v29  ;;  %4772 = vmatpush.msrb.mxu1 %v921_v62  ;;  %v973_v46 = vld [vmem:[%s6262_s12 + $0x1468] sm:$0xff]  ;;  %v907_v0 = vld [vmem:[%s6262_s12 + $0x1258] sm:$0xff] }
 0x32f   : > { %4793 = vmatpush.msrb.mxu2 %v951_v56  ;;  %4812 = vmatpush.msrb.mxu3 %v985_v1  ;;  %v873_v31 = vld [vmem:[%s6262_s12 + $0x1148] sm:$0xff]  ;;  %v971_v55 = vld [vmem:[%s6262_s12 + $0x1458] sm:$0xff] }
 0x330   : > { %4754 = vmatpush.msrb.mxu0 %v885_v51  ;;  %4773 = vmatpush.msrb.mxu1 %v919_v58  ;;  %v937_v30 = vld [vmem:[%s6262_s12 + $0x1348] sm:$0xff]  ;;  %v871_v42 = vld [vmem:[%s6262_s12 + $0x1138] sm:$0xff] }
 0x331   : > { %4794 = vmatpush.msrb.mxu2 %v949_v17  ;;  %4813 = vmatpush.msrb.mxu3 %v983_v32  ;;  %v905_v8 = vld [vmem:[%s6262_s12 + $0x1248] sm:$0xff]  ;;  %v935_v29 = vld [vmem:[%s6262_s12 + $0x1338] sm:$0xff] }
 0x332   : > { %4755 = vmatpush.msrb.mxu0 %v883_v5  ;;  %4774 = vmatpush.msrb.mxu1 %v917_v12  ;;  %v969_v62 = vld [vmem:[%s6262_s12 + $0x1448] sm:$0xff]  ;;  %v903_v1 = vld [vmem:[%s6262_s12 + $0x1238] sm:$0xff] }
 0x333   : > { %4795 = vmatpush.msrb.mxu2 %v947_v63  ;;  %4814 = vmatpush.msrb.mxu3 %v981_v57  ;;  %v869_v56 = vld [vmem:[%s6262_s12 + $0x1128] sm:$0xff]  ;;  %v967_v58 = vld [vmem:[%s6262_s12 + $0x1438] sm:$0xff] }
 0x334   : > { %4756 = vmatpush.msrb.mxu0 %v881_v47  ;;  %4775 = vmatpush.msrb.mxu1 %v915_v38  ;;  %v933_v51 = vld [vmem:[%s6262_s12 + $0x1328] sm:$0xff]  ;;  %v867_v17 = vld [vmem:[%s6262_s12 + $0x1118] sm:$0xff] }
 0x335   : > { %4796 = vmatpush.msrb.mxu2 %v945_v61  ;;  %4815 = vmatpush.msrb.mxu3 %v979_v4  ;;  %v901_v32 = vld [vmem:[%s6262_s12 + $0x1228] sm:$0xff]  ;;  %v931_v5 = vld [vmem:[%s6262_s12 + $0x1318] sm:$0xff] }
 0x336   : > { %4757 = vmatpush.msrb.mxu0 %v879_v40  ;;  %4776 = vmatpush.msrb.mxu1 %v913_v41  ;;  %v965_v12 = vld [vmem:[%s6262_s12 + $0x1428] sm:$0xff]  ;;  %v899_v57 = vld [vmem:[%s6262_s12 + $0x1218] sm:$0xff] }
 0x337   : > { %4797 = vmatpush.msrb.mxu2 %v943_v3  ;;  %4816 = vmatpush.msrb.mxu3 %v977_v54  ;;  %v865_v63 = vld [vmem:[%s6262_s12 + $0x1108] sm:$0xff]  ;;  %v963_v38 = vld [vmem:[%s6262_s12 + $0x1418] sm:$0xff] }
 0x338   : > { %4758 = vmatpush.msrb.mxu0 %v877_v2  ;;  %4777 = vmatpush.msrb.mxu1 %v911_v39  ;;  %v929_v47 = vld [vmem:[%s6262_s12 + $0x1308] sm:$0xff]  ;;  %v1023_v61 = vld [vmem:[%s6262_s12 + $0x15f8] sm:$0xff] }
 0x339   : > { %4798 = vmatpush.msrb.mxu2 %v941_v37  ;;  %4817 = vmatpush.msrb.mxu3 %v975_v6  ;;  %v1087_v4 = vld [vmem:[%s6262_s12 + $0x17f8] sm:$0xff]  ;;  %v897_v40 = vld [vmem:[%s6262_s12 + $0x1208] sm:$0xff] }
 0x33a   : > { %4759 = vmatpush.msrb.mxu0 %v875_v9  ;;  %4778 = vmatpush.msrb.mxu1 %v909_v59  ;;  %v961_v41 = vld [vmem:[%s6262_s12 + $0x1408] sm:$0xff]  ;;  %v1055_v54 = vld [vmem:[%s6262_s12 + $0x16f8] sm:$0xff] }
 0x33b   : > { %4799 = vmatpush.msrb.mxu2 %v939_v43  ;;  %4818 = vmatpush.msrb.mxu3 %v973_v46  ;;  %v1021_v3 = vld [vmem:[%s6262_s12 + $0x15e8] sm:$0xff]  ;;  %v1119_v39 = vld [vmem:[%s6262_s12 + $0x18f8] sm:$0xff] }
 0x33c   : > { %4760 = vmatpush.msrb.mxu0 %v873_v31  ;;  %4779 = vmatpush.msrb.mxu1 %v907_v0  ;;  %v1085_v2 = vld [vmem:[%s6262_s12 + $0x17e8] sm:$0xff]  ;;  %v1083_v37 = vld [vmem:[%s6262_s12 + $0x17d8] sm:$0xff] }
 0x33d   : > { %4800 = vmatpush.msrb.mxu2 %v937_v30  ;;  %4819 = vmatpush.msrb.mxu3 %v971_v55  ;;  %v1117_v6 = vld [vmem:[%s6262_s12 + $0x18e8] sm:$0xff]  ;;  %v1051_v59 = vld [vmem:[%s6262_s12 + $0x16d8] sm:$0xff] }
 0x33e   : > { %4761 = vmatpush.msrb.mxu0 %v871_v42  ;;  %4780 = vmatpush.msrb.mxu1 %v905_v8  ;;  %v1017_v9 = vld [vmem:[%s6262_s12 + $0x15c8] sm:$0xff]  ;;  %v1015_v43 = vld [vmem:[%s6262_s12 + $0x15b8] sm:$0xff] }
 0x33f   : > { %4801 = vmatpush.msrb.mxu2 %v935_v29  ;;  %4820 = vmatpush.msrb.mxu3 %v969_v62  ;;  %v1049_v46 = vld [vmem:[%s6262_s12 + $0x16c8] sm:$0xff]  ;;  %v1079_v31 = vld [vmem:[%s6262_s12 + $0x17b8] sm:$0xff] }
 0x340   : > { %4762 = vmatpush.msrb.mxu0 %v869_v56  ;;  %4781 = vmatpush.msrb.mxu1 %v903_v1  ;;  %v1113_v0 = vld [vmem:[%s6262_s12 + $0x18c8] sm:$0xff]  ;;  %v1047_v55 = vld [vmem:[%s6262_s12 + $0x16b8] sm:$0xff] }
 0x341   : > { %4802 = vmatpush.msrb.mxu2 %v933_v51  ;;  %4821 = vmatpush.msrb.mxu3 %v967_v58  ;;  %v1013_v30 = vld [vmem:[%s6262_s12 + $0x15a8] sm:$0xff]  ;;  %v1111_v8 = vld [vmem:[%s6262_s12 + $0x18b8] sm:$0xff] }
 0x342   : > { %4763 = vmatpush.msrb.mxu0 %v867_v17  ;;  %4782 = vmatpush.msrb.mxu1 %v901_v32  ;;  %v1077_v42 = vld [vmem:[%s6262_s12 + $0x17a8] sm:$0xff]  ;;  %v1011_v29 = vld [vmem:[%s6262_s12 + $0x1598] sm:$0xff] }
 0x343   : > { %4803 = vmatpush.msrb.mxu2 %v931_v5  ;;  %4822 = vmatpush.msrb.mxu3 %v965_v12  ;;  %v1045_v62 = vld [vmem:[%s6262_s12 + $0x16a8] sm:$0xff]  ;;  %v1075_v56 = vld [vmem:[%s6262_s12 + $0x1798] sm:$0xff] }
 0x344   : > { %4764 = vmatpush.msrb.mxu0 %v865_v63  ;;  %4783 = vmatpush.msrb.mxu1 %v899_v57  ;;  %v1109_v1 = vld [vmem:[%s6262_s12 + $0x18a8] sm:$0xff]  ;;  %v1043_v58 = vld [vmem:[%s6262_s12 + $0x1698] sm:$0xff] }
 0x345   : > { %4804 = vmatpush.msrb.mxu2 %v929_v47  ;;  %4823 = vmatpush.msrb.mxu3 %v963_v38  ;;  %v1009_v51 = vld [vmem:[%s6262_s12 + $0x1588] sm:$0xff]  ;;  %v1107_v32 = vld [vmem:[%s6262_s12 + $0x1898] sm:$0xff] }
 0x346   : > { %4765 = vmatmul.f32.vlgmr.msrb.gmra.mxu0 %v6647_v15  ;;  %4805 = vmatmul.f32.vlgmr.msrb.gmra.mxu2 %v6649_v16  ;;  %v1019_v15 = vld [vmem:[%s6262_s12 + $0x15d8] sm:$0xff]  ;;  %v1053_v16 = vld [vmem:[%s6262_s12 + $0x16e8] sm:$0xff] }
 0x347   : > { %4829 = vmatpush.msra.mxu0 %v1023_v61  ;;  %4869 = vmatpush.msra.mxu2 %v1087_v4  ;;  %v1073_v17 = vld [vmem:[%s6262_s12 + $0x1788] sm:$0xff]  ;;  %v1007_v5 = vld [vmem:[%s6262_s12 + $0x1578] sm:$0xff] }
 0x348   : > { %4784 = vmatpush.msrb.mxu1 %v897_v40  ;;  %4824 = vmatpush.msrb.mxu3 %v961_v41  ;;  %v1041_v12 = vld [vmem:[%s6262_s12 + $0x1688] sm:$0xff]  ;;  %v1071_v63 = vld [vmem:[%s6262_s12 + $0x1778] sm:$0xff] }
 0x349   : > { %4785 = vmatmul.f32.vlgmr.msrb.gmra.mxu1 %v6639_v10  ;;  %4825 = vmatmul.f32.vlgmr.msrb.gmra.mxu3 %v6714_v34  ;;  %v1081_v10 = vld [vmem:[%s6262_s12 + $0x17c8] sm:$0xff]  ;;  %v1115_v34 = vld [vmem:[%s6262_s12 + $0x18d8] sm:$0xff] }
 0x34a   : > { %4830 = vmatpush.msra.mxu0 %v1021_v3  ;;  %4849 = vmatpush.msra.mxu1 %v1055_v54  ;;  %v1105_v57 = vld [vmem:[%s6262_s12 + $0x1888] sm:$0xff]  ;;  %v1039_v38 = vld [vmem:[%s6262_s12 + $0x1678] sm:$0xff] }
 0x34b   : > { %4870 = vmatpush.msra.mxu2 %v1085_v2  ;;  %4889 = vmatpush.msra.mxu3 %v1119_v39  ;;  %v1005_v47 = vld [vmem:[%s6262_s12 + $0x1568] sm:$0xff]  ;;  %v1103_v4 = vld [vmem:[%s6262_s12 + $0x1878] sm:$0xff] }
 0x34c   : > { %4831 = vmatpush.msra.mxu0 %v1019_v15  ;;  %4850 = vmatpush.msra.mxu1 %v1053_v16  ;;  %v1069_v61 = vld [vmem:[%s6262_s12 + $0x1768] sm:$0xff]  ;;  %v1003_v40 = vld [vmem:[%s6262_s12 + $0x1558] sm:$0xff] }
 0x34d   : > { %4871 = vmatpush.msra.mxu2 %v1083_v37  ;;  %4890 = vmatpush.msra.mxu3 %v1117_v6  ;;  %v1037_v41 = vld [vmem:[%s6262_s12 + $0x1668] sm:$0xff]  ;;  %v1067_v3 = vld [vmem:[%s6262_s12 + $0x1758] sm:$0xff] }
 0x34e   : > { %4832 = vmatpush.msra.mxu0 %v1017_v9  ;;  %4851 = vmatpush.msra.mxu1 %v1051_v59  ;;  %v1101_v54 = vld [vmem:[%s6262_s12 + $0x1868] sm:$0xff]  ;;  %v1035_v39 = vld [vmem:[%s6262_s12 + $0x1658] sm:$0xff] }
 0x34f   : > { %4872 = vmatpush.msra.mxu2 %v1081_v10  ;;  %4891 = vmatpush.msra.mxu3 %v1115_v34  ;;  %v1001_v2 = vld [vmem:[%s6262_s12 + $0x1548] sm:$0xff]  ;;  %v1099_v16 = vld [vmem:[%s6262_s12 + $0x1858] sm:$0xff] }
 0x350   : > { %4833 = vmatpush.msra.mxu0 %v1015_v43  ;;  %4852 = vmatpush.msra.mxu1 %v1049_v46  ;;  %v1065_v15 = vld [vmem:[%s6262_s12 + $0x1748] sm:$0xff]  ;;  %v999_v37 = vld [vmem:[%s6262_s12 + $0x1538] sm:$0xff] }
 0x351   : > { %4873 = vmatpush.msra.mxu2 %v1079_v31  ;;  %4892 = vmatpush.msra.mxu3 %v1113_v0  ;;  %v1033_v6 = vld [vmem:[%s6262_s12 + $0x1648] sm:$0xff]  ;;  %v1063_v9 = vld [vmem:[%s6262_s12 + $0x1738] sm:$0xff] }
 0x352   : > { %4834 = vmatpush.msra.mxu0 %v1013_v30  ;;  %4853 = vmatpush.msra.mxu1 %v1047_v55  ;;  %v1097_v59 = vld [vmem:[%s6262_s12 + $0x1848] sm:$0xff]  ;;  %v1031_v34 = vld [vmem:[%s6262_s12 + $0x1638] sm:$0xff] }
 0x353   : > { %4874 = vmatpush.msra.mxu2 %v1077_v42  ;;  %4893 = vmatpush.msra.mxu3 %v1111_v8  ;;  %v997_v10 = vld [vmem:[%s6262_s12 + $0x1528] sm:$0xff]  ;;  %v1095_v46 = vld [vmem:[%s6262_s12 + $0x1838] sm:$0xff] }
 0x354   : > { %4835 = vmatpush.msra.mxu0 %v1011_v29  ;;  %4854 = vmatpush.msra.mxu1 %v1045_v62  ;;  %v1061_v43 = vld [vmem:[%s6262_s12 + $0x1728] sm:$0xff]  ;;  %v995_v31 = vld [vmem:[%s6262_s12 + $0x1518] sm:$0xff] }
 0x355   : > { %4875 = vmatpush.msra.mxu2 %v1075_v56  ;;  %4894 = vmatpush.msra.mxu3 %v1109_v1  ;;  %v1029_v0 = vld [vmem:[%s6262_s12 + $0x1628] sm:$0xff]  ;;  %v1059_v30 = vld [vmem:[%s6262_s12 + $0x1718] sm:$0xff] }
 0x356   : > { %4836 = vmatpush.msra.mxu0 %v1009_v51  ;;  %4855 = vmatpush.msra.mxu1 %v1043_v58  ;;  %v1093_v55 = vld [vmem:[%s6262_s12 + $0x1828] sm:$0xff]  ;;  %v1027_v8 = vld [vmem:[%s6262_s12 + $0x1618] sm:$0xff] }
 0x357   : > { %4876 = vmatpush.msra.mxu2 %v1073_v17  ;;  %4895 = vmatpush.msra.mxu3 %v1107_v32  ;;  %v993_v42 = vld [vmem:[%s6262_s12 + $0x1508] sm:$0xff]  ;;  %v1091_v62 = vld [vmem:[%s6262_s12 + $0x1818] sm:$0xff] }
 0x358   : > { %4837 = vmatpush.msra.mxu0 %v1007_v5  ;;  %4856 = vmatpush.msra.mxu1 %v1041_v12  ;;  %v1057_v29 = vld [vmem:[%s6262_s12 + $0x1708] sm:$0xff]  ;;  %v1151_v56 = vld [vmem:[%s6262_s12 + $0x19f8] sm:$0xff] }
 0x359   : > { %4877 = vmatpush.msra.mxu2 %v1071_v63  ;;  %4896 = vmatpush.msra.mxu3 %v1105_v57  ;;  %v1215_v1 = vld [vmem:[%s6262_s12 + $0x1bf8] sm:$0xff]  ;;  %v1025_v51 = vld [vmem:[%s6262_s12 + $0x1608] sm:$0xff] }
 0x35a   : > { %4838 = vmatpush.msra.mxu0 %v1005_v47  ;;  %4857 = vmatpush.msra.mxu1 %v1039_v38  ;;  %v1089_v58 = vld [vmem:[%s6262_s12 + $0x1808] sm:$0xff]  ;;  %v1183_v32 = vld [vmem:[%s6262_s12 + $0x1af8] sm:$0xff] }
 0x35b   : > { %4878 = vmatpush.msra.mxu2 %v1069_v61  ;;  %4897 = vmatpush.msra.mxu3 %v1103_v4  ;;  %v1149_v17 = vld [vmem:[%s6262_s12 + $0x19e8] sm:$0xff]  ;;  %v1247_v12 = vld [vmem:[%s6262_s12 + $0x1cf8] sm:$0xff] }
 0x35c   : > { %4839 = vmatpush.msra.mxu0 %v1003_v40  ;;  %4858 = vmatpush.msra.mxu1 %v1037_v41  ;;  %v1213_v5 = vld [vmem:[%s6262_s12 + $0x1be8] sm:$0xff]  ;;  %v1211_v63 = vld [vmem:[%s6262_s12 + $0x1bd8] sm:$0xff] }
 0x35d   : > { %4879 = vmatpush.msra.mxu2 %v1067_v3  ;;  %4898 = vmatpush.msra.mxu3 %v1101_v54  ;;  %v1245_v57 = vld [vmem:[%s6262_s12 + $0x1ce8] sm:$0xff]  ;;  %v1179_v38 = vld [vmem:[%s6262_s12 + $0x1ad8] sm:$0xff] }
 0x35e   : > { %4840 = vmatpush.msra.mxu0 %v1001_v2  ;;  %4859 = vmatpush.msra.mxu1 %v1035_v39  ;;  %v1145_v47 = vld [vmem:[%s6262_s12 + $0x19c8] sm:$0xff]  ;;  %v1143_v61 = vld [vmem:[%s6262_s12 + $0x19b8] sm:$0xff] }
 0x35f   : > { %4880 = vmatpush.msra.mxu2 %v1065_v15  ;;  %4899 = vmatpush.msra.mxu3 %v1099_v16  ;;  %v1177_v4 = vld [vmem:[%s6262_s12 + $0x1ac8] sm:$0xff]  ;;  %v1207_v40 = vld [vmem:[%s6262_s12 + $0x1bb8] sm:$0xff] }
 0x360   : > { %4841 = vmatpush.msra.mxu0 %v999_v37  ;;  %4860 = vmatpush.msra.mxu1 %v1033_v6  ;;  %v1241_v41 = vld [vmem:[%s6262_s12 + $0x1cc8] sm:$0xff]  ;;  %v1175_v54 = vld [vmem:[%s6262_s12 + $0x1ab8] sm:$0xff] }
 0x361   : > { %4881 = vmatpush.msra.mxu2 %v1063_v9  ;;  %4900 = vmatpush.msra.mxu3 %v1097_v59  ;;  %v1141_v3 = vld [vmem:[%s6262_s12 + $0x19a8] sm:$0xff]  ;;  %v1239_v39 = vld [vmem:[%s6262_s12 + $0x1cb8] sm:$0xff] }
 0x362   : > { %4842 = vmatpush.msra.mxu0 %v997_v10  ;;  %4861 = vmatpush.msra.mxu1 %v1031_v34  ;;  %v1205_v2 = vld [vmem:[%s6262_s12 + $0x1ba8] sm:$0xff]  ;;  %v1139_v15 = vld [vmem:[%s6262_s12 + $0x1998] sm:$0xff] }
 0x363   : > { %4882 = vmatpush.msra.mxu2 %v1061_v43  ;;  %4901 = vmatpush.msra.mxu3 %v1095_v46  ;;  %v1173_v16 = vld [vmem:[%s6262_s12 + $0x1aa8] sm:$0xff]  ;;  %v1203_v37 = vld [vmem:[%s6262_s12 + $0x1b98] sm:$0xff] }
 0x364   : > { %4843 = vmatpush.msra.mxu0 %v995_v31  ;;  %4862 = vmatpush.msra.mxu1 %v1029_v0  ;;  %v1237_v6 = vld [vmem:[%s6262_s12 + $0x1ca8] sm:$0xff]  ;;  %v1171_v59 = vld [vmem:[%s6262_s12 + $0x1a98] sm:$0xff] }
 0x365   : > { %4883 = vmatpush.msra.mxu2 %v1059_v30  ;;  %4902 = vmatpush.msra.mxu3 %v1093_v55  ;;  %v1137_v9 = vld [vmem:[%s6262_s12 + $0x1988] sm:$0xff]  ;;  %v1235_v34 = vld [vmem:[%s6262_s12 + $0x1c98] sm:$0xff] }
 0x366   : > { %4844 = vmatpush.msra.mxu0 %v993_v42  ;;  %4863 = vmatpush.msra.mxu1 %v1027_v8  ;;  %v1201_v10 = vld [vmem:[%s6262_s12 + $0x1b88] sm:$0xff]  ;;  %v1135_v43 = vld [vmem:[%s6262_s12 + $0x1978] sm:$0xff] }
 0x367   : > { %4884 = vmatpush.msra.mxu2 %v1057_v29  ;;  %4903 = vmatpush.msra.mxu3 %v1091_v62  ;;  %v1169_v46 = vld [vmem:[%s6262_s12 + $0x1a88] sm:$0xff]  ;;  %v1199_v31 = vld [vmem:[%s6262_s12 + $0x1b78] sm:$0xff] }
 0x368   : > { %4845 = vmatmul.f32.vlgmr.msra.gmra.mxu0 %v6724_v48  ;;  %4885 = vmatmul.f32.vlgmr.msra.gmra.mxu2 %v6726_v49  ;;  %v1147_v48 = vld [vmem:[%s6262_s12 + $0x19d8] sm:$0xff]  ;;  %v1181_v49 = vld [vmem:[%s6262_s12 + $0x1ae8] sm:$0xff] }
 0x369   : > { %4909 = vmatpush.msrb.mxu0 %v1151_v56  ;;  %4949 = vmatpush.msrb.mxu2 %v1215_v1  ;;  %v1233_v0 = vld [vmem:[%s6262_s12 + $0x1c88] sm:$0xff]  ;;  %v1167_v55 = vld [vmem:[%s6262_s12 + $0x1a78] sm:$0xff] }
 0x36a   : > { %4864 = vmatpush.msra.mxu1 %v1025_v51  ;;  %4904 = vmatpush.msra.mxu3 %v1089_v58  ;;  %v1133_v30 = vld [vmem:[%s6262_s12 + $0x1968] sm:$0xff]  ;;  %v1231_v8 = vld [vmem:[%s6262_s12 + $0x1c78] sm:$0xff] }
 0x36b   : > { %4865 = vmatmul.f32.vlgmr.msra.gmra.mxu1 %v6716_v35  ;;  %4905 = vmatmul.f32.vlgmr.msra.gmra.mxu3 %v6791_v19  ;;  %v1209_v35 = vld [vmem:[%s6262_s12 + $0x1bc8] sm:$0xff]  ;;  %v1243_v19 = vld [vmem:[%s6262_s12 + $0x1cd8] sm:$0xff] }
 0x36c   : > { %4910 = vmatpush.msrb.mxu0 %v1149_v17  ;;  %4929 = vmatpush.msrb.mxu1 %v1183_v32  ;;  %v1197_v42 = vld [vmem:[%s6262_s12 + $0x1b68] sm:$0xff]  ;;  %v1131_v29 = vld [vmem:[%s6262_s12 + $0x1958] sm:$0xff] }
 0x36d   : > { %4950 = vmatpush.msrb.mxu2 %v1213_v5  ;;  %4969 = vmatpush.msrb.mxu3 %v1247_v12  ;;  %v1165_v62 = vld [vmem:[%s6262_s12 + $0x1a68] sm:$0xff]  ;;  %v1195_v56 = vld [vmem:[%s6262_s12 + $0x1b58] sm:$0xff] }
 0x36e   : > { %4911 = vmatpush.msrb.mxu0 %v1147_v48  ;;  %4930 = vmatpush.msrb.mxu1 %v1181_v49  ;;  %v1229_v1 = vld [vmem:[%s6262_s12 + $0x1c68] sm:$0xff]  ;;  %v1163_v58 = vld [vmem:[%s6262_s12 + $0x1a58] sm:$0xff] }
 0x36f   : > { %4951 = vmatpush.msrb.mxu2 %v1211_v63  ;;  %4970 = vmatpush.msrb.mxu3 %v1245_v57  ;;  %v1129_v51 = vld [vmem:[%s6262_s12 + $0x1948] sm:$0xff]  ;;  %v1227_v32 = vld [vmem:[%s6262_s12 + $0x1c58] sm:$0xff] }
 0x370   : > { %4912 = vmatpush.msrb.mxu0 %v1145_v47  ;;  %4931 = vmatpush.msrb.mxu1 %v1179_v38  ;;  %v1193_v17 = vld [vmem:[%s6262_s12 + $0x1b48] sm:$0xff]  ;;  %v1127_v5 = vld [vmem:[%s6262_s12 + $0x1938] sm:$0xff] }
 0x371   : > { %4952 = vmatpush.msrb.mxu2 %v1209_v35  ;;  %4971 = vmatpush.msrb.mxu3 %v1243_v19  ;;  %v1161_v12 = vld [vmem:[%s6262_s12 + $0x1a48] sm:$0xff]  ;;  %v1191_v48 = vld [vmem:[%s6262_s12 + $0x1b38] sm:$0xff] }
 0x372   : > { %4913 = vmatpush.msrb.mxu0 %v1143_v61  ;;  %4932 = vmatpush.msrb.mxu1 %v1177_v4  ;;  %v1225_v49 = vld [vmem:[%s6262_s12 + $0x1c48] sm:$0xff]  ;;  %v1159_v57 = vld [vmem:[%s6262_s12 + $0x1a38] sm:$0xff] }
 0x373   : > { %4953 = vmatpush.msrb.mxu2 %v1207_v40  ;;  %4972 = vmatpush.msrb.mxu3 %v1241_v41  ;;  %v1125_v63 = vld [vmem:[%s6262_s12 + $0x1928] sm:$0xff]  ;;  %v1223_v38 = vld [vmem:[%s6262_s12 + $0x1c38] sm:$0xff] }
 0x374   : > { %4914 = vmatpush.msrb.mxu0 %v1141_v3  ;;  %4933 = vmatpush.msrb.mxu1 %v1175_v54  ;;  %v1189_v47 = vld [vmem:[%s6262_s12 + $0x1b28] sm:$0xff]  ;;  %v1123_v35 = vld [vmem:[%s6262_s12 + $0x1918] sm:$0xff] }
 0x375   : > { %4954 = vmatpush.msrb.mxu2 %v1205_v2  ;;  %4973 = vmatpush.msrb.mxu3 %v1239_v39  ;;  %v1157_v19 = vld [vmem:[%s6262_s12 + $0x1a28] sm:$0xff]  ;;  %v1187_v61 = vld [vmem:[%s6262_s12 + $0x1b18] sm:$0xff] }
 0x376   : > { %4915 = vmatpush.msrb.mxu0 %v1139_v15  ;;  %4934 = vmatpush.msrb.mxu1 %v1173_v16  ;;  %v1221_v4 = vld [vmem:[%s6262_s12 + $0x1c28] sm:$0xff]  ;;  %v1155_v41 = vld [vmem:[%s6262_s12 + $0x1a18] sm:$0xff] }
 0x377   : > { %4955 = vmatpush.msrb.mxu2 %v1203_v37  ;;  %4974 = vmatpush.msrb.mxu3 %v1237_v6  ;;  %v1121_v40 = vld [vmem:[%s6262_s12 + $0x1908] sm:$0xff]  ;;  %v1219_v54 = vld [vmem:[%s6262_s12 + $0x1c18] sm:$0xff] }
 0x378   : > { %4916 = vmatpush.msrb.mxu0 %v1137_v9  ;;  %4935 = vmatpush.msrb.mxu1 %v1171_v59  ;;  %v1185_v3 = vld [vmem:[%s6262_s12 + $0x1b08] sm:$0xff]  ;;  %v1279_v2 = vld [vmem:[%s6262_s12 + $0x1df8] sm:$0xff] }
 0x379   : > { %4956 = vmatpush.msrb.mxu2 %v1201_v10  ;;  %4975 = vmatpush.msrb.mxu3 %v1235_v34  ;;  %v1343_v39 = vld [vmem:[%s6262_s12 + $0x1ff8] sm:$0xff]  ;;  %v1153_v15 = vld [vmem:[%s6262_s12 + $0x1a08] sm:$0xff] }
 0x37a   : > { %4917 = vmatpush.msrb.mxu0 %v1135_v43  ;;  %4936 = vmatpush.msrb.mxu1 %v1169_v46  ;;  %v1217_v16 = vld [vmem:[%s6262_s12 + $0x1c08] sm:$0xff]  ;;  %v1311_v6 = vld [vmem:[%s6262_s12 + $0x1ef8] sm:$0xff] }
 0x37b   : > { %4957 = vmatpush.msrb.mxu2 %v1199_v31  ;;  %4976 = vmatpush.msrb.mxu3 %v1233_v0  ;;  %v1277_v37 = vld [vmem:[%s6262_s12 + $0x1de8] sm:$0xff]  ;;  %v1375_v59 = vld [vmem:[%s6262_s12 + $0x20f8] sm:$0xff] }
 0x37c   : > { %4918 = vmatpush.msrb.mxu0 %v1133_v30  ;;  %4937 = vmatpush.msrb.mxu1 %v1167_v55  ;;  %v1341_v9 = vld [vmem:[%s6262_s12 + $0x1fe8] sm:$0xff]  ;;  %v1339_v10 = vld [vmem:[%s6262_s12 + $0x1fd8] sm:$0xff] }
 0x37d   : > { %4958 = vmatpush.msrb.mxu2 %v1197_v42  ;;  %4977 = vmatpush.msrb.mxu3 %v1231_v8  ;;  %v1373_v34 = vld [vmem:[%s6262_s12 + $0x20e8] sm:$0xff]  ;;  %v1307_v46 = vld [vmem:[%s6262_s12 + $0x1ed8] sm:$0xff] }
 0x37e   : > { %4919 = vmatpush.msrb.mxu0 %v1131_v29  ;;  %4938 = vmatpush.msrb.mxu1 %v1165_v62  ;;  %v1273_v43 = vld [vmem:[%s6262_s12 + $0x1dc8] sm:$0xff]  ;;  %v1271_v31 = vld [vmem:[%s6262_s12 + $0x1db8] sm:$0xff] }
 0x37f   : > { %4959 = vmatpush.msrb.mxu2 %v1195_v56  ;;  %4978 = vmatpush.msrb.mxu3 %v1229_v1  ;;  %v1305_v0 = vld [vmem:[%s6262_s12 + $0x1ec8] sm:$0xff]  ;;  %v1335_v30 = vld [vmem:[%s6262_s12 + $0x1fb8] sm:$0xff] }
 0x380   : > { %4920 = vmatpush.msrb.mxu0 %v1129_v51  ;;  %4939 = vmatpush.msrb.mxu1 %v1163_v58  ;;  %v1369_v55 = vld [vmem:[%s6262_s12 + $0x20c8] sm:$0xff]  ;;  %v1303_v8 = vld [vmem:[%s6262_s12 + $0x1eb8] sm:$0xff] }
 0x381   : > { %4960 = vmatpush.msrb.mxu2 %v1193_v17  ;;  %4979 = vmatpush.msrb.mxu3 %v1227_v32  ;;  %v1269_v42 = vld [vmem:[%s6262_s12 + $0x1da8] sm:$0xff]  ;;  %v1367_v62 = vld [vmem:[%s6262_s12 + $0x20b8] sm:$0xff] }
 0x382   : > { %4921 = vmatpush.msrb.mxu0 %v1127_v5  ;;  %4940 = vmatpush.msrb.mxu1 %v1161_v12  ;;  %v1333_v29 = vld [vmem:[%s6262_s12 + $0x1fa8] sm:$0xff]  ;;  %v1267_v56 = vld [vmem:[%s6262_s12 + $0x1d98] sm:$0xff] }
 0x383   : > { %4961 = vmatpush.msrb.mxu2 %v1191_v48  ;;  %4980 = vmatpush.msrb.mxu3 %v1225_v49  ;;  %v1301_v1 = vld [vmem:[%s6262_s12 + $0x1ea8] sm:$0xff]  ;;  %v1331_v51 = vld [vmem:[%s6262_s12 + $0x1f98] sm:$0xff] }
 0x384   : > { %4922 = vmatpush.msrb.mxu0 %v1125_v63  ;;  %4941 = vmatpush.msrb.mxu1 %v1159_v57  ;;  %v1365_v58 = vld [vmem:[%s6262_s12 + $0x20a8] sm:$0xff]  ;;  %v1299_v32 = vld [vmem:[%s6262_s12 + $0x1e98] sm:$0xff] }
 0x385   : > { %4962 = vmatpush.msrb.mxu2 %v1189_v47  ;;  %4981 = vmatpush.msrb.mxu3 %v1223_v38  ;;  %v1265_v17 = vld [vmem:[%s6262_s12 + $0x1d88] sm:$0xff]  ;;  %v1363_v12 = vld [vmem:[%s6262_s12 + $0x2098] sm:$0xff] }
 0x386   : > { %4923 = vmatpush.msrb.mxu0 %v1123_v35  ;;  %4942 = vmatpush.msrb.mxu1 %v1157_v19  ;;  %v1329_v5 = vld [vmem:[%s6262_s12 + $0x1f88] sm:$0xff]  ;;  %v1263_v48 = vld [vmem:[%s6262_s12 + $0x1d78] sm:$0xff] }
 0x387   : > { %4963 = vmatpush.msrb.mxu2 %v1187_v61  ;;  %4982 = vmatpush.msrb.mxu3 %v1221_v4  ;;  %v1297_v49 = vld [vmem:[%s6262_s12 + $0x1e88] sm:$0xff]  ;;  %v1327_v63 = vld [vmem:[%s6262_s12 + $0x1f78] sm:$0xff] }
 0x388   : > { %4924 = vmatpush.msrb.mxu0 %v1121_v40  ;;  %4943 = vmatpush.msrb.mxu1 %v1155_v41  ;;  %v1361_v57 = vld [vmem:[%s6262_s12 + $0x2088] sm:$0xff]  ;;  %v1295_v38 = vld [vmem:[%s6262_s12 + $0x1e78] sm:$0xff] }
 0x389   : > { %4964 = vmatpush.msrb.mxu2 %v1185_v3  ;;  %4983 = vmatpush.msrb.mxu3 %v1219_v54  ;;  %v1261_v47 = vld [vmem:[%s6262_s12 + $0x1d68] sm:$0xff]  ;;  %v1359_v19 = vld [vmem:[%s6262_s12 + $0x2078] sm:$0xff] }
 0x38a   : > { %4925 = vmatmul.f32.vlgmr.msrb.gmra.mxu0 %v6801_v25  ;;  %4965 = vmatmul.f32.vlgmr.msrb.gmra.mxu2 %v6803_v26  ;;  %v1275_v25 = vld [vmem:[%s6262_s12 + $0x1dd8] sm:$0xff]  ;;  %v1309_v26 = vld [vmem:[%s6262_s12 + $0x1ee8] sm:$0xff] }
 0x38b   : > { %4989 = vmatpush.msra.mxu0 %v1279_v2  ;;  %5029 = vmatpush.msra.mxu2 %v1343_v39  ;;  %v1325_v35 = vld [vmem:[%s6262_s12 + $0x1f68] sm:$0xff]  ;;  %v1259_v61 = vld [vmem:[%s6262_s12 + $0x1d58] sm:$0xff] }
 0x38c   : > { %4944 = vmatpush.msrb.mxu1 %v1153_v15  ;;  %4984 = vmatpush.msrb.mxu3 %v1217_v16  ;;  %v1293_v4 = vld [vmem:[%s6262_s12 + $0x1e68] sm:$0xff]  ;;  %v1323_v40 = vld [vmem:[%s6262_s12 + $0x1f58] sm:$0xff] }
 0x38d   : > { %4945 = vmatmul.f32.vlgmr.msrb.gmra.mxu1 %v6793_v20  ;;  %4985 = vmatmul.f32.vlgmr.msrb.gmra.mxu3 %v6868_v7  ;;  %v1337_v20 = vld [vmem:[%s6262_s12 + $0x1fc8] sm:$0xff]  ;;  %v1371_v7 = vld [vmem:[%s6262_s12 + $0x20d8] sm:$0xff] }
 0x38e   : > { %4990 = vmatpush.msra.mxu0 %v1277_v37  ;;  %5009 = vmatpush.msra.mxu1 %v1311_v6  ;;  %v1357_v41 = vld [vmem:[%s6262_s12 + $0x2068] sm:$0xff]  ;;  %v1291_v54 = vld [vmem:[%s6262_s12 + $0x1e58] sm:$0xff] }
 0x38f   : > { %5030 = vmatpush.msra.mxu2 %v1341_v9  ;;  %5049 = vmatpush.msra.mxu3 %v1375_v59  ;;  %v1257_v3 = vld [vmem:[%s6262_s12 + $0x1d48] sm:$0xff]  ;;  %v1355_v39 = vld [vmem:[%s6262_s12 + $0x2058] sm:$0xff] }
 0x390   : > { %4991 = vmatpush.msra.mxu0 %v1275_v25  ;;  %5010 = vmatpush.msra.mxu1 %v1309_v26  ;;  %v1321_v2 = vld [vmem:[%s6262_s12 + $0x1f48] sm:$0xff]  ;;  %v1255_v15 = vld [vmem:[%s6262_s12 + $0x1d38] sm:$0xff] }
 0x391   : > { %5031 = vmatpush.msra.mxu2 %v1339_v10  ;;  %5050 = vmatpush.msra.mxu3 %v1373_v34  ;;  %v1289_v16 = vld [vmem:[%s6262_s12 + $0x1e48] sm:$0xff]  ;;  %v1319_v37 = vld [vmem:[%s6262_s12 + $0x1f38] sm:$0xff] }
 0x392   : > { %4992 = vmatpush.msra.mxu0 %v1273_v43  ;;  %5011 = vmatpush.msra.mxu1 %v1307_v46  ;;  %v1353_v6 = vld [vmem:[%s6262_s12 + $0x2048] sm:$0xff]  ;;  %v1287_v59 = vld [vmem:[%s6262_s12 + $0x1e38] sm:$0xff] }
 0x393   : > { %5032 = vmatpush.msra.mxu2 %v1337_v20  ;;  %5051 = vmatpush.msra.mxu3 %v1371_v7  ;;  %v1253_v9 = vld [vmem:[%s6262_s12 + $0x1d28] sm:$0xff]  ;;  %v1351_v26 = vld [vmem:[%s6262_s12 + $0x2038] sm:$0xff] }
 0x394   : > { %4993 = vmatpush.msra.mxu0 %v1271_v31  ;;  %5012 = vmatpush.msra.mxu1 %v1305_v0  ;;  %v1317_v25 = vld [vmem:[%s6262_s12 + $0x1f28] sm:$0xff]  ;;  %v1251_v10 = vld [vmem:[%s6262_s12 + $0x1d18] sm:$0xff] }
 0x395   : > { %5033 = vmatpush.msra.mxu2 %v1335_v30  ;;  %5052 = vmatpush.msra.mxu3 %v1369_v55  ;;  %v1285_v34 = vld [vmem:[%s6262_s12 + $0x1e28] sm:$0xff]  ;;  %v1315_v43 = vld [vmem:[%s6262_s12 + $0x1f18] sm:$0xff] }
 0x396   : > { %4994 = vmatpush.msra.mxu0 %v1269_v42  ;;  %5013 = vmatpush.msra.mxu1 %v1303_v8  ;;  %v1349_v46 = vld [vmem:[%s6262_s12 + $0x2028] sm:$0xff]  ;;  %v1283_v7 = vld [vmem:[%s6262_s12 + $0x1e18] sm:$0xff] }
 0x397   : > { %5034 = vmatpush.msra.mxu2 %v1333_v29  ;;  %5053 = vmatpush.msra.mxu3 %v1367_v62  ;;  %v1249_v20 = vld [vmem:[%s6262_s12 + $0x1d08] sm:$0xff]  ;;  %v1347_v0 = vld [vmem:[%s6262_s12 + $0x2018] sm:$0xff] }
 0x398   : > { %4995 = vmatpush.msra.mxu0 %v1267_v56  ;;  %5014 = vmatpush.msra.mxu1 %v1301_v1  ;;  %v1313_v31 = vld [vmem:[%s6262_s12 + $0x1f08] sm:$0xff]  ;;  %v1407_v30 = vld [vmem:[%s6262_s12 + $0x21f8] sm:$0xff] }
 0x399   : > { %5035 = vmatpush.msra.mxu2 %v1331_v51  ;;  %5054 = vmatpush.msra.mxu3 %v1365_v58  ;;  %v1471_v55 = vld [vmem:[%s6262_s12 + $0x23f8] sm:$0xff]  ;;  %v1281_v42 = vld [vmem:[%s6262_s12 + $0x1e08] sm:$0xff] }
 0x39a   : > { %4996 = vmatpush.msra.mxu0 %v1265_v17  ;;  %5015 = vmatpush.msra.mxu1 %v1299_v32  ;;  %v1345_v8 = vld [vmem:[%s6262_s12 + $0x2008] sm:$0xff]  ;;  %v1439_v62 = vld [vmem:[%s6262_s12 + $0x22f8] sm:$0xff] }
 0x39b   : > { %5036 = vmatpush.msra.mxu2 %v1329_v5  ;;  %5055 = vmatpush.msra.mxu3 %v1363_v12  ;;  %v1405_v29 = vld [vmem:[%s6262_s12 + $0x21e8] sm:$0xff]  ;;  %v1503_v1 = vld [vmem:[%s6262_s12 + $0x24f8] sm:$0xff] }
 0x39c   : > { %4997 = vmatpush.msra.mxu0 %v1263_v48  ;;  %5016 = vmatpush.msra.mxu1 %v1297_v49  ;;  %v1469_v56 = vld [vmem:[%s6262_s12 + $0x23e8] sm:$0xff]  ;;  %v1467_v51 = vld [vmem:[%s6262_s12 + $0x23d8] sm:$0xff] }
 0x39d   : > { %5037 = vmatpush.msra.mxu2 %v1327_v63  ;;  %5056 = vmatpush.msra.mxu3 %v1361_v57  ;;  %v1501_v58 = vld [vmem:[%s6262_s12 + $0x24e8] sm:$0xff]  ;;  %v1435_v32 = vld [vmem:[%s6262_s12 + $0x22d8] sm:$0xff] }
 0x39e   : > { %4998 = vmatpush.msra.mxu0 %v1261_v47  ;;  %5017 = vmatpush.msra.mxu1 %v1295_v38  ;;  %v1401_v17 = vld [vmem:[%s6262_s12 + $0x21c8] sm:$0xff]  ;;  %v1399_v5 = vld [vmem:[%s6262_s12 + $0x21b8] sm:$0xff] }
 0x39f   : > { %5038 = vmatpush.msra.mxu2 %v1325_v35  ;;  %5057 = vmatpush.msra.mxu3 %v1359_v19  ;;  %v1433_v12 = vld [vmem:[%s6262_s12 + $0x22c8] sm:$0xff]  ;;  %v1463_v48 = vld [vmem:[%s6262_s12 + $0x23b8] sm:$0xff] }
 0x3a0   : > { %4999 = vmatpush.msra.mxu0 %v1259_v61  ;;  %5018 = vmatpush.msra.mxu1 %v1293_v4  ;;  %v1497_v49 = vld [vmem:[%s6262_s12 + $0x24c8] sm:$0xff]  ;;  %v1431_v57 = vld [vmem:[%s6262_s12 + $0x22b8] sm:$0xff] }
 0x3a1   : > { %5039 = vmatpush.msra.mxu2 %v1323_v40  ;;  %5058 = vmatpush.msra.mxu3 %v1357_v41  ;;  %v1397_v63 = vld [vmem:[%s6262_s12 + $0x21a8] sm:$0xff]  ;;  %v1495_v38 = vld [vmem:[%s6262_s12 + $0x24b8] sm:$0xff] }
 0x3a2   : > { %5000 = vmatpush.msra.mxu0 %v1257_v3  ;;  %5019 = vmatpush.msra.mxu1 %v1291_v54  ;;  %v1461_v47 = vld [vmem:[%s6262_s12 + $0x23a8] sm:$0xff]  ;;  %v1395_v35 = vld [vmem:[%s6262_s12 + $0x2198] sm:$0xff] }
 0x3a3   : > { %5040 = vmatpush.msra.mxu2 %v1321_v2  ;;  %5059 = vmatpush.msra.mxu3 %v1355_v39  ;;  %v1429_v19 = vld [vmem:[%s6262_s12 + $0x22a8] sm:$0xff]  ;;  %v1459_v61 = vld [vmem:[%s6262_s12 + $0x2398] sm:$0xff] }
 0x3a4   : > { %5001 = vmatpush.msra.mxu0 %v1255_v15  ;;  %5020 = vmatpush.msra.mxu1 %v1289_v16  ;;  %v1493_v4 = vld [vmem:[%s6262_s12 + $0x24a8] sm:$0xff]  ;;  %v1427_v41 = vld [vmem:[%s6262_s12 + $0x2298] sm:$0xff] }
 0x3a5   : > { %5041 = vmatpush.msra.mxu2 %v1319_v37  ;;  %5060 = vmatpush.msra.mxu3 %v1353_v6  ;;  %v1393_v40 = vld [vmem:[%s6262_s12 + $0x2188] sm:$0xff]  ;;  %v1491_v54 = vld [vmem:[%s6262_s12 + $0x2498] sm:$0xff] }
 0x3a6   : > { %5002 = vmatpush.msra.mxu0 %v1253_v9  ;;  %5021 = vmatpush.msra.mxu1 %v1287_v59  ;;  %v1457_v3 = vld [vmem:[%s6262_s12 + $0x2388] sm:$0xff]  ;;  %v1391_v2 = vld [vmem:[%s6262_s12 + $0x2178] sm:$0xff] }
 0x3a7   : > { %5042 = vmatpush.msra.mxu2 %v1317_v25  ;;  %5061 = vmatpush.msra.mxu3 %v1351_v26  ;;  %v1425_v39 = vld [vmem:[%s6262_s12 + $0x2288] sm:$0xff]  ;;  %v1455_v15 = vld [vmem:[%s6262_s12 + $0x2378] sm:$0xff] }
 0x3a8   : > { %5003 = vmatpush.msra.mxu0 %v1251_v10  ;;  %5022 = vmatpush.msra.mxu1 %v1285_v34  ;;  %v1489_v16 = vld [vmem:[%s6262_s12 + $0x2488] sm:$0xff]  ;;  %v1423_v6 = vld [vmem:[%s6262_s12 + $0x2278] sm:$0xff] }
 0x3a9   : > { %5043 = vmatpush.msra.mxu2 %v1315_v43  ;;  %5062 = vmatpush.msra.mxu3 %v1349_v46  ;;  %v1389_v37 = vld [vmem:[%s6262_s12 + $0x2168] sm:$0xff]  ;;  %v1487_v59 = vld [vmem:[%s6262_s12 + $0x2478] sm:$0xff] }
 0x3aa   : > { %5004 = vmatpush.msra.mxu0 %v1249_v20  ;;  %5023 = vmatpush.msra.mxu1 %v1283_v7  ;;  %v1453_v9 = vld [vmem:[%s6262_s12 + $0x2368] sm:$0xff]  ;;  %v1387_v25 = vld [vmem:[%s6262_s12 + $0x2158] sm:$0xff] }
 0x3ab   : > { %5044 = vmatpush.msra.mxu2 %v1313_v31  ;;  %5063 = vmatpush.msra.mxu3 %v1347_v0  ;;  %v1421_v26 = vld [vmem:[%s6262_s12 + $0x2268] sm:$0xff]  ;;  %v1451_v10 = vld [vmem:[%s6262_s12 + $0x2358] sm:$0xff] }
 0x3ac   : > { %5005 = vmatmul.f32.vlgmr.msra.gmra.mxu0 %v6878_v18  ;;  %5045 = vmatmul.f32.vlgmr.msra.gmra.mxu2 %v6880_v21  ;;  %v1403_v18 = vld [vmem:[%s6262_s12 + $0x21d8] sm:$0xff]  ;;  %v1437_v21 = vld [vmem:[%s6262_s12 + $0x22e8] sm:$0xff] }
 0x3ad   : > { %5069 = vmatpush.msrb.mxu0 %v1407_v30  ;;  %5109 = vmatpush.msrb.mxu2 %v1471_v55  ;;  %v1485_v34 = vld [vmem:[%s6262_s12 + $0x2468] sm:$0xff]  ;;  %v1419_v46 = vld [vmem:[%s6262_s12 + $0x2258] sm:$0xff] }
 0x3ae   : > { %5024 = vmatpush.msra.mxu1 %v1281_v42  ;;  %5064 = vmatpush.msra.mxu3 %v1345_v8  ;;  %v1385_v43 = vld [vmem:[%s6262_s12 + $0x2148] sm:$0xff]  ;;  %v1483_v7 = vld [vmem:[%s6262_s12 + $0x2458] sm:$0xff] }
 0x3af   : > { %5025 = vmatmul.f32.vlgmr.msra.gmra.mxu1 %v6870_v11  ;;  %5065 = vmatmul.f32.vlgmr.msra.gmra.mxu3 %v6945_v13  ;;  %v1465_v11 = vld [vmem:[%s6262_s12 + $0x23c8] sm:$0xff]  ;;  %v1499_v13 = vld [vmem:[%s6262_s12 + $0x24d8] sm:$0xff] }
 0x3b0   : > { %5070 = vmatpush.msrb.mxu0 %v1405_v29  ;;  %5089 = vmatpush.msrb.mxu1 %v1439_v62  ;;  %v1449_v20 = vld [vmem:[%s6262_s12 + $0x2348] sm:$0xff]  ;;  %v1383_v31 = vld [vmem:[%s6262_s12 + $0x2138] sm:$0xff] }
 0x3b1   : > { %5110 = vmatpush.msrb.mxu2 %v1469_v56  ;;  %5129 = vmatpush.msrb.mxu3 %v1503_v1  ;;  %v1417_v0 = vld [vmem:[%s6262_s12 + $0x2248] sm:$0xff]  ;;  %v1447_v30 = vld [vmem:[%s6262_s12 + $0x2338] sm:$0xff] }
 0x3b2   : > { %5071 = vmatpush.msrb.mxu0 %v1403_v18  ;;  %5090 = vmatpush.msrb.mxu1 %v1437_v21  ;;  %v1481_v55 = vld [vmem:[%s6262_s12 + $0x2448] sm:$0xff]  ;;  %v1415_v8 = vld [vmem:[%s6262_s12 + $0x2238] sm:$0xff] }
 0x3b3   : > { %5111 = vmatpush.msrb.mxu2 %v1467_v51  ;;  %5130 = vmatpush.msrb.mxu3 %v1501_v58  ;;  %v1381_v42 = vld [vmem:[%s6262_s12 + $0x2128] sm:$0xff]  ;;  %v1479_v62 = vld [vmem:[%s6262_s12 + $0x2438] sm:$0xff] }
 0x3b4   : > { %5072 = vmatpush.msrb.mxu0 %v1401_v17  ;;  %5091 = vmatpush.msrb.mxu1 %v1435_v32  ;;  %v1445_v29 = vld [vmem:[%s6262_s12 + $0x2328] sm:$0xff]  ;;  %v1379_v56 = vld [vmem:[%s6262_s12 + $0x2118] sm:$0xff] }
 0x3b5   : > { %5112 = vmatpush.msrb.mxu2 %v1465_v11  ;;  %5131 = vmatpush.msrb.mxu3 %v1499_v13  ;;  %v1413_v1 = vld [vmem:[%s6262_s12 + $0x2228] sm:$0xff]  ;;  %v1443_v18 = vld [vmem:[%s6262_s12 + $0x2318] sm:$0xff] }
 0x3b6   : > { %5073 = vmatpush.msrb.mxu0 %v1399_v5  ;;  %5092 = vmatpush.msrb.mxu1 %v1433_v12  ;;  %v1477_v21 = vld [vmem:[%s6262_s12 + $0x2428] sm:$0xff]  ;;  %v1411_v58 = vld [vmem:[%s6262_s12 + $0x2218] sm:$0xff] }
 0x3b7   : > { %5113 = vmatpush.msrb.mxu2 %v1463_v48  ;;  %5132 = vmatpush.msrb.mxu3 %v1497_v49  ;;  %v1377_v51 = vld [vmem:[%s6262_s12 + $0x2108] sm:$0xff]  ;;  %v1475_v32 = vld [vmem:[%s6262_s12 + $0x2418] sm:$0xff] }
 0x3b8   : > { %5074 = vmatpush.msrb.mxu0 %v1397_v63  ;;  %5093 = vmatpush.msrb.mxu1 %v1431_v57  ;;  %v1441_v17 = vld [vmem:[%s6262_s12 + $0x2308] sm:$0xff]  ;;  %v1535_v11 = vld [vmem:[%s6262_s12 + $0x25f8] sm:$0xff] }
 0x3b9   : > { %5114 = vmatpush.msrb.mxu2 %v1461_v47  ;;  %5133 = vmatpush.msrb.mxu3 %v1495_v38  ;;  %v1599_v13 = vld [vmem:[%s6262_s12 + $0x27f8] sm:$0xff]  ;;  %v1409_v5 = vld [vmem:[%s6262_s12 + $0x2208] sm:$0xff] }
 0x3ba   : > { %5075 = vmatpush.msrb.mxu0 %v1395_v35  ;;  %5094 = vmatpush.msrb.mxu1 %v1429_v19  ;;  %v1473_v12 = vld [vmem:[%s6262_s12 + $0x2408] sm:$0xff]  ;;  %v1567_v49 = vld [vmem:[%s6262_s12 + $0x26f8] sm:$0xff] }
 0x3bb   : > { %5115 = vmatpush.msrb.mxu2 %v1459_v61  ;;  %5134 = vmatpush.msrb.mxu3 %v1493_v4  ;;  %v1533_v48 = vld [vmem:[%s6262_s12 + $0x25e8] sm:$0xff]  ;;  %v1631_v57 = vld [vmem:[%s6262_s12 + $0x28f8] sm:$0xff] }
 0x3bc   : > { %5076 = vmatpush.msrb.mxu0 %v1393_v40  ;;  %5095 = vmatpush.msrb.mxu1 %v1427_v41  ;;  %v1597_v63 = vld [vmem:[%s6262_s12 + $0x27e8] sm:$0xff]  ;;  %v1595_v47 = vld [vmem:[%s6262_s12 + $0x27d8] sm:$0xff] }
 0x3bd   : > { %5116 = vmatpush.msrb.mxu2 %v1457_v3  ;;  %5135 = vmatpush.msrb.mxu3 %v1491_v54  ;;  %v1629_v38 = vld [vmem:[%s6262_s12 + $0x28e8] sm:$0xff]  ;;  %v1563_v19 = vld [vmem:[%s6262_s12 + $0x26d8] sm:$0xff] }
 0x3be   : > { %5077 = vmatpush.msrb.mxu0 %v1391_v2  ;;  %5096 = vmatpush.msrb.mxu1 %v1425_v39  ;;  %v1529_v35 = vld [vmem:[%s6262_s12 + $0x25c8] sm:$0xff]  ;;  %v1527_v61 = vld [vmem:[%s6262_s12 + $0x25b8] sm:$0xff] }
 0x3bf   : > { %5117 = vmatpush.msrb.mxu2 %v1455_v15  ;;  %5136 = vmatpush.msrb.mxu3 %v1489_v16  ;;  %v1561_v4 = vld [vmem:[%s6262_s12 + $0x26c8] sm:$0xff]  ;;  %v1591_v40 = vld [vmem:[%s6262_s12 + $0x27b8] sm:$0xff] }
 0x3c0   : > { %5078 = vmatpush.msrb.mxu0 %v1389_v37  ;;  %5097 = vmatpush.msrb.mxu1 %v1423_v6  ;;  %v1625_v41 = vld [vmem:[%s6262_s12 + $0x28c8] sm:$0xff]  ;;  %v1559_v54 = vld [vmem:[%s6262_s12 + $0x26b8] sm:$0xff] }
 0x3c1   : > { %5118 = vmatpush.msrb.mxu2 %v1453_v9  ;;  %5137 = vmatpush.msrb.mxu3 %v1487_v59  ;;  %v1525_v3 = vld [vmem:[%s6262_s12 + $0x25a8] sm:$0xff]  ;;  %v1623_v39 = vld [vmem:[%s6262_s12 + $0x28b8] sm:$0xff] }
 0x3c2   : > { %5079 = vmatpush.msrb.mxu0 %v1387_v25  ;;  %5098 = vmatpush.msrb.mxu1 %v1421_v26  ;;  %v1589_v2 = vld [vmem:[%s6262_s12 + $0x27a8] sm:$0xff]  ;;  %v1523_v15 = vld [vmem:[%s6262_s12 + $0x2598] sm:$0xff] }
 0x3c3   : > { %5119 = vmatpush.msrb.mxu2 %v1451_v10  ;;  %5138 = vmatpush.msrb.mxu3 %v1485_v34  ;;  %v1557_v16 = vld [vmem:[%s6262_s12 + $0x26a8] sm:$0xff]  ;;  %v1587_v37 = vld [vmem:[%s6262_s12 + $0x2798] sm:$0xff] }
 0x3c4   : > { %5080 = vmatpush.msrb.mxu0 %v1385_v43  ;;  %5099 = vmatpush.msrb.mxu1 %v1419_v46  ;;  %v1621_v6 = vld [vmem:[%s6262_s12 + $0x28a8] sm:$0xff]  ;;  %v1555_v59 = vld [vmem:[%s6262_s12 + $0x2698] sm:$0xff] }
 0x3c5   : > { %5120 = vmatpush.msrb.mxu2 %v1449_v20  ;;  %5139 = vmatpush.msrb.mxu3 %v1483_v7  ;;  %v1521_v9 = vld [vmem:[%s6262_s12 + $0x2588] sm:$0xff]  ;;  %v1619_v26 = vld [vmem:[%s6262_s12 + $0x2898] sm:$0xff] }
 0x3c6   : > { %5081 = vmatpush.msrb.mxu0 %v1383_v31  ;;  %5100 = vmatpush.msrb.mxu1 %v1417_v0  ;;  %v1585_v25 = vld [vmem:[%s6262_s12 + $0x2788] sm:$0xff]  ;;  %v1519_v10 = vld [vmem:[%s6262_s12 + $0x2578] sm:$0xff] }
 0x3c7   : > { %5121 = vmatpush.msrb.mxu2 %v1447_v30  ;;  %5140 = vmatpush.msrb.mxu3 %v1481_v55  ;;  %v1553_v34 = vld [vmem:[%s6262_s12 + $0x2688] sm:$0xff]  ;;  %v1583_v43 = vld [vmem:[%s6262_s12 + $0x2778] sm:$0xff] }
 0x3c8   : > { %5082 = vmatpush.msrb.mxu0 %v1381_v42  ;;  %5101 = vmatpush.msrb.mxu1 %v1415_v8  ;;  %v1617_v46 = vld [vmem:[%s6262_s12 + $0x2888] sm:$0xff]  ;;  %v1551_v7 = vld [vmem:[%s6262_s12 + $0x2678] sm:$0xff] }
 0x3c9   : > { %5122 = vmatpush.msrb.mxu2 %v1445_v29  ;;  %5141 = vmatpush.msrb.mxu3 %v1479_v62  ;;  %v1517_v20 = vld [vmem:[%s6262_s12 + $0x2568] sm:$0xff]  ;;  %v1615_v0 = vld [vmem:[%s6262_s12 + $0x2878] sm:$0xff] }
 0x3ca   : > { %5083 = vmatpush.msrb.mxu0 %v1379_v56  ;;  %5102 = vmatpush.msrb.mxu1 %v1413_v1  ;;  %v1581_v31 = vld [vmem:[%s6262_s12 + $0x2768] sm:$0xff]  ;;  %v1515_v30 = vld [vmem:[%s6262_s12 + $0x2558] sm:$0xff] }
 0x3cb   : > { %5123 = vmatpush.msrb.mxu2 %v1443_v18  ;;  %5142 = vmatpush.msrb.mxu3 %v1477_v21  ;;  %v1549_v55 = vld [vmem:[%s6262_s12 + $0x2668] sm:$0xff]  ;;  %v1579_v42 = vld [vmem:[%s6262_s12 + $0x2758] sm:$0xff] }
 0x3cc   : > { %5084 = vmatpush.msrb.mxu0 %v1377_v51  ;;  %5103 = vmatpush.msrb.mxu1 %v1411_v58  ;;  %v1613_v8 = vld [vmem:[%s6262_s12 + $0x2868] sm:$0xff]  ;;  %v1547_v62 = vld [vmem:[%s6262_s12 + $0x2658] sm:$0xff] }
 0x3cd   : > { %5124 = vmatpush.msrb.mxu2 %v1441_v17  ;;  %5143 = vmatpush.msrb.mxu3 %v1475_v32  ;;  %v1513_v29 = vld [vmem:[%s6262_s12 + $0x2548] sm:$0xff]  ;;  %v1611_v1 = vld [vmem:[%s6262_s12 + $0x2858] sm:$0xff] }
 0x3ce   : > { %5085 = vmatmul.f32.vlgmr.msrb.gmra.mxu0 %v6955_v27  ;;  %5125 = vmatmul.f32.vlgmr.msrb.gmra.mxu2 %v6957_v28  ;;  %v1531_v27 = vld [vmem:[%s6262_s12 + $0x25d8] sm:$0xff]  ;;  %v1565_v28 = vld [vmem:[%s6262_s12 + $0x26e8] sm:$0xff] }
 0x3cf   : > { %5149 = vmatpush.msra.mxu0 %v1535_v11  ;;  %5189 = vmatpush.msra.mxu2 %v1599_v13  ;;  %v1577_v56 = vld [vmem:[%s6262_s12 + $0x2748] sm:$0xff]  ;;  %v1511_v18 = vld [vmem:[%s6262_s12 + $0x2538] sm:$0xff] }
 0x3d0   : > { %5104 = vmatpush.msrb.mxu1 %v1409_v5  ;;  %5144 = vmatpush.msrb.mxu3 %v1473_v12  ;;  %v1545_v21 = vld [vmem:[%s6262_s12 + $0x2648] sm:$0xff]  ;;  %v1575_v51 = vld [vmem:[%s6262_s12 + $0x2738] sm:$0xff] }
 0x3d1   : > { %5105 = vmatmul.f32.vlgmr.msrb.gmra.mxu1 %v6947_v14  ;;  %5145 = vmatmul.f32.vlgmr.msrb.gmra.mxu3 %v7022_v36  ;;  %v1593_v14 = vld [vmem:[%s6262_s12 + $0x27c8] sm:$0xff]  ;;  %v1627_v36 = vld [vmem:[%s6262_s12 + $0x28d8] sm:$0xff] }
 0x3d2   : > { %5150 = vmatpush.msra.mxu0 %v1533_v48  ;;  %5169 = vmatpush.msra.mxu1 %v1567_v49  ;;  %v1609_v58 = vld [vmem:[%s6262_s12 + $0x2848] sm:$0xff]  ;;  %v1543_v32 = vld [vmem:[%s6262_s12 + $0x2638] sm:$0xff] }
 0x3d3   : > { %5190 = vmatpush.msra.mxu2 %v1597_v63  ;;  %5209 = vmatpush.msra.mxu3 %v1631_v57  ;;  %v1509_v17 = vld [vmem:[%s6262_s12 + $0x2528] sm:$0xff]  ;;  %v1607_v13 = vld [vmem:[%s6262_s12 + $0x2838] sm:$0xff] }
 0x3d4   : > { %5151 = vmatpush.msra.mxu0 %v1531_v27  ;;  %5170 = vmatpush.msra.mxu1 %v1565_v28  ;;  %v1573_v11 = vld [vmem:[%s6262_s12 + $0x2728] sm:$0xff]  ;;  %v1507_v5 = vld [vmem:[%s6262_s12 + $0x2518] sm:$0xff] }
 0x3d5   : > { %5191 = vmatpush.msra.mxu2 %v1595_v47  ;;  %5210 = vmatpush.msra.mxu3 %v1629_v38  ;;  %v1541_v12 = vld [vmem:[%s6262_s12 + $0x2628] sm:$0xff]  ;;  %v1571_v48 = vld [vmem:[%s6262_s12 + $0x2718] sm:$0xff] }
 0x3d6   : > { %5152 = vmatpush.msra.mxu0 %v1529_v35  ;;  %5171 = vmatpush.msra.mxu1 %v1563_v19  ;;  %v1605_v49 = vld [vmem:[%s6262_s12 + $0x2828] sm:$0xff]  ;;  %v1539_v57 = vld [vmem:[%s6262_s12 + $0x2618] sm:$0xff] }
 0x3d7   : > { %5192 = vmatpush.msra.mxu2 %v1593_v14  ;;  %5211 = vmatpush.msra.mxu3 %v1627_v36  ;;  %v1505_v63 = vld [vmem:[%s6262_s12 + $0x2508] sm:$0xff]  ;;  %v1603_v28 = vld [vmem:[%s6262_s12 + $0x2818] sm:$0xff] }
 0x3d8   : > { %5153 = vmatpush.msra.mxu0 %v1527_v61  ;;  %5172 = vmatpush.msra.mxu1 %v1561_v4  ;;  %v1569_v27 = vld [vmem:[%s6262_s12 + $0x2708] sm:$0xff]  ;;  %v1663_v47 = vld [vmem:[%s6262_s12 + $0x29f8] sm:$0xff] }
 0x3d9   : > { %5193 = vmatpush.msra.mxu2 %v1591_v40  ;;  %5212 = vmatpush.msra.mxu3 %v1625_v41  ;;  %v1727_v38 = vld [vmem:[%s6262_s12 + $0x2bf8] sm:$0xff]  ;;  %v1537_v35 = vld [vmem:[%s6262_s12 + $0x2608] sm:$0xff] }
 0x3da   : > { %5154 = vmatpush.msra.mxu0 %v1525_v3  ;;  %5173 = vmatpush.msra.mxu1 %v1559_v54  ;;  %v1601_v19 = vld [vmem:[%s6262_s12 + $0x2808] sm:$0xff]  ;;  %v1695_v36 = vld [vmem:[%s6262_s12 + $0x2af8] sm:$0xff] }
 0x3db   : > { %5194 = vmatpush.msra.mxu2 %v1589_v2  ;;  %5213 = vmatpush.msra.mxu3 %v1623_v39  ;;  %v1661_v14 = vld [vmem:[%s6262_s12 + $0x29e8] sm:$0xff]  ;;  %v1759_v4 = vld [vmem:[%s6262_s12 + $0x2cf8] sm:$0xff] }
 0x3dc   : > { %5155 = vmatpush.msra.mxu0 %v1523_v15  ;;  %5174 = vmatpush.msra.mxu1 %v1557_v16  ;;  %v1725_v61 = vld [vmem:[%s6262_s12 + $0x2be8] sm:$0xff]  ;;  %v1723_v40 = vld [vmem:[%s6262_s12 + $0x2bd8] sm:$0xff] }
 0x3dd   : > { %5195 = vmatpush.msra.mxu2 %v1587_v37  ;;  %5214 = vmatpush.msra.mxu3 %v1621_v6  ;;  %v1757_v41 = vld [vmem:[%s6262_s12 + $0x2ce8] sm:$0xff]  ;;  %v1691_v54 = vld [vmem:[%s6262_s12 + $0x2ad8] sm:$0xff] }
 0x3de   : > { %5156 = vmatpush.msra.mxu0 %v1521_v9  ;;  %5175 = vmatpush.msra.mxu1 %v1555_v59  ;;  %v1657_v3 = vld [vmem:[%s6262_s12 + $0x29c8] sm:$0xff]  ;;  %v1655_v2 = vld [vmem:[%s6262_s12 + $0x29b8] sm:$0xff] }
 0x3df   : > { %5196 = vmatpush.msra.mxu2 %v1585_v25  ;;  %5215 = vmatpush.msra.mxu3 %v1619_v26  ;;  %v1689_v39 = vld [vmem:[%s6262_s12 + $0x2ac8] sm:$0xff]  ;;  %v1719_v15 = vld [vmem:[%s6262_s12 + $0x2bb8] sm:$0xff] }
 0x3e0   : > { %5157 = vmatpush.msra.mxu0 %v1519_v10  ;;  %5176 = vmatpush.msra.mxu1 %v1553_v34  ;;  %v1753_v16 = vld [vmem:[%s6262_s12 + $0x2cc8] sm:$0xff]  ;;  %v1687_v6 = vld [vmem:[%s6262_s12 + $0x2ab8] sm:$0xff] }
 0x3e1   : > { %5197 = vmatpush.msra.mxu2 %v1583_v43  ;;  %5216 = vmatpush.msra.mxu3 %v1617_v46  ;;  %v1653_v37 = vld [vmem:[%s6262_s12 + $0x29a8] sm:$0xff]  ;;  %v1751_v59 = vld [vmem:[%s6262_s12 + $0x2cb8] sm:$0xff] }
 0x3e2   : > { %5158 = vmatpush.msra.mxu0 %v1517_v20  ;;  %5177 = vmatpush.msra.mxu1 %v1551_v7  ;;  %v1717_v9 = vld [vmem:[%s6262_s12 + $0x2ba8] sm:$0xff]  ;;  %v1651_v25 = vld [vmem:[%s6262_s12 + $0x2998] sm:$0xff] }
 0x3e3   : > { %5198 = vmatpush.msra.mxu2 %v1581_v31  ;;  %5217 = vmatpush.msra.mxu3 %v1615_v0  ;;  %v1685_v26 = vld [vmem:[%s6262_s12 + $0x2aa8] sm:$0xff]  ;;  %v1715_v10 = vld [vmem:[%s6262_s12 + $0x2b98] sm:$0xff] }
 0x3e4   : > { %5159 = vmatpush.msra.mxu0 %v1515_v30  ;;  %5178 = vmatpush.msra.mxu1 %v1549_v55  ;;  %v1749_v34 = vld [vmem:[%s6262_s12 + $0x2ca8] sm:$0xff]  ;;  %v1683_v46 = vld [vmem:[%s6262_s12 + $0x2a98] sm:$0xff] }
 0x3e5   : > { %5199 = vmatpush.msra.mxu2 %v1579_v42  ;;  %5218 = vmatpush.msra.mxu3 %v1613_v8  ;;  %v1649_v43 = vld [vmem:[%s6262_s12 + $0x2988] sm:$0xff]  ;;  %v1747_v7 = vld [vmem:[%s6262_s12 + $0x2c98] sm:$0xff] }
 0x3e6   : > { %5160 = vmatpush.msra.mxu0 %v1513_v29  ;;  %5179 = vmatpush.msra.mxu1 %v1547_v62  ;;  %v1713_v20 = vld [vmem:[%s6262_s12 + $0x2b88] sm:$0xff]  ;;  %v1647_v31 = vld [vmem:[%s6262_s12 + $0x2978] sm:$0xff] }
 0x3e7   : > { %5200 = vmatpush.msra.mxu2 %v1577_v56  ;;  %5219 = vmatpush.msra.mxu3 %v1611_v1  ;;  %v1681_v0 = vld [vmem:[%s6262_s12 + $0x2a88] sm:$0xff]  ;;  %v1711_v30 = vld [vmem:[%s6262_s12 + $0x2b78] sm:$0xff] }
 0x3e8   : > { %5161 = vmatpush.msra.mxu0 %v1511_v18  ;;  %5180 = vmatpush.msra.mxu1 %v1545_v21  ;;  %v1745_v55 = vld [vmem:[%s6262_s12 + $0x2c88] sm:$0xff]  ;;  %v1679_v8 = vld [vmem:[%s6262_s12 + $0x2a78] sm:$0xff] }
 0x3e9   : > { %5201 = vmatpush.msra.mxu2 %v1575_v51  ;;  %5220 = vmatpush.msra.mxu3 %v1609_v58  ;;  %v1645_v42 = vld [vmem:[%s6262_s12 + $0x2968] sm:$0xff]  ;;  %v1743_v62 = vld [vmem:[%s6262_s12 + $0x2c78] sm:$0xff] }
 0x3ea   : > { %5162 = vmatpush.msra.mxu0 %v1509_v17  ;;  %5181 = vmatpush.msra.mxu1 %v1543_v32  ;;  %v1709_v29 = vld [vmem:[%s6262_s12 + $0x2b68] sm:$0xff]  ;;  %v1643_v56 = vld [vmem:[%s6262_s12 + $0x2958] sm:$0xff] }
 0x3eb   : > { %5202 = vmatpush.msra.mxu2 %v1573_v11  ;;  %5221 = vmatpush.msra.mxu3 %v1607_v13  ;;  %v1677_v1 = vld [vmem:[%s6262_s12 + $0x2a68] sm:$0xff]  ;;  %v1707_v18 = vld [vmem:[%s6262_s12 + $0x2b58] sm:$0xff] }
 0x3ec   : > { %5163 = vmatpush.msra.mxu0 %v1507_v5  ;;  %5182 = vmatpush.msra.mxu1 %v1541_v12  ;;  %v1741_v21 = vld [vmem:[%s6262_s12 + $0x2c68] sm:$0xff]  ;;  %v1675_v58 = vld [vmem:[%s6262_s12 + $0x2a58] sm:$0xff] }
 0x3ed   : > { %5203 = vmatpush.msra.mxu2 %v1571_v48  ;;  %5222 = vmatpush.msra.mxu3 %v1605_v49  ;;  %v1641_v51 = vld [vmem:[%s6262_s12 + $0x2948] sm:$0xff]  ;;  %v1739_v32 = vld [vmem:[%s6262_s12 + $0x2c58] sm:$0xff] }
 0x3ee   : > { %5164 = vmatpush.msra.mxu0 %v1505_v63  ;;  %5183 = vmatpush.msra.mxu1 %v1539_v57  ;;  %v1705_v17 = vld [vmem:[%s6262_s12 + $0x2b48] sm:$0xff]  ;;  %v1639_v11 = vld [vmem:[%s6262_s12 + $0x2938] sm:$0xff] }
 0x3ef   : > { %5204 = vmatpush.msra.mxu2 %v1569_v27  ;;  %5223 = vmatpush.msra.mxu3 %v1603_v28  ;;  %v1673_v13 = vld [vmem:[%s6262_s12 + $0x2a48] sm:$0xff]  ;;  %v1703_v5 = vld [vmem:[%s6262_s12 + $0x2b38] sm:$0xff] }
 0x3f0   : > { %5165 = vmatmul.f32.vlgmr.msra.gmra.mxu0 %v7032_v52  ;;  %5205 = vmatmul.f32.vlgmr.msra.gmra.mxu2 %v7034_v53  ;;  %v1659_v52 = vld [vmem:[%s6262_s12 + $0x29d8] sm:$0xff]  ;;  %v1693_v53 = vld [vmem:[%s6262_s12 + $0x2ae8] sm:$0xff] }
 0x3f1   : > { %5229 = vmatpush.msrb.mxu0 %v1663_v47  ;;  %5269 = vmatpush.msrb.mxu2 %v1727_v38  ;;  %v1737_v12 = vld [vmem:[%s6262_s12 + $0x2c48] sm:$0xff]  ;;  %v1671_v49 = vld [vmem:[%s6262_s12 + $0x2a38] sm:$0xff] }
 0x3f2   : > { %5184 = vmatpush.msra.mxu1 %v1537_v35  ;;  %5224 = vmatpush.msra.mxu3 %v1601_v19  ;;  %v1637_v48 = vld [vmem:[%s6262_s12 + $0x2928] sm:$0xff]  ;;  %v1735_v57 = vld [vmem:[%s6262_s12 + $0x2c38] sm:$0xff] }
 0x3f3   : > { %5185 = vmatmul.f32.vlgmr.msra.gmra.mxu1 %v7024_v44  ;;  %5225 = vmatmul.f32.vlgmr.msra.gmra.mxu3 %v7099_v23  ;;  %v1721_v44 = vld [vmem:[%s6262_s12 + $0x2bc8] sm:$0xff]  ;;  %v1755_v23 = vld [vmem:[%s6262_s12 + $0x2cd8] sm:$0xff] }
 0x3f4   : > { %5230 = vmatpush.msrb.mxu0 %v1661_v14  ;;  %5249 = vmatpush.msrb.mxu1 %v1695_v36  ;;  %v1701_v63 = vld [vmem:[%s6262_s12 + $0x2b28] sm:$0xff]  ;;  %v1635_v27 = vld [vmem:[%s6262_s12 + $0x2918] sm:$0xff] }
 0x3f5   : > { %5270 = vmatpush.msrb.mxu2 %v1725_v61  ;;  %5289 = vmatpush.msrb.mxu3 %v1759_v4  ;;  %v1669_v28 = vld [vmem:[%s6262_s12 + $0x2a28] sm:$0xff]  ;;  %v1699_v47 = vld [vmem:[%s6262_s12 + $0x2b18] sm:$0xff] }
 0x3f6   : > { %5231 = vmatpush.msrb.mxu0 %v1659_v52  ;;  %5250 = vmatpush.msrb.mxu1 %v1693_v53  ;;  %v1733_v38 = vld [vmem:[%s6262_s12 + $0x2c28] sm:$0xff]  ;;  %v1667_v19 = vld [vmem:[%s6262_s12 + $0x2a18] sm:$0xff] }
 0x3f7   : > { %5271 = vmatpush.msrb.mxu2 %v1723_v40  ;;  %5290 = vmatpush.msrb.mxu3 %v1757_v41  ;;  %v1633_v35 = vld [vmem:[%s6262_s12 + $0x2908] sm:$0xff]  ;;  %v1731_v36 = vld [vmem:[%s6262_s12 + $0x2c18] sm:$0xff] }
 0x3f8   : > { %5232 = vmatpush.msrb.mxu0 %v1657_v3  ;;  %5251 = vmatpush.msrb.mxu1 %v1691_v54  ;;  %v1697_v14 = vld [vmem:[%s6262_s12 + $0x2b08] sm:$0xff]  ;;  %v1791_v61 = vld [vmem:[%s6262_s12 + $0x2df8] sm:$0xff] }
 0x3f9   : > { %5272 = vmatpush.msrb.mxu2 %v1721_v44  ;;  %5291 = vmatpush.msrb.mxu3 %v1755_v23  ;;  %v1855_v4 = vld [vmem:[%s6262_s12 + $0x2ff8] sm:$0xff]  ;;  %v1665_v52 = vld [vmem:[%s6262_s12 + $0x2a08] sm:$0xff] }
 0x3fa   : > { %5233 = vmatpush.msrb.mxu0 %v1655_v2  ;;  %5252 = vmatpush.msrb.mxu1 %v1689_v39  ;;  %v1729_v53 = vld [vmem:[%s6262_s12 + $0x2c08] sm:$0xff]  ;;  %v1823_v41 = vld [vmem:[%s6262_s12 + $0x2ef8] sm:$0xff] }
 0x3fb   : > { %5273 = vmatpush.msrb.mxu2 %v1719_v15  ;;  %5292 = vmatpush.msrb.mxu3 %v1753_v16  ;;  %v1789_v40 = vld [vmem:[%s6262_s12 + $0x2de8] sm:$0xff]  ;;  %v1887_v54 = vld [vmem:[%s6262_s12 + $0x30f8] sm:$0xff] }
 0x3fc   : > { %5234 = vmatpush.msrb.mxu0 %v1653_v37  ;;  %5253 = vmatpush.msrb.mxu1 %v1687_v6  ;;  %v1853_v3 = vld [vmem:[%s6262_s12 + $0x2fe8] sm:$0xff]  ;;  %v1851_v44 = vld [vmem:[%s6262_s12 + $0x2fd8] sm:$0xff] }
 0x3fd   : > { %5274 = vmatpush.msrb.mxu2 %v1717_v9  ;;  %5293 = vmatpush.msrb.mxu3 %v1751_v59  ;;  %v1885_v23 = vld [vmem:[%s6262_s12 + $0x30e8] sm:$0xff]  ;;  %v1819_v39 = vld [vmem:[%s6262_s12 + $0x2ed8] sm:$0xff] }
 0x3fe   : > { %5235 = vmatpush.msrb.mxu0 %v1651_v25  ;;  %5254 = vmatpush.msrb.mxu1 %v1685_v26  ;;  %v1785_v2 = vld [vmem:[%s6262_s12 + $0x2dc8] sm:$0xff]  ;;  %v1783_v15 = vld [vmem:[%s6262_s12 + $0x2db8] sm:$0xff] }
 0x3ff   : > { %5275 = vmatpush.msrb.mxu2 %v1715_v10  ;;  %5294 = vmatpush.msrb.mxu3 %v1749_v34  ;;  %v1817_v16 = vld [vmem:[%s6262_s12 + $0x2ec8] sm:$0xff]  ;;  %v1847_v37 = vld [vmem:[%s6262_s12 + $0x2fb8] sm:$0xff] }
 0x400   : > { %5236 = vmatpush.msrb.mxu0 %v1649_v43  ;;  %5255 = vmatpush.msrb.mxu1 %v1683_v46  ;;  %v1881_v6 = vld [vmem:[%s6262_s12 + $0x30c8] sm:$0xff]  ;;  %v1815_v59 = vld [vmem:[%s6262_s12 + $0x2eb8] sm:$0xff] }
 0x401   : > { %5276 = vmatpush.msrb.mxu2 %v1713_v20  ;;  %5295 = vmatpush.msrb.mxu3 %v1747_v7  ;;  %v1781_v9 = vld [vmem:[%s6262_s12 + $0x2da8] sm:$0xff]  ;;  %v1879_v26 = vld [vmem:[%s6262_s12 + $0x30b8] sm:$0xff] }
 0x402   : > { %5237 = vmatpush.msrb.mxu0 %v1647_v31  ;;  %5256 = vmatpush.msrb.mxu1 %v1681_v0  ;;  %v1845_v25 = vld [vmem:[%s6262_s12 + $0x2fa8] sm:$0xff]  ;;  %v1779_v10 = vld [vmem:[%s6262_s12 + $0x2d98] sm:$0xff] }
 0x403   : > { %5277 = vmatpush.msrb.mxu2 %v1711_v30  ;;  %5296 = vmatpush.msrb.mxu3 %v1745_v55  ;;  %v1813_v34 = vld [vmem:[%s6262_s12 + $0x2ea8] sm:$0xff]  ;;  %v1843_v43 = vld [vmem:[%s6262_s12 + $0x2f98] sm:$0xff] }
 0x404   : > { %5238 = vmatpush.msrb.mxu0 %v1645_v42  ;;  %5257 = vmatpush.msrb.mxu1 %v1679_v8  ;;  %v1877_v46 = vld [vmem:[%s6262_s12 + $0x30a8] sm:$0xff]  ;;  %v1811_v7 = vld [vmem:[%s6262_s12 + $0x2e98] sm:$0xff] }
 0x405   : > { %5278 = vmatpush.msrb.mxu2 %v1709_v29  ;;  %5297 = vmatpush.msrb.mxu3 %v1743_v62  ;;  %v1777_v20 = vld [vmem:[%s6262_s12 + $0x2d88] sm:$0xff]  ;;  %v1875_v0 = vld [vmem:[%s6262_s12 + $0x3098] sm:$0xff] }
 0x406   : > { %5239 = vmatpush.msrb.mxu0 %v1643_v56  ;;  %5258 = vmatpush.msrb.mxu1 %v1677_v1  ;;  %v1841_v31 = vld [vmem:[%s6262_s12 + $0x2f88] sm:$0xff]  ;;  %v1775_v30 = vld [vmem:[%s6262_s12 + $0x2d78] sm:$0xff] }
 0x407   : > { %5279 = vmatpush.msrb.mxu2 %v1707_v18  ;;  %5298 = vmatpush.msrb.mxu3 %v1741_v21  ;;  %v1809_v55 = vld [vmem:[%s6262_s12 + $0x2e88] sm:$0xff]  ;;  %v1839_v42 = vld [vmem:[%s6262_s12 + $0x2f78] sm:$0xff] }
 0x408   : > { %5240 = vmatpush.msrb.mxu0 %v1641_v51  ;;  %5259 = vmatpush.msrb.mxu1 %v1675_v58  ;;  %v1873_v8 = vld [vmem:[%s6262_s12 + $0x3088] sm:$0xff]  ;;  %v1807_v62 = vld [vmem:[%s6262_s12 + $0x2e78] sm:$0xff] }
 0x409   : > { %5280 = vmatpush.msrb.mxu2 %v1705_v17  ;;  %5299 = vmatpush.msrb.mxu3 %v1739_v32  ;;  %v1773_v29 = vld [vmem:[%s6262_s12 + $0x2d68] sm:$0xff]  ;;  %v1871_v1 = vld [vmem:[%s6262_s12 + $0x3078] sm:$0xff] }
 0x40a   : > { %5241 = vmatpush.msrb.mxu0 %v1639_v11  ;;  %5260 = vmatpush.msrb.mxu1 %v1673_v13  ;;  %v1837_v56 = vld [vmem:[%s6262_s12 + $0x2f68] sm:$0xff]  ;;  %v1771_v18 = vld [vmem:[%s6262_s12 + $0x2d58] sm:$0xff] }
 0x40b   : > { %5281 = vmatpush.msrb.mxu2 %v1703_v5  ;;  %5300 = vmatpush.msrb.mxu3 %v1737_v12  ;;  %v1805_v21 = vld [vmem:[%s6262_s12 + $0x2e68] sm:$0xff]  ;;  %v1835_v51 = vld [vmem:[%s6262_s12 + $0x2f58] sm:$0xff] }
 0x40c   : > { %5242 = vmatpush.msrb.mxu0 %v1637_v48  ;;  %5261 = vmatpush.msrb.mxu1 %v1671_v49  ;;  %v1869_v58 = vld [vmem:[%s6262_s12 + $0x3068] sm:$0xff]  ;;  %v1803_v32 = vld [vmem:[%s6262_s12 + $0x2e58] sm:$0xff] }
 0x40d   : > { %5282 = vmatpush.msrb.mxu2 %v1701_v63  ;;  %5301 = vmatpush.msrb.mxu3 %v1735_v57  ;;  %v1769_v17 = vld [vmem:[%s6262_s12 + $0x2d48] sm:$0xff]  ;;  %v1867_v13 = vld [vmem:[%s6262_s12 + $0x3058] sm:$0xff] }
 0x40e   : > { %5243 = vmatpush.msrb.mxu0 %v1635_v27  ;;  %5262 = vmatpush.msrb.mxu1 %v1669_v28  ;;  %v1833_v11 = vld [vmem:[%s6262_s12 + $0x2f48] sm:$0xff]  ;;  %v1767_v5 = vld [vmem:[%s6262_s12 + $0x2d38] sm:$0xff] }
 0x40f   : > { %5283 = vmatpush.msrb.mxu2 %v1699_v47  ;;  %5302 = vmatpush.msrb.mxu3 %v1733_v38  ;;  %v1801_v12 = vld [vmem:[%s6262_s12 + $0x2e48] sm:$0xff]  ;;  %v1831_v48 = vld [vmem:[%s6262_s12 + $0x2f38] sm:$0xff] }
 0x410   : > { %5244 = vmatpush.msrb.mxu0 %v1633_v35  ;;  %5263 = vmatpush.msrb.mxu1 %v1667_v19  ;;  %v1865_v49 = vld [vmem:[%s6262_s12 + $0x3048] sm:$0xff]  ;;  %v1799_v57 = vld [vmem:[%s6262_s12 + $0x2e38] sm:$0xff] }
 0x411   : > { %5284 = vmatpush.msrb.mxu2 %v1697_v14  ;;  %5303 = vmatpush.msrb.mxu3 %v1731_v36  ;;  %v1765_v63 = vld [vmem:[%s6262_s12 + $0x2d28] sm:$0xff]  ;;  %v1863_v28 = vld [vmem:[%s6262_s12 + $0x3038] sm:$0xff] }
 0x412   : > { %5245 = vmatmul.f32.vlgmr.msrb.gmra.mxu0 %v7109_v33  ;;  %5285 = vmatmul.f32.vlgmr.msrb.gmra.mxu2 %v7111_v45  ;;  %v1787_v33 = vld [vmem:[%s6262_s12 + $0x2dd8] sm:$0xff]  ;;  %v1821_v45 = vld [vmem:[%s6262_s12 + $0x2ee8] sm:$0xff] }
 0x413   : > { %5309 = vmatpush.msra.mxu0 %v1791_v61  ;;  %5349 = vmatpush.msra.mxu2 %v1855_v4  ;;  %v1829_v27 = vld [vmem:[%s6262_s12 + $0x2f28] sm:$0xff]  ;;  %v1763_v47 = vld [vmem:[%s6262_s12 + $0x2d18] sm:$0xff] }
 0x414   : > { %5264 = vmatpush.msrb.mxu1 %v1665_v52  ;;  %5304 = vmatpush.msrb.mxu3 %v1729_v53  ;;  %v1797_v38 = vld [vmem:[%s6262_s12 + $0x2e28] sm:$0xff]  ;;  %v1827_v35 = vld [vmem:[%s6262_s12 + $0x2f18] sm:$0xff] }
 0x415   : > { %5265 = vmatmul.f32.vlgmr.msrb.gmra.mxu1 %v7101_v24  ;;  %5305 = vmatmul.f32.vlgmr.msrb.gmra.mxu3 %v7176_v50  ;;  %v1849_v24 = vld [vmem:[%s6262_s12 + $0x2fc8] sm:$0xff]  ;;  %v1883_v50 = vld [vmem:[%s6262_s12 + $0x30d8] sm:$0xff] }
 0x416   : > { %5310 = vmatpush.msra.mxu0 %v1789_v40  ;;  %5329 = vmatpush.msra.mxu1 %v1823_v41  ;;  %v1861_v19 = vld [vmem:[%s6262_s12 + $0x3028] sm:$0xff]  ;;  %v1795_v36 = vld [vmem:[%s6262_s12 + $0x2e18] sm:$0xff] }
 0x417   : > { %5350 = vmatpush.msra.mxu2 %v1853_v3  ;;  %5369 = vmatpush.msra.mxu3 %v1887_v54  ;;  %v1761_v14 = vld [vmem:[%s6262_s12 + $0x2d08] sm:$0xff]  ;;  %v1859_v4 = vld [vmem:[%s6262_s12 + $0x3018] sm:$0xff] }
 0x418   : > { %5311 = vmatpush.msra.mxu0 %v1787_v33  ;;  %5330 = vmatpush.msra.mxu1 %v1821_v45  ;;  %v1825_v61 = vld [vmem:[%s6262_s12 + $0x2f08] sm:$0xff]  ;;  %v1919_v52 = vld [vmem:[%s6262_s12 + $0x31f8] sm:$0xff] }
 0x419   : > { %5351 = vmatpush.msra.mxu2 %v1851_v44  ;;  %5370 = vmatpush.msra.mxu3 %v1885_v23  ;;  %v1983_v53 = vld [vmem:[%s6262_s12 + $0x33f8] sm:$0xff]  ;;  %v1793_v40 = vld [vmem:[%s6262_s12 + $0x2e08] sm:$0xff] }
 0x41a   : > { %5312 = vmatpush.msra.mxu0 %v1785_v2  ;;  %5331 = vmatpush.msra.mxu1 %v1819_v39  ;;  %v1857_v41 = vld [vmem:[%s6262_s12 + $0x3008] sm:$0xff]  ;;  %v9160_v3 = vld [vmem:[#allocation7_spill] sm:$0xff]  ;;  %v9161_v54 = vld [vmem:[#allocation8_spill] sm:$0xff] }
 0x41b   : > { %5352 = vmatpush.msra.mxu2 %v1849_v24  ;;  %5371 = vmatpush.msra.mxu3 %v1883_v50  ;;  %v1917_v33 = vld [vmem:[%s6262_s12 + $0x31e8] sm:$0xff]  ;;  %v1951_v45 = vld [vmem:[%s6262_s12 + $0x32f8] sm:$0xff] }
 0x41c   : > { %5313 = vmatpush.msra.mxu0 %v1783_v15  ;;  %5332 = vmatpush.msra.mxu1 %v1817_v16  ;;  %v1981_v44 = vld [vmem:[%s6262_s12 + $0x33e8] sm:$0xff]  ;;  %v2015_v23 = vld [vmem:[%s6262_s12 + $0x34f8] sm:$0xff] }
 0x41d   : > { %5353 = vmatpush.msra.mxu2 %v1847_v37  ;;  %5372 = vmatpush.msra.mxu3 %v1881_v6  ;;  %v9162_v2 = vld [vmem:[#allocation6_spill] sm:$0xff]  ;;  %v9163_v39 = vld [vmem:[#allocation9_spill] sm:$0xff]  ;;  %v1915_v24 = vld [vmem:[%s6262_s12 + $0x31d8] sm:$0xff] }
 0x41e   : > { %5314 = vmatpush.msra.mxu0 %v1781_v9  ;;  %5333 = vmatpush.msra.mxu1 %v1815_v59  ;;  %v1949_v50 = vld [vmem:[%s6262_s12 + $0x32e8] sm:$0xff]  ;;  %v1979_v15 = vld [vmem:[%s6262_s12 + $0x33d8] sm:$0xff] }
 0x41f   : > { %5354 = vmatpush.msra.mxu2 %v1845_v25  ;;  %5373 = vmatpush.msra.mxu3 %v1879_v26  ;;  %v2013_v16 = vld [vmem:[%s6262_s12 + $0x34e8] sm:$0xff]  ;;  %v1947_v6 = vld [vmem:[%s6262_s12 + $0x32d8] sm:$0xff] }
 0x420   : > { %5315 = vmatpush.msra.mxu0 %v1779_v10  ;;  %5334 = vmatpush.msra.mxu1 %v1813_v34  ;;  %v1913_v37 = vld [vmem:[%s6262_s12 + $0x31c8] sm:$0xff]  ;;  %v2011_v59 = vld [vmem:[%s6262_s12 + $0x34d8] sm:$0xff] }
 0x421   : > { %5355 = vmatpush.msra.mxu2 %v1843_v43  ;;  %5374 = vmatpush.msra.mxu3 %v1877_v46  ;;  %v1977_v9 = vld [vmem:[%s6262_s12 + $0x33c8] sm:$0xff]  ;;  %v1911_v25 = vld [vmem:[%s6262_s12 + $0x31b8] sm:$0xff] }
 0x422   : > { %5316 = vmatpush.msra.mxu0 %v1777_v20  ;;  %5335 = vmatpush.msra.mxu1 %v1811_v7  ;;  %v1945_v26 = vld [vmem:[%s6262_s12 + $0x32c8] sm:$0xff]  ;;  %v1975_v10 = vld [vmem:[%s6262_s12 + $0x33b8] sm:$0xff] }
 0x423   : > { %5356 = vmatpush.msra.mxu2 %v1841_v31  ;;  %5375 = vmatpush.msra.mxu3 %v1875_v0  ;;  %v2009_v34 = vld [vmem:[%s6262_s12 + $0x34c8] sm:$0xff]  ;;  %v1943_v46 = vld [vmem:[%s6262_s12 + $0x32b8] sm:$0xff] }
 0x424   : > { %5317 = vmatpush.msra.mxu0 %v1775_v30  ;;  %5336 = vmatpush.msra.mxu1 %v1809_v55  ;;  %v1909_v43 = vld [vmem:[%s6262_s12 + $0x31a8] sm:$0xff]  ;;  %v2007_v7 = vld [vmem:[%s6262_s12 + $0x34b8] sm:$0xff] }
 0x425   : > { %5357 = vmatpush.msra.mxu2 %v1839_v42  ;;  %5376 = vmatpush.msra.mxu3 %v1873_v8  ;;  %v1973_v20 = vld [vmem:[%s6262_s12 + $0x33a8] sm:$0xff]  ;;  %v1907_v31 = vld [vmem:[%s6262_s12 + $0x3198] sm:$0xff] }
 0x426   : > { %5318 = vmatpush.msra.mxu0 %v1773_v29  ;;  %5337 = vmatpush.msra.mxu1 %v1807_v62  ;;  %v1941_v0 = vld [vmem:[%s6262_s12 + $0x32a8] sm:$0xff]  ;;  %v1971_v30 = vld [vmem:[%s6262_s12 + $0x3398] sm:$0xff] }
 0x427   : > { %5358 = vmatpush.msra.mxu2 %v1837_v56  ;;  %5377 = vmatpush.msra.mxu3 %v1871_v1  ;;  %v2005_v55 = vld [vmem:[%s6262_s12 + $0x34a8] sm:$0xff]  ;;  %v1939_v8 = vld [vmem:[%s6262_s12 + $0x3298] sm:$0xff] }
 0x428   : > { %5319 = vmatpush.msra.mxu0 %v1771_v18  ;;  %5338 = vmatpush.msra.mxu1 %v1805_v21  ;;  %v1905_v42 = vld [vmem:[%s6262_s12 + $0x3188] sm:$0xff]  ;;  %v2003_v62 = vld [vmem:[%s6262_s12 + $0x3498] sm:$0xff] }
 0x429   : > { %5359 = vmatpush.msra.mxu2 %v1835_v51  ;;  %5378 = vmatpush.msra.mxu3 %v1869_v58  ;;  %v1969_v29 = vld [vmem:[%s6262_s12 + $0x3388] sm:$0xff]  ;;  %v1903_v56 = vld [vmem:[%s6262_s12 + $0x3178] sm:$0xff] }
 0x42a   : > { %5320 = vmatpush.msra.mxu0 %v1769_v17  ;;  %5339 = vmatpush.msra.mxu1 %v1803_v32  ;;  %v1937_v1 = vld [vmem:[%s6262_s12 + $0x3288] sm:$0xff]  ;;  %v1967_v18 = vld [vmem:[%s6262_s12 + $0x3378] sm:$0xff] }
 0x42b   : > { %5360 = vmatpush.msra.mxu2 %v1833_v11  ;;  %5379 = vmatpush.msra.mxu3 %v1867_v13  ;;  %v2001_v21 = vld [vmem:[%s6262_s12 + $0x3488] sm:$0xff]  ;;  %v1935_v58 = vld [vmem:[%s6262_s12 + $0x3278] sm:$0xff] }
 0x42c   : > { %5321 = vmatpush.msra.mxu0 %v1767_v5  ;;  %5340 = vmatpush.msra.mxu1 %v1801_v12  ;;  %v1901_v51 = vld [vmem:[%s6262_s12 + $0x3168] sm:$0xff]  ;;  %v1999_v32 = vld [vmem:[%s6262_s12 + $0x3478] sm:$0xff] }
 0x42d   : > { %5361 = vmatpush.msra.mxu2 %v1831_v48  ;;  %5380 = vmatpush.msra.mxu3 %v1865_v49  ;;  %v1965_v17 = vld [vmem:[%s6262_s12 + $0x3368] sm:$0xff]  ;;  %v1899_v11 = vld [vmem:[%s6262_s12 + $0x3158] sm:$0xff] }
 0x42e   : > { %5322 = vmatpush.msra.mxu0 %v1765_v63  ;;  %5341 = vmatpush.msra.mxu1 %v1799_v57  ;;  %v1933_v13 = vld [vmem:[%s6262_s12 + $0x3268] sm:$0xff]  ;;  %v1963_v5 = vld [vmem:[%s6262_s12 + $0x3358] sm:$0xff] }
 0x42f   : > { %5362 = vmatpush.msra.mxu2 %v1829_v27  ;;  %5381 = vmatpush.msra.mxu3 %v1863_v28  ;;  %v1997_v12 = vld [vmem:[%s6262_s12 + $0x3468] sm:$0xff]  ;;  %v1931_v49 = vld [vmem:[%s6262_s12 + $0x3258] sm:$0xff] }
 0x430   : > { %5323 = vmatpush.msra.mxu0 %v1763_v47  ;;  %5342 = vmatpush.msra.mxu1 %v1797_v38  ;;  %v1897_v48 = vld [vmem:[%s6262_s12 + $0x3148] sm:$0xff]  ;;  %v1995_v57 = vld [vmem:[%s6262_s12 + $0x3458] sm:$0xff] }
 0x431   : > { %5363 = vmatpush.msra.mxu2 %v1827_v35  ;;  %5382 = vmatpush.msra.mxu3 %v1861_v19  ;;  %v1961_v63 = vld [vmem:[%s6262_s12 + $0x3348] sm:$0xff]  ;;  %v1895_v27 = vld [vmem:[%s6262_s12 + $0x3138] sm:$0xff] }
 0x432   : > { %5324 = vmatpush.msra.mxu0 %v1761_v14  ;;  %5343 = vmatpush.msra.mxu1 %v1795_v36  ;;  %v1929_v28 = vld [vmem:[%s6262_s12 + $0x3248] sm:$0xff]  ;;  %v1959_v47 = vld [vmem:[%s6262_s12 + $0x3338] sm:$0xff] }
 0x433   : > { %5364 = vmatpush.msra.mxu2 %v1825_v61  ;;  %5383 = vmatpush.msra.mxu3 %v1859_v4  ;;  %v1993_v38 = vld [vmem:[%s6262_s12 + $0x3448] sm:$0xff]  ;;  %v1927_v19 = vld [vmem:[%s6262_s12 + $0x3238] sm:$0xff] }
 0x434   : > { %5325 = vmatmul.f32.vlgmr.msra.gmra.mxu0 %v9160_v3  ;;  %5365 = vmatmul.f32.vlgmr.msra.gmra.mxu2 %v9161_v54  ;;  %v1893_v35 = vld [vmem:[%s6262_s12 + $0x3128] sm:$0xff]  ;;  %v1991_v36 = vld [vmem:[%s6262_s12 + $0x3438] sm:$0xff] }
 0x435   : > { %5389 = vmatpush.msrb.mxu0 %v1919_v52  ;;  %5429 = vmatpush.msrb.mxu2 %v1983_v53  ;;  %v1957_v14 = vld [vmem:[%s6262_s12 + $0x3328] sm:$0xff]  ;;  %v1891_v61 = vld [vmem:[%s6262_s12 + $0x3118] sm:$0xff] }
 0x436   : > { %5344 = vmatpush.msra.mxu1 %v1793_v40  ;;  %5384 = vmatpush.msra.mxu3 %v1857_v41  ;;  %v1925_v4 = vld [vmem:[%s6262_s12 + $0x3228] sm:$0xff]  ;;  %v1955_v52 = vld [vmem:[%s6262_s12 + $0x3318] sm:$0xff] }
 0x437   : > { %5345 = vmatmul.f32.vlgmr.msra.gmra.mxu1 %v9162_v2  ;;  %5385 = vmatmul.f32.vlgmr.msra.gmra.mxu3 %v9163_v39  ;;  %v1989_v53 = vld [vmem:[%s6262_s12 + $0x3428] sm:$0xff]  ;;  %v1923_v41 = vld [vmem:[%s6262_s12 + $0x3218] sm:$0xff] }
 0x438   : > { %5390 = vmatpush.msrb.mxu0 %v1917_v33  ;;  %5409 = vmatpush.msrb.mxu1 %v1951_v45  ;;  %v1889_v40 = vld [vmem:[%s6262_s12 + $0x3108] sm:$0xff]  ;;  %v1987_v54 = vld [vmem:[%s6262_s12 + $0x3418] sm:$0xff] }
 0x439   : > { %5430 = vmatpush.msrb.mxu2 %v1981_v44  ;;  %5449 = vmatpush.msrb.mxu3 %v2015_v23  ;;  %v1953_v3 = vld [vmem:[%s6262_s12 + $0x3308] sm:$0xff]  ;;  %v2047_v33 = vld [vmem:[%s6262_s12 + $0x35f8] sm:$0xff] }
 0x43a   : > { %5391 = vmatpush.msrb.mxu0 %v1915_v24  ;;  %5410 = vmatpush.msrb.mxu1 %v1949_v50  ;;  %v2111_v45 = vld [vmem:[%s6262_s12 + $0x37f8] sm:$0xff]  ;;  %v1921_v44 = vld [vmem:[%s6262_s12 + $0x3208] sm:$0xff] }
 0x43b   : > { %5431 = vmatpush.msrb.mxu2 %v1979_v15  ;;  %5450 = vmatpush.msrb.mxu3 %v2013_v16  ;;  %v1985_v23 = vld [vmem:[%s6262_s12 + $0x3408] sm:$0xff]  ;;  %v9164_v2 = vld [vmem:[#allocation11_spill] sm:$0xff]  ;;  %v9165_v39 = vld [vmem:[#allocation12_spill] sm:$0xff] }
 0x43c   : > { %5392 = vmatpush.msrb.mxu0 %v1913_v37  ;;  %5411 = vmatpush.msrb.mxu1 %v1947_v6  ;;  %v2045_v24 = vld [vmem:[%s6262_s12 + $0x35e8] sm:$0xff]  ;;  %v2079_v50 = vld [vmem:[%s6262_s12 + $0x36f8] sm:$0xff] }
 0x43d   : > { %5432 = vmatpush.msrb.mxu2 %v1977_v9  ;;  %5451 = vmatpush.msrb.mxu3 %v2011_v59  ;;  %v2109_v15 = vld [vmem:[%s6262_s12 + $0x37e8] sm:$0xff]  ;;  %v2143_v16 = vld [vmem:[%s6262_s12 + $0x38f8] sm:$0xff] }
 0x43e   : > { %5393 = vmatpush.msrb.mxu0 %v1911_v25  ;;  %5412 = vmatpush.msrb.mxu1 %v1945_v26  ;;  %v9166_v37 = vld [vmem:[#allocation10_spill] sm:$0xff]  ;;  %v9167_v6 = vld [vmem:[#allocation13_spill] sm:$0xff]  ;;  %v2043_v9 = vld [vmem:[%s6262_s12 + $0x35d8] sm:$0xff] }
 0x43f   : > { %5433 = vmatpush.msrb.mxu2 %v1975_v10  ;;  %5452 = vmatpush.msrb.mxu3 %v2009_v34  ;;  %v2077_v59 = vld [vmem:[%s6262_s12 + $0x36e8] sm:$0xff]  ;;  %v2107_v25 = vld [vmem:[%s6262_s12 + $0x37d8] sm:$0xff] }
 0x440   : > { %5394 = vmatpush.msrb.mxu0 %v1909_v43  ;;  %5413 = vmatpush.msrb.mxu1 %v1943_v46  ;;  %v2141_v26 = vld [vmem:[%s6262_s12 + $0x38e8] sm:$0xff]  ;;  %v2075_v34 = vld [vmem:[%s6262_s12 + $0x36d8] sm:$0xff] }
 0x441   : > { %5434 = vmatpush.msrb.mxu2 %v1973_v20  ;;  %5453 = vmatpush.msrb.mxu3 %v2007_v7  ;;  %v2041_v10 = vld [vmem:[%s6262_s12 + $0x35c8] sm:$0xff]  ;;  %v2139_v46 = vld [vmem:[%s6262_s12 + $0x38d8] sm:$0xff] }
 0x442   : > { %5395 = vmatpush.msrb.mxu0 %v1907_v31  ;;  %5414 = vmatpush.msrb.mxu1 %v1941_v0  ;;  %v2105_v43 = vld [vmem:[%s6262_s12 + $0x37c8] sm:$0xff]  ;;  %v2039_v20 = vld [vmem:[%s6262_s12 + $0x35b8] sm:$0xff] }
 0x443   : > { %5435 = vmatpush.msrb.mxu2 %v1971_v30  ;;  %5454 = vmatpush.msrb.mxu3 %v2005_v55  ;;  %v2073_v7 = vld [vmem:[%s6262_s12 + $0x36c8] sm:$0xff]  ;;  %v2103_v31 = vld [vmem:[%s6262_s12 + $0x37b8] sm:$0xff] }
 0x444   : > { %5396 = vmatpush.msrb.mxu0 %v1905_v42  ;;  %5415 = vmatpush.msrb.mxu1 %v1939_v8  ;;  %v2137_v0 = vld [vmem:[%s6262_s12 + $0x38c8] sm:$0xff]  ;;  %v2071_v55 = vld [vmem:[%s6262_s12 + $0x36b8] sm:$0xff] }
 0x445   : > { %5436 = vmatpush.msrb.mxu2 %v1969_v29  ;;  %5455 = vmatpush.msrb.mxu3 %v2003_v62  ;;  %v2037_v30 = vld [vmem:[%s6262_s12 + $0x35a8] sm:$0xff]  ;;  %v2135_v8 = vld [vmem:[%s6262_s12 + $0x38b8] sm:$0xff] }
 0x446   : > { %5397 = vmatpush.msrb.mxu0 %v1903_v56  ;;  %5416 = vmatpush.msrb.mxu1 %v1937_v1  ;;  %v2101_v42 = vld [vmem:[%s6262_s12 + $0x37a8] sm:$0xff]  ;;  %v2035_v29 = vld [vmem:[%s6262_s12 + $0x3598] sm:$0xff] }
 0x447   : > { %5437 = vmatpush.msrb.mxu2 %v1967_v18  ;;  %5456 = vmatpush.msrb.mxu3 %v2001_v21  ;;  %v2069_v62 = vld [vmem:[%s6262_s12 + $0x36a8] sm:$0xff]  ;;  %v2099_v56 = vld [vmem:[%s6262_s12 + $0x3798] sm:$0xff] }
 0x448   : > { %5398 = vmatpush.msrb.mxu0 %v1901_v51  ;;  %5417 = vmatpush.msrb.mxu1 %v1935_v58  ;;  %v2133_v1 = vld [vmem:[%s6262_s12 + $0x38a8] sm:$0xff]  ;;  %v2067_v21 = vld [vmem:[%s6262_s12 + $0x3698] sm:$0xff] }
 0x449   : > { %5438 = vmatpush.msrb.mxu2 %v1965_v17  ;;  %5457 = vmatpush.msrb.mxu3 %v1999_v32  ;;  %v2033_v18 = vld [vmem:[%s6262_s12 + $0x3588] sm:$0xff]  ;;  %v2131_v58 = vld [vmem:[%s6262_s12 + $0x3898] sm:$0xff] }
 0x44a   : > { %5399 = vmatpush.msrb.mxu0 %v1899_v11  ;;  %5418 = vmatpush.msrb.mxu1 %v1933_v13  ;;  %v2097_v51 = vld [vmem:[%s6262_s12 + $0x3788] sm:$0xff]  ;;  %v2031_v17 = vld [vmem:[%s6262_s12 + $0x3578] sm:$0xff] }
 0x44b   : > { %5439 = vmatpush.msrb.mxu2 %v1963_v5  ;;  %5458 = vmatpush.msrb.mxu3 %v1997_v12  ;;  %v2065_v32 = vld [vmem:[%s6262_s12 + $0x3688] sm:$0xff]  ;;  %v2095_v11 = vld [vmem:[%s6262_s12 + $0x3778] sm:$0xff] }
 0x44c   : > { %5400 = vmatpush.msrb.mxu0 %v1897_v48  ;;  %5419 = vmatpush.msrb.mxu1 %v1931_v49  ;;  %v2129_v13 = vld [vmem:[%s6262_s12 + $0x3888] sm:$0xff]  ;;  %v2063_v12 = vld [vmem:[%s6262_s12 + $0x3678] sm:$0xff] }
 0x44d   : > { %5440 = vmatpush.msrb.mxu2 %v1961_v63  ;;  %5459 = vmatpush.msrb.mxu3 %v1995_v57  ;;  %v2029_v5 = vld [vmem:[%s6262_s12 + $0x3568] sm:$0xff]  ;;  %v2127_v49 = vld [vmem:[%s6262_s12 + $0x3878] sm:$0xff] }
 0x44e   : > { %5401 = vmatpush.msrb.mxu0 %v1895_v27  ;;  %5420 = vmatpush.msrb.mxu1 %v1929_v28  ;;  %v2093_v48 = vld [vmem:[%s6262_s12 + $0x3768] sm:$0xff]  ;;  %v2027_v63 = vld [vmem:[%s6262_s12 + $0x3558] sm:$0xff] }
 0x44f   : > { %5441 = vmatpush.msrb.mxu2 %v1959_v47  ;;  %5460 = vmatpush.msrb.mxu3 %v1993_v38  ;;  %v2061_v57 = vld [vmem:[%s6262_s12 + $0x3668] sm:$0xff]  ;;  %v2091_v27 = vld [vmem:[%s6262_s12 + $0x3758] sm:$0xff] }
 0x450   : > { %5402 = vmatpush.msrb.mxu0 %v1893_v35  ;;  %5421 = vmatpush.msrb.mxu1 %v1927_v19  ;;  %v2125_v28 = vld [vmem:[%s6262_s12 + $0x3868] sm:$0xff]  ;;  %v2059_v38 = vld [vmem:[%s6262_s12 + $0x3658] sm:$0xff] }
 0x451   : > { %5442 = vmatpush.msrb.mxu2 %v1957_v14  ;;  %5461 = vmatpush.msrb.mxu3 %v1991_v36  ;;  %v2025_v47 = vld [vmem:[%s6262_s12 + $0x3548] sm:$0xff]  ;;  %v2123_v19 = vld [vmem:[%s6262_s12 + $0x3858] sm:$0xff] }
 0x452   : > { %5403 = vmatpush.msrb.mxu0 %v1891_v61  ;;  %5422 = vmatpush.msrb.mxu1 %v1925_v4  ;;  %v2089_v35 = vld [vmem:[%s6262_s12 + $0x3748] sm:$0xff]  ;;  %v2023_v14 = vld [vmem:[%s6262_s12 + $0x3538] sm:$0xff] }
 0x453   : > { %5443 = vmatpush.msrb.mxu2 %v1955_v52  ;;  %5462 = vmatpush.msrb.mxu3 %v1989_v53  ;;  %v2057_v36 = vld [vmem:[%s6262_s12 + $0x3648] sm:$0xff]  ;;  %v2087_v61 = vld [vmem:[%s6262_s12 + $0x3738] sm:$0xff] }
 0x454   : > { %5404 = vmatpush.msrb.mxu0 %v1889_v40  ;;  %5423 = vmatpush.msrb.mxu1 %v1923_v41  ;;  %v2121_v4 = vld [vmem:[%s6262_s12 + $0x3848] sm:$0xff]  ;;  %v2055_v53 = vld [vmem:[%s6262_s12 + $0x3638] sm:$0xff] }
 0x455   : > { %5444 = vmatpush.msrb.mxu2 %v1953_v3  ;;  %5463 = vmatpush.msrb.mxu3 %v1987_v54  ;;  %v2021_v52 = vld [vmem:[%s6262_s12 + $0x3528] sm:$0xff]  ;;  %v2119_v41 = vld [vmem:[%s6262_s12 + $0x3838] sm:$0xff] }
 0x456   : > { %5405 = vmatmul.f32.vlgmr.msrb.gmra.mxu0 %v9164_v2  ;;  %5445 = vmatmul.f32.vlgmr.msrb.gmra.mxu2 %v9165_v39  ;;  %v2085_v40 = vld [vmem:[%s6262_s12 + $0x3728] sm:$0xff]  ;;  %v2019_v3 = vld [vmem:[%s6262_s12 + $0x3518] sm:$0xff] }
 0x457   : > { %5469 = vmatpush.msra.mxu0 %v2047_v33  ;;  %5509 = vmatpush.msra.mxu2 %v2111_v45  ;;  %v2053_v54 = vld [vmem:[%s6262_s12 + $0x3628] sm:$0xff]  ;;  %v2083_v33 = vld [vmem:[%s6262_s12 + $0x3718] sm:$0xff] }
 0x458   : > { %5424 = vmatpush.msrb.mxu1 %v1921_v44  ;;  %5464 = vmatpush.msrb.mxu3 %v1985_v23  ;;  %v2117_v45 = vld [vmem:[%s6262_s12 + $0x3828] sm:$0xff]  ;;  %v2051_v23 = vld [vmem:[%s6262_s12 + $0x3618] sm:$0xff] }
 0x459   : > { %5425 = vmatmul.f32.vlgmr.msrb.gmra.mxu1 %v9166_v37  ;;  %5465 = vmatmul.f32.vlgmr.msrb.gmra.mxu3 %v9167_v6  ;;  %v2017_v44 = vld [vmem:[%s6262_s12 + $0x3508] sm:$0xff]  ;;  %v2115_v39 = vld [vmem:[%s6262_s12 + $0x3818] sm:$0xff] }
 0x45a   : > { %5470 = vmatpush.msra.mxu0 %v2045_v24  ;;  %5489 = vmatpush.msra.mxu1 %v2079_v50  ;;  %v2081_v2 = vld [vmem:[%s6262_s12 + $0x3708] sm:$0xff]  ;;  %v2175_v24 = vld [vmem:[%s6262_s12 + $0x39f8] sm:$0xff] }
 0x45b   : > { %5510 = vmatpush.msra.mxu2 %v2109_v15  ;;  %5529 = vmatpush.msra.mxu3 %v2143_v16  ;;  %v2239_v50 = vld [vmem:[%s6262_s12 + $0x3bf8] sm:$0xff]  ;;  %v2049_v15 = vld [vmem:[%s6262_s12 + $0x3608] sm:$0xff] }
 0x45c   : > { %5471 = vmatpush.msra.mxu0 %v2043_v9  ;;  %5490 = vmatpush.msra.mxu1 %v2077_v59  ;;  %v2113_v16 = vld [vmem:[%s6262_s12 + $0x3808] sm:$0xff]  ;;  %v9168_v37 = vld [vmem:[#allocation15_spill] sm:$0xff]  ;;  %v9169_v6 = vld [vmem:[#allocation16_spill] sm:$0xff] }
 0x45d   : > { %5511 = vmatpush.msra.mxu2 %v2107_v25  ;;  %5530 = vmatpush.msra.mxu3 %v2141_v26  ;;  %v2173_v9 = vld [vmem:[%s6262_s12 + $0x39e8] sm:$0xff]  ;;  %v2207_v59 = vld [vmem:[%s6262_s12 + $0x3af8] sm:$0xff] }
 0x45e   : > { %5472 = vmatpush.msra.mxu0 %v2041_v10  ;;  %5491 = vmatpush.msra.mxu1 %v2075_v34  ;;  %v2237_v25 = vld [vmem:[%s6262_s12 + $0x3be8] sm:$0xff]  ;;  %v2271_v26 = vld [vmem:[%s6262_s12 + $0x3cf8] sm:$0xff] }
 0x45f   : > { %5512 = vmatpush.msra.mxu2 %v2105_v43  ;;  %5531 = vmatpush.msra.mxu3 %v2139_v46  ;;  %v9170_v10 = vld [vmem:[#allocation14_spill] sm:$0xff]  ;;  %v2171_v34 = vld [vmem:[%s6262_s12 + $0x39d8] sm:$0xff] }
 0x460   : > { %5473 = vmatpush.msra.mxu0 %v2039_v20  ;;  %5492 = vmatpush.msra.mxu1 %v2073_v7  ;;  %v2205_v43 = vld [vmem:[%s6262_s12 + $0x3ae8] sm:$0xff]  ;;  %v2235_v46 = vld [vmem:[%s6262_s12 + $0x3bd8] sm:$0xff] }
 0x461   : > { %5513 = vmatpush.msra.mxu2 %v2103_v31  ;;  %5532 = vmatpush.msra.mxu3 %v2137_v0  ;;  %v2269_v20 = vld [vmem:[%s6262_s12 + $0x3ce8] sm:$0xff]  ;;  %v2203_v31 = vld [vmem:[%s6262_s12 + $0x3ad8] sm:$0xff] }
 0x462   : > { %5474 = vmatpush.msra.mxu0 %v2037_v30  ;;  %5493 = vmatpush.msra.mxu1 %v2071_v55  ;;  %v2169_v7 = vld [vmem:[%s6262_s12 + $0x39c8] sm:$0xff]  ;;  %v2167_v30 = vld [vmem:[%s6262_s12 + $0x39b8] sm:$0xff] }
 0x463   : > { %5514 = vmatpush.msra.mxu2 %v2101_v42  ;;  %5533 = vmatpush.msra.mxu3 %v2135_v8  ;;  %v2233_v0 = vld [vmem:[%s6262_s12 + $0x3bc8] sm:$0xff]  ;;  %v2231_v42 = vld [vmem:[%s6262_s12 + $0x3bb8] sm:$0xff] }
 0x464   : > { %5475 = vmatpush.msra.mxu0 %v2035_v29  ;;  %5494 = vmatpush.msra.mxu1 %v2069_v62  ;;  %v2201_v55 = vld [vmem:[%s6262_s12 + $0x3ac8] sm:$0xff]  ;;  %v2199_v62 = vld [vmem:[%s6262_s12 + $0x3ab8] sm:$0xff] }
 0x465   : > { %5515 = vmatpush.msra.mxu2 %v2099_v56  ;;  %5534 = vmatpush.msra.mxu3 %v2133_v1  ;;  %v2265_v8 = vld [vmem:[%s6262_s12 + $0x3cc8] sm:$0xff]  ;;  %v2263_v1 = vld [vmem:[%s6262_s12 + $0x3cb8] sm:$0xff] }
 0x466   : > { %5476 = vmatpush.msra.mxu0 %v2033_v18  ;;  %5495 = vmatpush.msra.mxu1 %v2067_v21  ;;  %v2165_v29 = vld [vmem:[%s6262_s12 + $0x39a8] sm:$0xff]  ;;  %v2163_v18 = vld [vmem:[%s6262_s12 + $0x3998] sm:$0xff] }
 0x467   : > { %5516 = vmatpush.msra.mxu2 %v2097_v51  ;;  %5535 = vmatpush.msra.mxu3 %v2131_v58  ;;  %v2229_v56 = vld [vmem:[%s6262_s12 + $0x3ba8] sm:$0xff]  ;;  %v2227_v51 = vld [vmem:[%s6262_s12 + $0x3b98] sm:$0xff] }
 0x468   : > { %5477 = vmatpush.msra.mxu0 %v2031_v17  ;;  %5496 = vmatpush.msra.mxu1 %v2065_v32  ;;  %v2197_v21 = vld [vmem:[%s6262_s12 + $0x3aa8] sm:$0xff]  ;;  %v2195_v32 = vld [vmem:[%s6262_s12 + $0x3a98] sm:$0xff] }
 0x469   : > { %5517 = vmatpush.msra.mxu2 %v2095_v11  ;;  %5536 = vmatpush.msra.mxu3 %v2129_v13  ;;  %v2261_v58 = vld [vmem:[%s6262_s12 + $0x3ca8] sm:$0xff]  ;;  %v2259_v13 = vld [vmem:[%s6262_s12 + $0x3c98] sm:$0xff] }
 0x46a   : > { %5478 = vmatpush.msra.mxu0 %v2029_v5  ;;  %5497 = vmatpush.msra.mxu1 %v2063_v12  ;;  %v2161_v17 = vld [vmem:[%s6262_s12 + $0x3988] sm:$0xff]  ;;  %v2159_v5 = vld [vmem:[%s6262_s12 + $0x3978] sm:$0xff] }
 0x46b   : > { %5518 = vmatpush.msra.mxu2 %v2093_v48  ;;  %5537 = vmatpush.msra.mxu3 %v2127_v49  ;;  %v2225_v11 = vld [vmem:[%s6262_s12 + $0x3b88] sm:$0xff]  ;;  %v2223_v48 = vld [vmem:[%s6262_s12 + $0x3b78] sm:$0xff] }
 0x46c   : > { %5479 = vmatpush.msra.mxu0 %v2027_v63  ;;  %5498 = vmatpush.msra.mxu1 %v2061_v57  ;;  %v2193_v12 = vld [vmem:[%s6262_s12 + $0x3a88] sm:$0xff]  ;;  %v2191_v57 = vld [vmem:[%s6262_s12 + $0x3a78] sm:$0xff] }
 0x46d   : > { %5519 = vmatpush.msra.mxu2 %v2091_v27  ;;  %5538 = vmatpush.msra.mxu3 %v2125_v28  ;;  %v2257_v49 = vld [vmem:[%s6262_s12 + $0x3c88] sm:$0xff]  ;;  %v2255_v28 = vld [vmem:[%s6262_s12 + $0x3c78] sm:$0xff] }
 0x46e   : > { %5480 = vmatpush.msra.mxu0 %v2025_v47  ;;  %5499 = vmatpush.msra.mxu1 %v2059_v38  ;;  %v2157_v63 = vld [vmem:[%s6262_s12 + $0x3968] sm:$0xff]  ;;  %v2155_v47 = vld [vmem:[%s6262_s12 + $0x3958] sm:$0xff] }
 0x46f   : > { %5520 = vmatpush.msra.mxu2 %v2089_v35  ;;  %5539 = vmatpush.msra.mxu3 %v2123_v19  ;;  %v2221_v27 = vld [vmem:[%s6262_s12 + $0x3b68] sm:$0xff]  ;;  %v2219_v35 = vld [vmem:[%s6262_s12 + $0x3b58] sm:$0xff] }
 0x470   : > { %5481 = vmatpush.msra.mxu0 %v2023_v14  ;;  %5500 = vmatpush.msra.mxu1 %v2057_v36  ;;  %v2189_v38 = vld [vmem:[%s6262_s12 + $0x3a68] sm:$0xff]  ;;  %v2187_v36 = vld [vmem:[%s6262_s12 + $0x3a58] sm:$0xff] }
 0x471   : > { %5521 = vmatpush.msra.mxu2 %v2087_v61  ;;  %5540 = vmatpush.msra.mxu3 %v2121_v4  ;;  %v2253_v19 = vld [vmem:[%s6262_s12 + $0x3c68] sm:$0xff]  ;;  %v2251_v4 = vld [vmem:[%s6262_s12 + $0x3c58] sm:$0xff] }
 0x472   : > { %5482 = vmatpush.msra.mxu0 %v2021_v52  ;;  %5501 = vmatpush.msra.mxu1 %v2055_v53  ;;  %v2153_v14 = vld [vmem:[%s6262_s12 + $0x3948] sm:$0xff]  ;;  %v2151_v52 = vld [vmem:[%s6262_s12 + $0x3938] sm:$0xff] }
 0x473   : > { %5522 = vmatpush.msra.mxu2 %v2085_v40  ;;  %5541 = vmatpush.msra.mxu3 %v2119_v41  ;;  %v2217_v61 = vld [vmem:[%s6262_s12 + $0x3b48] sm:$0xff]  ;;  %v2215_v40 = vld [vmem:[%s6262_s12 + $0x3b38] sm:$0xff] }
 0x474   : > { %5483 = vmatpush.msra.mxu0 %v2019_v3  ;;  %5502 = vmatpush.msra.mxu1 %v2053_v54  ;;  %v2185_v53 = vld [vmem:[%s6262_s12 + $0x3a48] sm:$0xff]  ;;  %v2183_v54 = vld [vmem:[%s6262_s12 + $0x3a38] sm:$0xff] }
 0x475   : > { %5523 = vmatpush.msra.mxu2 %v2083_v33  ;;  %5542 = vmatpush.msra.mxu3 %v2117_v45  ;;  %v2249_v41 = vld [vmem:[%s6262_s12 + $0x3c48] sm:$0xff]  ;;  %v2247_v45 = vld [vmem:[%s6262_s12 + $0x3c38] sm:$0xff] }
 0x476   : > { %5484 = vmatpush.msra.mxu0 %v2017_v44  ;;  %5503 = vmatpush.msra.mxu1 %v2051_v23  ;;  %v2149_v3 = vld [vmem:[%s6262_s12 + $0x3928] sm:$0xff]  ;;  %v2147_v44 = vld [vmem:[%s6262_s12 + $0x3918] sm:$0xff] }
 0x477   : > { %5524 = vmatpush.msra.mxu2 %v2081_v2  ;;  %5543 = vmatpush.msra.mxu3 %v2115_v39  ;;  %v2213_v33 = vld [vmem:[%s6262_s12 + $0x3b28] sm:$0xff]  ;;  %v2211_v2 = vld [vmem:[%s6262_s12 + $0x3b18] sm:$0xff] }
 0x478   : > { %5485 = vmatmul.f32.vlgmr.msra.gmra.mxu0 %v9168_v37  ;;  %5525 = vmatmul.f32.vlgmr.msra.gmra.mxu2 %v9169_v6  ;;  %v2181_v23 = vld [vmem:[%s6262_s12 + $0x3a28] sm:$0xff]  ;;  %v2303_v37 = vld [vmem:[%s6262_s12 + $0x3df8] sm:$0xff] }
 0x479   : > { %5549 = vmatpush.msrb.mxu0 %v2175_v24  ;;  %5589 = vmatpush.msrb.mxu2 %v2239_v50  ;;  %v2245_v39 = vld [vmem:[%s6262_s12 + $0x3c28] sm:$0xff]  ;;  %v2179_v50 = vld [vmem:[%s6262_s12 + $0x3a18] sm:$0xff] }
 0x47a   : > { %5504 = vmatpush.msra.mxu1 %v2049_v15  ;;  %5544 = vmatpush.msra.mxu3 %v2113_v16  ;;  %v2145_v24 = vld [vmem:[%s6262_s12 + $0x3908] sm:$0xff]  ;;  %v2243_v16 = vld [vmem:[%s6262_s12 + $0x3c18] sm:$0xff] }
 0x47b   : > { %5505 = vmatmul.f32.vlgmr.msra.gmra.mxu1 %v9170_v10  ;;  %5545 = vmatmul.f32.vlgmr.msra.gmra.mxu3 %v7407_v22  ;;  %v2267_v22 = vld [vmem:[%s6262_s12 + $0x3cd8] sm:$0xff]  ;;  %v2209_v15 = vld [vmem:[%s6262_s12 + $0x3b08] sm:$0xff] }
 0x47c   : > { %5550 = vmatpush.msrb.mxu0 %v2173_v9  ;;  %5569 = vmatpush.msrb.mxu1 %v2207_v59  ;;  %v2367_v6 = vld [vmem:[%s6262_s12 + $0x3ff8] sm:$0xff]  ;;  %v2177_v9 = vld [vmem:[%s6262_s12 + $0x3a08] sm:$0xff] }
 0x47d   : > { %5590 = vmatpush.msrb.mxu2 %v2237_v25  ;;  %5609 = vmatpush.msrb.mxu3 %v2271_v26  ;;  %v2241_v59 = vld [vmem:[%s6262_s12 + $0x3c08] sm:$0xff]  ;;  %v9172_v26 = vld [vmem:[#allocation19_spill] sm:$0xff] }
 0x47e   : > { %5551 = vmatpush.msrb.mxu0 %v2171_v34  ;;  %5570 = vmatpush.msrb.mxu1 %v2205_v43  ;;  %v9171_v25 = vld [vmem:[#allocation18_spill] sm:$0xff]  ;;  %v2335_v34 = vld [vmem:[%s6262_s12 + $0x3ef8] sm:$0xff] }
 0x47f   : > { %5591 = vmatpush.msrb.mxu2 %v2235_v46  ;;  %5610 = vmatpush.msrb.mxu3 %v2269_v20  ;;  %v2301_v10 = vld [vmem:[%s6262_s12 + $0x3de8] sm:$0xff]  ;;  %v2399_v46 = vld [vmem:[%s6262_s12 + $0x40f8] sm:$0xff] }
 0x480   : > { %5552 = vmatpush.msrb.mxu0 %v2169_v7  ;;  %5571 = vmatpush.msrb.mxu1 %v2203_v31  ;;  %v2365_v43 = vld [vmem:[%s6262_s12 + $0x3fe8] sm:$0xff]  ;;  %v9174_v7 = vld [vmem:[#allocation20_spill] sm:$0xff] }
 0x481   : > { %5592 = vmatpush.msrb.mxu2 %v2233_v0  ;;  %5611 = vmatpush.msrb.mxu3 %v2267_v22  ;;  %v9173_v20 = vld [vmem:[#allocation17_spill] sm:$0xff]  ;;  %v2299_v31 = vld [vmem:[%s6262_s12 + $0x3dd8] sm:$0xff] }
 0x482   : > { %5553 = vmatpush.msrb.mxu0 %v2167_v30  ;;  %5572 = vmatpush.msrb.mxu1 %v2201_v55  ;;  %v2333_v0 = vld [vmem:[%s6262_s12 + $0x3ee8] sm:$0xff]  ;;  %v2363_v22 = vld [vmem:[%s6262_s12 + $0x3fd8] sm:$0xff] }
 0x483   : > { %5593 = vmatpush.msrb.mxu2 %v2231_v42  ;;  %5612 = vmatpush.msrb.mxu3 %v2265_v8  ;;  %v2397_v30 = vld [vmem:[%s6262_s12 + $0x40e8] sm:$0xff]  ;;  %v2331_v42 = vld [vmem:[%s6262_s12 + $0x3ed8] sm:$0xff] }
 0x484   : > { %5554 = vmatpush.msrb.mxu0 %v2165_v29  ;;  %5573 = vmatpush.msrb.mxu1 %v2199_v62  ;;  %v2297_v55 = vld [vmem:[%s6262_s12 + $0x3dc8] sm:$0xff]  ;;  %v2395_v29 = vld [vmem:[%s6262_s12 + $0x40d8] sm:$0xff] }
 0x485   : > { %5594 = vmatpush.msrb.mxu2 %v2229_v56  ;;  %5613 = vmatpush.msrb.mxu3 %v2263_v1  ;;  %v2361_v8 = vld [vmem:[%s6262_s12 + $0x3fc8] sm:$0xff]  ;;  %v2295_v62 = vld [vmem:[%s6262_s12 + $0x3db8] sm:$0xff] }
 0x486   : > { %5555 = vmatpush.msrb.mxu0 %v2163_v18  ;;  %5574 = vmatpush.msrb.mxu1 %v2197_v21  ;;  %v2329_v56 = vld [vmem:[%s6262_s12 + $0x3ec8] sm:$0xff]  ;;  %v2359_v1 = vld [vmem:[%s6262_s12 + $0x3fb8] sm:$0xff] }
 0x487   : > { %5595 = vmatpush.msrb.mxu2 %v2227_v51  ;;  %5614 = vmatpush.msrb.mxu3 %v2261_v58  ;;  %v2393_v18 = vld [vmem:[%s6262_s12 + $0x40c8] sm:$0xff]  ;;  %v2327_v51 = vld [vmem:[%s6262_s12 + $0x3eb8] sm:$0xff] }
 0x488   : > { %5556 = vmatpush.msrb.mxu0 %v2161_v17  ;;  %5575 = vmatpush.msrb.mxu1 %v2195_v32  ;;  %v2293_v21 = vld [vmem:[%s6262_s12 + $0x3da8] sm:$0xff]  ;;  %v2391_v17 = vld [vmem:[%s6262_s12 + $0x40b8] sm:$0xff] }
 0x489   : > { %5596 = vmatpush.msrb.mxu2 %v2225_v11  ;;  %5615 = vmatpush.msrb.mxu3 %v2259_v13  ;;  %v2357_v58 = vld [vmem:[%s6262_s12 + $0x3fa8] sm:$0xff]  ;;  %v2291_v32 = vld [vmem:[%s6262_s12 + $0x3d98] sm:$0xff] }
 0x48a   : > { %5557 = vmatpush.msrb.mxu0 %v2159_v5  ;;  %5576 = vmatpush.msrb.mxu1 %v2193_v12  ;;  %v2325_v11 = vld [vmem:[%s6262_s12 + $0x3ea8] sm:$0xff]  ;;  %v2355_v13 = vld [vmem:[%s6262_s12 + $0x3f98] sm:$0xff] }
 0x48b   : > { %5597 = vmatpush.msrb.mxu2 %v2223_v48  ;;  %5616 = vmatpush.msrb.mxu3 %v2257_v49  ;;  %v2389_v5 = vld [vmem:[%s6262_s12 + $0x40a8] sm:$0xff]  ;;  %v2323_v48 = vld [vmem:[%s6262_s12 + $0x3e98] sm:$0xff] }
 0x48c   : > { %5558 = vmatpush.msrb.mxu0 %v2157_v63  ;;  %5577 = vmatpush.msrb.mxu1 %v2191_v57  ;;  %v2289_v12 = vld [vmem:[%s6262_s12 + $0x3d88] sm:$0xff]  ;;  %v2387_v63 = vld [vmem:[%s6262_s12 + $0x4098] sm:$0xff] }
 0x48d   : > { %5598 = vmatpush.msrb.mxu2 %v2221_v27  ;;  %5617 = vmatpush.msrb.mxu3 %v2255_v28  ;;  %v2353_v49 = vld [vmem:[%s6262_s12 + $0x3f88] sm:$0xff]  ;;  %v2287_v57 = vld [vmem:[%s6262_s12 + $0x3d78] sm:$0xff] }
 0x48e   : > { %5559 = vmatpush.msrb.mxu0 %v2155_v47  ;;  %5578 = vmatpush.msrb.mxu1 %v2189_v38  ;;  %v2321_v27 = vld [vmem:[%s6262_s12 + $0x3e88] sm:$0xff]  ;;  %v2351_v28 = vld [vmem:[%s6262_s12 + $0x3f78] sm:$0xff] }
 0x48f   : > { %5599 = vmatpush.msrb.mxu2 %v2219_v35  ;;  %5618 = vmatpush.msrb.mxu3 %v2253_v19  ;;  %v2385_v47 = vld [vmem:[%s6262_s12 + $0x4088] sm:$0xff]  ;;  %v2319_v35 = vld [vmem:[%s6262_s12 + $0x3e78] sm:$0xff] }
 0x490   : > { %5560 = vmatpush.msrb.mxu0 %v2153_v14  ;;  %5579 = vmatpush.msrb.mxu1 %v2187_v36  ;;  %v2285_v38 = vld [vmem:[%s6262_s12 + $0x3d68] sm:$0xff]  ;;  %v2383_v14 = vld [vmem:[%s6262_s12 + $0x4078] sm:$0xff] }
 0x491   : > { %5600 = vmatpush.msrb.mxu2 %v2217_v61  ;;  %5619 = vmatpush.msrb.mxu3 %v2251_v4  ;;  %v2349_v19 = vld [vmem:[%s6262_s12 + $0x3f68] sm:$0xff]  ;;  %v2283_v36 = vld [vmem:[%s6262_s12 + $0x3d58] sm:$0xff] }
 0x492   : > { %5561 = vmatpush.msrb.mxu0 %v2151_v52  ;;  %5580 = vmatpush.msrb.mxu1 %v2185_v53  ;;  %v2317_v61 = vld [vmem:[%s6262_s12 + $0x3e68] sm:$0xff]  ;;  %v2347_v4 = vld [vmem:[%s6262_s12 + $0x3f58] sm:$0xff] }
 0x493   : > { %5601 = vmatpush.msrb.mxu2 %v2215_v40  ;;  %5620 = vmatpush.msrb.mxu3 %v2249_v41  ;;  %v2381_v52 = vld [vmem:[%s6262_s12 + $0x4068] sm:$0xff]  ;;  %v2315_v40 = vld [vmem:[%s6262_s12 + $0x3e58] sm:$0xff] }
 0x494   : > { %5562 = vmatpush.msrb.mxu0 %v2149_v3  ;;  %5581 = vmatpush.msrb.mxu1 %v2183_v54  ;;  %v2281_v53 = vld [vmem:[%s6262_s12 + $0x3d48] sm:$0xff]  ;;  %v2379_v3 = vld [vmem:[%s6262_s12 + $0x4058] sm:$0xff] }
 0x495   : > { %5602 = vmatpush.msrb.mxu2 %v2213_v33  ;;  %5621 = vmatpush.msrb.mxu3 %v2247_v45  ;;  %v2345_v41 = vld [vmem:[%s6262_s12 + $0x3f48] sm:$0xff]  ;;  %v2279_v54 = vld [vmem:[%s6262_s12 + $0x3d38] sm:$0xff] }
 0x496   : > { %5563 = vmatpush.msrb.mxu0 %v2147_v44  ;;  %5582 = vmatpush.msrb.mxu1 %v2181_v23  ;;  %v2313_v33 = vld [vmem:[%s6262_s12 + $0x3e48] sm:$0xff]  ;;  %v2343_v45 = vld [vmem:[%s6262_s12 + $0x3f38] sm:$0xff] }
 0x497   : > { %5603 = vmatpush.msrb.mxu2 %v2211_v2  ;;  %5622 = vmatpush.msrb.mxu3 %v2245_v39  ;;  %v2377_v44 = vld [vmem:[%s6262_s12 + $0x4048] sm:$0xff]  ;;  %v2311_v2 = vld [vmem:[%s6262_s12 + $0x3e38] sm:$0xff] }
 0x498   : > { %5564 = vmatpush.msrb.mxu0 %v2145_v24  ;;  %5583 = vmatpush.msrb.mxu1 %v2179_v50  ;;  %v2277_v23 = vld [vmem:[%s6262_s12 + $0x3d28] sm:$0xff]  ;;  %v2375_v24 = vld [vmem:[%s6262_s12 + $0x4038] sm:$0xff] }
 0x499   : > { %5604 = vmatpush.msrb.mxu2 %v2209_v15  ;;  %5623 = vmatpush.msrb.mxu3 %v2243_v16  ;;  %v2341_v39 = vld [vmem:[%s6262_s12 + $0x3f28] sm:$0xff]  ;;  %v2275_v50 = vld [vmem:[%s6262_s12 + $0x3d18] sm:$0xff] }
 0x49a   : > { %5565 = vmatmul.f32.vlgmr.msrb.gmra.mxu0 %v9171_v25  ;;  %5605 = vmatmul.f32.vlgmr.msrb.gmra.mxu2 %v9172_v26  ;;  %v2309_v15 = vld [vmem:[%s6262_s12 + $0x3e28] sm:$0xff]  ;;  %v2339_v16 = vld [vmem:[%s6262_s12 + $0x3f18] sm:$0xff] }
 0x49b   : > { %5629 = vmatpush.msra.mxu0 %v2303_v37  ;;  %5669 = vmatpush.msra.mxu2 %v2367_v6  ;;  %v2373_v37 = vld [vmem:[%s6262_s12 + $0x4028] sm:$0xff]  ;;  %v2371_v25 = vld [vmem:[%s6262_s12 + $0x4018] sm:$0xff] }
 0x49c   : > { %5584 = vmatpush.msrb.mxu1 %v2177_v9  ;;  %5624 = vmatpush.msrb.mxu3 %v2241_v59  ;;  %v2273_v6 = vld [vmem:[%s6262_s12 + $0x3d08] sm:$0xff]  ;;  %v2307_v9 = vld [vmem:[%s6262_s12 + $0x3e18] sm:$0xff] }
 0x49d   : > { %5585 = vmatmul.f32.vlgmr.msrb.gmra.mxu1 %v9173_v20  ;;  %5625 = vmatmul.f32.vlgmr.msrb.gmra.mxu3 %v9174_v7  ;;  %v2337_v59 = vld [vmem:[%s6262_s12 + $0x3f08] sm:$0xff]  ;;  %v2431_v26 = vld [vmem:[%s6262_s12 + $0x41f8] sm:$0xff]  ;;  %v4446_v7 = vpop.f32.mrf.mxu0 }
 0x49e   : > { %5630 = vmatpush.msra.mxu0 %v2301_v10  ;;  %5649 = vmatpush.msra.mxu1 %v2335_v34  ;;  %v2495_v10 = vld [vmem:[%s6262_s12 + $0x43f8] sm:$0xff]  ;;  %v2305_v34 = vld [vmem:[%s6262_s12 + $0x3e08] sm:$0xff] }
 0x49f   : > { %5670 = vmatpush.msra.mxu2 %v2365_v43  ;;  %5689 = vmatpush.msra.mxu3 %v2399_v46  ;;  %v2369_v43 = vld [vmem:[%s6262_s12 + $0x4008] sm:$0xff]  ;;  %v9176_v20 = vld [vmem:[#allocation23_spill] sm:$0xff] }
 0x4a0   : > { %5631 = vmatpush.msra.mxu0 %v2299_v31  ;;  %5650 = vmatpush.msra.mxu1 %v2333_v0  ;;  %v9175_v46 = vld [vmem:[#allocation22_spill] sm:$0xff]  ;;  %v2463_v0 = vld [vmem:[%s6262_s12 + $0x42f8] sm:$0xff] }
 0x4a1   : > { %5671 = vmatpush.msra.mxu2 %v2363_v22  ;;  %5690 = vmatpush.msra.mxu3 %v2397_v30  ;;  %v2429_v31 = vld [vmem:[%s6262_s12 + $0x41e8] sm:$0xff]  ;;  %v2527_v30 = vld [vmem:[%s6262_s12 + $0x44f8] sm:$0xff] }
 0x4a2   : > { %5632 = vmatpush.msra.mxu0 %v2297_v55  ;;  %5651 = vmatpush.msra.mxu1 %v2331_v42  ;;  %v2493_v22 = vld [vmem:[%s6262_s12 + $0x43e8] sm:$0xff]  ;;  %v4426_v55 = vpop.f32.mrf.mxu3 }
 0x4a3   : > { %5672 = vmatpush.msra.mxu2 %v2361_v8  ;;  %5691 = vmatpush.msra.mxu3 %v2395_v29  ;;  %v9177_v42 = vld [vmem:[#allocation21_spill] sm:$0xff]  ;;  %v9178_v8 = vld [vmem:[#allocation24_spill] sm:$0xff] }
 0x4a4   : > { %5633 = vmatpush.msra.mxu0 %v2295_v62  ;;  %5652 = vmatpush.msra.mxu1 %v2329_v56  ;;  %v2427_v29 = vld [vmem:[%s6262_s12 + $0x41d8] sm:$0xff]  ;;  %v2461_v62 = vld [vmem:[%s6262_s12 + $0x42e8] sm:$0xff]  ;;  %v4447_v56 = vadd.f32 %v4446_v7, %v4426_v55 }
 0x4a5   : > { %5673 = vmatpush.msra.mxu2 %v2359_v1  ;;  %5692 = vmatpush.msra.mxu3 %v2393_v18  ;;  %v2491_v1 = vld [vmem:[%s6262_s12 + $0x43d8] sm:$0xff]  ;;  %v2525_v18 = vld [vmem:[%s6262_s12 + $0x44e8] sm:$0xff] }
 0x4a6   : > { %5634 = vmatpush.msra.mxu0 %v2293_v21  ;;  %5653 = vmatpush.msra.mxu1 %v2327_v51  ;;  %v4466_v21 = vpop.f32.mrf.mxu1  ;;  %v2425_v51 = vld [vmem:[%s6262_s12 + $0x41c8] sm:$0xff]  ;;  %v2403_v55 = vld [vmem:[%s6262_s12 + $0x4118] sm:$0xff] }
 0x4a7   : > { %5674 = vmatpush.msra.mxu2 %v2357_v58  ;;  %5693 = vmatpush.msra.mxu3 %v2391_v17  ;;  %v2459_v58 = vld [vmem:[%s6262_s12 + $0x42d8] sm:$0xff]  ;;  %v2489_v17 = vld [vmem:[%s6262_s12 + $0x43c8] sm:$0xff] }
 0x4a8   : > { %5635 = vmatpush.msra.mxu0 %v2291_v32  ;;  %5654 = vmatpush.msra.mxu1 %v2325_v11  ;;  %v2523_v32 = vld [vmem:[%s6262_s12 + $0x44d8] sm:$0xff] }
 0x4a9   : > { %5675 = vmatpush.msra.mxu2 %v2355_v13  ;;  %5694 = vmatpush.msra.mxu3 %v2389_v5  ;;  %v2423_v11 = vld [vmem:[%s6262_s12 + $0x41b8] sm:$0xff]  ;;  %v2457_v13 = vld [vmem:[%s6262_s12 + $0x42c8] sm:$0xff]  ;;  %v4467_v5 = vadd.f32 %v4466_v21, %v4447_v56 }
 0x4aa   : > { %5636 = vmatpush.msra.mxu0 %v2289_v12  ;;  %5655 = vmatpush.msra.mxu1 %v2323_v48  ;;  %v2487_v12 = vld [vmem:[%s6262_s12 + $0x43b8] sm:$0xff]  ;;  %v2521_v48 = vld [vmem:[%s6262_s12 + $0x44c8] sm:$0xff] }
 0x4ab   : > { %5676 = vmatpush.msra.mxu2 %v2353_v49  ;;  %5695 = vmatpush.msra.mxu3 %v2387_v63  ;;  %v4486_v49 = vpop.f32.mrf.mxu2  ;;  %v2421_v63 = vld [vmem:[%s6262_s12 + $0x41a8] sm:$0xff] }
 0x4ac   : > { %5637 = vmatpush.msra.mxu0 %v2287_v57  ;;  %5656 = vmatpush.msra.mxu1 %v2321_v27  ;;  %v2455_v57 = vld [vmem:[%s6262_s12 + $0x42b8] sm:$0xff]  ;;  %v2485_v27 = vld [vmem:[%s6262_s12 + $0x43a8] sm:$0xff] }
 0x4ad   : > { %5677 = vmatpush.msra.mxu2 %v2351_v28  ;;  %5696 = vmatpush.msra.mxu3 %v2385_v47  ;;  %v2519_v28 = vld [vmem:[%s6262_s12 + $0x44b8] sm:$0xff]  ;;  %v2465_v21 = vld [vmem:[%s6262_s12 + $0x4308] sm:$0xff] }
 0x4ae   : > { %5638 = vmatpush.msra.mxu0 %v2285_v38  ;;  %5657 = vmatpush.msra.mxu1 %v2319_v35  ;;  %v2419_v47 = vld [vmem:[%s6262_s12 + $0x4198] sm:$0xff]  ;;  %v2453_v38 = vld [vmem:[%s6262_s12 + $0x42a8] sm:$0xff]  ;;  %v4487_v35 = vadd.f32 %v4486_v49, %v4467_v5 }
 0x4af   : > { %5678 = vmatpush.msra.mxu2 %v2349_v19  ;;  %5697 = vmatpush.msra.mxu3 %v2383_v14  ;;  %v2483_v19 = vld [vmem:[%s6262_s12 + $0x4398] sm:$0xff]  ;;  %v2517_v14 = vld [vmem:[%s6262_s12 + $0x44a8] sm:$0xff] }
 0x4b0   : > { %5639 = vmatpush.msra.mxu0 %v2283_v36  ;;  %5658 = vmatpush.msra.mxu1 %v2317_v61  ;;  %v4506_v36 = vpop.f32.mrf.mxu3  ;;  %v2417_v61 = vld [vmem:[%s6262_s12 + $0x4188] sm:$0xff]  ;;  %v9180_v49 = vld [vmem:[#allocation27_spill] sm:$0xff] }
 0x4b1   : > { %5679 = vmatpush.msra.mxu2 %v2347_v4  ;;  %5698 = vmatpush.msra.mxu3 %v2381_v52  ;;  %v2451_v4 = vld [vmem:[%s6262_s12 + $0x4298] sm:$0xff]  ;;  %v2481_v52 = vld [vmem:[%s6262_s12 + $0x4388] sm:$0xff] }
 0x4b2   : > { %5640 = vmatpush.msra.mxu0 %v2281_v53  ;;  %5659 = vmatpush.msra.mxu1 %v2315_v40  ;;  %v2515_v53 = vld [vmem:[%s6262_s12 + $0x4498] sm:$0xff]  ;;  %v2497_v5 = vld [vmem:[%s6262_s12 + $0x4408] sm:$0xff] }
 0x4b3   : > { %5680 = vmatpush.msra.mxu2 %v2345_v41  ;;  %5699 = vmatpush.msra.mxu3 %v2379_v3  ;;  %v2415_v40 = vld [vmem:[%s6262_s12 + $0x4178] sm:$0xff]  ;;  %v2449_v41 = vld [vmem:[%s6262_s12 + $0x4288] sm:$0xff]  ;;  %v4507_v3 = vadd.f32 %v4506_v36, %v4487_v35  ;;  %v4566_v7 = vpop.f32.mrf.mxu2 }
 0x4b4   : > { %5641 = vmatpush.msra.mxu0 %v2279_v54  ;;  %5660 = vmatpush.msra.mxu1 %v2313_v33  ;;  %v2479_v54 = vld [vmem:[%s6262_s12 + $0x4378] sm:$0xff]  ;;  %v2513_v33 = vld [vmem:[%s6262_s12 + $0x4488] sm:$0xff] }
 0x4b5   : > { %5681 = vmatpush.msra.mxu2 %v2343_v45  ;;  %5700 = vmatpush.msra.mxu3 %v2377_v44  ;;  %v4526_v45 = vpop.f32.mrf.mxu0  ;;  %v2413_v44 = vld [vmem:[%s6262_s12 + $0x4168] sm:$0xff] }
 0x4b6   : > { %5642 = vmatpush.msra.mxu0 %v2277_v23  ;;  %5661 = vmatpush.msra.mxu1 %v2311_v2  ;;  %v2447_v23 = vld [vmem:[%s6262_s12 + $0x4278] sm:$0xff]  ;;  %v2477_v2 = vld [vmem:[%s6262_s12 + $0x4368] sm:$0xff] }
 0x4b7   : > { %5682 = vmatpush.msra.mxu2 %v2341_v39  ;;  %5701 = vmatpush.msra.mxu3 %v2375_v24  ;;  %v2511_v39 = vld [vmem:[%s6262_s12 + $0x4478] sm:$0xff]  ;;  %v9181_v35 = vld [vmem:[#allocation25_spill] sm:$0xff] }
 0x4b8   : > { %5643 = vmatpush.msra.mxu0 %v2275_v50  ;;  %5662 = vmatpush.msra.mxu1 %v2309_v15  ;;  %v2411_v24 = vld [vmem:[%s6262_s12 + $0x4158] sm:$0xff]  ;;  %v2445_v50 = vld [vmem:[%s6262_s12 + $0x4268] sm:$0xff]  ;;  %v4527_v15 = vadd.f32 %v4526_v45, %v4507_v3  ;;  %v4586_v56 = vpop.f32.mrf.mxu3 }
 0x4b9   : > { %5683 = vmatpush.msra.mxu2 %v2339_v16  ;;  %5702 = vmatpush.msra.mxu3 %v2373_v37  ;;  %v2475_v16 = vld [vmem:[%s6262_s12 + $0x4358] sm:$0xff]  ;;  %v2509_v37 = vld [vmem:[%s6262_s12 + $0x4468] sm:$0xff] }
 0x4ba   : > { %5644 = vmatpush.msra.mxu0 %v2273_v6  ;;  %5663 = vmatpush.msra.mxu1 %v2307_v9  ;;  %v4546_v6 = vpop.f32.mrf.mxu1  ;;  %v2409_v9 = vld [vmem:[%s6262_s12 + $0x4148] sm:$0xff]  ;;  %v2551_v45 = vld [vmem:[%s6262_s12 + $0x45b8] sm:$0xff] }
 0x4bb   : > { %5684 = vmatpush.msra.mxu2 %v2337_v59  ;;  %5703 = vmatpush.msra.mxu3 %v2371_v25  ;;  %v2443_v59 = vld [vmem:[%s6262_s12 + $0x4258] sm:$0xff]  ;;  %v2473_v25 = vld [vmem:[%s6262_s12 + $0x4348] sm:$0xff] }
 0x4bc   : > { %5645 = vmatmul.f32.vlgmr.msra.gmra.mxu0 %v9175_v46  ;;  %5685 = vmatmul.f32.vlgmr.msra.gmra.mxu2 %v9176_v20  ;;  %v2471_v46 = vld [vmem:[%s6262_s12 + $0x4338] sm:$0xff]  ;;  %v2505_v20 = vld [vmem:[%s6262_s12 + $0x4448] sm:$0xff] }
 0x4bd   : > { %5709 = vmatpush.msrb.mxu0 %v2431_v26  ;;  %5749 = vmatpush.msrb.mxu2 %v2495_v10  ;;  %v2507_v26 = vld [vmem:[%s6262_s12 + $0x4458] sm:$0xff]  ;;  %v2589_v36 = vld [vmem:[%s6262_s12 + $0x46e8] sm:$0xff] }
 0x4be   : > { %5664 = vmatpush.msra.mxu1 %v2305_v34  ;;  %5704 = vmatpush.msra.mxu3 %v2369_v43  ;;  %v2407_v10 = vld [vmem:[%s6262_s12 + $0x4138] sm:$0xff]  ;;  %v2441_v34 = vld [vmem:[%s6262_s12 + $0x4248] sm:$0xff]  ;;  %v4547_v43 = vadd.f32 %v4546_v6, %v4527_v15 }
 0x4bf   : > { %5665 = vmatmul.f32.vlgmr.msra.gmra.mxu1 %v9177_v42  ;;  %5705 = vmatmul.f32.vlgmr.msra.gmra.mxu3 %v9178_v8  ;;  %v2437_v42 = vld [vmem:[%s6262_s12 + $0x4228] sm:$0xff]  ;;  %v2547_v6 = vld [vmem:[%s6262_s12 + $0x4598] sm:$0xff] }
 0x4c0   : > { %5710 = vmatpush.msrb.mxu0 %v2429_v31  ;;  %5729 = vmatpush.msrb.mxu1 %v2463_v0  ;;  %v2405_v31 = vld [vmem:[%s6262_s12 + $0x4128] sm:$0xff]  ;;  %v2439_v0 = vld [vmem:[%s6262_s12 + $0x4238] sm:$0xff]  ;;  %v4567_v8 = vadd.f32 %v4566_v7, %v4547_v43 }
 0x4c1   : > { %5750 = vmatpush.msrb.mxu2 %v2493_v22  ;;  %5769 = vmatpush.msrb.mxu3 %v2527_v30  ;;  %v2469_v22 = vld [vmem:[%s6262_s12 + $0x4328] sm:$0xff]  ;;  %v2503_v30 = vld [vmem:[%s6262_s12 + $0x4438] sm:$0xff] }
 0x4c2   : > { %5711 = vmatpush.msrb.mxu0 %v2427_v29  ;;  %5730 = vmatpush.msrb.mxu1 %v2461_v62  ;;  %v2467_v29 = vld [vmem:[%s6262_s12 + $0x4318] sm:$0xff]  ;;  %v2501_v62 = vld [vmem:[%s6262_s12 + $0x4428] sm:$0xff] }
 0x4c3   : > { %5751 = vmatpush.msrb.mxu2 %v2491_v1  ;;  %5770 = vmatpush.msrb.mxu3 %v2525_v18  ;;  %v2401_v1 = vld [vmem:[%s6262_s12 + $0x4108] sm:$0xff]  ;;  %v2435_v18 = vld [vmem:[%s6262_s12 + $0x4218] sm:$0xff] }
 0x4c4   : > { %5712 = vmatpush.msrb.mxu0 %v2425_v51  ;;  %5731 = vmatpush.msrb.mxu1 %v2459_v58  ;;  %v2499_v51 = vld [vmem:[%s6262_s12 + $0x4418] sm:$0xff]  ;;  %v4606_v58 = vpop.f32.mrf.mxu0  ;;  %v2617_v3 = vld [vmem:[%s6262_s12 + $0x47c8] sm:$0xff] }
 0x4c5   : > { %5752 = vmatpush.msrb.mxu2 %v2489_v17  ;;  %5771 = vmatpush.msrb.mxu3 %v2523_v32  ;;  %v4587_v17 = vadd.f32 %v4586_v56, %v4567_v8  ;;  %v2559_v32 = vld [vmem:[%s6262_s12 + $0x45f8] sm:$0xff] }
 0x4c6   : > { %5713 = vmatpush.msrb.mxu0 %v2423_v11  ;;  %5732 = vmatpush.msrb.mxu1 %v2457_v13  ;;  %v2623_v11 = vld [vmem:[%s6262_s12 + $0x47f8] sm:$0xff]  ;;  %v2433_v13 = vld [vmem:[%s6262_s12 + $0x4208] sm:$0xff] }
 0x4c7   : > { %5753 = vmatpush.msrb.mxu2 %v2487_v12  ;;  %5772 = vmatpush.msrb.mxu3 %v2521_v48  ;;  %v4607_v12 = vadd.f32 %v4606_v58, %v4587_v17  ;;  %v9179_v48 = vld [vmem:[#allocation26_spill] sm:$0xff]  ;;  %v2579_v43 = vld [vmem:[%s6262_s12 + $0x4698] sm:$0xff] }
 0x4c8   : > { %5714 = vmatpush.msrb.mxu0 %v2421_v63  ;;  %5733 = vmatpush.msrb.mxu1 %v2455_v57  ;;  %v4626_v63 = vpop.f32.mrf.mxu1  ;;  %v2557_v57 = vld [vmem:[%s6262_s12 + $0x45e8] sm:$0xff]  ;;  %v2575_v8 = vld [vmem:[%s6262_s12 + $0x4678] sm:$0xff] }
 0x4c9   : > { %5754 = vmatpush.msrb.mxu2 %v2485_v27  ;;  %5773 = vmatpush.msrb.mxu3 %v2519_v28  ;;  %v2591_v27 = vld [vmem:[%s6262_s12 + $0x46f8] sm:$0xff]  ;;  %v2621_v28 = vld [vmem:[%s6262_s12 + $0x47e8] sm:$0xff] }
 0x4ca   : > { %5715 = vmatpush.msrb.mxu0 %v2419_v47  ;;  %5734 = vmatpush.msrb.mxu1 %v2453_v38  ;;  %v2655_v47 = vld [vmem:[%s6262_s12 + $0x48f8] sm:$0xff]  ;;  %v4646_v38 = vpop.f32.mrf.mxu2  ;;  %v2637_v58 = vld [vmem:[%s6262_s12 + $0x4868] sm:$0xff] }
 0x4cb   : > { %5755 = vmatpush.msrb.mxu2 %v2483_v19  ;;  %5774 = vmatpush.msrb.mxu3 %v2517_v14  ;;  %v6151_v19 = vld.sshfl [vmem:[#allocation1 + $0x20] sm:$0xff pattern:$0x73625140]  ;;  %v2555_v14 = vld [vmem:[%s6262_s12 + $0x45d8] sm:$0xff] }
 0x4cc   : > { %5716 = vmatpush.msrb.mxu0 %v2417_v61  ;;  %5735 = vmatpush.msrb.mxu1 %v2451_v4  ;;  %v4627_v61 = vadd.f32 %v4626_v63, %v4607_v12  ;;  %v2619_v4 = vld [vmem:[%s6262_s12 + $0x47d8] sm:$0xff] }
 0x4cd   : > { %5756 = vmatpush.msrb.mxu2 %v2481_v52  ;;  %5775 = vmatpush.msrb.mxu3 %v2515_v53  ;;  %v2653_v52 = vld [vmem:[%s6262_s12 + $0x48e8] sm:$0xff]  ;;  %v2639_v56 = vld [vmem:[%s6262_s12 + $0x4878] sm:$0xff] }
 0x4ce   : > { %5717 = vmatpush.msrb.mxu0 %v2415_v40  ;;  %5736 = vmatpush.msrb.mxu1 %v2449_v41  ;;  %v2553_v53 = vld [vmem:[%s6262_s12 + $0x45c8] sm:$0xff]  ;;  %v2587_v40 = vld [vmem:[%s6262_s12 + $0x46d8] sm:$0xff]  ;;  %v4647_v41 = vadd.f32 %v4646_v38, %v4627_v61 }
 0x4cf   : > { %5757 = vmatpush.msrb.mxu2 %v2479_v54  ;;  %5776 = vmatpush.msrb.mxu3 %v2513_v33  ;;  %v2651_v54 = vld [vmem:[%s6262_s12 + $0x48d8] sm:$0xff]  ;;  %v4666_v33 = vpop.f32.mrf.mxu3  ;;  %v2565_v61 = vld [vmem:[%s6262_s12 + $0x4628] sm:$0xff] }
 0x4d0   : > { %5718 = vmatpush.msrb.mxu0 %v2413_v44  ;;  %5737 = vmatpush.msrb.mxu1 %v2447_v23  ;;  %v2585_v44 = vld [vmem:[%s6262_s12 + $0x46c8] sm:$0xff]  ;;  %v2615_v23 = vld [vmem:[%s6262_s12 + $0x47b8] sm:$0xff]  ;;  %v4667_v15 = vadd.f32 %v4666_v33, %v4647_v41 }
 0x4d1   : > { %5758 = vmatpush.msrb.mxu2 %v2477_v2  ;;  %5777 = vmatpush.msrb.mxu3 %v2511_v39  ;;  %v2649_v2 = vld [vmem:[%s6262_s12 + $0x48c8] sm:$0xff]  ;;  %v4686_v39 = vpop.f32.mrf.mxu0  ;;  %v2635_v12 = vld [vmem:[%s6262_s12 + $0x4858] sm:$0xff] }
 0x4d2   : > { %5719 = vmatpush.msrb.mxu0 %v2411_v24  ;;  %5738 = vmatpush.msrb.mxu1 %v2445_v50  ;;  %v2549_v24 = vld [vmem:[%s6262_s12 + $0x45a8] sm:$0xff]  ;;  %v2583_v50 = vld [vmem:[%s6262_s12 + $0x46b8] sm:$0xff]  ;;  %v4726_v7 = vpop.f32.mrf.mxu2 }
 0x4d3   : > { %5759 = vmatpush.msrb.mxu2 %v2475_v16  ;;  %5778 = vmatpush.msrb.mxu3 %v2509_v37  ;;  %v2613_v16 = vld [vmem:[%s6262_s12 + $0x47a8] sm:$0xff]  ;;  %v2647_v37 = vld [vmem:[%s6262_s12 + $0x48b8] sm:$0xff] }
 0x4d4   : > { %5720 = vmatpush.msrb.mxu0 %v2409_v9  ;;  %5739 = vmatpush.msrb.mxu1 %v2443_v59  ;;  %v2581_v9 = vld [vmem:[%s6262_s12 + $0x46a8] sm:$0xff]  ;;  %v4687_v59 = vadd.f32 %v4686_v39, %v4667_v15  ;;  %v2567_v38 = vld [vmem:[%s6262_s12 + $0x4638] sm:$0xff] }
 0x4d5   : > { %5760 = vmatpush.msrb.mxu2 %v2473_v25  ;;  %5779 = vmatpush.msrb.mxu3 %v2507_v26  ;;  %v2611_v25 = vld [vmem:[%s6262_s12 + $0x4798] sm:$0xff]  ;;  %v2645_v26 = vld [vmem:[%s6262_s12 + $0x48a8] sm:$0xff] }
 0x4d6   : > { %5721 = vmatpush.msrb.mxu0 %v2407_v10  ;;  %5740 = vmatpush.msrb.mxu1 %v2441_v34  ;;  %v4706_v10 = vpop.f32.mrf.mxu1  ;;  %v2545_v34 = vld [vmem:[%s6262_s12 + $0x4588] sm:$0xff]  ;;  %v2563_v41 = vld [vmem:[%s6262_s12 + $0x4618] sm:$0xff] }
 0x4d7   : > { %5761 = vmatpush.msrb.mxu2 %v2471_v46  ;;  %5780 = vmatpush.msrb.mxu3 %v2505_v20  ;;  %v2609_v46 = vld [vmem:[%s6262_s12 + $0x4788] sm:$0xff]  ;;  %v2643_v20 = vld [vmem:[%s6262_s12 + $0x4898] sm:$0xff] }
 0x4d8   : > { %5722 = vmatpush.msrb.mxu0 %v2405_v31  ;;  %5741 = vmatpush.msrb.mxu1 %v2439_v0  ;;  %v2543_v31 = vld [vmem:[%s6262_s12 + $0x4578] sm:$0xff]  ;;  %v2577_v0 = vld [vmem:[%s6262_s12 + $0x4688] sm:$0xff] }
 0x4d9   : > { %5762 = vmatpush.msrb.mxu2 %v2469_v22  ;;  %5781 = vmatpush.msrb.mxu3 %v2503_v30  ;;  %v4707_v22 = vadd.f32 %v4706_v10, %v4687_v59  ;;  %v2607_v30 = vld [vmem:[%s6262_s12 + $0x4778] sm:$0xff]  ;;  %v4766_v17 = vpop.f32.mrf.mxu0  ;;  %v2625_v39 = vld [vmem:[%s6262_s12 + $0x4808] sm:$0xff] }
 0x4da   : > { %5723 = vmatpush.msrb.mxu0 %v2403_v55  ;;  %5742 = vmatpush.msrb.mxu1 %v2437_v42  ;;  %v2641_v55 = vld [vmem:[%s6262_s12 + $0x4888] sm:$0xff]  ;;  %v2627_v33 = vld [vmem:[%s6262_s12 + $0x4818] sm:$0xff] }
 0x4db   : > { %5763 = vmatpush.msrb.mxu2 %v2467_v29  ;;  %5782 = vmatpush.msrb.mxu3 %v2501_v62  ;;  %v2541_v42 = vld [vmem:[%s6262_s12 + $0x4568] sm:$0xff]  ;;  %v4727_v29 = vadd.f32 %v4726_v7, %v4707_v22  ;;  %v6153_v15 = vld.sshfl [vmem:[#allocation1 + $0x38] sm:$0xff pattern:$0x73625140] }
 0x4dc   : > { %5724 = vmatpush.msrb.mxu0 %v2401_v1  ;;  %5743 = vmatpush.msrb.mxu1 %v2435_v18  ;;  %v2605_v62 = vld [vmem:[%s6262_s12 + $0x4768] sm:$0xff]  ;;  %v4746_v1 = vpop.f32.mrf.mxu3  ;;  %v2539_v18 = vld [vmem:[%s6262_s12 + $0x4558] sm:$0xff] }
 0x4dd   : > { %5764 = vmatpush.msrb.mxu2 %v2465_v21  ;;  %5783 = vmatpush.msrb.mxu3 %v2499_v51  ;;  %v2573_v21 = vld [vmem:[%s6262_s12 + $0x4668] sm:$0xff]  ;;  %v2603_v51 = vld [vmem:[%s6262_s12 + $0x4758] sm:$0xff] }
 0x4de   : > { %5725 = vmatmul.f32.vlgmr.msrb.gmra.mxu0 %v9179_v48  ;;  %5765 = vmatmul.f32.vlgmr.msrb.gmra.mxu2 %v9180_v49  ;;  %v2535_v48 = vld [vmem:[%s6262_s12 + $0x4538] sm:$0xff]  ;;  %v2569_v49 = vld [vmem:[%s6262_s12 + $0x4648] sm:$0xff] }
 0x4df   : > { %5789 = vmatpush.msra.mxu0 %v2559_v32  ;;  %5829 = vmatpush.msra.mxu2 %v2623_v11  ;;  %v2537_v32 = vld [vmem:[%s6262_s12 + $0x4548] sm:$0xff]  ;;  %v2571_v11 = vld [vmem:[%s6262_s12 + $0x4658] sm:$0xff] }
 0x4e0   : > { %5744 = vmatpush.msrb.mxu1 %v2433_v13  ;;  %5784 = vmatpush.msrb.mxu3 %v2497_v5  ;;  %v4747_v13 = vadd.f32 %v4746_v1, %v4727_v29  ;;  %v2601_v5 = vld [vmem:[%s6262_s12 + $0x4748] sm:$0xff]  ;;  %v2683_v59 = vld [vmem:[%s6262_s12 + $0x49d8] sm:$0xff] }
 0x4e1   : > { %5745 = vmatmul.f32.vlgmr.msrb.gmra.mxu1 %v9181_v35  ;;  %5785 = vmatmul.f32.vlgmr.msrb.gmra.mxu3 %v6151_v19  ;;  %v2597_v35 = vld [vmem:[%s6262_s12 + $0x4728] sm:$0xff]  ;;  %v2631_v19 = vld [vmem:[%s6262_s12 + $0x4838] sm:$0xff] }
 0x4e2   : > { %5790 = vmatpush.msra.mxu0 %v2557_v57  ;;  %5809 = vmatpush.msra.mxu1 %v2591_v27  ;;  %v4767_v63 = vadd.f32 %v4766_v17, %v4747_v13  ;;  %v2599_v57 = vld [vmem:[%s6262_s12 + $0x4738] sm:$0xff]  ;;  %v2633_v27 = vld [vmem:[%s6262_s12 + $0x4848] sm:$0xff] }
 0x4e3   : > { %5830 = vmatpush.msra.mxu2 %v2621_v28  ;;  %5849 = vmatpush.msra.mxu3 %v2655_v47  ;;  %v4786_v28 = vpop.f32.mrf.mxu1  ;;  %v2533_v47 = vld [vmem:[%s6262_s12 + $0x4528] sm:$0xff]  ;;  %v2679_v7 = vld [vmem:[%s6262_s12 + $0x49b8] sm:$0xff] }
 0x4e4   : > { %5791 = vmatpush.msra.mxu0 %v2555_v14  ;;  %5810 = vmatpush.msra.mxu1 %v2589_v36  ;;  %v4806_v14 = vpop.f32.mrf.mxu2  ;;  %v2531_v36 = vld [vmem:[%s6262_s12 + $0x4518] sm:$0xff]  ;;  %v2717_v10 = vld [vmem:[%s6262_s12 + $0x4ae8] sm:$0xff] }
 0x4e5   : > { %5831 = vmatpush.msra.mxu2 %v2619_v4  ;;  %5850 = vmatpush.msra.mxu3 %v2653_v52  ;;  %v4787_v4 = vadd.f32 %v4786_v28, %v4767_v63  ;;  %v2595_v52 = vld [vmem:[%s6262_s12 + $0x4718] sm:$0xff]  ;;  %v2677_v22 = vld [vmem:[%s6262_s12 + $0x49a8] sm:$0xff] }
 0x4e6   : > { %5792 = vmatpush.msra.mxu0 %v2553_v53  ;;  %5811 = vmatpush.msra.mxu1 %v2587_v40  ;;  %v2629_v53 = vld [vmem:[%s6262_s12 + $0x4828] sm:$0xff]  ;;  %v2707_v1 = vld [vmem:[%s6262_s12 + $0x4a98] sm:$0xff] }
 0x4e7   : > { %5832 = vmatpush.msra.mxu2 %v2617_v3  ;;  %5851 = vmatpush.msra.mxu3 %v2651_v54  ;;  %v2529_v40 = vld [vmem:[%s6262_s12 + $0x4508] sm:$0xff]  ;;  %v4807_v3 = vadd.f32 %v4806_v14, %v4787_v4 }
 0x4e8   : > { %5793 = vmatpush.msra.mxu0 %v2551_v45  ;;  %5812 = vmatpush.msra.mxu1 %v2585_v44  ;;  %v2593_v54 = vld [vmem:[%s6262_s12 + $0x4708] sm:$0xff]  ;;  %v4826_v45 = vpop.f32.mrf.mxu3  ;;  %v2687_v44 = vld [vmem:[%s6262_s12 + $0x49f8] sm:$0xff] }
 0x4e9   : > { %5833 = vmatpush.msra.mxu2 %v2615_v23  ;;  %5852 = vmatpush.msra.mxu3 %v2649_v2  ;;  %v2561_v23 = vld [vmem:[%s6262_s12 + $0x4608] sm:$0xff]  ;;  %v4846_v2 = vpop.f32.mrf.mxu0 }
 0x4ea   : > { %5794 = vmatpush.msra.mxu0 %v2549_v24  ;;  %5813 = vmatpush.msra.mxu1 %v2583_v50  ;;  %v4827_v24 = vadd.f32 %v4826_v45, %v4807_v3  ;;  %v6152_v50 = vld.sshfl [vmem:[#allocation1 + $0x28] sm:$0xff pattern:$0x73625140] }
 0x4eb   : > { %5834 = vmatpush.msra.mxu2 %v2613_v16  ;;  %5853 = vmatpush.msra.mxu3 %v2647_v37  ;;  %v2685_v16 = vld [vmem:[%s6262_s12 + $0x49e8] sm:$0xff]  ;;  %v2719_v37 = vld [vmem:[%s6262_s12 + $0x4af8] sm:$0xff] }
 0x4ec   : > { %5795 = vmatpush.msra.mxu0 %v2547_v6  ;;  %5814 = vmatpush.msra.mxu1 %v2581_v9  ;;  %v4847_v6 = vadd.f32 %v4846_v2, %v4827_v24  ;;  %v6154_v9 = vld.sshfl [vmem:[#allocation1 + $0x30] sm:$0xff pattern:$0x73625140]  ;;  %v2709_v29 = vld [vmem:[%s6262_s12 + $0x4aa8] sm:$0xff] }
 0x4ed   : > { %5835 = vmatpush.msra.mxu2 %v2611_v25  ;;  %5854 = vmatpush.msra.mxu3 %v2645_v26  ;;  %v4866_v25 = vpop.f32.mrf.mxu1  ;;  %v6155_v26 = vld.sshfl [vmem:[#allocation1] sm:$0xff pattern:$0x73625140]  ;;  %v2669_v17 = vld [vmem:[%s6262_s12 + $0x4968] sm:$0xff] }
 0x4ee   : > { %5796 = vmatpush.msra.mxu0 %v2545_v34  ;;  %5815 = vmatpush.msra.mxu1 %v2579_v43  ;;  %v2681_v34 = vld [vmem:[%s6262_s12 + $0x49c8] sm:$0xff]  ;;  %v4886_v43 = vpop.f32.mrf.mxu2 }
 0x4ef   : > { %5836 = vmatpush.msra.mxu2 %v2609_v46  ;;  %5855 = vmatpush.msra.mxu3 %v2643_v20  ;;  %v2715_v46 = vld [vmem:[%s6262_s12 + $0x4ad8] sm:$0xff]  ;;  %v4867_v20 = vadd.f32 %v4866_v25, %v4847_v6  ;;  %v2693_v4 = vld [vmem:[%s6262_s12 + $0x4a28] sm:$0xff] }
 0x4f0   : > { %5797 = vmatpush.msra.mxu0 %v2543_v31  ;;  %5816 = vmatpush.msra.mxu1 %v2577_v0  ;;  %v2713_v31 = vld [vmem:[%s6262_s12 + $0x4ac8] sm:$0xff] }
 0x4f1   : > { %5837 = vmatpush.msra.mxu2 %v2607_v30  ;;  %5856 = vmatpush.msra.mxu3 %v2641_v55  ;;  %v4887_v0 = vadd.f32 %v4886_v43, %v4867_v20  ;;  %v4906_v30 = vpop.f32.mrf.mxu3  ;;  %v2711_v55 = vld [vmem:[%s6262_s12 + $0x4ab8] sm:$0xff]  ;;  %v2689_v3 = vld [vmem:[%s6262_s12 + $0x4a08] sm:$0xff] }
 0x4f2   : > { %5798 = vmatpush.msra.mxu0 %v2541_v42  ;;  %5817 = vmatpush.msra.mxu1 %v2575_v8  ;;  %v2675_v42 = vld [vmem:[%s6262_s12 + $0x4998] sm:$0xff]  ;;  %v4926_v8 = vpop.f32.mrf.mxu0 }
 0x4f3   : > { %5838 = vmatpush.msra.mxu2 %v2605_v62  ;;  %5857 = vmatpush.msra.mxu3 %v2639_v56  ;;  %v4907_v62 = vadd.f32 %v4906_v30, %v4887_v0  ;;  %v2673_v56 = vld [vmem:[%s6262_s12 + $0x4988] sm:$0xff] }
 0x4f4   : > { %5799 = vmatpush.msra.mxu0 %v2539_v18  ;;  %5818 = vmatpush.msra.mxu1 %v2573_v21  ;;  %v2671_v21 = vld [vmem:[%s6262_s12 + $0x4978] sm:$0xff] }
 0x4f5   : > { %5839 = vmatpush.msra.mxu2 %v2603_v51  ;;  %5858 = vmatpush.msra.mxu3 %v2637_v58  ;;  %v4927_v18 = vadd.f32 %v4926_v8, %v4907_v62  ;;  %v4946_v51 = vpop.f32.mrf.mxu1  ;;  %v2705_v58 = vld [vmem:[%s6262_s12 + $0x4a88] sm:$0xff] }
 0x4f6   : > { %5800 = vmatpush.msra.mxu0 %v2537_v32  ;;  %5819 = vmatpush.msra.mxu1 %v2571_v11  ;;  %v4966_v32 = vpop.f32.mrf.mxu2  ;;  %v2703_v11 = vld [vmem:[%s6262_s12 + $0x4a78] sm:$0xff] }
 0x4f7   : > { %5840 = vmatpush.msra.mxu2 %v2601_v5  ;;  %5859 = vmatpush.msra.mxu3 %v2635_v12  ;;  %v4947_v13 = vadd.f32 %v4946_v51, %v4927_v18  ;;  %v2667_v5 = vld [vmem:[%s6262_s12 + $0x4958] sm:$0xff]  ;;  %v2701_v12 = vld [vmem:[%s6262_s12 + $0x4a68] sm:$0xff] }
 0x4f8   : > { %5801 = vmatpush.msra.mxu0 %v2535_v48  ;;  %5820 = vmatpush.msra.mxu1 %v2569_v49  ;;  %v2665_v49 = vld [vmem:[%s6262_s12 + $0x4948] sm:$0xff] }
 0x4f9   : > { %5841 = vmatpush.msra.mxu2 %v2599_v57  ;;  %5860 = vmatpush.msra.mxu3 %v2633_v27  ;;  %v4967_v48 = vadd.f32 %v4966_v32, %v4947_v13  ;;  %v4986_v63 = vpop.f32.mrf.mxu3  ;;  %v2699_v57 = vld [vmem:[%s6262_s12 + $0x4a58] sm:$0xff] }
 0x4fa   : > { %5802 = vmatpush.msra.mxu0 %v2533_v47  ;;  %5821 = vmatpush.msra.mxu1 %v2567_v38  ;;  %v2663_v27 = vld [vmem:[%s6262_s12 + $0x4938] sm:$0xff]  ;;  %v5006_v28 = vpop.f32.mrf.mxu0  ;;  %v2697_v47 = vld [vmem:[%s6262_s12 + $0x4a48] sm:$0xff] }
 0x4fb   : > { %5842 = vmatpush.msra.mxu2 %v2597_v35  ;;  %5861 = vmatpush.msra.mxu3 %v2631_v19  ;;  %v4987_v38 = vadd.f32 %v4986_v63, %v4967_v48  ;;  %v2661_v35 = vld [vmem:[%s6262_s12 + $0x4928] sm:$0xff]  ;;  %v2695_v19 = vld [vmem:[%s6262_s12 + $0x4a38] sm:$0xff] }
 0x4fc   : > { %5803 = vmatpush.msra.mxu0 %v2531_v36  ;;  %5822 = vmatpush.msra.mxu1 %v2565_v61  ;;  %v2659_v36 = vld [vmem:[%s6262_s12 + $0x4918] sm:$0xff] }
 0x4fd   : > { %5843 = vmatpush.msra.mxu2 %v2595_v52  ;;  %5862 = vmatpush.msra.mxu3 %v2629_v53  ;;  %v5007_v14 = vadd.f32 %v5006_v28, %v4987_v38  ;;  %v5026_v61 = vpop.f32.mrf.mxu1  ;;  %v2657_v52 = vld [vmem:[%s6262_s12 + $0x4908] sm:$0xff] }
 0x4fe   : > { %5804 = vmatpush.msra.mxu0 %v2529_v40  ;;  %5823 = vmatpush.msra.mxu1 %v2563_v41  ;;  %v5046_v53 = vpop.f32.mrf.mxu2  ;;  %v2691_v40 = vld [vmem:[%s6262_s12 + $0x4a18] sm:$0xff] }
 0x4ff   : > { %5844 = vmatpush.msra.mxu2 %v2593_v54  ;;  %5863 = vmatpush.msra.mxu3 %v2627_v33  ;;  %v5027_v41 = vadd.f32 %v5026_v61, %v5007_v14  ;;  %v6156_v33 = vld.sshfl [vmem:[#allocation1 + $0x8] sm:$0xff pattern:$0x73625140] }
 0x500   : > { %5805 = vmatmul.f32.vlgmr.msra.gmra.mxu0 %v6152_v50  ;;  %5845 = vmatmul.f32.vlgmr.msra.gmra.mxu2 %v6153_v15 }
 0x501   : > { %5869 = vmatpush.msrb.mxu0 %v2687_v44  ;;  %5824 = vmatpush.msra.mxu1 %v2561_v23  ;;  %v5047_v54 = vadd.f32 %v5046_v53, %v5027_v41  ;;  %v5066_v45 = vpop.f32.mrf.mxu3  ;;  %v6157_v23 = vld.sshfl [vmem:[#allocation1 + $0x10] sm:$0xff pattern:$0x73625140] }
 0x502   : > { %5864 = vmatpush.msra.mxu3 %v2625_v39  ;;  %5825 = vmatmul.f32.vlgmr.msra.gmra.mxu1 %v6154_v9  ;;  %v5086_v44 = vpop.f32.mrf.mxu0 }
 0x503   : > { %5865 = vmatmul.f32.vlgmr.msra.gmra.mxu3 %v6155_v26  ;;  %5870 = vmatpush.msrb.mxu0 %v2685_v16  ;;  %v5067_v2 = vadd.f32 %v5066_v45, %v5047_v54 }
 0x504   : > { %5889 = vmatpush.msrb.mxu1 %v2719_v37 }
 0x505   : > { %5871 = vmatpush.msrb.mxu0 %v2683_v59  ;;  %v5087_v39 = vadd.f32 %v5086_v44, %v5067_v2  ;;  %v5106_v24 = vpop.f32.mrf.mxu1 }
 0x506   : > { %5890 = vmatpush.msrb.mxu1 %v2717_v10  ;;  %v5126_v50 = vpop.f32.mrf.mxu2 }
 0x507   : > { %5872 = vmatpush.msrb.mxu0 %v2681_v34  ;;  %v5107_v15 = vadd.f32 %v5106_v24, %v5087_v39 }
 0x508   : > { %5891 = vmatpush.msrb.mxu1 %v2715_v46 }
 0x509   : > { %5873 = vmatpush.msrb.mxu0 %v2679_v7  ;;  %v5127_v16 = vadd.f32 %v5126_v50, %v5107_v15  ;;  %v5146_v37 = vpop.f32.mrf.mxu3 }
 0x50a   : > { %5892 = vmatpush.msrb.mxu1 %v2713_v31  ;;  %v5166_v6 = vpop.f32.mrf.mxu0 }
 0x50b   : > { %5874 = vmatpush.msrb.mxu0 %v2677_v22  ;;  %v5147_v9 = vadd.f32 %v5146_v37, %v5127_v16 }
 0x50c   : > { %5893 = vmatpush.msrb.mxu1 %v2711_v55 }
 0x50d   : > { %5875 = vmatpush.msrb.mxu0 %v2675_v42  ;;  %v5167_v59 = vadd.f32 %v5166_v6, %v5147_v9  ;;  %v5186_v25 = vpop.f32.mrf.mxu1 }
 0x50e   : > { %5894 = vmatpush.msrb.mxu1 %v2709_v29  ;;  %v5206_v26 = vpop.f32.mrf.mxu2 }
 0x50f   : > { %5876 = vmatpush.msrb.mxu0 %v2673_v56  ;;  %v5187_v10 = vadd.f32 %v5186_v25, %v5167_v59 }
 0x510   : > { %5895 = vmatpush.msrb.mxu1 %v2707_v1 }
 0x511   : > { %5877 = vmatpush.msrb.mxu0 %v2671_v21  ;;  %v5207_v34 = vadd.f32 %v5206_v26, %v5187_v10  ;;  %v5226_v43 = vpop.f32.mrf.mxu3 }
 0x512   : > { %5896 = vmatpush.msrb.mxu1 %v2705_v58  ;;  %v5246_v46 = vpop.f32.mrf.mxu0 }
 0x513   : > { %5878 = vmatpush.msrb.mxu0 %v2669_v17  ;;  %v5227_v20 = vadd.f32 %v5226_v43, %v5207_v34 }
 0x514   : > { %5897 = vmatpush.msrb.mxu1 %v2703_v11 }
 0x515   : > { %5879 = vmatpush.msrb.mxu0 %v2667_v5  ;;  %v5247_v7 = vadd.f32 %v5246_v46, %v5227_v20  ;;  %v5266_v31 = vpop.f32.mrf.mxu1 }
 0x516   : > { %5898 = vmatpush.msrb.mxu1 %v2701_v12  ;;  %v5286_v0 = vpop.f32.mrf.mxu2 }
 0x517   : > { %5880 = vmatpush.msrb.mxu0 %v2665_v49  ;;  %v5267_v22 = vadd.f32 %v5266_v31, %v5247_v7 }
 0x518   : > { %5899 = vmatpush.msrb.mxu1 %v2699_v57 }
 0x519   : > { %5881 = vmatpush.msrb.mxu0 %v2663_v27  ;;  %v5287_v30 = vadd.f32 %v5286_v0, %v5267_v22  ;;  %v5306_v55 = vpop.f32.mrf.mxu3 }
 0x51a   : > { %5900 = vmatpush.msrb.mxu1 %v2697_v47  ;;  %v5326_v42 = vpop.f32.mrf.mxu0 }
 0x51b   : > { %5882 = vmatpush.msrb.mxu0 %v2661_v35  ;;  %v5307_v8 = vadd.f32 %v5306_v55, %v5287_v30  ;;  %v300_v30 = vld [vmem:[#allocation2] sm:$0xf] }
 0x51c   : > { %5901 = vmatpush.msrb.mxu1 %v2695_v19 }
 0x51d   : > { %5883 = vmatpush.msrb.mxu0 %v2659_v36  ;;  %v5327_v29 = vadd.f32 %v5326_v42, %v5307_v8  ;;  %v5346_v62 = vpop.f32.mrf.mxu1 }
 0x51e   : > { %5902 = vmatpush.msrb.mxu1 %v2693_v4  ;;  %v5366_v56 = vpop.f32.mrf.mxu2 }
 0x51f   : > { %5884 = vmatpush.msrb.mxu0 %v2657_v52  ;;  %v5347_v1 = vadd.f32 %v5346_v62, %v5327_v29 }
 0x520   : > { %5903 = vmatpush.msrb.mxu1 %v2691_v40  ;;  %5885 = vmatmul.f32.vlgmr.msrb.gmra.mxu0 %v6156_v33 }
 0x521   : > { %v5367_v18 = vadd.f32 %v5366_v56, %v5347_v1  ;;  %v5386_v21 = vpop.f32.mrf.mxu3 }
 0x522   : > { %5904 = vmatpush.msrb.mxu1 %v2689_v3  ;;  %v5406_v51 = vpop.f32.mrf.mxu0 }
 0x523   : > { %5905 = vmatmul.f32.vlgmr.msrb.gmra.mxu1 %v6157_v23  ;;  %v5387_v58 = vadd.f32 %v5386_v21, %v5367_v18 }
 0x525   : > { %v5407_v17 = vadd.f32 %v5406_v51, %v5387_v58  ;;  %v5426_v32 = vpop.f32.mrf.mxu1 }
 0x526   : > { %v5446_v11 = vpop.f32.mrf.mxu2 }
 0x527   : > { %v5427_v13 = vadd.f32 %v5426_v32, %v5407_v17 }
 0x529   : > { %v5447_v5 = vadd.f32 %v5446_v11, %v5427_v13  ;;  %v5466_v12 = vpop.f32.mrf.mxu3 }
 0x52a   : > { %v5486_v48 = vpop.f32.mrf.mxu0 }
 0x52b   : > { %v5467_v49 = vadd.f32 %v5466_v12, %v5447_v5 }
 0x52d   : > { %v5487_v63 = vadd.f32 %v5486_v48, %v5467_v49  ;;  %v5506_v57 = vpop.f32.mrf.mxu1 }
 0x52e   : > { %v5526_v27 = vpop.f32.mrf.mxu2 }
 0x52f   : > { %v5507_v28 = vadd.f32 %v5506_v57, %v5487_v63 }
 0x531   : > { %v5527_v47 = vadd.f32 %v5526_v27, %v5507_v28  ;;  %v5546_v38 = vpop.f32.mrf.mxu3 }
 0x532   : > { %v5566_v35 = vpop.f32.mrf.mxu0 }
 0x533   : > { %v5547_v19 = vadd.f32 %v5546_v38, %v5527_v47 }
 0x535   : > { %v5567_v14 = vadd.f32 %v5566_v35, %v5547_v19  ;;  %v5586_v36 = vpop.f32.mrf.mxu1 }
 0x536   : > { %v5606_v61 = vpop.f32.mrf.mxu2 }
 0x537   : > { %v5587_v4 = vadd.f32 %v5586_v36, %v5567_v14 }
 0x539   : > { %v5607_v52 = vadd.f32 %v5606_v61, %v5587_v4  ;;  %v5626_v53 = vpop.f32.mrf.mxu3 }
 0x53a   : > { %v5646_v40 = vpop.f32.mrf.mxu0 }
 0x53b   : > { %v5627_v41 = vadd.f32 %v5626_v53, %v5607_v52 }
 0x53d   : > { %v5647_v3 = vadd.f32 %v5646_v40, %v5627_v41  ;;  %v5666_v54 = vpop.f32.mrf.mxu1 }
 0x53f   : > { %v5686_v33 = vpop.f32.mrf.mxu2  ;;  %v5667_v45 = vadd.f32 %v5666_v54, %v5647_v3 }
 0x541   : > { %v5687_v44 = vadd.f32 %v5686_v33, %v5667_v45 }
 0x542   : > { %v5706_v23 = vpop.f32.mrf.mxu3 }
 0x543   : > { %v5707_v39 = vadd.f32 %v5706_v23, %v5687_v44 }
 0x55b   : > { %v5726_v2 = vpop.f32.mrf.mxu0 }
 0x55c   : > { %v5727_v24 = vadd.f32 %v5726_v2, %v5707_v39 }
 0x55e   : > { %v5746_v50 = vpop.f32.mrf.mxu1 }
 0x55f   : > { %v5747_v16 = vadd.f32 %v5746_v50, %v5727_v24 }
 0x561   : > { %v5766_v15 = vpop.f32.mrf.mxu2 }
 0x562   : > { %v5767_v37 = vadd.f32 %v5766_v15, %v5747_v16 }
 0x564   : > { %v5786_v6 = vpop.f32.mrf.mxu3 }
 0x565   : > { %v5787_v59 = vadd.f32 %v5786_v6, %v5767_v37 }
 0x57d   : > { %v5806_v9 = vpop.f32.mrf.mxu0 }
 0x57e   : > { %v5807_v25 = vadd.f32 %v5806_v9, %v5787_v59 }
 0x57f   : > { %v5826_v26 = vpop.f32.mrf.mxu1 }
 0x580   : > { %v5827_v34 = vadd.f32 %v5826_v26, %v5807_v25 }
 0x583   : > { %v5846_v10 = vpop.f32.mrf.mxu2 }
 0x584   : > { %v5847_v43 = vadd.f32 %v5846_v10, %v5827_v34 }
 0x586   : > { %v5866_v46 = vpop.f32.mrf.mxu3 }
 0x587   : > { %v5867_v20 = vadd.f32 %v5866_v46, %v5847_v43 }
 0x59d   : > { %v5886_v7 = vpop.f32.mrf.mxu0 }
 0x59e   : > { %v5887_v31 = vadd.f32 %v5886_v7, %v5867_v20 }
 0x5a0   : > { %v5906_v0 = vpop.f32.mrf.mxu1 }
 0x5a1   : > { %v5907_v22 = vadd.f32 %v5906_v0, %v5887_v31 }
 0x5a3   : > { %v5911_v55 = vrot.slane %v5907_v22, 6 }
 0x5a4   : > { %5922 = sbr.rel (%p6126_p6) target bundleno = 1748 (0x6d4), region = 56 }
 0x5a5   : > { %v5913_v42 = vsel %vm5912_vm3, %v7986_v60, %v5911_v55 }
 0x5a6   : > { %v5915_v8 = vadd.f32 %v5913_v42, %v300_v30 }
 0x5a8   : > { %5918 = vst.msk [vmem:[#allocation2] sm:$0xf] %vm5917_vm5, %v5915_v8 }
 0x5a9   : > { %v5948_v29 = vld [vmem:[%s9110_s2 + $0x78] sm:$0xff]  ;;  %v5947_v62 = vld [vmem:[%s9110_s2 + $0x70] sm:$0xff]  ;;  %v5946_v60 = vld [vmem:[%s9110_s2 + $0x68] sm:$0xff]  ;;  %vm6032_vm6 = vcmask 1043456   ;;  %vm5967_vm7 = vcmask 588800   ;;  %vm6028_vm8 = vcmask 818176  }
 0x5aa   : > { %5970 = vmatpush.msra.mxu0 %v5948_v29  ;;  %v5957_v56 = vld [vmem:[%s9110_s2 + $0xc0] sm:$0xff]  ;;  %v5956_v1 = vld [vmem:[%s9110_s2 + $0xb8] sm:$0xff]  ;;  %v5955_v21 = vld [vmem:[%s9110_s2 + $0xb0] sm:$0xff]  ;;  %vm6056_vm9 = vcmask 214016  }
 0x5ab   : > { %v5945_v18 = vld [vmem:[%s9110_s2 + $0x60] sm:$0xff]  ;;  %5997 = vmatpush.msra.mxu1 %v5957_v56  ;;  %v5944_v51 = vld [vmem:[%s9110_s2 + $0x58] sm:$0xff]  ;;  %v5954_v58 = vld [vmem:[%s9110_s2 + $0xa8] sm:$0xff] }
 0x5ac   : > { %5971 = vmatpush.msra.mxu0 %v5947_v62  ;;  %v5943_v17 = vld [vmem:[%s9110_s2 + $0x50] sm:$0xff]  ;;  %v5924_v32 = vld [vmem:[%s9112_s4] sm:$0x3]  ;;  %v6022_v48 = vld [vmem:[%s9111_s3 + $0x58] sm:$0xff] }
 0x5ad   : > { %5998 = vmatpush.msra.mxu1 %v5956_v1  ;;  %v5953_v11 = vld [vmem:[%s9110_s2 + $0xa0] sm:$0xff]  ;;  %v5926_v13 = vperm.slane %v5924_v32, 0  ;;  %v5927_v5 = vperm.slane %v5924_v32, 1  ;;  %v5942_v49 = vld [vmem:[%s9110_s2 + $0x48] sm:$0xff]  ;;  %v5952_v63 = vld [vmem:[%s9110_s2 + $0x98] sm:$0xff] }
 0x5ae   : > { %5972 = vmatpush.msra.mxu0 %v5946_v60  ;;  %v6023_v12 = vld [vmem:[%s9111_s3 + $0x60] sm:$0xf]  ;;  %v6021_v28 = vld [vmem:[%s9111_s3 + $0x50] sm:$0xff]  ;;  %v6020_v19 = vld [vmem:[%s9111_s3 + $0x48] sm:$0xff] }
 0x5af   : > { %5999 = vmatpush.msra.mxu1 %v5955_v21  ;;  %6128 = vmatpush.msk.msra.mxu2 %vm6032_vm6, %v6023_v12  ;;  %v5923_v57 = vld [vmem:[#allocation2] sm:$0xf]  ;;  %v5928_v27 = vrot.slane %v5927_v5, 6  ;;  %v5941_v47 = vld [vmem:[%s9110_s2 + $0x40] sm:$0xff]  ;;  %v5951_v38 = vld [vmem:[%s9110_s2 + $0x90] sm:$0xff] }
 0x5b0   : > { %5973 = vmatpush.msra.mxu0 %v5945_v18  ;;  %v5940_v14 = vld [vmem:[%s9110_s2 + $0x38] sm:$0xff]  ;;  %v5950_v61 = vld [vmem:[%s9110_s2 + $0x88] sm:$0xff]  ;;  %v6019_v4 = vld [vmem:[%s9111_s3 + $0x40] sm:$0xff] }
 0x5b1   : > { %6000 = vmatpush.msra.mxu1 %v5954_v58  ;;  %6040 = vmatpush.msra.mxu2 %v6022_v48  ;;  %v5929_v35 = vsel %vm5912_vm3, %v5926_v13, %v5928_v27  ;;  %v5939_v52 = vld [vmem:[%s9110_s2 + $0x30] sm:$0xff]  ;;  %v5949_v40 = vld [vmem:[%s9110_s2 + $0x80] sm:$0xff]  ;;  %v6018_v41 = vld [vmem:[%s9111_s3 + $0x38] sm:$0xff] }
 0x5b2   : > { %5974 = vmatpush.msra.mxu0 %v5944_v51  ;;  %v5931_v36 = vadd.f32 %v5929_v35, %v5923_v57  ;;  %v5938_v3 = vld [vmem:[%s9110_s2 + $0x28] sm:$0xff]  ;;  %v6017_v54 = vld [vmem:[%s9111_s3 + $0x30] sm:$0xff]  ;;  %v5937_v33 = vld [vmem:[%s9110_s2 + $0x20] sm:$0xff] }
 0x5b3   : > { %6001 = vmatpush.msra.mxu1 %v5953_v11  ;;  %6041 = vmatpush.msra.mxu2 %v6021_v28  ;;  %v6016_v45 = vld [vmem:[%s9111_s3 + $0x28] sm:$0xff]  ;;  %v5936_v44 = vld [vmem:[%s9110_s2 + $0x18] sm:$0xff]  ;;  %v6015_v23 = vld [vmem:[%s9111_s3 + $0x20] sm:$0xff] }
 0x5b4   : > { %5975 = vmatpush.msra.mxu0 %v5943_v17  ;;  %v5932_v53 = vmax.f32 %v5931_v36, 0.0  ;;  %v5935_v2 = vld [vmem:[%s9110_s2 + $0x10] sm:$0xff]  ;;  %v5934_v24 = vld [vmem:[%s9110_s2 + $0x8] sm:$0xff]  ;;  %v5933_v50 = vld [vmem:[%s9110_s2] sm:$0xff] }
 0x5b5   : > { %6002 = vmatpush.msra.mxu1 %v5952_v63  ;;  %6042 = vmatpush.msra.mxu2 %v6020_v19  ;;  %v6014_v16 = vld [vmem:[%s9111_s3 + $0x18] sm:$0xff]  ;;  %v6013_v37 = vld [vmem:[%s9111_s3 + $0x10] sm:$0xff]  ;;  %v6012_v6 = vld [vmem:[%s9111_s3 + $0x8] sm:$0xff] }
 0x5b6   : > { %5976 = vmatpush.msra.mxu0 %v5942_v49  ;;  %5963 = vst [vmem:[#allocation1] ss:$4 sm:$0xff] %v5932_v53  ;;  %v6011_v9 = vld [vmem:[%s9111_s3] sm:$0xff] }
 0x5b7   : > { %6003 = vmatpush.msra.mxu1 %v5951_v38  ;;  %6043 = vmatpush.msra.mxu2 %v6019_v4  ;;  %v6158_v59 = vld [vmem:[%s9113_s5] ss:$0 sm:$0xff] }
 0x5b8   : > { %5977 = vmatpush.msra.mxu0 %v5941_v47  ;;  %v6159_v46 = vld [vmem:[%s9114_s6] ss:$0 sm:$0xff] }
 0x5b9   : > { %6004 = vmatpush.msra.mxu1 %v5950_v61  ;;  %6044 = vmatpush.msra.mxu2 %v6018_v41 }
 0x5ba   : > { %5978 = vmatpush.msra.mxu0 %v5940_v14 }
 0x5bb   : > { %6005 = vmatpush.msra.mxu1 %v5949_v40  ;;  %6045 = vmatpush.msra.mxu2 %v6017_v54 }
 0x5bc   : > { %5979 = vmatpush.msra.mxu0 %v5939_v52 }
 0x5bd   : > { %6046 = vmatpush.msra.mxu2 %v6016_v45  ;;  %v5965_v39 = vld.sshfl [vmem:[#allocation1 + $0x8] sm:$0xff pattern:$0x73625140]  ;;  %v5964_v15 = vld.sshfl [vmem:[#allocation1] sm:$0xff pattern:$0x73625140] }
 0x5be   : > { %5980 = vmatpush.msra.mxu0 %v5938_v3  ;;  %6127 = vmatmul.msk.f32.vlgmr.msra.gmra.mxu1 %vm5967_vm7, %v5965_v39 }
 0x5bf   : > { %6047 = vmatpush.msra.mxu2 %v6015_v23 }
 0x5c0   : > { %5981 = vmatpush.msra.mxu0 %v5937_v33 }
 0x5c1   : > { %6048 = vmatpush.msra.mxu2 %v6014_v16 }
 0x5c2   : > { %5982 = vmatpush.msra.mxu0 %v5936_v44 }
 0x5c3   : > { %6049 = vmatpush.msra.mxu2 %v6013_v37 }
 0x5c4   : > { %5983 = vmatpush.msra.mxu0 %v5935_v2 }
 0x5c5   : > { %6050 = vmatpush.msra.mxu2 %v6012_v6 }
 0x5c6   : > { %5984 = vmatpush.msra.mxu0 %v5934_v24 }
 0x5c7   : > { %6051 = vmatpush.msra.mxu2 %v6011_v9 }
 0x5c8   : > { %5985 = vmatpush.msra.mxu0 %v5933_v50 }
 0x5c9   : > { %5986 = vmatmul.f32.vlgmr.msra.gmra.mxu0 %v5964_v15 }
 0x63b   : > { %v6007_v26 = vpop.f32.mrf.mxu1 }
 0x646   : > { %v5987_v25 = vpop.f32.mrf.mxu0 }
 0x647   : > { %v5988_v10 = vadd.f32 %v6158_v59, %v5987_v25 }
 0x649   : > { %v6008_v34 = vadd.f32 %v6007_v26, %v5988_v10 }
 0x64b   : > { %v6010_v43 = vmax.f32 %v6008_v34, 0.0 }
 0x64d   : > { %6129 = vmatmul.msk.f32.vlgmr.msra.gmra.mxu2 %vm6028_vm8, %v6010_v43 }
 0x6d0   : > { %v6053_v20 = vpop.f32.mrf.mxu2 }
 0x6d1   : > { %v6054_v7 = vadd.f32 %v6159_v46, %v6053_v20 }
 0x6d3   : > { %6057 = vst.msk [vmem:[#allocation3] sm:$0x3] %vm6056_vm9, %v6054_v7 }
 0x6d4 PF: > { %p6139_p7 = scmp.eq.s32.totalorder %s6248_s25, 4  ;;  %s6201_s11 = smov [#allocation3]  }
 0x6d5   : > { %s6064_s12 = sshll.u32 %s6201_s11, 4  ;;  %s6066_s15 = sshll.u32 %s9115_s7, 4  ;;  %s6065_s12 = int_to_ptr.vmem [resolvable:$true] %s6064_s12  ;;  %s6067_s15 = int_to_ptr.hbm [resolvable:$true] %s6066_s15 }
 0x6d6   : > { %6136 = dma.vmem_to_hbm [thread:$0]  (%p6139_p7), %s6065_s12, 32, %s6067_s15, [#allocation4]  }
 0x6d7   : > { %6193 = dma.done.wait (%p6139_p7), [#allocation4], 32  }
 0x6d8   : > { %6195 = vsyncadd (%p6139_p7), [#allocation4], 4294967264 }
 0x6d9 PF: > { %s18_s24 = sadd.s32 1, %s6198_s24  }
 0x6da   : > { %p15_p8 = scmp.ge.s32.totalorder %s18_s24, 7  }
 0x6dc   :  { %17 = sbr.rel (!%p15_p8) target bundleno = 1 (0x1), region = 87 }
 0x6e1   :  { %6080 = vsyncpa [#allocation4], 1 }
 0x6e2   :  { %6082 = vsyncpa [#allocation4 + $0x1], 1 }

</bundles_post_ra>
